<compile_context>
chip_gen: v7x
topology: tpu7x:2x2x1
jax: 0.10.0
libtpu: 0.0.40
codegen_flags: <defaults>
</compile_context>

<pallas_src>
import functools

import jax
import jax.numpy as jnp
from jax import lax
from jax.experimental import pallas as pl
from jax.experimental.pallas import tpu as pltpu


# ----------------------------------------------------------------------------
# Fused kernel: one grid step == one batch image.
# ----------------------------------------------------------------------------
def _fused_kernel(x_ref, f_ref, wq_ref, sq_ref, bq_ref,
                  wkv_ref, skv_ref, bkv_ref, wm_ref, sm_ref, bm_ref,
                  o_ref, xpad_ref, fpad_ref, cpad_ref, *, H, W, C):
    HW = H * W
    inv_sqrt_d = 1.0 / (W ** 0.5)        # torch: 1/sqrt(Query_features.size(3))

    x = x_ref[0]                         # (H, W, C)  original input_feature
    f = f_ref[0]                         # (H, W, C)  features

    def pad_into(pad_ref, val):
        # 1-pixel spatial zero pad, kept in a VMEM scratch buffer.
        pad_ref[...] = jnp.zeros_like(pad_ref)
        pad_ref[1:H + 1, 1:W + 1, :] = val

    def im2col(pad_ref, cin):
        # (H+2, W+2, cin) padded buffer -> (H*W, 9*cin) patch matrix.
        cols = [pad_ref[kh:kh + H, kw:kw + W, :].reshape(HW, cin)
                for kh in range(3) for kw in range(3)]
        return jnp.concatenate(cols, axis=-1)

    def conv_bn_relu(pad_ref, cin, w_ref, s_ref, b_ref):
        y = jnp.dot(im2col(pad_ref, cin), w_ref[...],
                    preferred_element_type=jnp.float32)
        return jnp.maximum(y * s_ref[...] + b_ref[...], 0.0)

    # ---- Q conv and fused K/V conv (K,V share one matmul, Cout = 2C) -------
    pad_into(xpad_ref, x)
    q = conv_bn_relu(xpad_ref, C, wq_ref, sq_ref, bq_ref)          # (HW, C)
    pad_into(fpad_ref, f)
    kv = conv_bn_relu(fpad_ref, C, wkv_ref, skv_ref, bkv_ref)      # (HW, 2C)
    k = kv[:, :C]
    v = kv[:, C:]

    # ---- channel attention, batched over image rows h -----------------------
    # torch: QK = einsum('nlhd,nshd->nlsh'); softmax over s; einsum('nlsh,nshd->nlhd')
    q_hld = jnp.swapaxes(q.reshape(H, W, C), 1, 2)                 # (H, C, W)
    k_hsd = jnp.swapaxes(k.reshape(H, W, C), 1, 2)                 # (H, C, W)
    v_hsd = jnp.swapaxes(v.reshape(H, W, C), 1, 2)                 # (H, C, W)
    qk = jnp.einsum('hld,hsd->hls', q_hld, k_hsd,
                    preferred_element_type=jnp.float32) * inv_sqrt_d  # (H, C, C)
    qk_max = jnp.max(qk, axis=-1, keepdims=True)
    e = jnp.exp(qk - qk_max)
    a = e / jnp.sum(e, axis=-1, keepdims=True)                     # softmax over s
    qv = jnp.einsum('hls,hsd->hld', a, v_hsd,
                    preferred_element_type=jnp.float32)            # (H, C, W)
    qv_hwc = jnp.swapaxes(qv, 1, 2)                                # (H, W, C)

    # ---- mlp conv on concat([input, queried_values]) + residual -------------
    cat = jnp.concatenate([x, qv_hwc], axis=-1)                    # (H, W, 2C)
    pad_into(cpad_ref, cat)
    msg = conv_bn_relu(cpad_ref, 2 * C, wm_ref, sm_ref, bm_ref)    # (HW, C)

    out = x.reshape(HW, C) + msg
    o_ref[...] = out.reshape(1, H, W, C).astype(o_ref.dtype)


# ----------------------------------------------------------------------------
# Wrapper: NCHW <-> NHWC, weight packing, BN folding, pallas_call.
# ----------------------------------------------------------------------------
def cross_transformer_backbone_forward(input_feature, features, params,
                                        eps=1e-5):
    """input_feature, features: (N, C, H, W) float32 -> (N, C, H, W)."""
    N, C, H, W = input_feature.shape
    assert features.shape == (N, C, H, W)

    x = jnp.transpose(input_feature.astype(jnp.float32), (0, 2, 3, 1))  # NHWC
    f = jnp.transpose(features.astype(jnp.float32), (0, 2, 3, 1))

    def pack_w(w):
        # torch (Cout, Cin, 3, 3) -> lane-dense (9*Cin, Cout), rows (kh, kw, cin)
        cout = w.shape[0]
        return jnp.transpose(w, (2, 3, 1, 0)).reshape(-1, cout)

    def fold_bn(gamma, beta, mean, var, conv_bias=None):
        scale = gamma / jnp.sqrt(var + eps)
        bias = beta - mean * scale
        if conv_bias is not None:
            bias = bias + conv_bias * scale
        return (scale[None, :].astype(jnp.float32),
                bias[None, :].astype(jnp.float32))

    wq = pack_w(params['w0'])
    sq, bq = fold_bn(params['g0'], params['be0'], params['m0'], params['v0'],
                     params['b0'])
    # K and V convs read the same input -> one fused matmul with Cout = 2C.
    wkv = jnp.concatenate([pack_w(params['w1']), pack_w(params['w2'])], axis=1)
    sk, bk = fold_bn(params['g1'], params['be1'], params['m1'], params['v1'])
    sv, bv = fold_bn(params['g2'], params['be2'], params['m2'], params['v2'])
    skv = jnp.concatenate([sk, sv], axis=1)
    bkv = jnp.concatenate([bk, bv], axis=1)
    wm = pack_w(params['wm'])
    sm, bm = fold_bn(params['gm'], params['bem'], params['mm'], params['vm'])

    kern = functools.partial(_fused_kernel, H=H, W=W, C=C)
    out_nhwc = pl.pallas_call(
        kern,
        out_shape=jax.ShapeDtypeStruct((N, H, W, C), jnp.float32),
        grid_spec=pltpu.PrefetchScalarGridSpec(
            num_scalar_prefetch=0,
            grid=(N,),
            in_specs=[
                pl.BlockSpec((1, H, W, C), lambda n: (n, 0, 0, 0)),   # input
                pl.BlockSpec((1, H, W, C), lambda n: (n, 0, 0, 0)),   # features
                pl.BlockSpec((9 * C, C), lambda n: (0, 0)),           # wq
                pl.BlockSpec((1, C), lambda n: (0, 0)),               # sq
                pl.BlockSpec((1, C), lambda n: (0, 0)),               # bq
                pl.BlockSpec((9 * C, 2 * C), lambda n: (0, 0)),       # wkv
                pl.BlockSpec((1, 2 * C), lambda n: (0, 0)),           # skv
                pl.BlockSpec((1, 2 * C), lambda n: (0, 0)),           # bkv
                pl.BlockSpec((18 * C, C), lambda n: (0, 0)),          # wm
                pl.BlockSpec((1, C), lambda n: (0, 0)),               # sm
                pl.BlockSpec((1, C), lambda n: (0, 0)),               # bm
            ],
            out_specs=pl.BlockSpec((1, H, W, C), lambda n: (n, 0, 0, 0)),
            scratch_shapes=[
                pltpu.VMEM((H + 2, W + 2, C), jnp.float32),      # padded input
                pltpu.VMEM((H + 2, W + 2, C), jnp.float32),      # padded features
                pltpu.VMEM((H + 2, W + 2, 2 * C), jnp.float32),  # padded concat
            ],
        ),
        compiler_params=pltpu.CompilerParams(
            dimension_semantics=("parallel",),
            vmem_limit_bytes=48 * 1024 * 1024,
        ),
    )(x, f, wq, sq, bq, wkv, skv, bkv, wm, sm, bm)

    return jnp.transpose(out_nhwc, (0, 3, 1, 2))                     # -> NCHW


# ----------------------------------------------------------------------------
# Pure-JAX reference (XLA convs / einsums) for a correctness check.
# ----------------------------------------------------------------------------
def _ref_forward(x_nchw, f_nchw, p, eps=1e-5):
    def conv_bn_relu(x, w, b, gamma, beta, mean, var):
        y = lax.conv_general_dilated(
            x, w, window_strides=(1, 1), padding=[(1, 1), (1, 1)],
            dimension_numbers=("NCHW", "OIHW", "NCHW"))
        if b is not None:
            y = y + b[None, :, None, None]
        scale = (gamma / jnp.sqrt(var + eps))[None, :, None, None]
        y = (y - mean[None, :, None, None]) * scale + beta[None, :, None, None]
        return jnp.maximum(y, 0.0)

    q = conv_bn_relu(x_nchw, p['w0'], p['b0'], p['g0'], p['be0'], p['m0'], p['v0'])
    k = conv_bn_relu(f_nchw, p['w1'], None, p['g1'], p['be1'], p['m1'], p['v1'])
    v = conv_bn_relu(f_nchw, p['w2'], None, p['g2'], p['be2'], p['m2'], p['v2'])
    qk = jnp.einsum('nlhd,nshd->nlsh', q, k)
    a = jax.nn.softmax(qk * (1.0 / (q.shape[3] ** 0.5)), axis=2)
    qv = jnp.einsum('nlsh,nshd->nlhd', a, v)
    msg = conv_bn_relu(jnp.concatenate([x_nchw, qv], axis=1),
                       p['wm'], None, p['gm'], p['bem'], p['mm'], p['vm'])
    return x_nchw + msg


if __name__ == "__main__":
    # in_channels=128 keeps every matmul operand and store lane-dense (128 lanes).
    N, C, H, W = 2, 128, 8, 8
    keys = iter(jax.random.split(jax.random.PRNGKey(0), 32))

    def nk():
        return next(keys)

    input_feature = jax.random.normal(nk(), (N, C, H, W), jnp.float32)
    features = jax.random.normal(nk(), (N, C, H, W), jnp.float32)

    def conv_w(cout, cin):
        return 0.03 * jax.random.normal(nk(), (cout, cin, 3, 3), jnp.float32)

    def bn(c):
        gamma = 1.0 + 0.1 * jax.random.normal(nk(), (c,), jnp.float32)
        beta = 0.1 * jax.random.normal(nk(), (c,), jnp.float32)
        mean = 0.1 * jax.random.normal(nk(), (c,), jnp.float32)
        var = jnp.abs(jax.random.normal(nk(), (c,), jnp.float32)) + 0.5
        return gamma, beta, mean, var

    g0, be0, m0, v0 = bn(C)
    g1, be1, m1, v1 = bn(C)
    g2, be2, m2, v2 = bn(C)
    gm, bem, mm, vm = bn(C)
    params = dict(
        w0=conv_w(C, C),
        b0=0.05 * jax.random.normal(nk(), (C,), jnp.float32),
        g0=g0, be0=be0, m0=m0, v0=v0,
        w1=conv_w(C, C), g1=g1, be1=be1, m1=m1, v1=v1,
        w2=conv_w(C, C), g2=g2, be2=be2, m2=m2, v2=v2,
        wm=conv_w(C, 2 * C), gm=gm, bem=bem, mm=mm, vm=vm,
    )

    fwd = jax.jit(cross_transformer_backbone_forward)
    out = jax.block_until_ready(fwd(input_feature, features, params))
    assert out.shape == (N, C, H, W), out.shape

    ref = _ref_forward(input_feature, features, params)
    max_diff = float(jnp.max(jnp.abs(out - ref)))
    assert jnp.allclose(out, ref, atol=1e-2, rtol=1e-2), max_diff

    print("KERNEL_OK")
</pallas_src>

<mosaic_0001>
module attributes {stable_mosaic.version = 11 : i64} {
  func.func @_fused_kernel(%arg0: i32, %arg1: memref<1x8x8x128xf32, #tpu.memory_space<vmem>>, %arg2: memref<1x8x8x128xf32, #tpu.memory_space<vmem>>, %arg3: memref<1152x128xf32, #tpu.memory_space<vmem>>, %arg4: memref<1x128xf32, #tpu.memory_space<vmem>>, %arg5: memref<1x128xf32, #tpu.memory_space<vmem>>, %arg6: memref<1152x256xf32, #tpu.memory_space<vmem>>, %arg7: memref<1x256xf32, #tpu.memory_space<vmem>>, %arg8: memref<1x256xf32, #tpu.memory_space<vmem>>, %arg9: memref<2304x128xf32, #tpu.memory_space<vmem>>, %arg10: memref<1x128xf32, #tpu.memory_space<vmem>>, %arg11: memref<1x128xf32, #tpu.memory_space<vmem>>, %arg12: memref<1x8x8x128xf32, #tpu.memory_space<vmem>>, %arg13: memref<10x10x128xf32, #tpu.memory_space<vmem>>, %arg14: memref<10x10x128xf32, #tpu.memory_space<vmem>>, %arg15: memref<10x10x256xf32, #tpu.memory_space<vmem>>) attributes {dimension_semantics = [#tpu.dimension_semantics<parallel>], iteration_bounds = array<i64: 2>, scalar_prefetch = 0 : i64, scratch_operands = 3 : i64, tpu.core_type = #tpu.core_type<tc>, window_params = [{transform_indices = @transform_0, window_bounds = array<i64: 1, 8, 8, 128>}, {transform_indices = @transform_1, window_bounds = array<i64: 1, 8, 8, 128>}, {pipeline_mode = #tpu.pipeline_mode<synchronous>, transform_indices = @transform_2, window_bounds = array<i64: 1152, 128>}, {pipeline_mode = #tpu.pipeline_mode<synchronous>, transform_indices = @transform_3, window_bounds = array<i64: 1, 128>}, {pipeline_mode = #tpu.pipeline_mode<synchronous>, transform_indices = @transform_4, window_bounds = array<i64: 1, 128>}, {pipeline_mode = #tpu.pipeline_mode<synchronous>, transform_indices = @transform_5, window_bounds = array<i64: 1152, 256>}, {pipeline_mode = #tpu.pipeline_mode<synchronous>, transform_indices = @transform_6, window_bounds = array<i64: 1, 256>}, {pipeline_mode = #tpu.pipeline_mode<synchronous>, transform_indices = @transform_7, window_bounds = array<i64: 1, 256>}, {pipeline_mode = #tpu.pipeline_mode<synchronous>, transform_indices = @transform_8, window_bounds = array<i64: 2304, 128>}, {pipeline_mode = #tpu.pipeline_mode<synchronous>, transform_indices = @transform_9, window_bounds = array<i64: 1, 128>}, {pipeline_mode = #tpu.pipeline_mode<synchronous>, transform_indices = @transform_10, window_bounds = array<i64: 1, 128>}, {transform_indices = @transform_11, window_bounds = array<i64: 1, 8, 8, 128>}]} {
    %c0 = arith.constant 0 : index
    %c0_0 = arith.constant 0 : index
    %c0_1 = arith.constant 0 : index
    %c0_2 = arith.constant 0 : index
    %0 = vector.load %arg1[%c0, %c0_0, %c0_1, %c0_2] : memref<1x8x8x128xf32, #tpu.memory_space<vmem>>, vector<1x8x8x128xf32>
    %1 = vector.shape_cast %0 : vector<1x8x8x128xf32> to vector<8x8x128xf32>
    %c0_3 = arith.constant 0 : index
    %c0_4 = arith.constant 0 : index
    %c0_5 = arith.constant 0 : index
    %c0_6 = arith.constant 0 : index
    %2 = vector.load %arg2[%c0_3, %c0_4, %c0_5, %c0_6] : memref<1x8x8x128xf32, #tpu.memory_space<vmem>>, vector<1x8x8x128xf32>
    %3 = vector.shape_cast %2 : vector<1x8x8x128xf32> to vector<8x8x128xf32>
    %cst = arith.constant 0.000000e+00 : f32
    %4 = vector.broadcast %cst : f32 to vector<10x10x128xf32>
    %c0_7 = arith.constant 0 : index
    %c0_8 = arith.constant 0 : index
    %c0_9 = arith.constant 0 : index
    %5 = vector.load %arg13[%c0_7, %c0_8, %c0_9] : memref<10x10x128xf32, #tpu.memory_space<vmem>>, vector<10x10x128xf32>
    tpu.vector_store %arg13[%c0_7, %c0_8, %c0_9], %4 {strides = array<i32>} : memref<10x10x128xf32, #tpu.memory_space<vmem>>, vector<10x10x128xf32>,
    %c1 = arith.constant 1 : index
    %c1_10 = arith.constant 1 : index
    %c0_11 = arith.constant 0 : index
    %6 = vector.load %arg13[%c1, %c1_10, %c0_11] : memref<10x10x128xf32, #tpu.memory_space<vmem>>, vector<8x8x128xf32>
    tpu.vector_store %arg13[%c1, %c1_10, %c0_11], %1 {strides = array<i32>} : memref<10x10x128xf32, #tpu.memory_space<vmem>>, vector<8x8x128xf32>,
    %c0_12 = arith.constant 0 : index
    %c0_13 = arith.constant 0 : index
    %c0_14 = arith.constant 0 : index
    %7 = vector.load %arg13[%c0_12, %c0_13, %c0_14] : memref<10x10x128xf32, #tpu.memory_space<vmem>>, vector<8x8x128xf32>
    %8 = vector.shape_cast %7 : vector<8x8x128xf32> to vector<64x128xf32>
    %c0_15 = arith.constant 0 : index
    %c1_16 = arith.constant 1 : index
    %c0_17 = arith.constant 0 : index
    %9 = vector.load %arg13[%c0_15, %c1_16, %c0_17] : memref<10x10x128xf32, #tpu.memory_space<vmem>>, vector<8x8x128xf32>
    %10 = vector.shape_cast %9 : vector<8x8x128xf32> to vector<64x128xf32>
    %c0_18 = arith.constant 0 : index
    %c2 = arith.constant 2 : index
    %c0_19 = arith.constant 0 : index
    %11 = vector.load %arg13[%c0_18, %c2, %c0_19] : memref<10x10x128xf32, #tpu.memory_space<vmem>>, vector<8x8x128xf32>
    %12 = vector.shape_cast %11 : vector<8x8x128xf32> to vector<64x128xf32>
    %c1_20 = arith.constant 1 : index
    %c0_21 = arith.constant 0 : index
    %c0_22 = arith.constant 0 : index
    %13 = vector.load %arg13[%c1_20, %c0_21, %c0_22] : memref<10x10x128xf32, #tpu.memory_space<vmem>>, vector<8x8x128xf32>
    %14 = vector.shape_cast %13 : vector<8x8x128xf32> to vector<64x128xf32>
    %c1_23 = arith.constant 1 : index
    %c1_24 = arith.constant 1 : index
    %c0_25 = arith.constant 0 : index
    %15 = vector.load %arg13[%c1_23, %c1_24, %c0_25] : memref<10x10x128xf32, #tpu.memory_space<vmem>>, vector<8x8x128xf32>
    %16 = vector.shape_cast %15 : vector<8x8x128xf32> to vector<64x128xf32>
    %c1_26 = arith.constant 1 : index
    %c2_27 = arith.constant 2 : index
    %c0_28 = arith.constant 0 : index
    %17 = vector.load %arg13[%c1_26, %c2_27, %c0_28] : memref<10x10x128xf32, #tpu.memory_space<vmem>>, vector<8x8x128xf32>
    %18 = vector.shape_cast %17 : vector<8x8x128xf32> to vector<64x128xf32>
    %c2_29 = arith.constant 2 : index
    %c0_30 = arith.constant 0 : index
    %c0_31 = arith.constant 0 : index
    %19 = vector.load %arg13[%c2_29, %c0_30, %c0_31] : memref<10x10x128xf32, #tpu.memory_space<vmem>>, vector<8x8x128xf32>
    %20 = vector.shape_cast %19 : vector<8x8x128xf32> to vector<64x128xf32>
    %c2_32 = arith.constant 2 : index
    %c1_33 = arith.constant 1 : index
    %c0_34 = arith.constant 0 : index
    %21 = vector.load %arg13[%c2_32, %c1_33, %c0_34] : memref<10x10x128xf32, #tpu.memory_space<vmem>>, vector<8x8x128xf32>
    %22 = vector.shape_cast %21 : vector<8x8x128xf32> to vector<64x128xf32>
    %c2_35 = arith.constant 2 : index
    %c2_36 = arith.constant 2 : index
    %c0_37 = arith.constant 0 : index
    %23 = vector.load %arg13[%c2_35, %c2_36, %c0_37] : memref<10x10x128xf32, #tpu.memory_space<vmem>>, vector<8x8x128xf32>
    %24 = vector.shape_cast %23 : vector<8x8x128xf32> to vector<64x128xf32>
    %25 = tpu.concatenate %8, %10, %12, %14, %16, %18, %20, %22, %24 in 1 : vector<64x128xf32>, vector<64x128xf32>, vector<64x128xf32>, vector<64x128xf32>, vector<64x128xf32>, vector<64x128xf32>, vector<64x128xf32>, vector<64x128xf32>, vector<64x128xf32> -> vector<64x1152xf32>
    %c0_38 = arith.constant 0 : index
    %c0_39 = arith.constant 0 : index
    %26 = vector.load %arg3[%c0_38, %c0_39] : memref<1152x128xf32, #tpu.memory_space<vmem>>, vector<1152x128xf32>
    %cst_40 = arith.constant dense<0.000000e+00> : vector<64x128xf32>
    %27 = tpu.matmul %25, %26, %cst_40 {dimension_numbers = #tpu.dot_dimension_numbers<[1], [0], [0], [1], [0, 0, 1, 1], [], []>} : vector<64x1152xf32>, vector<1152x128xf32>, vector<64x128xf32> -> vector<64x128xf32>
    %c0_41 = arith.constant 0 : index
    %c0_42 = arith.constant 0 : index
    %28 = vector.load %arg4[%c0_41, %c0_42] : memref<1x128xf32, #tpu.memory_space<vmem>>, vector<1x128xf32>
    %29 = vector.broadcast %28 : vector<1x128xf32> to vector<64x128xf32>
    %30 = arith.mulf %27, %29 : vector<64x128xf32>
    %c0_43 = arith.constant 0 : index
    %c0_44 = arith.constant 0 : index
    %31 = vector.load %arg5[%c0_43, %c0_44] : memref<1x128xf32, #tpu.memory_space<vmem>>, vector<1x128xf32>
    %32 = vector.broadcast %31 : vector<1x128xf32> to vector<64x128xf32>
    %33 = arith.addf %30, %32 : vector<64x128xf32>
    %cst_45 = arith.constant 0.000000e+00 : f32
    %34 = vector.broadcast %cst_45 : f32 to vector<64x128xf32>
    %35 = arith.maximumf %33, %34 : vector<64x128xf32>
    %cst_46 = arith.constant 0.000000e+00 : f32
    %36 = vector.broadcast %cst_46 : f32 to vector<10x10x128xf32>
    %c0_47 = arith.constant 0 : index
    %c0_48 = arith.constant 0 : index
    %c0_49 = arith.constant 0 : index
    %37 = vector.load %arg14[%c0_47, %c0_48, %c0_49] : memref<10x10x128xf32, #tpu.memory_space<vmem>>, vector<10x10x128xf32>
    tpu.vector_store %arg14[%c0_47, %c0_48, %c0_49], %36 {strides = array<i32>} : memref<10x10x128xf32, #tpu.memory_space<vmem>>, vector<10x10x128xf32>,
    %c1_50 = arith.constant 1 : index
    %c1_51 = arith.constant 1 : index
    %c0_52 = arith.constant 0 : index
    %38 = vector.load %arg14[%c1_50, %c1_51, %c0_52] : memref<10x10x128xf32, #tpu.memory_space<vmem>>, vector<8x8x128xf32>
    tpu.vector_store %arg14[%c1_50, %c1_51, %c0_52], %3 {strides = array<i32>} : memref<10x10x128xf32, #tpu.memory_space<vmem>>, vector<8x8x128xf32>,
    %c0_53 = arith.constant 0 : index
    %c0_54 = arith.constant 0 : index
    %c0_55 = arith.constant 0 : index
    %39 = vector.load %arg14[%c0_53, %c0_54, %c0_55] : memref<10x10x128xf32, #tpu.memory_space<vmem>>, vector<8x8x128xf32>
    %40 = vector.shape_cast %39 : vector<8x8x128xf32> to vector<64x128xf32>
    %c0_56 = arith.constant 0 : index
    %c1_57 = arith.constant 1 : index
    %c0_58 = arith.constant 0 : index
    %41 = vector.load %arg14[%c0_56, %c1_57, %c0_58] : memref<10x10x128xf32, #tpu.memory_space<vmem>>, vector<8x8x128xf32>
    %42 = vector.shape_cast %41 : vector<8x8x128xf32> to vector<64x128xf32>
    %c0_59 = arith.constant 0 : index
    %c2_60 = arith.constant 2 : index
    %c0_61 = arith.constant 0 : index
    %43 = vector.load %arg14[%c0_59, %c2_60, %c0_61] : memref<10x10x128xf32, #tpu.memory_space<vmem>>, vector<8x8x128xf32>
    %44 = vector.shape_cast %43 : vector<8x8x128xf32> to vector<64x128xf32>
    %c1_62 = arith.constant 1 : index
    %c0_63 = arith.constant 0 : index
    %c0_64 = arith.constant 0 : index
    %45 = vector.load %arg14[%c1_62, %c0_63, %c0_64] : memref<10x10x128xf32, #tpu.memory_space<vmem>>, vector<8x8x128xf32>
    %46 = vector.shape_cast %45 : vector<8x8x128xf32> to vector<64x128xf32>
    %c1_65 = arith.constant 1 : index
    %c1_66 = arith.constant 1 : index
    %c0_67 = arith.constant 0 : index
    %47 = vector.load %arg14[%c1_65, %c1_66, %c0_67] : memref<10x10x128xf32, #tpu.memory_space<vmem>>, vector<8x8x128xf32>
    %48 = vector.shape_cast %47 : vector<8x8x128xf32> to vector<64x128xf32>
    %c1_68 = arith.constant 1 : index
    %c2_69 = arith.constant 2 : index
    %c0_70 = arith.constant 0 : index
    %49 = vector.load %arg14[%c1_68, %c2_69, %c0_70] : memref<10x10x128xf32, #tpu.memory_space<vmem>>, vector<8x8x128xf32>
    %50 = vector.shape_cast %49 : vector<8x8x128xf32> to vector<64x128xf32>
    %c2_71 = arith.constant 2 : index
    %c0_72 = arith.constant 0 : index
    %c0_73 = arith.constant 0 : index
    %51 = vector.load %arg14[%c2_71, %c0_72, %c0_73] : memref<10x10x128xf32, #tpu.memory_space<vmem>>, vector<8x8x128xf32>
    %52 = vector.shape_cast %51 : vector<8x8x128xf32> to vector<64x128xf32>
    %c2_74 = arith.constant 2 : index
    %c1_75 = arith.constant 1 : index
    %c0_76 = arith.constant 0 : index
    %53 = vector.load %arg14[%c2_74, %c1_75, %c0_76] : memref<10x10x128xf32, #tpu.memory_space<vmem>>, vector<8x8x128xf32>
    %54 = vector.shape_cast %53 : vector<8x8x128xf32> to vector<64x128xf32>
    %c2_77 = arith.constant 2 : index
    %c2_78 = arith.constant 2 : index
    %c0_79 = arith.constant 0 : index
    %55 = vector.load %arg14[%c2_77, %c2_78, %c0_79] : memref<10x10x128xf32, #tpu.memory_space<vmem>>, vector<8x8x128xf32>
    %56 = vector.shape_cast %55 : vector<8x8x128xf32> to vector<64x128xf32>
    %57 = tpu.concatenate %40, %42, %44, %46, %48, %50, %52, %54, %56 in 1 : vector<64x128xf32>, vector<64x128xf32>, vector<64x128xf32>, vector<64x128xf32>, vector<64x128xf32>, vector<64x128xf32>, vector<64x128xf32>, vector<64x128xf32>, vector<64x128xf32> -> vector<64x1152xf32>
    %c0_80 = arith.constant 0 : index
    %c0_81 = arith.constant 0 : index
    %58 = vector.load %arg6[%c0_80, %c0_81] : memref<1152x256xf32, #tpu.memory_space<vmem>>, vector<1152x256xf32>
    %cst_82 = arith.constant dense<0.000000e+00> : vector<64x256xf32>
    %59 = tpu.matmul %57, %58, %cst_82 {dimension_numbers = #tpu.dot_dimension_numbers<[1], [0], [0], [1], [0, 0, 1, 1], [], []>} : vector<64x1152xf32>, vector<1152x256xf32>, vector<64x256xf32> -> vector<64x256xf32>
    %c0_83 = arith.constant 0 : index
    %c0_84 = arith.constant 0 : index
    %60 = vector.load %arg7[%c0_83, %c0_84] : memref<1x256xf32, #tpu.memory_space<vmem>>, vector<1x256xf32>
    %61 = vector.broadcast %60 : vector<1x256xf32> to vector<64x256xf32>
    %62 = arith.mulf %59, %61 : vector<64x256xf32>
    %c0_85 = arith.constant 0 : index
    %c0_86 = arith.constant 0 : index
    %63 = vector.load %arg8[%c0_85, %c0_86] : memref<1x256xf32, #tpu.memory_space<vmem>>, vector<1x256xf32>
    %64 = vector.broadcast %63 : vector<1x256xf32> to vector<64x256xf32>
    %65 = arith.addf %62, %64 : vector<64x256xf32>
    %cst_87 = arith.constant 0.000000e+00 : f32
    %66 = vector.broadcast %cst_87 : f32 to vector<64x256xf32>
    %67 = arith.maximumf %65, %66 : vector<64x256xf32>
    %68 = vector.extract_strided_slice %67 {offsets = [0, 0], sizes = [64, 128], strides = [1, 1]} : vector<64x256xf32> to vector<64x128xf32>
    %69 = vector.extract_strided_slice %67 {offsets = [0, 128], sizes = [64, 128], strides = [1, 1]} : vector<64x256xf32> to vector<64x128xf32>
    %70 = vector.shape_cast %35 : vector<64x128xf32> to vector<8x8x128xf32>
    %71 = tpu.transpose %70, [0, 2, 1] : vector<8x8x128xf32> -> vector<8x128x8xf32>
    %72 = vector.shape_cast %68 : vector<64x128xf32> to vector<8x8x128xf32>
    %73 = tpu.transpose %72, [0, 2, 1] : vector<8x8x128xf32> -> vector<8x128x8xf32>
    %74 = vector.shape_cast %69 : vector<64x128xf32> to vector<8x8x128xf32>
    %75 = tpu.transpose %74, [0, 2, 1] : vector<8x8x128xf32> -> vector<8x128x8xf32>
    "tpu.trace_start"() <{level = 10 : i32, message = "hld,hsd->hls"}> : () -> ()
    %cst_88 = arith.constant dense<0.000000e+00> : vector<8x128x128xf32>
    %76 = tpu.matmul %71, %73, %cst_88 {dimension_numbers = #tpu.dot_dimension_numbers<[2], [2], [1], [1], [0, 0, 0, 1, 1, 1], [0], [0]>} : vector<8x128x8xf32>, vector<8x128x8xf32>, vector<8x128x128xf32> -> vector<8x128x128xf32>
    "tpu.trace_stop"() : () -> ()
    %cst_89 = arith.constant 0.353553385 : f32
    %77 = vector.broadcast %cst_89 : f32 to vector<8x128x128xf32>
    %78 = arith.mulf %76, %77 : vector<8x128x128xf32>
    %cst_90 = arith.constant dense<0xFF800000> : vector<8x128xf32>
    %79 = vector.multi_reduction <maximumf>, %78, %cst_90 [2] : vector<8x128x128xf32> to vector<8x128xf32>
    %80 = vector.shape_cast %79 : vector<8x128xf32> to vector<8x128x1xf32>
    %81 = vector.broadcast %80 : vector<8x128x1xf32> to vector<8x128x128xf32>
    %82 = arith.subf %78, %81 : vector<8x128x128xf32>
    %83 = math.exp %82 : vector<8x128x128xf32>
    %cst_91 = arith.constant dense<0.000000e+00> : vector<8x128xf32>
    %84 = vector.multi_reduction <add>, %83, %cst_91 [2] : vector<8x128x128xf32> to vector<8x128xf32>
    %85 = vector.shape_cast %84 : vector<8x128xf32> to vector<8x128x1xf32>
    %86 = vector.broadcast %85 : vector<8x128x1xf32> to vector<8x128x128xf32>
    %87 = arith.divf %83, %86 : vector<8x128x128xf32>
    "tpu.trace_start"() <{level = 10 : i32, message = "hls,hsd->hld"}> : () -> ()
    %cst_92 = arith.constant dense<0.000000e+00> : vector<8x128x8xf32>
    %88 = tpu.matmul %87, %75, %cst_92 {dimension_numbers = #tpu.dot_dimension_numbers<[2], [1], [1], [2], [0, 0, 0, 1, 1, 2], [0], [0]>} : vector<8x128x128xf32>, vector<8x128x8xf32>, vector<8x128x8xf32> -> vector<8x128x8xf32>
    "tpu.trace_stop"() : () -> ()
    %89 = tpu.transpose %88, [0, 2, 1] : vector<8x128x8xf32> -> vector<8x8x128xf32>
    %90 = tpu.concatenate %1, %89 in 2 : vector<8x8x128xf32>, vector<8x8x128xf32> -> vector<8x8x256xf32>
    %cst_93 = arith.constant 0.000000e+00 : f32
    %91 = vector.broadcast %cst_93 : f32 to vector<10x10x256xf32>
    %c0_94 = arith.constant 0 : index
    %c0_95 = arith.constant 0 : index
    %c0_96 = arith.constant 0 : index
    %92 = vector.load %arg15[%c0_94, %c0_95, %c0_96] : memref<10x10x256xf32, #tpu.memory_space<vmem>>, vector<10x10x256xf32>
    tpu.vector_store %arg15[%c0_94, %c0_95, %c0_96], %91 {strides = array<i32>} : memref<10x10x256xf32, #tpu.memory_space<vmem>>, vector<10x10x256xf32>,
    %c1_97 = arith.constant 1 : index
    %c1_98 = arith.constant 1 : index
    %c0_99 = arith.constant 0 : index
    %93 = vector.load %arg15[%c1_97, %c1_98, %c0_99] : memref<10x10x256xf32, #tpu.memory_space<vmem>>, vector<8x8x256xf32>
    tpu.vector_store %arg15[%c1_97, %c1_98, %c0_99], %90 {strides = array<i32>} : memref<10x10x256xf32, #tpu.memory_space<vmem>>, vector<8x8x256xf32>,
    %c0_100 = arith.constant 0 : index
    %c0_101 = arith.constant 0 : index
    %c0_102 = arith.constant 0 : index
    %94 = vector.load %arg15[%c0_100, %c0_101, %c0_102] : memref<10x10x256xf32, #tpu.memory_space<vmem>>, vector<8x8x256xf32>
    %95 = vector.shape_cast %94 : vector<8x8x256xf32> to vector<64x256xf32>
    %c0_103 = arith.constant 0 : index
    %c1_104 = arith.constant 1 : index
    %c0_105 = arith.constant 0 : index
    %96 = vector.load %arg15[%c0_103, %c1_104, %c0_105] : memref<10x10x256xf32, #tpu.memory_space<vmem>>, vector<8x8x256xf32>
    %97 = vector.shape_cast %96 : vector<8x8x256xf32> to vector<64x256xf32>
    %c0_106 = arith.constant 0 : index
    %c2_107 = arith.constant 2 : index
    %c0_108 = arith.constant 0 : index
    %98 = vector.load %arg15[%c0_106, %c2_107, %c0_108] : memref<10x10x256xf32, #tpu.memory_space<vmem>>, vector<8x8x256xf32>
    %99 = vector.shape_cast %98 : vector<8x8x256xf32> to vector<64x256xf32>
    %c1_109 = arith.constant 1 : index
    %c0_110 = arith.constant 0 : index
    %c0_111 = arith.constant 0 : index
    %100 = vector.load %arg15[%c1_109, %c0_110, %c0_111] : memref<10x10x256xf32, #tpu.memory_space<vmem>>, vector<8x8x256xf32>
    %101 = vector.shape_cast %100 : vector<8x8x256xf32> to vector<64x256xf32>
    %c1_112 = arith.constant 1 : index
    %c1_113 = arith.constant 1 : index
    %c0_114 = arith.constant 0 : index
    %102 = vector.load %arg15[%c1_112, %c1_113, %c0_114] : memref<10x10x256xf32, #tpu.memory_space<vmem>>, vector<8x8x256xf32>
    %103 = vector.shape_cast %102 : vector<8x8x256xf32> to vector<64x256xf32>
    %c1_115 = arith.constant 1 : index
    %c2_116 = arith.constant 2 : index
    %c0_117 = arith.constant 0 : index
    %104 = vector.load %arg15[%c1_115, %c2_116, %c0_117] : memref<10x10x256xf32, #tpu.memory_space<vmem>>, vector<8x8x256xf32>
    %105 = vector.shape_cast %104 : vector<8x8x256xf32> to vector<64x256xf32>
    %c2_118 = arith.constant 2 : index
    %c0_119 = arith.constant 0 : index
    %c0_120 = arith.constant 0 : index
    %106 = vector.load %arg15[%c2_118, %c0_119, %c0_120] : memref<10x10x256xf32, #tpu.memory_space<vmem>>, vector<8x8x256xf32>
    %107 = vector.shape_cast %106 : vector<8x8x256xf32> to vector<64x256xf32>
    %c2_121 = arith.constant 2 : index
    %c1_122 = arith.constant 1 : index
    %c0_123 = arith.constant 0 : index
    %108 = vector.load %arg15[%c2_121, %c1_122, %c0_123] : memref<10x10x256xf32, #tpu.memory_space<vmem>>, vector<8x8x256xf32>
    %109 = vector.shape_cast %108 : vector<8x8x256xf32> to vector<64x256xf32>
    %c2_124 = arith.constant 2 : index
    %c2_125 = arith.constant 2 : index
    %c0_126 = arith.constant 0 : index
    %110 = vector.load %arg15[%c2_124, %c2_125, %c0_126] : memref<10x10x256xf32, #tpu.memory_space<vmem>>, vector<8x8x256xf32>
    %111 = vector.shape_cast %110 : vector<8x8x256xf32> to vector<64x256xf32>
    %112 = tpu.concatenate %95, %97, %99, %101, %103, %105, %107, %109, %111 in 1 : vector<64x256xf32>, vector<64x256xf32>, vector<64x256xf32>, vector<64x256xf32>, vector<64x256xf32>, vector<64x256xf32>, vector<64x256xf32>, vector<64x256xf32>, vector<64x256xf32> -> vector<64x2304xf32>
    %c0_127 = arith.constant 0 : index
    %c0_128 = arith.constant 0 : index
    %113 = vector.load %arg9[%c0_127, %c0_128] : memref<2304x128xf32, #tpu.memory_space<vmem>>, vector<2304x128xf32>
    %cst_129 = arith.constant dense<0.000000e+00> : vector<64x128xf32>
    %114 = tpu.matmul %112, %113, %cst_129 {dimension_numbers = #tpu.dot_dimension_numbers<[1], [0], [0], [1], [0, 0, 1, 1], [], []>} : vector<64x2304xf32>, vector<2304x128xf32>, vector<64x128xf32> -> vector<64x128xf32>
    %c0_130 = arith.constant 0 : index
    %c0_131 = arith.constant 0 : index
    %115 = vector.load %arg10[%c0_130, %c0_131] : memref<1x128xf32, #tpu.memory_space<vmem>>, vector<1x128xf32>
    %116 = vector.broadcast %115 : vector<1x128xf32> to vector<64x128xf32>
    %117 = arith.mulf %114, %116 : vector<64x128xf32>
    %c0_132 = arith.constant 0 : index
    %c0_133 = arith.constant 0 : index
    %118 = vector.load %arg11[%c0_132, %c0_133] : memref<1x128xf32, #tpu.memory_space<vmem>>, vector<1x128xf32>
    %119 = vector.broadcast %118 : vector<1x128xf32> to vector<64x128xf32>
    %120 = arith.addf %117, %119 : vector<64x128xf32>
    %cst_134 = arith.constant 0.000000e+00 : f32
    %121 = vector.broadcast %cst_134 : f32 to vector<64x128xf32>
    %122 = arith.maximumf %120, %121 : vector<64x128xf32>
    %123 = vector.shape_cast %1 : vector<8x8x128xf32> to vector<64x128xf32>
    %124 = arith.addf %123, %122 : vector<64x128xf32>
    %125 = vector.shape_cast %124 : vector<64x128xf32> to vector<1x8x8x128xf32>
    %c0_135 = arith.constant 0 : index
    %c0_136 = arith.constant 0 : index
    %c0_137 = arith.constant 0 : index
    %c0_138 = arith.constant 0 : index
    %126 = vector.load %arg12[%c0_135, %c0_136, %c0_137, %c0_138] : memref<1x8x8x128xf32, #tpu.memory_space<vmem>>, vector<1x8x8x128xf32>
    tpu.vector_store %arg12[%c0_135, %c0_136, %c0_137, %c0_138], %125 {strides = array<i32>} : memref<1x8x8x128xf32, #tpu.memory_space<vmem>>, vector<1x8x8x128xf32>,
    return
  }
  func.func @transform_0(%arg0: i32) -> (i32, i32, i32, i32) {
    %c0_i32 = arith.constant 0 : i32
    %c0_i32_0 = arith.constant 0 : i32
    %c0_i32_1 = arith.constant 0 : i32
    %c0_i32_2 = arith.constant 0 : i32
    return %arg0, %c0_i32, %c0_i32_0, %c0_i32_1 : i32, i32, i32, i32
  }
  func.func @transform_1(%arg0: i32) -> (i32, i32, i32, i32) {
    %c0_i32 = arith.constant 0 : i32
    %c0_i32_0 = arith.constant 0 : i32
    %c0_i32_1 = arith.constant 0 : i32
    %c0_i32_2 = arith.constant 0 : i32
    return %arg0, %c0_i32, %c0_i32_0, %c0_i32_1 : i32, i32, i32, i32
  }
  func.func @transform_2(%arg0: i32) -> (i32, i32) {
    %c0_i32 = arith.constant 0 : i32
    %c0_i32_0 = arith.constant 0 : i32
    %c0_i32_1 = arith.constant 0 : i32
    return %c0_i32, %c0_i32_0 : i32, i32
  }
  func.func @transform_3(%arg0: i32) -> (i32, i32) {
    %c0_i32 = arith.constant 0 : i32
    %c0_i32_0 = arith.constant 0 : i32
    %c0_i32_1 = arith.constant 0 : i32
    return %c0_i32, %c0_i32_0 : i32, i32
  }
  func.func @transform_4(%arg0: i32) -> (i32, i32) {
    %c0_i32 = arith.constant 0 : i32
    %c0_i32_0 = arith.constant 0 : i32
    %c0_i32_1 = arith.constant 0 : i32
    return %c0_i32, %c0_i32_0 : i32, i32
  }
  func.func @transform_5(%arg0: i32) -> (i32, i32) {
    %c0_i32 = arith.constant 0 : i32
    %c0_i32_0 = arith.constant 0 : i32
    %c0_i32_1 = arith.constant 0 : i32
    return %c0_i32, %c0_i32_0 : i32, i32
  }
  func.func @transform_6(%arg0: i32) -> (i32, i32) {
    %c0_i32 = arith.constant 0 : i32
    %c0_i32_0 = arith.constant 0 : i32
    %c0_i32_1 = arith.constant 0 : i32
    return %c0_i32, %c0_i32_0 : i32, i32
  }
  func.func @transform_7(%arg0: i32) -> (i32, i32) {
    %c0_i32 = arith.constant 0 : i32
    %c0_i32_0 = arith.constant 0 : i32
    %c0_i32_1 = arith.constant 0 : i32
    return %c0_i32, %c0_i32_0 : i32, i32
  }
  func.func @transform_8(%arg0: i32) -> (i32, i32) {
    %c0_i32 = arith.constant 0 : i32
    %c0_i32_0 = arith.constant 0 : i32
    %c0_i32_1 = arith.constant 0 : i32
    return %c0_i32, %c0_i32_0 : i32, i32
  }
  func.func @transform_9(%arg0: i32) -> (i32, i32) {
    %c0_i32 = arith.constant 0 : i32
    %c0_i32_0 = arith.constant 0 : i32
    %c0_i32_1 = arith.constant 0 : i32
    return %c0_i32, %c0_i32_0 : i32, i32
  }
  func.func @transform_10(%arg0: i32) -> (i32, i32) {
    %c0_i32 = arith.constant 0 : i32
    %c0_i32_0 = arith.constant 0 : i32
    %c0_i32_1 = arith.constant 0 : i32
    return %c0_i32, %c0_i32_0 : i32, i32
  }
  func.func @transform_11(%arg0: i32) -> (i32, i32, i32, i32) {
    %c0_i32 = arith.constant 0 : i32
    %c0_i32_0 = arith.constant 0 : i32
    %c0_i32_1 = arith.constant 0 : i32
    %c0_i32_2 = arith.constant 0 : i32
    return %arg0, %c0_i32, %c0_i32_0, %c0_i32_1 : i32, i32, i32, i32
  }
}

</mosaic_0001>

<bundles_post_ra>
// kernel: cross_transformer_backbone_forward.1
= control target key start
LH: loop header
LB: loop body
LE: loop exit
PB: predicated region body
PF: predicated region fallthrough
CT: control target
= control target key end

     0   :  { %16 = vsyncpa [#allocation6], 0  ;;  %s17318_s0 = inlined_call_operand.vmem [shape: f32[2,8,8,128], index: 0, kind: input, shape index: {}]   ;;  %s17319_s1 = inlined_call_operand.vmem [shape: f32[2,8,8,128], index: 1, kind: input, shape index: {}]   ;;  %s17320_s2 = inlined_call_operand.vmem [shape: f32[1152,128], index: 2, kind: input, shape index: {}]   ;;  %s17321_s3 = inlined_call_operand.vmem [shape: f32[1,128], index: 3, kind: input, shape index: {}]   ;;  %s17322_s4 = inlined_call_operand.vmem [shape: f32[1,128], index: 4, kind: input, shape index: {}]   ;;  %s17323_s5 = inlined_call_operand.vmem [shape: f32[1152,256], index: 5, kind: input, shape index: {}]   ;;  %s17324_s6 = inlined_call_operand.vmem [shape: f32[1,256], index: 6, kind: input, shape index: {}]   ;;  %s17325_s7 = inlined_call_operand.vmem [shape: f32[1,256], index: 7, kind: input, shape index: {}]   ;;  %s17326_s8 = inlined_call_operand.vmem [shape: f32[2304,128], index: 8, kind: input, shape index: {}]   ;;  %s17327_s9 = inlined_call_operand.vmem [shape: f32[1,128], index: 9, kind: input, shape index: {}]   ;;  %s17328_s10 = inlined_call_operand.vmem [shape: f32[1,128], index: 10, kind: input, shape index: {}]   ;;  %s17329_s11 = inlined_call_operand.hbm [shape: f32[2,8,8,128], index: 11, kind: output, shape index: {}]  }
   0x1   :  { %18 = vsyncpa [#allocation6 + $0x1], 0  ;;  %s12208_s17 = smov 0   ;;  %s12210_s18 = smov 0  }
   0x2   :  { %s12212_s19 = smov 0   ;;  %s12214_s20 = smov 0  }
   0x3 LB: > { %17516 = sst [smem:[#allocation8_spill]] %s12138_s19  ;;  %s12229_s21 = sadd.s32 4294967295, %s12142_s20   ;;  %s12142_s20 = sphi %s12214_s20, %s17910_s20   ;;  %s12138_s19 = sphi %s12212_s19, %s17912_s19   ;;  %s12134_s18 = sphi %s12210_s18, %s17914_s18   ;;  %s12130_s17 = sphi %s12208_s17, %s17913_s17  }
   0x4   : > { %s9069_s22 = sadd.s32 4294967294, %s12142_s20   ;;  %s12233_s23 = sadd.s32 1, %s12142_s20  }
   0x5   : > { %17517 = sst [smem:[#allocation9_spill]] %s12233_s23  ;;  %s272_s24 = sadd.s32 1, %s12138_s19 }
   0x6   : > { %s269_s25 = ssub.s32 %s12142_s20, %s12233_s23  ;;  %p282_p0 = scmp.ne.s32.totalorder %s12138_s19, %s12134_s18 }
   0x7   : > { %p270_p1 = scmp.eq.s32.totalorder %s269_s25, 0  ;;  %p283_p2 = scmp.eq.s32.totalorder %s12229_s21, 1 }
   0x8   : > { %p288_p3 = scmp.ne.s32.totalorder %s12134_s18, %s12130_s17  ;;  %p289_p4 = scmp.eq.s32.totalorder %s9069_s22, 1 }
   0x9   : > { %s12244_s26 = scalar_select %p270_p1, %s12138_s19, %s272_s24  }
   0xa   : > { %p12246_p5 = por %p283_p2, %p282_p0  ;;  %p12250_p6 = por %p289_p4, %p288_p3 }
   0xb   : > { %17518 = sst [smem:[#allocation10_spill]] %s12244_s26  ;;  %p9072_p7 = scmp.ge.s32.totalorder %s12142_s20, 1 }
   0xc   : > { %p350_p8 = scmp.lt.s32.totalorder %s12142_s20, 3 }
   0xe   : > { %p351_p9 = pnand %p9072_p7, %p350_p8 }
  0x10   : > { %354 = sbr.rel (%p351_p9) target bundleno = 2151 (0x867), region = 64 }
  0x17   : > { %v12259_v0 = vld [vmem:[%s17320_s2 + $0x80] sm:$0xff]  ;;  %v12264_v1 = vld [vmem:[%s17320_s2 + $0x88] sm:$0xff]  ;;  %v12144_v7 = vmov 0.0   ;;  %v541_v12 = vld [vmem:[%s17320_s2 + $0x90] sm:$0xff]  ;;  %p395_p10 = scmp.lt.s32.totalorder %s12229_s21, 1  ;;  %vm2513_vm0 = vcmask 64512  }
  0x18   : > { %v12269_v2 = vld [vmem:[%s17320_s2 + $0x180] sm:$0xff]  ;;  %v10702_v3 = vpack.c.bf16 %v12264_v1, %v12259_v0  ;;  %v12276_v4 = vld [vmem:[%s17320_s2 + $0x188] sm:$0xff]  ;;  %421 = vst [vmem:[#allocation2] sm:$0xff] %v12144_v7  ;;  %422 = vst [vmem:[#allocation2 + $0x8] sm:$0x3] %v12144_v7  ;;  %vm6955_vm1 = vcmask 1046528  }
  0x19   : > { %v12281_v5 = vld [vmem:[%s17320_s2] sm:$0xff]  ;;  %v12286_v6 = vld [vmem:[%s17320_s2 + $0x8] sm:$0xff]  ;;  %423 = vst [vmem:[#allocation2 + $0x10] sm:$0xff] %v12144_v7  ;;  %424 = vst [vmem:[#allocation2 + $0x18] sm:$0x3] %v12144_v7  ;;  %v10734_v8 = vpack.c.bf16 %v12276_v4, %v12269_v2  ;;  %s12469_s24 = scalar_select %p395_p10, %s12229_s21, 1 }
  0x1a   : > { %425 = vst [vmem:[#allocation2 + $0x20] sm:$0xff] %v12144_v7  ;;  %426 = vst [vmem:[#allocation2 + $0x28] sm:$0x3] %v12144_v7  ;;  %v10704_v9 = vpack.c.bf16 %v12286_v6, %v12281_v5  ;;  %v555_v10 = vld [vmem:[%s17320_s2 + $0x100] sm:$0xff]  ;;  %v556_v11 = vld [vmem:[%s17320_s2 + $0x108] sm:$0xff]  ;;  %10703 = vmatprep.subr.bf16.mxu0 %v10702_v3  ;;  %vm7084_vm2 = vcmask 1045504  }
  0x1b   : > { %427 = vst [vmem:[#allocation2 + $0x30] sm:$0xff] %v12144_v7  ;;  %428 = vst [vmem:[#allocation2 + $0x38] sm:$0x3] %v12144_v7  ;;  %v10736_v13 = vpack.c.bf16 %v556_v11, %v555_v10  ;;  %v542_v14 = vld [vmem:[%s17320_s2 + $0x98] sm:$0xff]  ;;  %v573_v15 = vld [vmem:[%s17320_s2 + $0x190] sm:$0xff]  ;;  %10735 = vmatprep.subr.bf16.mxu1 %v10734_v8  ;;  %s9215_s26 = sshll.u32 %s12469_s24, 6 }
  0x1c   : > { %429 = vst [vmem:[#allocation2 + $0x40] sm:$0xff] %v12144_v7  ;;  %430 = vst [vmem:[#allocation2 + $0x48] sm:$0x3] %v12144_v7  ;;  %v574_v16 = vld [vmem:[%s17320_s2 + $0x198] sm:$0xff]  ;;  %10705 = vmatpush3.bf16.msra.mxu0 %v10704_v9  ;;  %v10706_v17 = vpack.c.bf16 %v542_v14, %v541_v12  ;;  %v525_v19 = vld [vmem:[%s17320_s2 + $0x10] sm:$0xff]  ;;  %s12519_s22 = scalar_lea.vmem %s17318_s0, %s9215_s26  ;;  %s13010_s14 = scalar_lea.vmem %s17319_s1, %s9215_s26 }
  0x1d   : > { %431 = vst [vmem:[#allocation2 + $0x50] sm:$0xff] %v12144_v7  ;;  %432 = vst [vmem:[#allocation2 + $0x58] sm:$0x3] %v12144_v7  ;;  %v10738_v18 = vpack.c.bf16 %v574_v16, %v573_v15  ;;  %v526_v20 = vld [vmem:[%s17320_s2 + $0x18] sm:$0xff]  ;;  %v557_v21 = vld [vmem:[%s17320_s2 + $0x110] sm:$0xff]  ;;  %10737 = vmatpush3.bf16.msra.mxu1 %v10736_v13  ;;  %s392_s16 = sand.u32 1, %s12134_s18  }
  0x1e   : > { %433 = vst [vmem:[#allocation2 + $0x60] sm:$0xff] %v12144_v7  ;;  %434 = vst [vmem:[#allocation2 + $0x68] sm:$0x3] %v12144_v7  ;;  %v10708_v22 = vpack.c.bf16 %v526_v20, %v525_v19  ;;  %v558_v23 = vld [vmem:[%s17320_s2 + $0x118] sm:$0xff]  ;;  %v543_v24 = vld [vmem:[%s17320_s2 + $0xa0] sm:$0xff]  ;;  %10707 = vmatprep.subr.bf16.mxu0 %v10706_v17  ;;  %s9217_s30 = sshll.u32 %s12229_s21, 10 }
  0x1f   : > { %435 = vst [vmem:[#allocation2 + $0x70] sm:$0xff] %v12144_v7  ;;  %436 = vst [vmem:[#allocation2 + $0x78] sm:$0x3] %v12144_v7  ;;  %v544_v25 = vld [vmem:[%s17320_s2 + $0xa8] sm:$0xff]  ;;  %10739 = vmatprep.subr.bf16.mxu1 %v10738_v18  ;;  %v10740_v26 = vpack.c.bf16 %v558_v23, %v557_v21  ;;  %v575_v28 = vld [vmem:[%s17320_s2 + $0x1a0] sm:$0xff]  ;;  %s17270_s23 = scalar_lea.hbm %s17329_s11, %s9217_s30  ;;  %s17277_s15 = scalar_lea.sflag [#allocation6], %s392_s16 }
  0x20   : > { %437 = vst [vmem:[#allocation2 + $0x80] sm:$0xff] %v12144_v7  ;;  %438 = vst [vmem:[#allocation2 + $0x88] sm:$0x3] %v12144_v7  ;;  %v10710_v27 = vpack.c.bf16 %v544_v25, %v543_v24  ;;  %v576_v29 = vld [vmem:[%s17320_s2 + $0x1a8] sm:$0xff]  ;;  %v527_v30 = vld [vmem:[%s17320_s2 + $0x20] sm:$0xff]  ;;  %10709 = vmatpush3.bf16.msra.mxu0 %v10708_v22 }
  0x21   : > { %439 = vst [vmem:[#allocation2 + $0x90] sm:$0xff] %v12144_v7  ;;  %440 = vst [vmem:[#allocation2 + $0x98] sm:$0x3] %v12144_v7  ;;  %v10742_v31 = vpack.c.bf16 %v576_v29, %v575_v28  ;;  %v528_v32 = vld [vmem:[%s17320_s2 + $0x28] sm:$0xff]  ;;  %v559_v33 = vld [vmem:[%s17320_s2 + $0x120] sm:$0xff]  ;;  %10741 = vmatpush3.bf16.msra.mxu1 %v10740_v26 }
  0x22   : > { %1230 = vst [vmem:[#allocation3] sm:$0xff] %v12144_v7  ;;  %1231 = vst [vmem:[#allocation3 + $0x8] sm:$0x3] %v12144_v7  ;;  %v560_v34 = vld [vmem:[%s17320_s2 + $0x128] sm:$0xff]  ;;  %v10712_v35 = vpack.c.bf16 %v528_v32, %v527_v30  ;;  %v545_v36 = vld [vmem:[%s17320_s2 + $0xb0] sm:$0xff]  ;;  %10711 = vmatprep.subr.bf16.mxu0 %v10710_v27 }
  0x23   : > { %1232 = vst [vmem:[#allocation3 + $0x10] sm:$0xff] %v12144_v7  ;;  %1233 = vst [vmem:[#allocation3 + $0x18] sm:$0x3] %v12144_v7  ;;  %v546_v37 = vld [vmem:[%s17320_s2 + $0xb8] sm:$0xff]  ;;  %v577_v38 = vld [vmem:[%s17320_s2 + $0x1b0] sm:$0xff]  ;;  %v10744_v39 = vpack.c.bf16 %v560_v34, %v559_v33  ;;  %10743 = vmatprep.subr.bf16.mxu1 %v10742_v31 }
  0x24   : > { %1234 = vst [vmem:[#allocation3 + $0x20] sm:$0xff] %v12144_v7  ;;  %1235 = vst [vmem:[#allocation3 + $0x28] sm:$0x3] %v12144_v7  ;;  %v10714_v40 = vpack.c.bf16 %v546_v37, %v545_v36  ;;  %v578_v41 = vld [vmem:[%s17320_s2 + $0x1b8] sm:$0xff]  ;;  %v529_v42 = vld [vmem:[%s17320_s2 + $0x30] sm:$0xff]  ;;  %10713 = vmatpush3.bf16.msra.mxu0 %v10712_v35 }
  0x25   : > { %1236 = vst [vmem:[#allocation3 + $0x30] sm:$0xff] %v12144_v7  ;;  %1237 = vst [vmem:[#allocation3 + $0x38] sm:$0x3] %v12144_v7  ;;  %v530_v43 = vld [vmem:[%s17320_s2 + $0x38] sm:$0xff]  ;;  %v10746_v44 = vpack.c.bf16 %v578_v41, %v577_v38  ;;  %v561_v45 = vld [vmem:[%s17320_s2 + $0x130] sm:$0xff]  ;;  %10745 = vmatpush3.bf16.msra.mxu1 %v10744_v39 }
  0x26   : > { %1238 = vst [vmem:[#allocation3 + $0x40] sm:$0xff] %v12144_v7  ;;  %1239 = vst [vmem:[#allocation3 + $0x48] sm:$0x3] %v12144_v7  ;;  %v562_v46 = vld [vmem:[%s17320_s2 + $0x138] sm:$0xff]  ;;  %v547_v47 = vld [vmem:[%s17320_s2 + $0xc0] sm:$0xff]  ;;  %v10716_v51 = vpack.c.bf16 %v530_v43, %v529_v42  ;;  %10715 = vmatprep.subr.bf16.mxu0 %v10714_v40 }
  0x27   : > { %1240 = vst [vmem:[#allocation3 + $0x50] sm:$0xff] %v12144_v7  ;;  %1241 = vst [vmem:[#allocation3 + $0x58] sm:$0x3] %v12144_v7  ;;  %v548_v48 = vld [vmem:[%s17320_s2 + $0xc8] sm:$0xff]  ;;  %v579_v49 = vld [vmem:[%s17320_s2 + $0x1c0] sm:$0xff]  ;;  %v10748_v52 = vpack.c.bf16 %v562_v46, %v561_v45  ;;  %10747 = vmatprep.subr.bf16.mxu1 %v10746_v44 }
  0x28   : > { %1242 = vst [vmem:[#allocation3 + $0x60] sm:$0xff] %v12144_v7  ;;  %1243 = vst [vmem:[#allocation3 + $0x68] sm:$0x3] %v12144_v7  ;;  %v580_v50 = vld [vmem:[%s17320_s2 + $0x1c8] sm:$0xff]  ;;  %v10718_v53 = vpack.c.bf16 %v548_v48, %v547_v47  ;;  %v531_v54 = vld [vmem:[%s17320_s2 + $0x40] sm:$0xff]  ;;  %10717 = vmatpush3.bf16.msra.mxu0 %v10716_v51 }
  0x29   : > { %1244 = vst [vmem:[#allocation3 + $0x70] sm:$0xff] %v12144_v7  ;;  %1245 = vst [vmem:[#allocation3 + $0x78] sm:$0x3] %v12144_v7  ;;  %v532_v55 = vld [vmem:[%s17320_s2 + $0x48] sm:$0xff]  ;;  %v563_v56 = vld [vmem:[%s17320_s2 + $0x140] sm:$0xff]  ;;  %v10750_v57 = vpack.c.bf16 %v580_v50, %v579_v49  ;;  %10749 = vmatpush3.bf16.msra.mxu1 %v10748_v52 }
  0x2a   : > { %1246 = vst [vmem:[#allocation3 + $0x80] sm:$0xff] %v12144_v7  ;;  %1247 = vst [vmem:[#allocation3 + $0x88] sm:$0x3] %v12144_v7  ;;  %v564_v58 = vld [vmem:[%s17320_s2 + $0x148] sm:$0xff]  ;;  %v549_v59 = vld [vmem:[%s17320_s2 + $0xd0] sm:$0xff]  ;;  %v10720_v63 = vpack.c.bf16 %v532_v55, %v531_v54  ;;  %10719 = vmatprep.subr.bf16.mxu0 %v10718_v53 }
  0x2b   : > { %1248 = vst [vmem:[#allocation3 + $0x90] sm:$0xff] %v12144_v7  ;;  %1249 = vst [vmem:[#allocation3 + $0x98] sm:$0x3] %v12144_v7  ;;  %v550_v60 = vld [vmem:[%s17320_s2 + $0xd8] sm:$0xff]  ;;  %v581_v61 = vld [vmem:[%s17320_s2 + $0x1d0] sm:$0xff]  ;;  %v10752_v0 = vpack.c.bf16 %v564_v58, %v563_v56  ;;  %10751 = vmatprep.subr.bf16.mxu1 %v10750_v57 }
  0x2c   : > { %6754 = vst [vmem:[#allocation4] sm:$0xff] %v12144_v7  ;;  %6755 = vst [vmem:[#allocation4 + $0x8] sm:$0xff] %v12144_v7  ;;  %v582_v62 = vld [vmem:[%s17320_s2 + $0x1d8] sm:$0xff]  ;;  %v10722_v1 = vpack.c.bf16 %v550_v60, %v549_v59  ;;  %v533_v2 = vld [vmem:[%s17320_s2 + $0x50] sm:$0xff]  ;;  %10721 = vmatpush3.bf16.msra.mxu0 %v10720_v63 }
  0x2d   : > { %6756 = vst [vmem:[#allocation4 + $0x10] sm:$0x3] %v12144_v7  ;;  %6757 = vst [vmem:[#allocation4 + $0x18] sm:$0x3] %v12144_v7  ;;  %v534_v3 = vld [vmem:[%s17320_s2 + $0x58] sm:$0xff]  ;;  %v565_v4 = vld [vmem:[%s17320_s2 + $0x150] sm:$0xff]  ;;  %v10754_v5 = vpack.c.bf16 %v582_v62, %v581_v61  ;;  %10753 = vmatpush3.bf16.msra.mxu1 %v10752_v0 }
  0x2e   : > { %6758 = vst [vmem:[#allocation4 + $0x20] sm:$0xff] %v12144_v7  ;;  %6759 = vst [vmem:[#allocation4 + $0x28] sm:$0xff] %v12144_v7  ;;  %v566_v6 = vld [vmem:[%s17320_s2 + $0x158] sm:$0xff]  ;;  %v551_v8 = vld [vmem:[%s17320_s2 + $0xe0] sm:$0xff]  ;;  %v10724_v12 = vpack.c.bf16 %v534_v3, %v533_v2  ;;  %10723 = vmatprep.subr.bf16.mxu0 %v10722_v1 }
  0x2f   : > { %6760 = vst [vmem:[#allocation4 + $0x30] sm:$0x3] %v12144_v7  ;;  %6761 = vst [vmem:[#allocation4 + $0x38] sm:$0x3] %v12144_v7  ;;  %v552_v9 = vld [vmem:[%s17320_s2 + $0xe8] sm:$0xff]  ;;  %v583_v10 = vld [vmem:[%s17320_s2 + $0x1e0] sm:$0xff]  ;;  %v10756_v15 = vpack.c.bf16 %v566_v6, %v565_v4  ;;  %10755 = vmatprep.subr.bf16.mxu1 %v10754_v5 }
  0x30   : > { %6762 = vst [vmem:[#allocation4 + $0x40] sm:$0xff] %v12144_v7  ;;  %6763 = vst [vmem:[#allocation4 + $0x48] sm:$0xff] %v12144_v7  ;;  %v584_v11 = vld [vmem:[%s17320_s2 + $0x1e8] sm:$0xff]  ;;  %v535_v13 = vld [vmem:[%s17320_s2 + $0x60] sm:$0xff]  ;;  %v10726_v16 = vpack.c.bf16 %v552_v9, %v551_v8  ;;  %10725 = vmatpush3.bf16.msra.mxu0 %v10724_v12 }
  0x31   : > { %6764 = vst [vmem:[#allocation4 + $0x50] sm:$0x3] %v12144_v7  ;;  %6765 = vst [vmem:[#allocation4 + $0x58] sm:$0x3] %v12144_v7  ;;  %v536_v14 = vld [vmem:[%s17320_s2 + $0x68] sm:$0xff]  ;;  %v567_v17 = vld [vmem:[%s17320_s2 + $0x160] sm:$0xff]  ;;  %v10758_v20 = vpack.c.bf16 %v584_v11, %v583_v10  ;;  %10757 = vmatpush3.bf16.msra.mxu1 %v10756_v15 }
  0x32   : > { %6766 = vst [vmem:[#allocation4 + $0x60] sm:$0xff] %v12144_v7  ;;  %6767 = vst [vmem:[#allocation4 + $0x68] sm:$0xff] %v12144_v7  ;;  %v458_v18 = vld [vmem:[#allocation2 + $0x1] sm:$0xff]  ;;  %v553_v22 = vld [vmem:[%s17320_s2 + $0xf0] sm:$0xff]  ;;  %v10728_v26 = vpack.c.bf16 %v536_v14, %v535_v13  ;;  %10727 = vmatprep.subr.bf16.mxu0 %v10726_v16 }
  0x33   : > { %6768 = vst [vmem:[#allocation4 + $0x70] sm:$0x3] %v12144_v7  ;;  %6769 = vst [vmem:[#allocation4 + $0x78] sm:$0x3] %v12144_v7  ;;  %v12537_v19 = vld [vmem:[%s12519_s22] sm:$0xff]  ;;  %v568_v21 = vld [vmem:[%s17320_s2 + $0x168] sm:$0xff]  ;;  %731 = vmatprep.mubr.f32.mxu0 %v458_v18  ;;  %10759 = vmatprep.subr.bf16.mxu1 %v10758_v20 }
  0x34   : > { %6770 = vst [vmem:[#allocation4 + $0x80] sm:$0xff] %v12144_v7  ;;  %6771 = vst [vmem:[#allocation4 + $0x88] sm:$0xff] %v12144_v7  ;;  %v554_v23 = vld [vmem:[%s17320_s2 + $0xf8] sm:$0xff]  ;;  %v585_v24 = vld [vmem:[%s17320_s2 + $0x1f0] sm:$0xff]  ;;  %v10760_v28 = vpack.c.bf16 %v568_v21, %v567_v17  ;;  %10729 = vmatpush3.bf16.msra.mxu0 %v10728_v26 }
  0x35   : > { %6772 = vst [vmem:[#allocation4 + $0x90] sm:$0x3] %v12144_v7  ;;  %6773 = vst [vmem:[#allocation4 + $0x98] sm:$0x3] %v12144_v7  ;;  %v586_v25 = vld [vmem:[%s17320_s2 + $0x1f8] sm:$0xff]  ;;  %v537_v27 = vld [vmem:[%s17320_s2 + $0x70] sm:$0xff]  ;;  %v10730_v29 = vpack.c.bf16 %v554_v23, %v553_v22 }
  0x36   : > { %6774 = vst [vmem:[#allocation4 + $0xa0] sm:$0xff] %v12144_v7  ;;  %6775 = vst [vmem:[#allocation4 + $0xa8] sm:$0xff] %v12144_v7  ;;  %v538_v30 = vld [vmem:[%s17320_s2 + $0x78] sm:$0xff]  ;;  %v569_v31 = vld [vmem:[%s17320_s2 + $0x170] sm:$0xff]  ;;  %v10762_v33 = vpack.c.bf16 %v586_v25, %v585_v24  ;;  %10761 = vmatpush3.bf16.msra.mxu1 %v10760_v28 }
  0x37   : > { %6776 = vst [vmem:[#allocation4 + $0xb0] sm:$0x3] %v12144_v7  ;;  %6777 = vst [vmem:[#allocation4 + $0xb8] sm:$0x3] %v12144_v7  ;;  %v12565_v32 = vld [vmem:[%s12519_s22 + $0x8] sm:$0xff]  ;;  %v570_v34 = vld [vmem:[%s17320_s2 + $0x178] sm:$0xff]  ;;  %v10732_v39 = vpack.c.bf16 %v538_v30, %v537_v27  ;;  %10731 = vmatprep.subr.bf16.mxu0 %v10730_v29 }
  0x38   : > { %6778 = vst [vmem:[#allocation4 + $0xc0] sm:$0xff] %v12144_v7  ;;  %6779 = vst [vmem:[#allocation4 + $0xc8] sm:$0xff] %v12144_v7  ;;  %v603_v35 = vld [vmem:[%s17320_s2 + $0x280] sm:$0xff]  ;;  %v604_v36 = vld [vmem:[%s17320_s2 + $0x288] sm:$0xff]  ;;  %v10764_v41 = vpack.c.bf16 %v570_v34, %v569_v31  ;;  %10763 = vmatprep.subr.bf16.mxu1 %v10762_v33 }
  0x39   : > { %6780 = vst [vmem:[#allocation4 + $0xd0] sm:$0x3] %v12144_v7  ;;  %6781 = vst [vmem:[#allocation4 + $0xd8] sm:$0x3] %v12144_v7  ;;  %v635_v37 = vld [vmem:[%s17320_s2 + $0x380] sm:$0xff]  ;;  %v636_v38 = vld [vmem:[%s17320_s2 + $0x388] sm:$0xff]  ;;  %v10766_v43 = vpack.c.bf16 %v604_v36, %v603_v35  ;;  %10733 = vmatpush3.bf16.msra.mxu0 %v10732_v39 }
  0x3a   : > { %6782 = vst [vmem:[#allocation4 + $0xe0] sm:$0xff] %v12144_v7  ;;  %6783 = vst [vmem:[#allocation4 + $0xe8] sm:$0xff] %v12144_v7  ;;  %v12584_v40 = vld [vmem:[%s12519_s22 + $0x10] sm:$0xff]  ;;  %v587_v44 = vld [vmem:[%s17320_s2 + $0x200] sm:$0xff]  ;;  %v10798_v46 = vpack.c.bf16 %v636_v38, %v635_v37  ;;  %10765 = vmatpush3.bf16.msra.mxu1 %v10764_v41 }
  0x3b   : > { %6784 = vst [vmem:[#allocation4 + $0xf0] sm:$0x3] %v12144_v7  ;;  %6785 = vst [vmem:[#allocation4 + $0xf8] sm:$0x3] %v12144_v7  ;;  %v588_v45 = vld [vmem:[%s17320_s2 + $0x208] sm:$0xff]  ;;  %v619_v47 = vld [vmem:[%s17320_s2 + $0x300] sm:$0xff]  ;;  %10767 = vmatprep.subr.bf16.mxu0 %v10766_v43 }
  0x3c   : > { %6786 = vst [vmem:[#allocation4 + $0x100] sm:$0xff] %v12144_v7  ;;  %6787 = vst [vmem:[#allocation4 + $0x108] sm:$0xff] %v12144_v7  ;;  %v620_v48 = vld [vmem:[%s17320_s2 + $0x308] sm:$0xff]  ;;  %v605_v49 = vld [vmem:[%s17320_s2 + $0x290] sm:$0xff]  ;;  %v10768_v52 = vpack.c.bf16 %v588_v45, %v587_v44  ;;  %10799 = vmatprep.subr.bf16.mxu1 %v10798_v46  ;;  %732 = vmatmul.mubr.f32.vlgmr.msra.gmra.mrb[0].mxu0 %v12144_v7 }
  0x3d   : > { %6788 = vst [vmem:[#allocation4 + $0x110] sm:$0x3] %v12144_v7  ;;  %6789 = vst [vmem:[#allocation4 + $0x118] sm:$0x3] %v12144_v7  ;;  %v606_v50 = vld [vmem:[%s17320_s2 + $0x298] sm:$0xff]  ;;  %v637_v53 = vld [vmem:[%s17320_s2 + $0x390] sm:$0xff]  ;;  %v10800_v56 = vpack.c.bf16 %v620_v48, %v619_v47  ;;  %736 = vmatprep.mubr.f32.mxu0 %v12537_v19 }
  0x3e   : > { %6790 = vst [vmem:[#allocation4 + $0x120] sm:$0xff] %v12144_v7  ;;  %6791 = vst [vmem:[#allocation4 + $0x128] sm:$0xff] %v12144_v7  ;;  %v12606_v51 = vld [vmem:[%s12519_s22 + $0x18] sm:$0xff]  ;;  %v466_v55 = vld [vmem:[#allocation2 + $0x2] sm:$0xff]  ;;  %v10770_v59 = vpack.c.bf16 %v606_v50, %v605_v49  ;;  %10769 = vmatpush3.bf16.msra.mxu0 %v10768_v52 }
  0x3f   : > { %6792 = vst [vmem:[#allocation4 + $0x130] sm:$0x3] %v12144_v7  ;;  %6793 = vst [vmem:[#allocation4 + $0x138] sm:$0x3] %v12144_v7  ;;  %v638_v54 = vld [vmem:[%s17320_s2 + $0x398] sm:$0xff]  ;;  %v589_v57 = vld [vmem:[%s17320_s2 + $0x210] sm:$0xff] }
  0x40   : > { %442 = vst [vmem:[#allocation2 + $0x11] sm:$0xff] %v12537_v19  ;;  %443 = vst [vmem:[#allocation2 + $0x21] sm:$0xff] %v12565_v32  ;;  %v590_v58 = vld [vmem:[%s17320_s2 + $0x218] sm:$0xff]  ;;  %v621_v60 = vld [vmem:[%s17320_s2 + $0x310] sm:$0xff]  ;;  %v10802_v0 = vpack.c.bf16 %v638_v54, %v637_v53  ;;  %10771 = vmatprep.subr.bf16.mxu0 %v10770_v59 }
  0x41   : > { %444 = vst [vmem:[#allocation2 + $0x31] sm:$0xff] %v12584_v40  ;;  %445 = vst [vmem:[#allocation2 + $0x41] sm:$0xff] %v12606_v51  ;;  %v622_v61 = vld [vmem:[%s17320_s2 + $0x318] sm:$0xff]  ;;  %v607_v62 = vld [vmem:[%s17320_s2 + $0x2a0] sm:$0xff]  ;;  %v10772_v3 = vpack.c.bf16 %v590_v58, %v589_v57 }
  0x42   : > { %v608_v1 = vld [vmem:[%s17320_s2 + $0x2a8] sm:$0xff]  ;;  %v12637_v2 = vld [vmem:[%s12519_s22 + $0x20] sm:$0xff]  ;;  %v10804_v6 = vpack.c.bf16 %v622_v61, %v621_v60  ;;  %v609_v13 = vld [vmem:[%s17320_s2 + $0x2b0] sm:$0xff] }
  0x43   : > { %v639_v4 = vld [vmem:[%s17320_s2 + $0x3a0] sm:$0xff]  ;;  %v640_v7 = vld [vmem:[%s17320_s2 + $0x3a8] sm:$0xff]  ;;  %446 = vst [vmem:[#allocation2 + $0x51] sm:$0xff] %v12637_v2  ;;  %v10774_v10 = vpack.c.bf16 %v608_v1, %v607_v62  ;;  %v610_v16 = vld [vmem:[%s17320_s2 + $0x2b8] sm:$0xff]  ;;  %10773 = vmatpush3.bf16.msra.mxu0 %v10772_v3 }
  0x44   : > { %v591_v8 = vld [vmem:[%s17320_s2 + $0x220] sm:$0xff]  ;;  %v592_v9 = vld [vmem:[%s17320_s2 + $0x228] sm:$0xff]  ;;  %v10806_v15 = vpack.c.bf16 %v640_v7, %v639_v4  ;;  %v641_v20 = vld [vmem:[%s17320_s2 + $0x3b0] sm:$0xff]  ;;  %v10778_v26 = vpack.c.bf16 %v610_v16, %v609_v13 }
  0x45   : > { %v623_v11 = vld [vmem:[%s17320_s2 + $0x320] sm:$0xff]  ;;  %v624_v12 = vld [vmem:[%s17320_s2 + $0x328] sm:$0xff]  ;;  %v10776_v18 = vpack.c.bf16 %v592_v9, %v591_v8  ;;  %v642_v21 = vld [vmem:[%s17320_s2 + $0x3b8] sm:$0xff]  ;;  %10775 = vmatprep.subr.bf16.mxu0 %v10774_v10 }
  0x46   : > { %v12671_v17 = vld [vmem:[%s12519_s22 + $0x28] sm:$0xff]  ;;  %v10808_v23 = vpack.c.bf16 %v624_v12, %v623_v11  ;;  %v593_v24 = vld [vmem:[%s17320_s2 + $0x230] sm:$0xff]  ;;  %v594_v25 = vld [vmem:[%s17320_s2 + $0x238] sm:$0xff]  ;;  %v10810_v31 = vpack.c.bf16 %v642_v21, %v641_v20 }
  0x47   : > { %v474_v42 = vld [vmem:[#allocation2 + $0x10] sm:$0xff]  ;;  %v12631_v63 = vld [vmem:[#allocation2 + $0x20] sm:$0xff]  ;;  %447 = vst [vmem:[#allocation2 + $0x61] sm:$0xff] %v12671_v17  ;;  %v626_v28 = vld [vmem:[%s17320_s2 + $0x338] sm:$0xff]  ;;  %10777 = vmatpush3.bf16.msra.mxu0 %v10776_v18  ;;  %v10780_v35 = vpack.c.bf16 %v594_v25, %v593_v24 }
  0x48   : > { %836 = vmatprep.mubr.f32.mxu1 %v474_v42  ;;  %v12647_v5 = vld [vmem:[#allocation2 + $0x12] sm:$0xff]  ;;  %737 = vmatmul.mubr.f32.gmra.mrb[2].mxu0 %v474_v42  ;;  %v12682_v22 = vld [vmem:[#allocation2 + $0x22] sm:$0xff] }
  0x49   : > { %837 = vmatmul.mubr.f32.vlgmr.msra.gmra.mrb[0].mxu1 %v466_v55  ;;  %v12665_v14 = vld [vmem:[#allocation2 + $0x30] sm:$0xff]  ;;  %741 = vmatprep.mubr.f32.mxu0 %v12565_v32  ;;  %v12701_v30 = vld [vmem:[#allocation2 + $0x40] sm:$0xff]  ;;  %v612_v34 = vld [vmem:[%s17320_s2 + $0x2c8] sm:$0xff] }
  0x4a   : > { %10801 = vmatpush3.bf16.msra.mxu1 %v10800_v56  ;;  %841 = vmatprep.mubr.f32.mxu1 %v12631_v63  ;;  %v625_v27 = vld [vmem:[%s17320_s2 + $0x330] sm:$0xff]  ;;  %v611_v33 = vld [vmem:[%s17320_s2 + $0x2c0] sm:$0xff]  ;;  %v644_v37 = vld [vmem:[%s17320_s2 + $0x3c8] sm:$0xff] }
  0x4b   : > { %10803 = vmatprep.subr.bf16.mxu1 %v10802_v0  ;;  %v12698_v29 = vld [vmem:[%s12519_s22 + $0x30] sm:$0xff]  ;;  %v643_v36 = vld [vmem:[%s17320_s2 + $0x3c0] sm:$0xff]  ;;  %v10812_v39 = vpack.c.bf16 %v626_v28, %v625_v27  ;;  %v596_v42 = vld [vmem:[%s17320_s2 + $0x248] sm:$0xff]  ;;  %10779 = vmatprep.subr.bf16.mxu0 %v10778_v26  ;;  %v10782_v43 = vpack.c.bf16 %v612_v34, %v611_v33 }
  0x4c   : > { %742 = vmatmul.mubr.f32.gmra.mrb[4].mxu0 %v12631_v63  ;;  %448 = vst [vmem:[#allocation2 + $0x71] sm:$0xff] %v12698_v29  ;;  %v12718_v38 = vld [vmem:[#allocation2 + $0x32] sm:$0xff]  ;;  %v595_v41 = vld [vmem:[%s17320_s2 + $0x240] sm:$0xff]  ;;  %v628_v45 = vld [vmem:[%s17320_s2 + $0x348] sm:$0xff]  ;;  %v10814_v48 = vpack.c.bf16 %v644_v37, %v643_v36 }
  0x4d   : > { %842 = vmatmul.mubr.f32.gmra.mrb[2].mxu1 %v12647_v5  ;;  %746 = vmatprep.mubr.f32.mxu0 %v12584_v40  ;;  %v627_v44 = vld [vmem:[%s17320_s2 + $0x340] sm:$0xff]  ;;  %v12734_v46 = vld [vmem:[%s12519_s22 + $0x38] sm:$0xff]  ;;  %v12737_v47 = vld [vmem:[#allocation2 + $0x50] sm:$0xff]  ;;  %v10784_v52 = vpack.c.bf16 %v596_v42, %v595_v41  ;;  %s9073_s22 = sshll.u32 %s392_s16, 6 }
  0x4e   : > { %10805 = vmatpush3.bf16.msra.mxu1 %v10804_v6  ;;  %846 = vmatprep.mubr.f32.mxu1 %v12665_v14  ;;  %v613_v49 = vld [vmem:[%s17320_s2 + $0x2d0] sm:$0xff]  ;;  %v614_v50 = vld [vmem:[%s17320_s2 + $0x2d8] sm:$0xff]  ;;  %449 = vst [vmem:[#allocation2 + $0x81] sm:$0xff] %v12734_v46  ;;  %v12754_v55 = vld [vmem:[#allocation2 + $0x42] sm:$0xff]  ;;  %v10816_v56 = vpack.c.bf16 %v628_v45, %v627_v44  ;;  %s17242_s29 = scalar_lea.vmem [#allocation5], %s9073_s22 }
  0x4f   : > { %10807 = vmatprep.subr.bf16.mxu1 %v10806_v15  ;;  %10781 = vmatpush3.bf16.msra.mxu0 %v10780_v35  ;;  %v645_v53 = vld [vmem:[%s17320_s2 + $0x3d0] sm:$0xff]  ;;  %v646_v54 = vld [vmem:[%s17320_s2 + $0x3d8] sm:$0xff]  ;;  %v10786_v59 = vpack.c.bf16 %v614_v50, %v613_v49  ;;  %v12770_v62 = vld [vmem:[#allocation2 + $0x60] sm:$0xff]  ;;  %s8995_s12 = sshll.u32 %s17242_s29, 4  ;;  %s17272_s12 = int_to_ptr.vmem [resolvable:$true] %s8995_s12 }
  0x50   : > { %747 = vmatmul.mubr.f32.gmra.mrb[6].mxu0 %v12665_v14  ;;  %v597_v57 = vld [vmem:[%s17320_s2 + $0x250] sm:$0xff]  ;;  %v598_v58 = vld [vmem:[%s17320_s2 + $0x258] sm:$0xff]  ;;  %10783 = vmatprep.subr.bf16.mxu0 %v10782_v43  ;;  %v10818_v0 = vpack.c.bf16 %v646_v54, %v645_v53  ;;  %v615_v1 = vld [vmem:[%s17320_s2 + $0x2e0] sm:$0xff]  ;;  %s12080_s21 = scalar_lea.vmem %s17272_s12, 1024 }
  0x51   : > { %847 = vmatmul.mubr.f32.gmra.mrb[4].mxu1 %v12682_v22  ;;  %751 = vmatprep.mubr.f32.mxu0 %v12606_v51  ;;  %v629_v60 = vld [vmem:[%s17320_s2 + $0x350] sm:$0xff]  ;;  %v630_v61 = vld [vmem:[%s17320_s2 + $0x358] sm:$0xff]  ;;  %v616_v3 = vld [vmem:[%s17320_s2 + $0x2e8] sm:$0xff]  ;;  %v10788_v4 = vpack.c.bf16 %v598_v58, %v597_v57  ;;  %p12081_p11 = scmp.ne.s32.totalorder %s17272_s12, %s12080_s21 }
  0x52   : > { %10809 = vmatpush3.bf16.msra.mxu1 %v10808_v23  ;;  %851 = vmatprep.mubr.f32.mxu1 %v12701_v30  ;;  %v647_v7 = vld [vmem:[%s17320_s2 + $0x3e0] sm:$0xff]  ;;  %v648_v6 = vld [vmem:[%s17320_s2 + $0x3e8] sm:$0xff]  ;;  %v12786_v8 = vld [vmem:[#allocation2 + $0x52] sm:$0xff]  ;;  %v10820_v9 = vpack.c.bf16 %v630_v61, %v629_v60  ;;  %v10790_v12 = vpack.c.bf16 %v616_v3, %v615_v1 }
  0x53   : > { %10811 = vmatprep.subr.bf16.mxu1 %v10810_v31  ;;  %10785 = vmatpush3.bf16.msra.mxu0 %v10784_v52  ;;  %v599_v10 = vld [vmem:[%s17320_s2 + $0x260] sm:$0xff]  ;;  %v600_v11 = vld [vmem:[%s17320_s2 + $0x268] sm:$0xff]  ;;  %v12802_v16 = vld [vmem:[#allocation2 + $0x70] sm:$0xff]  ;;  %v10822_v18 = vpack.c.bf16 %v648_v6, %v647_v7  ;;  %p12082_p12 = pnand %p12081_p11, %p12246_p5 }
  0x54   : > { %752 = vmatmul.mubr.f32.gmra.mrb[8].mxu0 %v12701_v30  ;;  %10787 = vmatprep.subr.bf16.mxu0 %v10786_v59  ;;  %v631_v13 = vld [vmem:[%s17320_s2 + $0x360] sm:$0xff]  ;;  %v632_v15 = vld [vmem:[%s17320_s2 + $0x368] sm:$0xff]  ;;  %v617_v20 = vld [vmem:[%s17320_s2 + $0x2f0] sm:$0xff]  ;;  %v10792_v23 = vpack.c.bf16 %v600_v11, %v599_v10 }
  0x55   : > { %852 = vmatmul.mubr.f32.gmra.mrb[6].mxu1 %v12718_v38  ;;  %756 = vmatprep.mubr.f32.mxu0 %v12637_v2  ;;  %v618_v21 = vld [vmem:[%s17320_s2 + $0x2f8] sm:$0xff]  ;;  %v649_v24 = vld [vmem:[%s17320_s2 + $0x3f0] sm:$0xff]  ;;  %v12818_v26 = vld [vmem:[#allocation2 + $0x62] sm:$0xff]  ;;  %v10824_v27 = vpack.c.bf16 %v632_v15, %v631_v13  ;;  %p12083_p13 = pneg %p12082_p12 }
  0x56   : > { %10813 = vmatpush3.bf16.msra.mxu1 %v10812_v39  ;;  %856 = vmatprep.mubr.f32.mxu1 %v12737_v47  ;;  %v650_v25 = vld [vmem:[%s17320_s2 + $0x3f8] sm:$0xff]  ;;  %v601_v28 = vld [vmem:[%s17320_s2 + $0x270] sm:$0xff]  ;;  %v10794_v33 = vpack.c.bf16 %v618_v21, %v617_v20  ;;  %v12834_v36 = vld [vmem:[#allocation2 + $0x80] sm:$0xff] }
  0x57   : > { %10815 = vmatprep.subr.bf16.mxu1 %v10814_v48  ;;  %10789 = vmatpush3.bf16.msra.mxu0 %v10788_v4  ;;  %v602_v31 = vld [vmem:[%s17320_s2 + $0x278] sm:$0xff]  ;;  %v633_v34 = vld [vmem:[%s17320_s2 + $0x370] sm:$0xff]  ;;  %v10826_v37 = vpack.c.bf16 %v650_v25, %v649_v24  ;;  %v651_v39 = vld [vmem:[%s17320_s2 + $0x400] sm:$0xff] }
  0x58   : > { %757 = vmatmul.mubr.f32.gmra.mrb[10].mxu0 %v12737_v47  ;;  %10791 = vmatprep.subr.bf16.mxu0 %v10790_v12  ;;  %v634_v35 = vld [vmem:[%s17320_s2 + $0x378] sm:$0xff]  ;;  %v652_v41 = vld [vmem:[%s17320_s2 + $0x408] sm:$0xff]  ;;  %v10796_v42 = vpack.c.bf16 %v602_v31, %v601_v28  ;;  %v1332_v50 = vld [vmem:[%s17323_s5] sm:$0xff] }
  0x59   : > { %857 = vmatmul.mubr.f32.gmra.mrb[8].mxu1 %v12754_v55  ;;  %761 = vmatprep.mubr.f32.mxu0 %v12671_v17  ;;  %v1333_v43 = vld [vmem:[%s17323_s5 + $0x8] sm:$0xff]  ;;  %v1335_v44 = vld [vmem:[%s17323_s5 + $0x18] sm:$0xff]  ;;  %v10828_v48 = vpack.c.bf16 %v634_v35, %v633_v34  ;;  %v10830_v49 = vpack.c.bf16 %v652_v41, %v651_v39  ;;  %v1334_v52 = vld [vmem:[%s17323_s5 + $0x10] sm:$0xff] }
  0x5a   : > { %10817 = vmatpush3.bf16.msra.mxu1 %v10816_v56  ;;  %861 = vmatprep.mubr.f32.mxu1 %v12770_v62  ;;  %v12850_v45 = vld [vmem:[#allocation2 + $0x72] sm:$0xff]  ;;  %v10862_v54 = vpack.c.bf16 %v1335_v44, %v1333_v43  ;;  %v1337_v57 = vld [vmem:[%s17323_s5 + $0x28] sm:$0xff]  ;;  %v10864_v59 = vpack.c.bf16 %v1334_v52, %v1332_v50  ;;  %v655_v3 = vld [vmem:[%s17320_s2 + $0x420] sm:$0xff] }
  0x5b   : > { %10819 = vmatprep.subr.bf16.mxu1 %v10818_v0  ;;  %10793 = vmatpush3.bf16.msra.mxu0 %v10792_v23  ;;  %v653_v53 = vld [vmem:[%s17320_s2 + $0x410] sm:$0xff]  ;;  %v654_v56 = vld [vmem:[%s17320_s2 + $0x418] sm:$0xff]  ;;  %v1336_v0 = vld [vmem:[%s17323_s5 + $0x20] sm:$0xff] }
  0x5c   : > { %762 = vmatmul.mubr.f32.gmra.mrb[12].mxu0 %v12770_v62  ;;  %10795 = vmatprep.subr.bf16.mxu0 %v10794_v33  ;;  %v1339_v58 = vld [vmem:[%s17323_s5 + $0x38] sm:$0xff]  ;;  %v10834_v60 = vpack.c.bf16 %v654_v56, %v653_v53  ;;  %v1338_v1 = vld [vmem:[%s17323_s5 + $0x30] sm:$0xff]  ;;  %v1341_v4 = vld [vmem:[%s17323_s5 + $0x48] sm:$0xff] }
  0x5d   : > { %862 = vmatmul.mubr.f32.gmra.mrb[10].mxu1 %v12786_v8  ;;  %766 = vmatprep.mubr.f32.mxu0 %v12698_v29  ;;  %v10866_v61 = vpack.c.bf16 %v1339_v58, %v1337_v57  ;;  %v1343_v7 = vld [vmem:[%s17323_s5 + $0x58] sm:$0xff]  ;;  %v1340_v10 = vld [vmem:[%s17323_s5 + $0x40] sm:$0xff]  ;;  %v1342_v11 = vld [vmem:[%s17323_s5 + $0x50] sm:$0xff] }
  0x5e   : > { %10821 = vmatpush3.bf16.msra.mxu1 %v10820_v9  ;;  %866 = vmatprep.mubr.f32.mxu1 %v12802_v16  ;;  %v10870_v9 = vpack.c.bf16 %v1343_v7, %v1341_v4  ;;  %v658_v12 = vld [vmem:[%s17320_s2 + $0x438] sm:$0xff]  ;;  %v1345_v13 = vld [vmem:[%s17323_s5 + $0x68] sm:$0xff]  ;;  %v1344_v21 = vld [vmem:[%s17323_s5 + $0x60] sm:$0xff] }
  0x5f   : > { %10823 = vmatprep.subr.bf16.mxu1 %v10822_v18  ;;  %10797 = vmatpush3.bf16.msra.mxu0 %v10796_v42  ;;  %v1347_v15 = vld [vmem:[%s17323_s5 + $0x78] sm:$0xff]  ;;  %v1346_v23 = vld [vmem:[%s17323_s5 + $0x70] sm:$0xff]  ;;  %v660_v24 = vld [vmem:[%s17320_s2 + $0x448] sm:$0xff] }
  0x60   : > { %767 = vmatmul.mubr.f32.gmra.mrb[14].mxu0 %v12802_v16  ;;  %10831 = vmatprep.subr.bf16.mxu0 %v10830_v49  ;;  %v10874_v20 = vpack.c.bf16 %v1347_v15, %v1345_v13  ;;  %v1349_v25 = vld [vmem:[%s17323_s5 + $0x88] sm:$0xff]  ;;  %v1348_v33 = vld [vmem:[%s17323_s5 + $0x80] sm:$0xff]  ;;  %v1350_v34 = vld [vmem:[%s17323_s5 + $0x90] sm:$0xff] }
  0x61   : > { %867 = vmatmul.mubr.f32.gmra.mrb[12].mxu1 %v12818_v26  ;;  %941 = vmatprep.mubr.f32.mxu0 %v12647_v5  ;;  %v656_v5 = vld [vmem:[%s17320_s2 + $0x428] sm:$0xff]  ;;  %v662_v35 = vld [vmem:[%s17320_s2 + $0x458] sm:$0xff]  ;;  %v1352_v43 = vld [vmem:[%s17323_s5 + $0xa0] sm:$0xff] }
  0x62   : > { %10825 = vmatpush3.bf16.msra.mxu1 %v10824_v27  ;;  %871 = vmatprep.mubr.f32.mxu1 %v12834_v36  ;;  %v10838_v6 = vpack.c.bf16 %v656_v5, %v655_v3  ;;  %v1351_v27 = vld [vmem:[%s17323_s5 + $0x98] sm:$0xff]  ;;  %v1354_v44 = vld [vmem:[%s17323_s5 + $0xb0] sm:$0xff]  ;;  %v1361_v58 = vld [vmem:[%s17323_s5 + $0xe8] sm:$0xff] }
  0x63   : > { %10827 = vmatprep.subr.bf16.mxu1 %v10826_v37  ;;  %v10878_v31 = vpack.c.bf16 %v1351_v27, %v1349_v25  ;;  %v1353_v37 = vld [vmem:[%s17323_s5 + $0xa8] sm:$0xff]  ;;  %v1355_v39 = vld [vmem:[%s17323_s5 + $0xb8] sm:$0xff]  ;;  %v1358_v56 = vld [vmem:[%s17323_s5 + $0xd0] sm:$0xff] }
  0x64   : > { %942 = vmatmul.mubr.f32.vlgmr.msra.gmra.mrb[16].mxu0 %v12537_v19  ;;  %v10868_v19 = vpack.c.bf16 %v1338_v1, %v1336_v0  ;;  %v10882_v42 = vpack.c.bf16 %v1355_v39, %v1353_v37  ;;  %v1359_v50 = vld [vmem:[%s17323_s5 + $0xd8] sm:$0xff]  ;;  %v1362_v1 = vld [vmem:[%s17323_s5 + $0xf0] sm:$0xff]  ;;  %v1365_v3 = vld [vmem:[%s17323_s5 + $0x108] sm:$0xff] }
  0x65   : > { %872 = vmatmul.mubr.f32.gmra.mrb[14].mxu1 %v12850_v45  ;;  %10833 = vmatpush3.bf16.msra.mxu0 %v10830_v49  ;;  %v1357_v49 = vld [vmem:[%s17323_s5 + $0xc8] sm:$0xff]  ;;  %v666_v57 = vld [vmem:[%s17320_s2 + $0x478] sm:$0xff]  ;;  %v13030_v4 = vld [vmem:[%s13010_s14] sm:$0xff] }
  0x66   : > { %10829 = vmatpush3.bf16.msra.mxu1 %v10828_v48  ;;  %1046 = vmatprep.mubr.f32.mxu1 %v12565_v32  ;;  %v664_v48 = vld [vmem:[%s17320_s2 + $0x468] sm:$0xff]  ;;  %v10886_v53 = vpack.c.bf16 %v1359_v50, %v1357_v49  ;;  %v1367_v5 = vld [vmem:[%s17323_s5 + $0x118] sm:$0xff]  ;;  %1251 = vst [vmem:[#allocation3 + $0x11] sm:$0xff] %v13030_v4  ;;  %v13056_v13 = vld [vmem:[#allocation2] sm:$0xff] }
  0x67   : > { %10863 = vmatprep.subr.bf16.mxu1 %v10862_v54  ;;  %946 = vmatprep.mubr.f32.mxu0 %v12682_v22  ;;  %v1356_v54 = vld [vmem:[%s17323_s5 + $0xc0] sm:$0xff]  ;;  %v514_v7 = vld [vmem:[#allocation2 + $0x91] sm:$0xff]  ;;  %v1389_v49 = vld [vmem:[%s17323_s5 + $0x1c8] sm:$0xff] }
  0x68   : > { %10835 = vmatprep.subr.bf16.mxu0 %v10834_v60  ;;  %947 = vmatmul.mubr.f32.gmra.mrb[18].mxu0 %v12565_v32  ;;  %v10872_v32 = vpack.c.bf16 %v1342_v11, %v1340_v10  ;;  %v13046_v10 = vld [vmem:[%s13010_s14 + $0x10] sm:$0xff]  ;;  %v1369_v11 = vld [vmem:[%s17323_s5 + $0x128] sm:$0xff]  ;;  %v13060_v15 = vld [vmem:[%s13010_s14 + $0x18] sm:$0xff] }
  0x69   : > { %1047 = vmatmul.mubr.f32.vlgmr.msra.gmra.mrb[16].mxu1 %v12631_v63  ;;  %v657_v63 = vld [vmem:[%s17320_s2 + $0x430] sm:$0xff]  ;;  %10837 = vmatpush3.bf16.msra.mxu0 %v10834_v60  ;;  %v13013_v60 = vld [vmem:[#allocation2 + $0x82] sm:$0xff]  ;;  %1253 = vst [vmem:[#allocation3 + $0x31] sm:$0xff] %v13046_v10  ;;  %1254 = vst [vmem:[#allocation3 + $0x41] sm:$0xff] %v13060_v15 }
  0x6a   : > { %10865 = vmatpush1.bf16.msra.mxu1 %v10864_v59  ;;  %1051 = vmatprep.mubr.f32.mxu1 %v12584_v40  ;;  %v10842_v18 = vpack.c.bf16 %v658_v12, %v657_v63  ;;  %v1363_v59 = vld [vmem:[%s17323_s5 + $0xf8] sm:$0xff]  ;;  %v1267_v12 = vld [vmem:[#allocation3 + $0x1] sm:$0xff]  ;;  %v13087_v25 = vld [vmem:[%s13010_s14 + $0x30] sm:$0xff] }
  0x6b   : > { %10867 = vmatprep.subr.bf16.mxu1 %v10866_v61  ;;  %951 = vmatprep.mubr.f32.mxu0 %v12718_v38  ;;  %v10890_v0 = vpack.c.bf16 %v1363_v59, %v1361_v58  ;;  %v1371_v63 = vld [vmem:[%s17323_s5 + $0x138] sm:$0xff]  ;;  %v1372_v27 = vld [vmem:[%s17323_s5 + $0x140] sm:$0xff]  ;;  %1257 = vst [vmem:[#allocation3 + $0x71] sm:$0xff] %v13087_v25 }
  0x6c   : > { %10839 = vmatprep.subr.bf16.mxu0 %v10838_v6  ;;  %952 = vmatmul.mubr.f32.gmra.mrb[20].mxu0 %v12584_v40  ;;  %v10876_v40 = vpack.c.bf16 %v1346_v23, %v1344_v21  ;;  %v1370_v21 = vld [vmem:[%s17323_s5 + $0x130] sm:$0xff]  ;;  %v1375_v23 = vld [vmem:[%s17323_s5 + $0x158] sm:$0xff]  ;;  %v1392_v59 = vld [vmem:[%s17323_s5 + $0x1e0] sm:$0xff] }
  0x6d   : > { %1052 = vmatmul.mubr.f32.gmra.mrb[18].mxu1 %v12665_v14  ;;  %v659_v14 = vld [vmem:[%s17320_s2 + $0x440] sm:$0xff]  ;;  %10841 = vmatpush3.bf16.msra.mxu0 %v10838_v6  ;;  %v10894_v6 = vpack.c.bf16 %v1367_v5, %v1365_v3  ;;  %v1391_v50 = vld [vmem:[%s17323_s5 + $0x1d8] sm:$0xff]  ;;  %v1398_v3 = vld [vmem:[%s17323_s5 + $0x210] sm:$0xff] }
  0x6e   : > { %10869 = vmatpush1.bf16.msra.mxu1 %v10868_v19  ;;  %1056 = vmatprep.mubr.f32.mxu1 %v12606_v51  ;;  %v10846_v28 = vpack.c.bf16 %v660_v24, %v659_v14  ;;  %v13082_v14 = vld [vmem:[%s13010_s14 + $0x28] sm:$0xff] }
  0x6f   : > { %10871 = vmatprep.subr.bf16.mxu1 %v10870_v9  ;;  %956 = vmatprep.mubr.f32.mxu0 %v12754_v55  ;;  %v1364_v9 = vld [vmem:[%s17323_s5 + $0x100] sm:$0xff]  ;;  %1256 = vst [vmem:[#allocation3 + $0x61] sm:$0xff] %v13082_v14  ;;  %v1401_v5 = vld [vmem:[%s17323_s5 + $0x228] sm:$0xff] }
  0x70   : > { %10843 = vmatprep.subr.bf16.mxu0 %v10842_v18  ;;  %957 = vmatmul.mubr.f32.gmra.mrb[22].mxu0 %v12606_v51  ;;  %v10880_v51 = vpack.c.bf16 %v1350_v34, %v1348_v33  ;;  %v1376_v34 = vld [vmem:[%s17323_s5 + $0x160] sm:$0xff] }
  0x71   : > { %1057 = vmatmul.mubr.f32.gmra.mrb[20].mxu1 %v12701_v30  ;;  %v661_v30 = vld [vmem:[%s17320_s2 + $0x450] sm:$0xff]  ;;  %10845 = vmatpush3.bf16.msra.mxu0 %v10842_v18  ;;  %v10898_v18 = vpack.c.bf16 %v1371_v63, %v1369_v11  ;;  %v1405_v63 = vld [vmem:[%s17323_s5 + $0x248] sm:$0xff] }
  0x72   : > { %10873 = vmatpush1.bf16.msra.mxu1 %v10872_v32  ;;  %1061 = vmatprep.mubr.f32.mxu1 %v12637_v2  ;;  %v10850_v41 = vpack.c.bf16 %v662_v35, %v661_v30  ;;  %v13065_v32 = vld [vmem:[%s13010_s14 + $0x20] sm:$0xff]  ;;  %v1381_v30 = vld [vmem:[%s17323_s5 + $0x188] sm:$0xff]  ;;  %v522_v35 = vld [vmem:[#allocation2 + $0x92] sm:$0xff] }
  0x73   : > { %10875 = vmatprep.subr.bf16.mxu1 %v10874_v20  ;;  %961 = vmatprep.mubr.f32.mxu0 %v12786_v8  ;;  %v1368_v20 = vld [vmem:[%s17323_s5 + $0x120] sm:$0xff]  ;;  %1255 = vst [vmem:[#allocation3 + $0x51] sm:$0xff] %v13065_v32  ;;  %v1402_v11 = vld [vmem:[%s17323_s5 + $0x230] sm:$0xff] }
  0x74   : > { %10847 = vmatprep.subr.bf16.mxu0 %v10846_v28  ;;  %962 = vmatmul.mubr.f32.gmra.mrb[24].mxu0 %v12637_v2  ;;  %v10884_v2 = vpack.c.bf16 %v1354_v44, %v1352_v43  ;;  %v10900_v24 = vpack.c.bf16 %v1370_v21, %v1368_v20  ;;  %v1404_v21 = vld [vmem:[%s17323_s5 + $0x240] sm:$0xff] }
  0x75   : > { %1062 = vmatmul.mubr.f32.gmra.mrb[22].mxu1 %v12737_v47  ;;  %v663_v47 = vld [vmem:[%s17320_s2 + $0x460] sm:$0xff]  ;;  %10849 = vmatpush3.bf16.msra.mxu0 %v10846_v28  ;;  %v1379_v28 = vld [vmem:[%s17323_s5 + $0x178] sm:$0xff] }
  0x76   : > { %10877 = vmatpush1.bf16.msra.mxu1 %v10876_v40  ;;  %1066 = vmatprep.mubr.f32.mxu1 %v12671_v17  ;;  %v10854_v52 = vpack.c.bf16 %v664_v48, %v663_v47  ;;  %v1374_v40 = vld [vmem:[%s17323_s5 + $0x150] sm:$0xff]  ;;  %v1384_v47 = vld [vmem:[%s17323_s5 + $0x1a0] sm:$0xff] }
  0x77   : > { %10879 = vmatprep.subr.bf16.mxu1 %v10878_v31  ;;  %966 = vmatprep.mubr.f32.mxu0 %v12818_v26  ;;  %v10904_v31 = vpack.c.bf16 %v1374_v40, %v1372_v27  ;;  %v1386_v48 = vld [vmem:[%s17323_s5 + $0x1b0] sm:$0xff]  ;;  %v1408_v40 = vld [vmem:[%s17323_s5 + $0x260] sm:$0xff] }
  0x78   : > { %10851 = vmatprep.subr.bf16.mxu0 %v10850_v41  ;;  %967 = vmatmul.mubr.f32.gmra.mrb[26].mxu0 %v12671_v17  ;;  %v10888_v17 = vpack.c.bf16 %v1358_v56, %v1356_v54  ;;  %v1390_v54 = vld [vmem:[%s17323_s5 + $0x1d0] sm:$0xff]  ;;  %v1393_v56 = vld [vmem:[%s17323_s5 + $0x1e8] sm:$0xff] }
  0x79   : > { %1067 = vmatmul.mubr.f32.gmra.mrb[24].mxu1 %v12770_v62  ;;  %v665_v62 = vld [vmem:[%s17320_s2 + $0x470] sm:$0xff]  ;;  %10853 = vmatpush3.bf16.msra.mxu0 %v10850_v41  ;;  %v1385_v41 = vld [vmem:[%s17323_s5 + $0x1a8] sm:$0xff] }
  0x7a   : > { %10881 = vmatpush1.bf16.msra.mxu1 %v10880_v51  ;;  %1071 = vmatprep.mubr.f32.mxu1 %v12698_v29  ;;  %v10858_v61 = vpack.c.bf16 %v666_v57, %v665_v62  ;;  %v1380_v51 = vld [vmem:[%s17323_s5 + $0x180] sm:$0xff]  ;;  %v1395_v62 = vld [vmem:[%s17323_s5 + $0x1f8] sm:$0xff] }
  0x7b   : > { %10883 = vmatprep.subr.bf16.mxu1 %v10882_v42  ;;  %971 = vmatprep.mubr.f32.mxu0 %v12850_v45  ;;  %v1387_v42 = vld [vmem:[%s17323_s5 + $0x1b8] sm:$0xff]  ;;  %v10922_v58 = vpack.c.bf16 %v1395_v62, %v1393_v56  ;;  %v13276_v56 = vld [vmem:[#allocation3 + $0x60] sm:$0xff] }
  0x7c   : > { %10855 = vmatprep.subr.bf16.mxu0 %v10854_v52  ;;  %972 = vmatmul.mubr.f32.gmra.mrb[28].mxu0 %v12698_v29  ;;  %v13035_v29 = vld [vmem:[%s13010_s14 + $0x8] sm:$0xff]  ;;  %v10914_v44 = vpack.c.bf16 %v1387_v42, %v1385_v41  ;;  %v1416_v41 = vld [vmem:[%s17323_s5 + $0x2a0] sm:$0xff]  ;;  %v1418_v42 = vld [vmem:[%s17323_s5 + $0x2b0] sm:$0xff] }
  0x7d   : > { %1072 = vmatmul.mubr.f32.gmra.mrb[26].mxu1 %v12802_v16  ;;  %v1360_v16 = vld [vmem:[%s17323_s5 + $0xe0] sm:$0xff]  ;;  %10857 = vmatpush3.bf16.msra.mxu0 %v10854_v52  ;;  %1252 = vst [vmem:[#allocation3 + $0x21] sm:$0xff] %v13035_v29  ;;  %v10918_v52 = vpack.c.bf16 %v1391_v50, %v1389_v49 }
  0x7e   : > { %10885 = vmatpush1.bf16.msra.mxu1 %v10884_v2  ;;  %1076 = vmatprep.mubr.f32.mxu1 %v12734_v46  ;;  %v10892_v19 = vpack.c.bf16 %v1362_v1, %v1360_v16  ;;  %v10916_v2 = vpack.c.bf16 %v1386_v48, %v1384_v47  ;;  %v1396_v1 = vld [vmem:[%s17323_s5 + $0x200] sm:$0xff]  ;;  %v10948_v47 = vpack.c.bf16 %v1418_v42, %v1416_v41  ;;  %v13260_v48 = vld [vmem:[#allocation3 + $0x50] sm:$0xff]  ;;  %v1453_v41 = vld [vmem:[%s17323_s5 + $0x3c8] sm:$0xff] }
  0x7f   : > { %10887 = vmatprep.subr.bf16.mxu1 %v10886_v53  ;;  %976 = vmatprep.mubr.f32.mxu0 %v13013_v60  ;;  %v1388_v53 = vld [vmem:[%s17323_s5 + $0x1c0] sm:$0xff]  ;;  %v1455_v42 = vld [vmem:[%s17323_s5 + $0x3d8] sm:$0xff] }
  0x80   : > { %10859 = vmatprep.subr.bf16.mxu0 %v10858_v61  ;;  %977 = vmatmul.mubr.f32.gmra.mrb[30].mxu0 %v12734_v46  ;;  %v10920_v57 = vpack.c.bf16 %v1390_v54, %v1388_v53  ;;  %v1420_v50 = vld [vmem:[%s17323_s5 + $0x2c0] sm:$0xff]  ;;  %v1427_v53 = vld [vmem:[%s17323_s5 + $0x2f8] sm:$0xff] }
  0x81   : > { %1077 = vmatmul.mubr.f32.gmra.mrb[28].mxu1 %v12834_v36  ;;  %v1366_v36 = vld [vmem:[%s17323_s5 + $0x110] sm:$0xff]  ;;  %10861 = vmatpush3.bf16.msra.mxu0 %v10858_v61  ;;  %v1399_v61 = vld [vmem:[%s17323_s5 + $0x218] sm:$0xff] }
  0x82   : > { %10889 = vmatpush1.bf16.msra.mxu1 %v10888_v17  ;;  %1081 = vmatprep.mubr.f32.mxu1 %v514_v7  ;;  %v10896_v46 = vpack.c.bf16 %v1366_v36, %v1364_v9  ;;  %v1394_v17 = vld [vmem:[%s17323_s5 + $0x1f0] sm:$0xff]  ;;  %v1403_v7 = vld [vmem:[%s17323_s5 + $0x238] sm:$0xff]  ;;  %v1400_v36 = vld [vmem:[%s17323_s5 + $0x220] sm:$0xff] }
  0x83   : > { %10891 = vmatprep.subr.bf16.mxu1 %v10890_v0  ;;  %10274 = vmatprep.mubr.f32.mxu0 %v12682_v22  ;;  %v1373_v22 = vld [vmem:[%s17323_s5 + $0x148] sm:$0xff]  ;;  %v10924_v0 = vpack.c.bf16 %v1394_v17, %v1392_v59  ;;  %v10930_v9 = vpack.c.bf16 %v1403_v7, %v1401_v5  ;;  %v1431_v17 = vld [vmem:[%s17323_s5 + $0x318] sm:$0xff] }
  0x84   : > { %10275 = vmatmul.mubr.f32.vlgmr.msra.gmra.mrb[32].mxu0 %v12718_v38  ;;  %v10902_v38 = vpack.c.bf16 %v1375_v23, %v1373_v22  ;;  %v1406_v22 = vld [vmem:[%s17323_s5 + $0x250] sm:$0xff]  ;;  %v1411_v23 = vld [vmem:[%s17323_s5 + $0x278] sm:$0xff]  ;;  %v1429_v59 = vld [vmem:[%s17323_s5 + $0x308] sm:$0xff] }
  0x85   : > { %1082 = vmatmul.mubr.f32.gmra.mrb[30].mxu1 %v13056_v13  ;;  %10277 = vmatprep.mubr.f32.mxu0 %v12754_v55  ;;  %v1377_v55 = vld [vmem:[%s17323_s5 + $0x168] sm:$0xff]  ;;  %v1435_v5 = vld [vmem:[%s17323_s5 + $0x338] sm:$0xff] }
  0x86   : > { %10893 = vmatpush1.bf16.msra.mxu1 %v10892_v19  ;;  %1684 = vmatprep.mubr.f32.mxu1 %v1267_v12  ;;  %v10906_v33 = vpack.c.bf16 %v1379_v28, %v1377_v55  ;;  %v13179_v19 = vld [vmem:[%s13010_s14 + $0x38] sm:$0xff]  ;;  %v1410_v55 = vld [vmem:[%s17323_s5 + $0x270] sm:$0xff]  ;;  %v1413_v28 = vld [vmem:[%s17323_s5 + $0x288] sm:$0xff]  ;;  %s12145_s14 = smov [#allocation5]  }
  0x87   : > { %10895 = vmatprep.subr.bf16.mxu1 %v10894_v6  ;;  %1258 = vst [vmem:[#allocation3 + $0x81] sm:$0xff] %v13179_v19  ;;  %v10928_v6 = vpack.c.bf16 %v1398_v3, %v1396_v1  ;;  %v1407_v12 = vld [vmem:[%s17323_s5 + $0x258] sm:$0xff]  ;;  %v1430_v1 = vld [vmem:[%s17323_s5 + $0x310] sm:$0xff]  ;;  %v1433_v3 = vld [vmem:[%s17323_s5 + $0x328] sm:$0xff]  ;;  %s12084_s24 = sshll.u32 %s12145_s14, 4  ;;  %s12085_s24 = int_to_ptr.vmem [resolvable:$false] %s12084_s24 }
  0x88   : > { %10278 = vmatmul.mubr.f32.gmra.mrb[34].mxu0 %v12786_v8  ;;  %v1378_v8 = vld [vmem:[%s17323_s5 + $0x170] sm:$0xff]  ;;  %v10934_v20 = vpack.c.bf16 %v1407_v12, %v1405_v63  ;;  %v1439_v63 = vld [vmem:[%s17323_s5 + $0x358] sm:$0xff]  ;;  %s12086_s26 = scalar_lea.vmem %s12085_s24, 2048  ;;  %p12087_p0 = scmp.lt.s32.totalorder %s17272_s12, %s12085_s24 }
  0x89   : > { %10280 = vmatprep.mubr.f32.mxu0 %v12818_v26  ;;  %v1383_v26 = vld [vmem:[%s17323_s5 + $0x198] sm:$0xff]  ;;  %v10908_v37 = vpack.c.bf16 %v1378_v8, %v1376_v34  ;;  %v13228_v34 = vld [vmem:[#allocation3 + $0x30] sm:$0xff]  ;;  %p12088_p1 = scmp.lt.s32.totalorder %s12086_s26, %s12080_s21 }
  0x8a   : > { %10897 = vmatpush1.bf16.msra.mxu1 %v10896_v46  ;;  %v10910_v39 = vpack.c.bf16 %v1383_v26, %v1381_v30  ;;  %v10932_v46 = vpack.c.bf16 %v1402_v11, %v1400_v36  ;;  %v1412_v30 = vld [vmem:[%s17323_s5 + $0x280] sm:$0xff]  ;;  %v1414_v26 = vld [vmem:[%s17323_s5 + $0x290] sm:$0xff]  ;;  %v1437_v11 = vld [vmem:[%s17323_s5 + $0x348] sm:$0xff] }
  0x8b   : > { %10899 = vmatprep.subr.bf16.mxu1 %v10898_v18  ;;  %v13196_v18 = vld [vmem:[#allocation3 + $0x10] sm:$0xff]  ;;  %p12089_p2 = por %p12088_p1, %p12087_p0 }
  0x8c   : > { %10281 = vmatmul.mubr.f32.gmra.mrb[36].mxu0 %v12850_v45  ;;  %v1382_v45 = vld [vmem:[%s17323_s5 + $0x190] sm:$0xff] }
  0x8d   : > { %10283 = vmatprep.mubr.f32.mxu0 %v13013_v60  ;;  %v10912_v43 = vpack.c.bf16 %v1382_v45, %v1380_v51  ;;  %v1397_v60 = vld [vmem:[%s17323_s5 + $0x208] sm:$0xff]  ;;  %v13244_v51 = vld [vmem:[#allocation3 + $0x40] sm:$0xff]  ;;  %v1434_v36 = vld [vmem:[%s17323_s5 + $0x330] sm:$0xff]  ;;  %p12090_p3 = pnand %p12089_p2, %p12083_p13 }
  0x8e   : > { %10901 = vmatpush1.bf16.msra.mxu1 %v10900_v24  ;;  %v10926_v16 = vpack.c.bf16 %v1399_v61, %v1397_v60  ;;  %v10936_v24 = vpack.c.bf16 %v1406_v22, %v1404_v21  ;;  %v13292_v61 = vld [vmem:[#allocation3 + $0x70] sm:$0xff]  ;;  %v1441_v21 = vld [vmem:[%s17323_s5 + $0x368] sm:$0xff]  ;;  %v1443_v22 = vld [vmem:[%s17323_s5 + $0x378] sm:$0xff] }
  0x8f   : > { %10903 = vmatprep.subr.bf16.mxu1 %v10902_v38  ;;  %v13212_v38 = vld [vmem:[#allocation3 + $0x20] sm:$0xff] }
  0x90   : > { %10284 = vmatmul.mubr.f32.gmra.mrb[38].mxu0 %v522_v35  ;;  %v1417_v35 = vld [vmem:[%s17323_s5 + $0x2a8] sm:$0xff] }
  0x92   : > { %10905 = vmatpush1.bf16.msra.mxu1 %v10904_v31  ;;  %v1415_v31 = vld [vmem:[%s17323_s5 + $0x298] sm:$0xff] }
  0x93   : > { %10907 = vmatprep.subr.bf16.mxu1 %v10906_v33  ;;  %v10940_v33 = vpack.c.bf16 %v1410_v55, %v1408_v40  ;;  %v10942_v8 = vpack.c.bf16 %v1415_v31, %v1413_v28  ;;  %v1445_v40 = vld [vmem:[%s17323_s5 + $0x388] sm:$0xff]  ;;  %v1447_v55 = vld [vmem:[%s17323_s5 + $0x398] sm:$0xff] }
  0x94   : > { %v10974_v31 = vpack.c.bf16 %v1447_v55, %v1445_v40  ;;  %v1477_v40 = vld [vmem:[%s17323_s5 + $0x488] sm:$0xff] }
  0x96   : > { %10909 = vmatpush1.bf16.msra.mxu1 %v10908_v37  ;;  %v1419_v37 = vld [vmem:[%s17323_s5 + $0x2b8] sm:$0xff] }
  0x97   : > { %10911 = vmatprep.subr.bf16.mxu1 %v10910_v39  ;;  %v10944_v39 = vpack.c.bf16 %v1414_v26, %v1412_v30  ;;  %v10946_v45 = vpack.c.bf16 %v1419_v37, %v1417_v35  ;;  %v1449_v30 = vld [vmem:[%s17323_s5 + $0x3a8] sm:$0xff]  ;;  %v1451_v26 = vld [vmem:[%s17323_s5 + $0x3b8] sm:$0xff] }
  0x98   : > { %v10978_v37 = vpack.c.bf16 %v1451_v26, %v1449_v30  ;;  %v1481_v30 = vld [vmem:[%s17323_s5 + $0x4a8] sm:$0xff] }
  0x9a   : > { %10913 = vmatpush1.bf16.msra.mxu1 %v10912_v43  ;;  %v1421_v43 = vld [vmem:[%s17323_s5 + $0x2c8] sm:$0xff] }
  0x9b   : > { %10915 = vmatprep.subr.bf16.mxu1 %v10914_v44  ;;  %v1423_v44 = vld [vmem:[%s17323_s5 + $0x2d8] sm:$0xff] }
  0x9c   : > { %v10950_v49 = vpack.c.bf16 %v1423_v44, %v1421_v43  ;;  %v10982_v44 = vpack.c.bf16 %v1455_v42, %v1453_v41  ;;  %v1485_v41 = vld [vmem:[%s17323_s5 + $0x4c8] sm:$0xff] }
  0x9e   : > { %10917 = vmatpush1.bf16.msra.mxu1 %v10916_v2  ;;  %v1422_v2 = vld [vmem:[%s17323_s5 + $0x2d0] sm:$0xff] }
  0x9f   : > { %10919 = vmatprep.subr.bf16.mxu1 %v10918_v52  ;;  %v1425_v52 = vld [vmem:[%s17323_s5 + $0x2e8] sm:$0xff]  ;;  %v10952_v54 = vpack.c.bf16 %v1422_v2, %v1420_v50  ;;  %v1459_v2 = vld [vmem:[%s17323_s5 + $0x3f8] sm:$0xff] }
  0xa0   : > { %v10954_v62 = vpack.c.bf16 %v1427_v53, %v1425_v52  ;;  %v1457_v50 = vld [vmem:[%s17323_s5 + $0x3e8] sm:$0xff] }
  0xa1   : > { %v10986_v53 = vpack.c.bf16 %v1459_v2, %v1457_v50  ;;  %v1489_v50 = vld [vmem:[%s17323_s5 + $0x4e8] sm:$0xff] }
  0xa2   : > { %10921 = vmatpush1.bf16.msra.mxu1 %v10920_v57  ;;  %v1424_v57 = vld [vmem:[%s17323_s5 + $0x2e0] sm:$0xff] }
  0xa3   : > { %10923 = vmatprep.subr.bf16.mxu1 %v10922_v58  ;;  %v1426_v58 = vld [vmem:[%s17323_s5 + $0x2f0] sm:$0xff] }
  0xa4   : > { %v10956_v60 = vpack.c.bf16 %v1426_v58, %v1424_v57  ;;  %v1461_v57 = vld [vmem:[%s17323_s5 + $0x408] sm:$0xff]  ;;  %v1463_v58 = vld [vmem:[%s17323_s5 + $0x418] sm:$0xff] }
  0xa6   : > { %10925 = vmatpush1.bf16.msra.mxu1 %v10924_v0  ;;  %v10958_v0 = vpack.c.bf16 %v1431_v17, %v1429_v59  ;;  %v10990_v17 = vpack.c.bf16 %v1463_v58, %v1461_v57  ;;  %v13505_v57 = vld [vmem:[#allocation3 + $0x80] sm:$0xff]  ;;  %v1493_v58 = vld [vmem:[%s17323_s5 + $0x508] sm:$0xff] }
  0xa7   : > { %10927 = vmatprep.subr.bf16.mxu1 %v10926_v16  ;;  %v1428_v16 = vld [vmem:[%s17323_s5 + $0x300] sm:$0xff] }
  0xa8   : > { %v10960_v7 = vpack.c.bf16 %v1430_v1, %v1428_v16  ;;  %v1465_v16 = vld [vmem:[%s17323_s5 + $0x428] sm:$0xff]  ;;  %v1467_v1 = vld [vmem:[%s17323_s5 + $0x438] sm:$0xff] }
  0xa9   : > { %1685 = vmatmul.mubr.f32.vlgmr.msra.gmra.mrb[32].mxu1 %v13056_v13  ;;  %v1409_v13 = vld [vmem:[%s17323_s5 + $0x268] sm:$0xff] }
  0xaa   : > { %10929 = vmatpush1.bf16.msra.mxu1 %v10928_v6  ;;  %1690 = vmatprep.mubr.f32.mxu1 %v13030_v4  ;;  %v10938_v27 = vpack.c.bf16 %v1411_v23, %v1409_v13  ;;  %v10962_v6 = vpack.c.bf16 %v1435_v5, %v1433_v3  ;;  %v10970_v23 = vpack.c.bf16 %v1443_v22, %v1441_v21  ;;  %v1275_v3 = vld [vmem:[#allocation3 + $0x2] sm:$0xff] }
  0xab   : > { %10931 = vmatprep.subr.bf16.mxu1 %v10930_v9  ;;  %v1432_v9 = vld [vmem:[%s17323_s5 + $0x320] sm:$0xff]  ;;  %v1473_v21 = vld [vmem:[%s17323_s5 + $0x468] sm:$0xff] }
  0xac   : > { %v10964_v12 = vpack.c.bf16 %v1434_v36, %v1432_v9  ;;  %v1466_v9 = vld [vmem:[%s17323_s5 + $0x430] sm:$0xff]  ;;  %v1469_v36 = vld [vmem:[%s17323_s5 + $0x448] sm:$0xff] }
  0xad   : > { %1691 = vmatmul.mubr.f32.gmra.mrb[34].mxu1 %v13196_v18 }
  0xae   : > { %10933 = vmatpush1.bf16.msra.mxu1 %v10932_v46  ;;  %1696 = vmatprep.mubr.f32.mxu1 %v13035_v29  ;;  %v10966_v46 = vpack.c.bf16 %v1439_v63, %v1437_v11  ;;  %v1471_v11 = vld [vmem:[%s17323_s5 + $0x458] sm:$0xff] }
  0xaf   : > { %10935 = vmatprep.subr.bf16.mxu1 %v10934_v20  ;;  %v1438_v20 = vld [vmem:[%s17323_s5 + $0x350] sm:$0xff] }
  0xb1   : > { %1697 = vmatmul.mubr.f32.gmra.mrb[36].mxu1 %v13212_v38 }
  0xb2   : > { %10937 = vmatpush1.bf16.msra.mxu1 %v10936_v24  ;;  %1702 = vmatprep.mubr.f32.mxu1 %v13046_v10  ;;  %v1440_v24 = vld [vmem:[%s17323_s5 + $0x360] sm:$0xff] }
  0xb3   : > { %10939 = vmatprep.subr.bf16.mxu1 %v10938_v27  ;;  %v1442_v27 = vld [vmem:[%s17323_s5 + $0x370] sm:$0xff] }
  0xb4   : > { %v10972_v28 = vpack.c.bf16 %v1442_v27, %v1440_v24  ;;  %v1472_v24 = vld [vmem:[%s17323_s5 + $0x460] sm:$0xff]  ;;  %v1474_v27 = vld [vmem:[%s17323_s5 + $0x470] sm:$0xff] }
  0xb5   : > { %1703 = vmatmul.mubr.f32.gmra.mrb[38].mxu1 %v13228_v34  ;;  %v11004_v55 = vpack.c.bf16 %v1474_v27, %v1472_v24  ;;  %v1506_v24 = vld [vmem:[%s17323_s5 + $0x570] sm:$0xff]  ;;  %v1509_v27 = vld [vmem:[%s17323_s5 + $0x588] sm:$0xff] }
  0xb6   : > { %10941 = vmatpush1.bf16.msra.mxu1 %v10940_v33  ;;  %1708 = vmatprep.mubr.f32.mxu1 %v13060_v15  ;;  %v1444_v33 = vld [vmem:[%s17323_s5 + $0x380] sm:$0xff] }
  0xb7   : > { %10943 = vmatprep.subr.bf16.mxu1 %v10942_v8  ;;  %v1446_v8 = vld [vmem:[%s17323_s5 + $0x390] sm:$0xff] }
  0xb8   : > { %v10976_v35 = vpack.c.bf16 %v1446_v8, %v1444_v33  ;;  %v1476_v33 = vld [vmem:[%s17323_s5 + $0x480] sm:$0xff]  ;;  %v1478_v8 = vld [vmem:[%s17323_s5 + $0x490] sm:$0xff] }
  0xb9   : > { %1709 = vmatmul.mubr.f32.gmra.mrb[40].mxu1 %v13244_v51  ;;  %v11008_v26 = vpack.c.bf16 %v1478_v8, %v1476_v33  ;;  %v1510_v33 = vld [vmem:[%s17323_s5 + $0x590] sm:$0xff]  ;;  %v1513_v8 = vld [vmem:[%s17323_s5 + $0x5a8] sm:$0xff] }
  0xba   : > { %10945 = vmatpush1.bf16.msra.mxu1 %v10944_v39  ;;  %1714 = vmatprep.mubr.f32.mxu1 %v13065_v32  ;;  %v1448_v39 = vld [vmem:[%s17323_s5 + $0x3a0] sm:$0xff] }
  0xbb   : > { %10947 = vmatprep.subr.bf16.mxu1 %v10946_v45  ;;  %v1450_v45 = vld [vmem:[%s17323_s5 + $0x3b0] sm:$0xff] }
  0xbc   : > { %v10980_v43 = vpack.c.bf16 %v1450_v45, %v1448_v39  ;;  %v1480_v39 = vld [vmem:[%s17323_s5 + $0x4a0] sm:$0xff]  ;;  %v1482_v45 = vld [vmem:[%s17323_s5 + $0x4b0] sm:$0xff] }
  0xbd   : > { %1715 = vmatmul.mubr.f32.gmra.mrb[42].mxu1 %v13260_v48  ;;  %v11012_v42 = vpack.c.bf16 %v1482_v45, %v1480_v39  ;;  %v1514_v39 = vld [vmem:[%s17323_s5 + $0x5b0] sm:$0xff]  ;;  %v1517_v45 = vld [vmem:[%s17323_s5 + $0x5c8] sm:$0xff] }
  0xbe   : > { %10949 = vmatpush1.bf16.msra.mxu1 %v10948_v47  ;;  %1720 = vmatprep.mubr.f32.mxu1 %v13082_v14  ;;  %v1452_v47 = vld [vmem:[%s17323_s5 + $0x3c0] sm:$0xff] }
  0xbf   : > { %10951 = vmatprep.subr.bf16.mxu1 %v10950_v49  ;;  %v1454_v49 = vld [vmem:[%s17323_s5 + $0x3d0] sm:$0xff] }
  0xc0   : > { %v10984_v52 = vpack.c.bf16 %v1454_v49, %v1452_v47  ;;  %v1484_v47 = vld [vmem:[%s17323_s5 + $0x4c0] sm:$0xff]  ;;  %v1486_v49 = vld [vmem:[%s17323_s5 + $0x4d0] sm:$0xff] }
  0xc1   : > { %1721 = vmatmul.mubr.f32.gmra.mrb[44].mxu1 %v13276_v56  ;;  %v11016_v2 = vpack.c.bf16 %v1486_v49, %v1484_v47  ;;  %v1516_v47 = vld [vmem:[%s17323_s5 + $0x5c0] sm:$0xff]  ;;  %v1518_v49 = vld [vmem:[%s17323_s5 + $0x5d0] sm:$0xff] }
  0xc2   : > { %10953 = vmatpush1.bf16.msra.mxu1 %v10952_v54  ;;  %1726 = vmatprep.mubr.f32.mxu1 %v13087_v25  ;;  %v1456_v54 = vld [vmem:[%s17323_s5 + $0x3e0] sm:$0xff] }
  0xc3   : > { %10955 = vmatprep.subr.bf16.mxu1 %v10954_v62  ;;  %v1458_v62 = vld [vmem:[%s17323_s5 + $0x3f0] sm:$0xff] }
  0xc4   : > { %v10988_v59 = vpack.c.bf16 %v1458_v62, %v1456_v54  ;;  %v1488_v54 = vld [vmem:[%s17323_s5 + $0x4e0] sm:$0xff]  ;;  %v1490_v62 = vld [vmem:[%s17323_s5 + $0x4f0] sm:$0xff] }
  0xc5   : > { %1727 = vmatmul.mubr.f32.gmra.mrb[46].mxu1 %v13292_v61 }
  0xc6   : > { %10957 = vmatpush1.bf16.msra.mxu1 %v10956_v60  ;;  %1797 = vmatprep.mubr.f32.mxu1 %v13196_v18  ;;  %v1436_v18 = vld [vmem:[%s17323_s5 + $0x340] sm:$0xff] }
  0xc7   : > { %10959 = vmatprep.subr.bf16.mxu1 %v10958_v0  ;;  %v10968_v13 = vpack.c.bf16 %v1438_v20, %v1436_v18  ;;  %v1460_v60 = vld [vmem:[%s17323_s5 + $0x400] sm:$0xff]  ;;  %v1462_v0 = vld [vmem:[%s17323_s5 + $0x410] sm:$0xff] }
  0xc8   : > { %v10992_v5 = vpack.c.bf16 %v1462_v0, %v1460_v60  ;;  %v1468_v18 = vld [vmem:[%s17323_s5 + $0x440] sm:$0xff]  ;;  %v1470_v20 = vld [vmem:[%s17323_s5 + $0x450] sm:$0xff] }
  0xc9   : > { %v11000_v22 = vpack.c.bf16 %v1470_v20, %v1468_v18  ;;  %v1492_v0 = vld [vmem:[%s17323_s5 + $0x500] sm:$0xff]  ;;  %v1502_v18 = vld [vmem:[%s17323_s5 + $0x550] sm:$0xff]  ;;  %v1505_v20 = vld [vmem:[%s17323_s5 + $0x568] sm:$0xff] }
  0xca   : > { %10961 = vmatpush1.bf16.msra.mxu1 %v10960_v7  ;;  %v10994_v7 = vpack.c.bf16 %v1467_v1, %v1465_v16  ;;  %v1494_v16 = vld [vmem:[%s17323_s5 + $0x510] sm:$0xff]  ;;  %v1497_v1 = vld [vmem:[%s17323_s5 + $0x528] sm:$0xff] }
  0xcb   : > { %10963 = vmatprep.subr.bf16.mxu1 %v10962_v6  ;;  %v1464_v6 = vld [vmem:[%s17323_s5 + $0x420] sm:$0xff] }
  0xcc   : > { %v10996_v63 = vpack.c.bf16 %v1466_v9, %v1464_v6  ;;  %v1496_v6 = vld [vmem:[%s17323_s5 + $0x520] sm:$0xff]  ;;  %v1498_v9 = vld [vmem:[%s17323_s5 + $0x530] sm:$0xff] }
  0xce   : > { %10965 = vmatpush1.bf16.msra.mxu1 %v10964_v12  ;;  %v13417_v12 = vld [vmem:[#allocation3 + $0x12] sm:$0xff] }
  0xcf   : > { %10967 = vmatprep.subr.bf16.mxu1 %v10966_v46  ;;  %v10998_v46 = vpack.c.bf16 %v1471_v11, %v1469_v36  ;;  %v1501_v36 = vld [vmem:[%s17323_s5 + $0x548] sm:$0xff]  ;;  %v1503_v11 = vld [vmem:[%s17323_s5 + $0x558] sm:$0xff] }
  0xd2   : > { %10969 = vmatpush1.bf16.msra.mxu1 %v10968_v13  ;;  %v13433_v13 = vld [vmem:[#allocation3 + $0x22] sm:$0xff] }
  0xd3   : > { %10971 = vmatprep.subr.bf16.mxu1 %v10970_v23 }
  0xd6   : > { %10973 = vmatpush1.bf16.msra.mxu1 %v10972_v28  ;;  %v13449_v28 = vld [vmem:[#allocation3 + $0x32] sm:$0xff] }
  0xd7   : > { %10975 = vmatprep.subr.bf16.mxu1 %v10974_v31 }
  0xda   : > { %10977 = vmatpush1.bf16.msra.mxu1 %v10976_v35  ;;  %v13465_v35 = vld [vmem:[#allocation3 + $0x42] sm:$0xff] }
  0xdb   : > { %10979 = vmatprep.subr.bf16.mxu1 %v10978_v37 }
  0xde   : > { %10981 = vmatpush1.bf16.msra.mxu1 %v10980_v43  ;;  %v13481_v43 = vld [vmem:[#allocation3 + $0x52] sm:$0xff] }
  0xdf   : > { %10983 = vmatprep.subr.bf16.mxu1 %v10982_v44 }
  0xe2   : > { %10985 = vmatpush1.bf16.msra.mxu1 %v10984_v52  ;;  %v13497_v52 = vld [vmem:[#allocation3 + $0x62] sm:$0xff] }
  0xe3   : > { %10987 = vmatprep.subr.bf16.mxu1 %v10986_v53 }
  0xe6   : > { %10989 = vmatpush1.bf16.msra.mxu1 %v10988_v59  ;;  %v11020_v59 = vpack.c.bf16 %v1490_v62, %v1488_v54 }
  0xe7   : > { %10991 = vmatprep.subr.bf16.mxu1 %v10990_v17  ;;  %v13515_v17 = vld [vmem:[#allocation3 + $0x72] sm:$0xff] }
  0xe9   : > { %1798 = vmatmul.mubr.f32.vlgmr.msra.gmra.mrb[32].mxu1 %v1275_v3  ;;  %v1499_v3 = vld [vmem:[%s17323_s5 + $0x538] sm:$0xff] }
  0xea   : > { %10993 = vmatpush1.bf16.msra.mxu1 %v10992_v5  ;;  %1803 = vmatprep.mubr.f32.mxu1 %v13212_v38  ;;  %v1475_v38 = vld [vmem:[%s17323_s5 + $0x478] sm:$0xff]  ;;  %v11024_v5 = vpack.c.bf16 %v1494_v16, %v1492_v0  ;;  %v1520_v0 = vld [vmem:[%s17323_s5 + $0x5e0] sm:$0xff]  ;;  %v1522_v16 = vld [vmem:[%s17323_s5 + $0x5f0] sm:$0xff] }
  0xeb   : > { %10995 = vmatprep.subr.bf16.mxu1 %v10994_v7  ;;  %v11002_v23 = vpack.c.bf16 %v1475_v38, %v1473_v21  ;;  %v11026_v7 = vpack.c.bf16 %v1499_v3, %v1497_v1  ;;  %v1507_v21 = vld [vmem:[%s17323_s5 + $0x578] sm:$0xff] }
  0xed   : > { %1804 = vmatmul.mubr.f32.gmra.mrb[34].mxu1 %v13417_v12 }
  0xee   : > { %10997 = vmatpush1.bf16.msra.mxu1 %v10996_v63  ;;  %1809 = vmatprep.mubr.f32.mxu1 %v13228_v34  ;;  %v1479_v34 = vld [vmem:[%s17323_s5 + $0x498] sm:$0xff]  ;;  %v11028_v63 = vpack.c.bf16 %v1498_v9, %v1496_v6 }
  0xef   : > { %10999 = vmatprep.subr.bf16.mxu1 %v10998_v46  ;;  %v11006_v31 = vpack.c.bf16 %v1479_v34, %v1477_v40  ;;  %v1500_v46 = vld [vmem:[%s17323_s5 + $0x540] sm:$0xff]  ;;  %v1511_v40 = vld [vmem:[%s17323_s5 + $0x598] sm:$0xff] }
  0xf0   : > { %v11032_v38 = vpack.c.bf16 %v1502_v18, %v1500_v46  ;;  %v1527_v6 = vld [vmem:[%s17323_s5 + $0x618] sm:$0xff]  ;;  %v1524_v18 = vld [vmem:[%s17323_s5 + $0x600] sm:$0xff] }
  0xf1   : > { %1810 = vmatmul.mubr.f32.gmra.mrb[36].mxu1 %v13433_v13 }
  0xf2   : > { %11001 = vmatpush1.bf16.msra.mxu1 %v11000_v22  ;;  %1815 = vmatprep.mubr.f32.mxu1 %v13244_v51  ;;  %v1483_v51 = vld [vmem:[%s17323_s5 + $0x4b8] sm:$0xff]  ;;  %v11034_v22 = vpack.c.bf16 %v1507_v21, %v1505_v20  ;;  %v1526_v20 = vld [vmem:[%s17323_s5 + $0x610] sm:$0xff] }
  0xf3   : > { %11003 = vmatprep.subr.bf16.mxu1 %v11002_v23  ;;  %v11010_v37 = vpack.c.bf16 %v1483_v51, %v1481_v30  ;;  %v1504_v23 = vld [vmem:[%s17323_s5 + $0x560] sm:$0xff]  ;;  %v1515_v30 = vld [vmem:[%s17323_s5 + $0x5b8] sm:$0xff] }
  0xf4   : > { %v11036_v34 = vpack.c.bf16 %v1506_v24, %v1504_v23  ;;  %v1529_v23 = vld [vmem:[%s17323_s5 + $0x628] sm:$0xff]  ;;  %v1531_v24 = vld [vmem:[%s17323_s5 + $0x638] sm:$0xff] }
  0xf5   : > { %1816 = vmatmul.mubr.f32.gmra.mrb[38].mxu1 %v13449_v28 }
  0xf6   : > { %11005 = vmatpush1.bf16.msra.mxu1 %v11004_v55  ;;  %1821 = vmatprep.mubr.f32.mxu1 %v13260_v48  ;;  %v1487_v48 = vld [vmem:[%s17323_s5 + $0x4d8] sm:$0xff]  ;;  %v11038_v55 = vpack.c.bf16 %v1511_v40, %v1509_v27 }
  0xf7   : > { %11007 = vmatprep.subr.bf16.mxu1 %v11006_v31  ;;  %v11014_v44 = vpack.c.bf16 %v1487_v48, %v1485_v41  ;;  %v1508_v31 = vld [vmem:[%s17323_s5 + $0x580] sm:$0xff]  ;;  %v1519_v41 = vld [vmem:[%s17323_s5 + $0x5d8] sm:$0xff] }
  0xf8   : > { %v11040_v51 = vpack.c.bf16 %v1510_v33, %v1508_v31  ;;  %v11058_v33 = vpack.c.bf16 %v1531_v24, %v1529_v23  ;;  %v1545_v24 = vld [vmem:[%s17323_s5 + $0x6a8] sm:$0xff] }
  0xf9   : > { %1822 = vmatmul.mubr.f32.gmra.mrb[40].mxu1 %v13465_v35 }
  0xfa   : > { %11009 = vmatpush1.bf16.msra.mxu1 %v11008_v26  ;;  %1827 = vmatprep.mubr.f32.mxu1 %v13276_v56  ;;  %v1491_v56 = vld [vmem:[%s17323_s5 + $0x4f8] sm:$0xff]  ;;  %v11042_v26 = vpack.c.bf16 %v1515_v30, %v1513_v8  ;;  %v1528_v8 = vld [vmem:[%s17323_s5 + $0x620] sm:$0xff]  ;;  %v1530_v30 = vld [vmem:[%s17323_s5 + $0x630] sm:$0xff] }
  0xfb   : > { %11011 = vmatprep.subr.bf16.mxu1 %v11010_v37  ;;  %v11018_v53 = vpack.c.bf16 %v1491_v56, %v1489_v50  ;;  %v1512_v37 = vld [vmem:[%s17323_s5 + $0x5a0] sm:$0xff] }
  0xfc   : > { %v11044_v48 = vpack.c.bf16 %v1514_v39, %v1512_v37  ;;  %v1533_v39 = vld [vmem:[%s17323_s5 + $0x648] sm:$0xff] }
  0xfd   : > { %1828 = vmatmul.mubr.f32.gmra.mrb[42].mxu1 %v13481_v43 }
  0xfe   : > { %11013 = vmatpush1.bf16.msra.mxu1 %v11012_v42  ;;  %1833 = vmatprep.mubr.f32.mxu1 %v13292_v61  ;;  %v1495_v61 = vld [vmem:[%s17323_s5 + $0x518] sm:$0xff] }
  0xff   : > { %11015 = vmatprep.subr.bf16.mxu1 %v11014_v44  ;;  %v11022_v60 = vpack.c.bf16 %v1495_v61, %v1493_v58  ;;  %v11046_v44 = vpack.c.bf16 %v1519_v41, %v1517_v45  ;;  %v11048_v61 = vpack.c.bf16 %v1518_v49, %v1516_v47  ;;  %v1535_v45 = vld [vmem:[%s17323_s5 + $0x658] sm:$0xff] }
 0x100   : > { %v11062_v49 = vpack.c.bf16 %v1535_v45, %v1533_v39  ;;  %v1549_v45 = vld [vmem:[%s17323_s5 + $0x6c8] sm:$0xff] }
 0x101   : > { %1834 = vmatmul.mubr.f32.gmra.mrb[44].mxu1 %v13497_v52 }
 0x102   : > { %11017 = vmatpush1.bf16.msra.mxu1 %v11016_v2  ;;  %1839 = vmatprep.mubr.f32.mxu1 %v13505_v57  ;;  %v1521_v2 = vld [vmem:[%s17323_s5 + $0x5e8] sm:$0xff] }
 0x103   : > { %11019 = vmatprep.subr.bf16.mxu1 %v11018_v53  ;;  %v1523_v53 = vld [vmem:[%s17323_s5 + $0x5f8] sm:$0xff] }
 0x105   : > { %1840 = vmatmul.mubr.f32.gmra.mrb[46].mxu1 %v13515_v17 }
 0x106   : > { %11021 = vmatpush1.bf16.msra.mxu1 %v11020_v59  ;;  %1910 = vmatprep.mubr.f32.mxu1 %v13417_v12  ;;  %v11030_v12 = vpack.c.bf16 %v1503_v11, %v1501_v36 }
 0x107   : > { %11023 = vmatprep.subr.bf16.mxu1 %v11022_v60  ;;  %v11050_v60 = vpack.c.bf16 %v1523_v53, %v1521_v2 }
 0x10a   : > { %11025 = vmatpush1.bf16.msra.mxu1 %v11024_v5 }
 0x10b   : > { %11027 = vmatprep.subr.bf16.mxu1 %v11026_v7  ;;  %v1525_v7 = vld [vmem:[%s17323_s5 + $0x608] sm:$0xff] }
 0x10c   : > { %v11054_v46 = vpack.c.bf16 %v1527_v6, %v1525_v7  ;;  %v1541_v6 = vld [vmem:[%s17323_s5 + $0x688] sm:$0xff] }
 0x10e   : > { %11029 = vmatpush1.bf16.msra.mxu1 %v11028_v63  ;;  %v11052_v63 = vpack.c.bf16 %v1522_v16, %v1520_v0  ;;  %v1536_v16 = vld [vmem:[%s17323_s5 + $0x660] sm:$0xff] }
 0x10f   : > { %11031 = vmatprep.subr.bf16.mxu1 %v11030_v12  ;;  %v9250_v42 = vpop.f32.mrb[0].mxu0 }
 0x110   : > { %v9251_v56 = vpop.f32.mrb[1].mxu0 }
 0x111   : > { %v9252_v54 = vadd.f32 %v9251_v56, %v9250_v42  ;;  %v1534_v56 = vld [vmem:[%s17323_s5 + $0x650] sm:$0xff] }
 0x112   : > { %11033 = vmatpush1.bf16.msra.mxu1 %v11032_v38 }
 0x113   : > { %11035 = vmatprep.subr.bf16.mxu1 %v11034_v22 }
 0x116   : > { %11037 = vmatpush1.bf16.msra.mxu1 %v11036_v34 }
 0x117   : > { %11039 = vmatprep.subr.bf16.mxu1 %v11038_v55  ;;  %v11056_v55 = vpack.c.bf16 %v1526_v20, %v1524_v18  ;;  %v1540_v20 = vld [vmem:[%s17323_s5 + $0x680] sm:$0xff] }
 0x11a   : > { %11041 = vmatpush1.bf16.msra.mxu1 %v11040_v51 }
 0x11b   : > { %11043 = vmatprep.subr.bf16.mxu1 %v11042_v26  ;;  %v9253_v59 = vpop.f32.mrb[2].mxu0 }
 0x11c   : > { %v9306_v50 = vpop.f32.mrb[0].mxu1  ;;  %v9254_v5 = vpop.f32.mrb[3].mxu0 }
 0x11d   : > { %v9307_v62 = vpop.f32.mrb[1].mxu1  ;;  %v9255_v9 = vadd.f32 %v9254_v5, %v9253_v59 }
 0x11e   : > { %v9308_v58 = vadd.f32 %v9307_v62, %v9306_v50  ;;  %11045 = vmatpush1.bf16.msra.mxu1 %v11044_v48  ;;  %v1532_v50 = vld [vmem:[%s17323_s5 + $0x640] sm:$0xff] }
 0x11f   : > { %11047 = vmatprep.subr.bf16.mxu1 %v11046_v44  ;;  %v9256_v12 = vpop.f32.mrb[4].mxu0  ;;  %v11060_v44 = vpack.c.bf16 %v1530_v30, %v1528_v8  ;;  %v11064_v59 = vpack.c.bf16 %v1534_v56, %v1532_v50  ;;  %v1544_v30 = vld [vmem:[%s17323_s5 + $0x6a0] sm:$0xff] }
 0x120   : > { %v13609_v1 = vadd.f32 %v9308_v58, %v9252_v54  ;;  %v9309_v3 = vpop.f32.mrb[2].mxu1  ;;  %v9257_v22 = vpop.f32.mrb[5].mxu0  ;;  %v1537_v54 = vld [vmem:[%s17323_s5 + $0x668] sm:$0xff]  ;;  %v1548_v56 = vld [vmem:[%s17323_s5 + $0x6c0] sm:$0xff] }
 0x121   : > { %v9310_v36 = vpop.f32.mrb[3].mxu1  ;;  %v9258_v27 = vadd.f32 %v9257_v22, %v9256_v12 }
 0x122   : > { %v9311_v11 = vadd.f32 %v9310_v36, %v9309_v3  ;;  %11049 = vmatpush1.bf16.msra.mxu1 %v11048_v61  ;;  %v1538_v3 = vld [vmem:[%s17323_s5 + $0x670] sm:$0xff] }
 0x123   : > { %11051 = vmatprep.subr.bf16.mxu1 %v11050_v60  ;;  %v9259_v31 = vpop.f32.mrb[6].mxu0  ;;  %v11068_v12 = vpack.c.bf16 %v1538_v3, %v1536_v16 }
 0x124   : > { %v13623_v21 = vadd.f32 %v9311_v11, %v9255_v9  ;;  %v9312_v38 = vpop.f32.mrb[4].mxu1  ;;  %v9260_v37 = vpop.f32.mrb[7].mxu0  ;;  %v1543_v9 = vld [vmem:[%s17323_s5 + $0x698] sm:$0xff] }
 0x125   : > { %v9313_v40 = vpop.f32.mrb[5].mxu1  ;;  %v9261_v41 = vadd.f32 %v9260_v37, %v9259_v31  ;;  %v11070_v18 = vpack.c.bf16 %v1543_v9, %v1541_v6  ;;  %v13734_v6 = vld [vmem:[#allocation3 + $0x82] sm:$0xff] }
 0x126   : > { %v9314_v34 = vadd.f32 %v9313_v40, %v9312_v38  ;;  %11053 = vmatpush1.bf16.msra.mxu1 %v11052_v63  ;;  %v1542_v38 = vld [vmem:[%s17323_s5 + $0x690] sm:$0xff] }
 0x127   : > { %11055 = vmatprep.subr.bf16.mxu1 %v11054_v46  ;;  %v9262_v47 = vpop.f32.mrb[8].mxu0  ;;  %v11072_v31 = vpack.c.bf16 %v1542_v38, %v1540_v20 }
 0x128   : > { %v13637_v51 = vadd.f32 %v9314_v34, %v9258_v27  ;;  %v9315_v26 = vpop.f32.mrb[6].mxu1  ;;  %v1547_v27 = vld [vmem:[%s17323_s5 + $0x6b8] sm:$0xff] }
 0x129   : > { %v9316_v48 = vpop.f32.mrb[7].mxu1  ;;  %1911 = vmatmul.mubr.f32.vlgmr.msra.gmra.mrb[32].mxu1 %v13030_v4  ;;  %v9263_v4 = vpop.f32.mrb[9].mxu0  ;;  %v11074_v8 = vpack.c.bf16 %v1547_v27, %v1545_v24  ;;  %v1558_v24 = vld [vmem:[%s17323_s5 + $0x710] sm:$0xff]  ;;  %v1316_v27 = vld [vmem:[#allocation3 + $0x21] sm:$0xff] }
 0x12a   : > { %v9317_v42 = vadd.f32 %v9316_v48, %v9315_v26  ;;  %11057 = vmatpush1.bf16.msra.mxu1 %v11056_v55  ;;  %1916 = vmatprep.mubr.f32.mxu1 %v13433_v13  ;;  %v1539_v13 = vld [vmem:[%s17323_s5 + $0x678] sm:$0xff]  ;;  %v9264_v62 = vadd.f32 %v9263_v4, %v9262_v47  ;;  %v1546_v26 = vld [vmem:[%s17323_s5 + $0x6b0] sm:$0xff] }
 0x12b   : > { %11059 = vmatprep.subr.bf16.mxu1 %v11058_v33  ;;  %v9265_v60 = vpop.f32.mrb[10].mxu0  ;;  %v11066_v0 = vpack.c.bf16 %v1539_v13, %v1537_v54  ;;  %v11076_v47 = vpack.c.bf16 %v1546_v26, %v1544_v30  ;;  %v1553_v13 = vld [vmem:[%s17323_s5 + $0x6e8] sm:$0xff] }
 0x12c   : > { %v13653_v2 = vadd.f32 %v9317_v42, %v9261_v41  ;;  %v9318_v53 = vpop.f32.mrb[8].mxu1  ;;  %v1551_v41 = vld [vmem:[%s17323_s5 + $0x6d8] sm:$0xff] }
 0x12d   : > { %v9319_v58 = vpop.f32.mrb[9].mxu1  ;;  %1917 = vmatmul.mubr.f32.gmra.mrb[34].mxu1 %v13035_v29  ;;  %v9266_v29 = vpop.f32.mrb[11].mxu0  ;;  %v11078_v50 = vpack.c.bf16 %v1551_v41, %v1549_v45  ;;  %v1560_v45 = vld [vmem:[%s17323_s5 + $0x720] sm:$0xff]  ;;  %v1562_v41 = vld [vmem:[%s17323_s5 + $0x730] sm:$0xff] }
 0x12e   : > { %v9320_v61 = vadd.f32 %v9319_v58, %v9318_v53  ;;  %11061 = vmatpush1.bf16.msra.mxu1 %v11060_v44  ;;  %1922 = vmatprep.mubr.f32.mxu1 %v13449_v28  ;;  %v9267_v36 = vadd.f32 %v9266_v29, %v9265_v60  ;;  %v1550_v53 = vld [vmem:[%s17323_s5 + $0x6d0] sm:$0xff] }
 0x12f   : > { %11063 = vmatprep.subr.bf16.mxu1 %v11062_v49  ;;  %v9268_v46 = vpop.f32.mrb[12].mxu0  ;;  %v11080_v60 = vpack.c.bf16 %v1550_v53, %v1548_v56  ;;  %v1554_v29 = vld [vmem:[%s17323_s5 + $0x6f0] sm:$0xff]  ;;  %v11092_v56 = vpack.c.bf16 %v1562_v41, %v1560_v45 }
 0x130   : > { %v13669_v5 = vadd.f32 %v9320_v61, %v9264_v62  ;;  %v9321_v7 = vpop.f32.mrb[10].mxu1  ;;  %v1555_v62 = vld [vmem:[%s17323_s5 + $0x6f8] sm:$0xff] }
 0x131   : > { %v9322_v11 = vpop.f32.mrb[11].mxu1  ;;  %1923 = vmatmul.mubr.f32.gmra.mrb[36].mxu1 %v13046_v10  ;;  %v9269_v10 = vpop.f32.mrb[13].mxu0  ;;  %v11082_v3 = vpack.c.bf16 %v1555_v62, %v1553_v13  ;;  %v1564_v13 = vld [vmem:[%s17323_s5 + $0x740] sm:$0xff]  ;;  %v1566_v62 = vld [vmem:[%s17323_s5 + $0x750] sm:$0xff] }
 0x132   : > { %v9323_v63 = vadd.f32 %v9322_v11, %v9321_v7  ;;  %11065 = vmatpush1.bf16.msra.mxu1 %v11064_v59  ;;  %1928 = vmatprep.mubr.f32.mxu1 %v13465_v35  ;;  %v9270_v40 = vadd.f32 %v9269_v10, %v9268_v46  ;;  %v1552_v7 = vld [vmem:[%s17323_s5 + $0x6e0] sm:$0xff] }
 0x133   : > { %11067 = vmatprep.subr.bf16.mxu1 %v11066_v0  ;;  %v9271_v33 = vpop.f32.mrb[14].mxu0  ;;  %v1556_v10 = vld [vmem:[%s17323_s5 + $0x700] sm:$0xff] }
 0x134   : > { %v13685_v22 = vadd.f32 %v9323_v63, %v9267_v36  ;;  %v9324_v23 = vpop.f32.mrb[12].mxu1  ;;  %v1557_v36 = vld [vmem:[%s17323_s5 + $0x708] sm:$0xff]  ;;  %v11088_v30 = vpack.c.bf16 %v1558_v24, %v1556_v10 }
 0x135   : > { %v9325_v34 = vpop.f32.mrb[13].mxu1  ;;  %1929 = vmatmul.mubr.f32.gmra.mrb[38].mxu1 %v13060_v15  ;;  %v9272_v15 = vpop.f32.mrb[15].mxu0 }
 0x136   : > { %v9326_v55 = vadd.f32 %v9325_v34, %v9324_v23  ;;  %11069 = vmatpush1.bf16.msra.mxu1 %v11068_v12  ;;  %1934 = vmatprep.mubr.f32.mxu1 %v13481_v43  ;;  %v9273_v48 = vadd.f32 %v9272_v15, %v9271_v33  ;;  %v1561_v34 = vld [vmem:[%s17323_s5 + $0x728] sm:$0xff] }
 0x137   : > { %11071 = vmatprep.subr.bf16.mxu1 %v11070_v18  ;;  %v9362_v49 = vpop.f32.mrb[16].mxu0  ;;  %v11084_v18 = vpack.c.bf16 %v1554_v29, %v1552_v7  ;;  %v11096_v7 = vpack.c.bf16 %v1566_v62, %v1564_v13 }
 0x138   : > { %v13701_v37 = vadd.f32 %v9326_v55, %v9270_v40  ;;  %v9327_v39 = vpop.f32.mrb[14].mxu1 }
 0x139   : > { %v9328_v42 = vpop.f32.mrb[15].mxu1  ;;  %1935 = vmatmul.mubr.f32.gmra.mrb[40].mxu1 %v13065_v32  ;;  %v9363_v32 = vpop.f32.mrb[17].mxu0 }
 0x13a   : > { %v9329_v44 = vadd.f32 %v9328_v42, %v9327_v39  ;;  %11073 = vmatpush1.bf16.msra.mxu1 %v11072_v31  ;;  %1940 = vmatprep.mubr.f32.mxu1 %v13497_v52  ;;  %v9364_v58 = vadd.f32 %v9363_v32, %v9362_v49 }
 0x13b   : > { %11075 = vmatprep.subr.bf16.mxu1 %v11074_v8  ;;  %v9365_v16 = vpop.f32.mrb[18].mxu0 }
 0x13c   : > { %v13717_v4 = vadd.f32 %v9329_v44, %v9273_v48  ;;  %v9418_v54 = vpop.f32.mrb[16].mxu1  ;;  %v944_v0 = vadd.f32 %v9364_v58, %v13609_v1  ;;  %v1559_v1 = vld [vmem:[%s17323_s5 + $0x718] sm:$0xff] }
 0x13d   : > { %v9419_v61 = vpop.f32.mrb[17].mxu1  ;;  %1941 = vmatmul.mubr.f32.gmra.mrb[42].mxu1 %v13082_v14  ;;  %v9366_v14 = vpop.f32.mrb[19].mxu0  ;;  %v11086_v23 = vpack.c.bf16 %v1559_v1, %v1557_v36  ;;  %v1568_v36 = vld [vmem:[%s17323_s5 + $0x760] sm:$0xff]  ;;  %v1570_v1 = vld [vmem:[%s17323_s5 + $0x770] sm:$0xff] }
 0x13e   : > { %v9420_v59 = vadd.f32 %v9419_v61, %v9418_v54  ;;  %11077 = vmatpush1.bf16.msra.mxu1 %v11076_v47  ;;  %1946 = vmatprep.mubr.f32.mxu1 %v13515_v17  ;;  %v9367_v63 = vadd.f32 %v9366_v14, %v9365_v16  ;;  %v11100_v10 = vpack.c.bf16 %v1570_v1, %v1568_v36 }
 0x13f   : > { %11079 = vmatprep.subr.bf16.mxu1 %v11078_v50  ;;  %v9368_v38 = vpop.f32.mrb[20].mxu0 }
 0x140   : > { %v9421_v9 = vpop.f32.mrb[18].mxu1  ;;  %v13742_v11 = vadd.f32 %v9420_v59, %v944_v0  ;;  %v949_v20 = vadd.f32 %v9367_v63, %v13623_v21  ;;  %v1563_v21 = vld [vmem:[%s17323_s5 + $0x738] sm:$0xff]  ;;  %v1569_v59 = vld [vmem:[%s17323_s5 + $0x768] sm:$0xff] }
 0x141   : > { %v9422_v12 = vpop.f32.mrb[19].mxu1  ;;  %1947 = vmatmul.mubr.f32.gmra.mrb[44].mxu1 %v13087_v25  ;;  %v9369_v25 = vpop.f32.mrb[21].mxu0  ;;  %v11090_v15 = vpack.c.bf16 %v1563_v21, %v1561_v34  ;;  %v1574_v34 = vld [vmem:[%s17323_s5 + $0x790] sm:$0xff] }
 0x142   : > { %11081 = vmatpush1.bf16.msra.mxu1 %v11080_v60  ;;  %v9423_v46 = vadd.f32 %v9422_v12, %v9421_v9  ;;  %1952 = vmatprep.mubr.f32.mxu1 %v13734_v6  ;;  %v9370_v31 = vadd.f32 %v9369_v25, %v9368_v38 }
 0x143   : > { %11083 = vmatprep.subr.bf16.mxu1 %v11082_v3  ;;  %v9371_v39 = vpop.f32.mrb[22].mxu0 }
 0x144   : > { %v9424_v40 = vpop.f32.mrb[20].mxu1  ;;  %v13759_v55 = vadd.f32 %v9423_v46, %v949_v20  ;;  %v954_v26 = vadd.f32 %v9370_v31, %v13637_v51  ;;  %v9372_v48 = vpop.f32.mrb[23].mxu0  ;;  %v1567_v51 = vld [vmem:[%s17323_s5 + $0x758] sm:$0xff]  ;;  %v1573_v46 = vld [vmem:[%s17323_s5 + $0x788] sm:$0xff] }
 0x145   : > { %v9425_v33 = vpop.f32.mrb[21].mxu1  ;;  %1953 = vmatmul.mubr.f32.gmra.mrb[46].mxu1 %v13179_v19  ;;  %v1565_v19 = vld [vmem:[%s17323_s5 + $0x748] sm:$0xff]  ;;  %v9373_v47 = vadd.f32 %v9372_v48, %v9371_v39 }
 0x146   : > { %11085 = vmatpush1.bf16.msra.mxu1 %v11084_v18  ;;  %v9426_v8 = vadd.f32 %v9425_v33, %v9424_v40  ;;  %2023 = vmatprep.mubr.f32.mxu1 %v1316_v27  ;;  %v11094_v32 = vpack.c.bf16 %v1567_v51, %v1565_v19  ;;  %v1572_v40 = vld [vmem:[%s17323_s5 + $0x780] sm:$0xff]  ;;  %v1577_v33 = vld [vmem:[%s17323_s5 + $0x7a8] sm:$0xff]  ;;  %v1578_v19 = vld [vmem:[%s17323_s5 + $0x7b0] sm:$0xff] }
 0x147   : > { %11087 = vmatprep.subr.bf16.mxu1 %v11086_v23  ;;  %v959_v53 = vadd.f32 %v9373_v47, %v13653_v2  ;;  %v9374_v54 = vpop.f32.mrb[24].mxu0  ;;  %v1571_v2 = vld [vmem:[%s17323_s5 + $0x778] sm:$0xff] }
 0x148   : > { %v9427_v42 = vpop.f32.mrb[22].mxu1  ;;  %v13775_v44 = vadd.f32 %v9426_v8, %v954_v26  ;;  %v9375_v58 = vpop.f32.mrb[25].mxu0  ;;  %v11098_v9 = vpack.c.bf16 %v1571_v2, %v1569_v59  ;;  %v1582_v59 = vld [vmem:[%s17323_s5 + $0x7d0] sm:$0xff]  ;;  %v13845_v2 = vld [vmem:[%s17321_s3] ss:$0 sm:$0xff] }
 0x149   : > { %v9428_v49 = vpop.f32.mrb[23].mxu1  ;;  %v9376_v0 = vadd.f32 %v9375_v58, %v9374_v54 }
 0x14a   : > { %11089 = vmatpush1.bf16.msra.mxu1 %v11088_v30  ;;  %v9429_v50 = vadd.f32 %v9428_v49, %v9427_v42  ;;  %v1576_v42 = vld [vmem:[%s17323_s5 + $0x7a0] sm:$0xff]  ;;  %v1581_v49 = vld [vmem:[%s17323_s5 + $0x7c8] sm:$0xff] }
 0x14b   : > { %11091 = vmatprep.subr.bf16.mxu1 %v11090_v15  ;;  %v964_v29 = vadd.f32 %v9376_v0, %v13669_v5  ;;  %v9377_v14 = vpop.f32.mrb[26].mxu0  ;;  %v1575_v5 = vld [vmem:[%s17323_s5 + $0x798] sm:$0xff]  ;;  %v11104_v15 = vpack.c.bf16 %v1574_v34, %v1572_v40  ;;  %v1588_v40 = vld [vmem:[%s17323_s5 + $0x800] sm:$0xff]  ;;  %v1590_v34 = vld [vmem:[%s17323_s5 + $0x810] sm:$0xff] }
 0x14c   : > { %v9430_v61 = vpop.f32.mrb[24].mxu1  ;;  %v13790_v60 = vadd.f32 %v9429_v50, %v959_v53  ;;  %v9378_v63 = vpop.f32.mrb[27].mxu0  ;;  %v11102_v25 = vpack.c.bf16 %v1575_v5, %v1573_v46 }
 0x14d   : > { %v9431_v16 = vpop.f32.mrb[25].mxu1  ;;  %v9379_v20 = vadd.f32 %v9378_v63, %v9377_v14  ;;  %v13860_v14 = vld [vmem:[%s17322_s4] ss:$0 sm:$0xff] }
 0x14e   : > { %11093 = vmatpush1.bf16.msra.mxu1 %v11092_v56  ;;  %v9432_v3 = vadd.f32 %v9431_v16, %v9430_v61  ;;  %v1580_v61 = vld [vmem:[%s17323_s5 + $0x7c0] sm:$0xff] }
 0x14f   : > { %11095 = vmatprep.subr.bf16.mxu1 %v11094_v32  ;;  %v969_v24 = vadd.f32 %v9379_v20, %v13685_v22  ;;  %v9380_v27 = vpop.f32.mrb[28].mxu0  ;;  %v1579_v22 = vld [vmem:[%s17323_s5 + $0x7b8] sm:$0xff]  ;;  %v11108_v32 = vpack.c.bf16 %v1578_v19, %v1576_v42  ;;  %v1584_v63 = vld [vmem:[%s17323_s5 + $0x7e0] sm:$0xff]  ;;  %v1589_v20 = vld [vmem:[%s17323_s5 + $0x808] sm:$0xff] }
 0x150   : > { %v9433_v12 = vpop.f32.mrb[26].mxu1  ;;  %v13805_v18 = vadd.f32 %v9432_v3, %v964_v29  ;;  %v9381_v21 = vpop.f32.mrb[29].mxu0  ;;  %v11106_v48 = vpack.c.bf16 %v1579_v22, %v1577_v33  ;;  %v1587_v3 = vld [vmem:[%s17323_s5 + $0x7f8] sm:$0xff]  ;;  %v1593_v22 = vld [vmem:[%s17323_s5 + $0x828] sm:$0xff] }
 0x151   : > { %v9434_v38 = vpop.f32.mrb[27].mxu1  ;;  %v9382_v30 = vadd.f32 %v9381_v21, %v9380_v27  ;;  %v1317_v42 = vld [vmem:[#allocation3 + $0x31] sm:$0xff] }
 0x152   : > { %11097 = vmatpush1.bf16.msra.mxu1 %v11096_v7  ;;  %v9435_v23 = vadd.f32 %v9434_v38, %v9433_v12  ;;  %v1591_v38 = vld [vmem:[%s17323_s5 + $0x818] sm:$0xff] }
 0x153   : > { %11099 = vmatprep.subr.bf16.mxu1 %v11098_v9  ;;  %v974_v45 = vadd.f32 %v9382_v30, %v13701_v37  ;;  %v9383_v41 = vpop.f32.mrb[30].mxu0  ;;  %v1583_v37 = vld [vmem:[%s17323_s5 + $0x7d8] sm:$0xff] }
 0x154   : > { %v9436_v31 = vpop.f32.mrb[28].mxu1  ;;  %v1074_v8 = vadd.f32 %v9435_v23, %v969_v24  ;;  %v9384_v51 = vpop.f32.mrb[31].mxu0  ;;  %v11110_v58 = vpack.c.bf16 %v1583_v37, %v1581_v49  ;;  %v1595_v30 = vld [vmem:[%s17323_s5 + $0x838] sm:$0xff] }
 0x155   : > { %v9437_v26 = vpop.f32.mrb[29].mxu1  ;;  %v9385_v56 = vadd.f32 %v9384_v51, %v9383_v41  ;;  %v11122_v19 = vpack.c.bf16 %v1595_v30, %v1593_v22  ;;  %v1592_v51 = vld [vmem:[%s17323_s5 + $0x820] sm:$0xff]  ;;  %v1610_v22 = vld [vmem:[%s17323_s5 + $0x8b0] sm:$0xff]  ;;  %v1613_v30 = vld [vmem:[%s17323_s5 + $0x8c8] sm:$0xff] }
 0x156   : > { %11101 = vmatpush1.bf16.msra.mxu1 %v11100_v10  ;;  %v9438_v39 = vadd.f32 %v9437_v26, %v9436_v31 }
 0x157   : > { %11103 = vmatprep.subr.bf16.mxu1 %v11102_v25  ;;  %v979_v13 = vadd.f32 %v9385_v56, %v13717_v4  ;;  %v10276_v62 = vpop.f32.mrb[32].mxu0  ;;  %v1585_v4 = vld [vmem:[%s17323_s5 + $0x7e8] sm:$0xff] }
 0x158   : > { %v9439_v47 = vpop.f32.mrb[30].mxu1  ;;  %v13833_v50 = vadd.f32 %v9438_v39, %v974_v45  ;;  %v1159_v0 = vadd.f32 %v10276_v62, %v13759_v55  ;;  %v1153_v16 = vpop.f32.mrb[33].mxu0  ;;  %v11112_v55 = vpack.c.bf16 %v1582_v59, %v1580_v61  ;;  %v11114_v1 = vpack.c.bf16 %v1587_v3, %v1585_v4  ;;  %v1597_v56 = vld [vmem:[%s17323_s5 + $0x848] sm:$0xff]  ;;  %v1596_v4 = vld [vmem:[%s17323_s5 + $0x840] sm:$0xff] }
 0x159   : > { %v9440_v53 = vpop.f32.mrb[31].mxu1  ;;  %v13855_v29 = vadd.f32 %v1153_v16, %v13742_v11  ;;  %v1586_v11 = vld [vmem:[%s17323_s5 + $0x7f0] sm:$0xff]  ;;  %v11120_v45 = vpack.c.bf16 %v1590_v34, %v1588_v40  ;;  %v1601_v3 = vld [vmem:[%s17323_s5 + $0x868] sm:$0xff]  ;;  %v1611_v40 = vld [vmem:[%s17323_s5 + $0x8b8] sm:$0xff] }
 0x15a   : > { %11105 = vmatpush1.bf16.msra.mxu1 %v11104_v15  ;;  %v9441_v54 = vadd.f32 %v9440_v53, %v9439_v47  ;;  %v1200_v9 = vmul.f32 %v13845_v2, %v1159_v0  ;;  %v11116_v24 = vpack.c.bf16 %v1586_v11, %v1584_v63  ;;  %v1308_v15 = vld [vmem:[#allocation3 + $0x20] sm:$0xff]  ;;  %v1599_v53 = vld [vmem:[%s17323_s5 + $0x858] sm:$0xff] }
 0x15b   : > { %11107 = vmatprep.subr.bf16.mxu1 %v11106_v48  ;;  %v10279_v36 = vpop.f32.mrb[34].mxu0  ;;  %v1318_v0 = vld [vmem:[#allocation3 + $0x41] sm:$0xff]  ;;  %v11126_v16 = vpack.c.bf16 %v1599_v53, %v1597_v56  ;;  %v1319_v63 = vld [vmem:[#allocation3 + $0x51] sm:$0xff] }
 0x15c   : > { %v1084_v7 = vadd.f32 %v9441_v54, %v979_v13  ;;  %v1169_v12 = vadd.f32 %v10279_v36, %v13790_v60  ;;  %v1163_v46 = vpop.f32.mrb[35].mxu0  ;;  %v1215_v5 = vadd.f32 %v13860_v14, %v1200_v9  ;;  %v11118_v60 = vpack.c.bf16 %v1591_v38, %v1589_v20  ;;  %v1310_v36 = vld [vmem:[#allocation3 + $0x40] sm:$0xff]  ;;  %v1607_v20 = vld [vmem:[%s17323_s5 + $0x898] sm:$0xff]  ;;  %v1311_v38 = vld [vmem:[#allocation3 + $0x50] sm:$0xff] }
 0x15d   : > { %v1164_v23 = vadd.f32 %v1163_v46, %v13775_v44  ;;  %v1602_v46 = vld [vmem:[%s17323_s5 + $0x870] sm:$0xff]  ;;  %v1312_v34 = vld [vmem:[#allocation3 + $0x60] sm:$0xff] }
 0x15e   : > { %11109 = vmatpush1.bf16.msra.mxu1 %v11108_v32  ;;  %v1223_v10 = vmax.f32 %v1215_v5, 0.0  ;;  %v1202_v27 = vmul.f32 %v13845_v2, %v1169_v12  ;;  %v1600_v12 = vld [vmem:[%s17323_s5 + $0x860] sm:$0xff]  ;;  %v1605_v5 = vld [vmem:[%s17323_s5 + $0x888] sm:$0xff]  ;;  %v1618_v56 = vld [vmem:[%s17323_s5 + $0x8f0] sm:$0xff] }
 0x15f   : > { %11111 = vmatprep.subr.bf16.mxu1 %v11110_v58  ;;  %v10282_v25 = vpop.f32.mrb[36].mxu0  ;;  %v1201_v21 = vmul.f32 %v13845_v2, %v1164_v23  ;;  %v1309_v58 = vld [vmem:[#allocation3 + $0x30] sm:$0xff]  ;;  %v11132_v23 = vpack.c.bf16 %v1602_v46, %v1600_v12 }
 0x160   : > { %v1179_v31 = vadd.f32 %v10282_v25, %v1074_v8  ;;  %v1173_v44 = vpop.f32.mrb[37].mxu0  ;;  %2289 = vxpose.xlu0.b32.start.end [1/1] (short) %v1223_v10, 128  ;;  %v1217_v33 = vadd.f32 %v13860_v14, %v1202_v27  ;;  %v1320_v10 = vld [vmem:[#allocation3 + $0x61] sm:$0xff]  ;;  %v1606_v25 = vld [vmem:[%s17323_s5 + $0x890] sm:$0xff] }
 0x161   : > { %v1174_v26 = vadd.f32 %v1173_v44, %v13805_v18  ;;  %v13895_v39 = vadd.f32 %v13860_v14, %v1201_v21  ;;  %v1594_v18 = vld [vmem:[%s17323_s5 + $0x830] sm:$0xff]  ;;  %v1604_v27 = vld [vmem:[%s17323_s5 + $0x880] sm:$0xff] }
 0x162   : > { %11113 = vmatpush1.bf16.msra.mxu1 %v11112_v55  ;;  %v1225_v8 = vmax.f32 %v1217_v33, 0.0  ;;  %v1204_v41 = vmul.f32 %v13845_v2, %v1179_v31  ;;  %v11124_v61 = vpack.c.bf16 %v1594_v18, %v1592_v51  ;;  %v11136_v21 = vpack.c.bf16 %v1606_v25, %v1604_v27  ;;  %v1321_v31 = vld [vmem:[#allocation3 + $0x71] sm:$0xff]  ;;  %v1608_v33 = vld [vmem:[%s17323_s5 + $0x8a0] sm:$0xff] }
 0x163   : > { %11115 = vmatprep.subr.bf16.mxu1 %v11114_v1  ;;  %v10285_v48 = vpop.f32.mrb[38].mxu0  ;;  %v1203_v47 = vmul.f32 %v13845_v2, %v1174_v26  ;;  %v1615_v26 = vld [vmem:[%s17323_s5 + $0x8d8] sm:$0xff]  ;;  %v12059_v51 = vld [vmem:[#allocation3 + $0x81] sm:$0xff] }
 0x164   : > { %v1189_v49 = vadd.f32 %v10285_v48, %v1084_v7  ;;  %v1183_v37 = vpop.f32.mrb[39].mxu0  ;;  %2353 = vxpose.xlu1.b32.start.end [1/1] (short) %v1225_v8, 128  ;;  %v13912_v54 = vadd.f32 %v13860_v14, %v1204_v41  ;;  %v1603_v7 = vld [vmem:[%s17323_s5 + $0x878] sm:$0xff]  ;;  %v11140_v8 = vpack.c.bf16 %v1610_v22, %v1608_v33  ;;  %v1612_v41 = vld [vmem:[%s17323_s5 + $0x8c0] sm:$0xff]  ;;  %v1614_v48 = vld [vmem:[%s17323_s5 + $0x8d0] sm:$0xff] }
 0x165   : > { %v1184_v32 = vadd.f32 %v1183_v37, %v13833_v50  ;;  %v13916_v13 = vadd.f32 %v13860_v14, %v1203_v47  ;;  %v1598_v50 = vld [vmem:[%s17323_s5 + $0x850] sm:$0xff]  ;;  %v11130_v11 = vpack.c.bf16 %v1603_v7, %v1601_v3  ;;  %v11144_v18 = vpack.c.bf16 %v1614_v48, %v1612_v41  ;;  %v1616_v37 = vld [vmem:[%s17323_s5 + $0x8e0] sm:$0xff] }
 0x166   : > { %11117 = vmatpush1.bf16.msra.mxu1 %v11116_v24  ;;  %v1206_v62 = vmul.f32 %v13845_v2, %v1189_v49  ;;  %v11128_v1 = vpack.c.bf16 %v1598_v50, %v1596_v4  ;;  %v11134_v24 = vpack.c.bf16 %v1607_v20, %v1605_v5  ;;  %v1323_v47 = vld [vmem:[#allocation3 + $0x91] sm:$0xff]  ;;  %v11148_v53 = vpack.c.bf16 %v1618_v56, %v1616_v37  ;;  %v2185_v56 = vld [vmem:[%s17324_s6] sm:$0x3] }
 0x167   : > { %11119 = vmatprep.subr.bf16.mxu1 %v11118_v60  ;;  %v1205_v59 = vmul.f32 %v13845_v2, %v1184_v32  ;;  %v1609_v60 = vld [vmem:[%s17323_s5 + $0x8a8] sm:$0xff]  ;;  %v12060_v32 = vld [vmem:[#allocation2] sm:$0xff] }
 0x168   : > { %v13933_v55 = vadd.f32 %v13860_v14, %v1206_v62  ;;  %v11138_v44 = vpack.c.bf16 %v1611_v40, %v1609_v60  ;;  %v12061_v62 = vld [vmem:[#allocation3 + $0x22] sm:$0xff] }
 0x169   : > { %2024 = vmatmul.mubr.f32.vlgmr.msra.gmra.mrb[32].mxu1 %v1308_v15  ;;  %v13936_v9 = vadd.f32 %v13860_v14, %v1205_v59  ;;  %v1313_v15 = vld [vmem:[#allocation3 + $0x70] sm:$0xff] }
 0x16a   : > { %11121 = vmatpush1.bf16.msra.mxu1 %v11120_v45  ;;  %2029 = vmatprep.mubr.f32.mxu1 %v1317_v42  ;;  %v11142_v45 = vpack.c.bf16 %v1615_v26, %v1613_v30  ;;  %v1617_v42 = vld [vmem:[%s17323_s5 + $0x8e8] sm:$0xff]  ;;  %v1229_v40 = vmax.f32 %v13933_v55, 0.0 }
 0x16b   : > { %11123 = vmatprep.subr.bf16.mxu1 %v11122_v19  ;;  %v1619_v19 = vld [vmem:[%s17323_s5 + $0x8f8] sm:$0xff]  ;;  %v1228_v27 = vmax.f32 %v13936_v9, 0.0 }
 0x16c   : > { %v11146_v49 = vpack.c.bf16 %v1619_v19, %v1617_v42  ;;  %v2187_v19 = vlaneseq }
 0x16d   : > { %2030 = vmatmul.mubr.f32.gmra.mrb[34].mxu1 %v1309_v58 }
 0x16e   : > { %11125 = vmatpush1.bf16.msra.mxu1 %v11124_v61  ;;  %2035 = vmatprep.mubr.f32.mxu1 %v1318_v0 }
 0x16f   : > { %11127 = vmatprep.subr.bf16.mxu1 %v11126_v16 }
 0x171   : > { %2036 = vmatmul.mubr.f32.gmra.mrb[36].mxu1 %v1310_v36 }
 0x172   : > { %11129 = vmatpush1.bf16.msra.mxu1 %v11128_v1  ;;  %2041 = vmatprep.mubr.f32.mxu1 %v1319_v63 }
 0x173   : > { %11131 = vmatprep.subr.bf16.mxu1 %v11130_v11 }
 0x175   : > { %2042 = vmatmul.mubr.f32.gmra.mrb[38].mxu1 %v1311_v38 }
 0x176   : > { %11133 = vmatpush1.bf16.msra.mxu1 %v11132_v23  ;;  %2047 = vmatprep.mubr.f32.mxu1 %v1320_v10 }
 0x177   : > { %11135 = vmatprep.subr.bf16.mxu1 %v11134_v24 }
 0x179   : > { %2048 = vmatmul.mubr.f32.gmra.mrb[40].mxu1 %v1312_v34 }
 0x17a   : > { %11137 = vmatpush1.bf16.msra.mxu1 %v11136_v21  ;;  %2053 = vmatprep.mubr.f32.mxu1 %v1321_v31 }
 0x17b   : > { %11139 = vmatprep.subr.bf16.mxu1 %v11138_v44 }
 0x17d   : > { %2054 = vmatmul.mubr.f32.gmra.mrb[42].mxu1 %v1313_v15 }
 0x17e   : > { %11141 = vmatpush1.bf16.msra.mxu1 %v11140_v8  ;;  %2059 = vmatprep.mubr.f32.mxu1 %v12059_v51 }
 0x17f   : > { %11143 = vmatprep.subr.bf16.mxu1 %v11142_v45 }
 0x181   : > { %2060 = vmatmul.mubr.f32.gmra.mrb[44].mxu1 %v13505_v57  ;;  %v1199_v57 = vmul.f32 %v13845_v2, %v13855_v29 }
 0x182   : > { %11145 = vmatpush1.bf16.msra.mxu1 %v11144_v18  ;;  %2065 = vmatprep.mubr.f32.mxu1 %v1323_v47  ;;  %v2188_v18 = vshrl.u32 %v2187_v19, 7 }
 0x183   : > { %11147 = vmatprep.subr.bf16.mxu1 %v11146_v49  ;;  %v1214_v58 = vadd.f32 %v13860_v14, %v1199_v57 }
 0x184   : > { %v2189_v37 = vsub.s32 0, %v2188_v18 }
 0x185   : > { %2066 = vmatmul.mubr.f32.gmra.mrb[46].mxu1 %v12060_v32  ;;  %v1222_v61 = vmax.f32 %v1214_v58, 0.0 }
 0x186   : > { %11149 = vmatpush1.bf16.msra.mxu1 %v11148_v53  ;;  %2136 = vmatprep.mubr.f32.mxu1 %v12060_v32  ;;  %v2193_v53 = vsub.s32 1, %v2188_v18  ;;  %v14105_v57 = vrot.slane %v2185_v56, %v2189_v37 }
 0x188   : > { %v14107_v58 = vrot.slane %v2185_v56, %v2193_v53 }
 0x189   : > { %2137 = vmatmul.mubr.f32.vlgmr.msra.gmra.mrb[32].mxu1 %v12061_v62  ;;  %v2213_v62 = vld [vmem:[%s17325_s7] sm:$0x3] }
 0x18a   : > { %2142 = vmatprep.mubr.f32.mxu1 %v12060_v32 }
 0x18d   : > { %2143 = vmatmul.mubr.f32.gmra.mrb[34].mxu1 %v13449_v28  ;;  %v1331_v28 = vld [vmem:[#allocation3 + $0x92] sm:$0xff] }
 0x18e   : > { %2148 = vmatprep.mubr.f32.mxu1 %v12060_v32 }
 0x191   : > { %2149 = vmatmul.mubr.f32.gmra.mrb[36].mxu1 %v13465_v35  ;;  %v1224_v35 = vmax.f32 %v13895_v39, 0.0 }
 0x192   : > { %2154 = vmatprep.mubr.f32.mxu1 %v12060_v32 }
 0x195   : > { %2155 = vmatmul.mubr.f32.gmra.mrb[38].mxu1 %v13481_v43  ;;  %v1226_v43 = vmax.f32 %v13916_v13, 0.0 }
 0x196   : > { %2160 = vmatprep.mubr.f32.mxu1 %v12060_v32 }
 0x199   : > { %2161 = vmatmul.mubr.f32.gmra.mrb[40].mxu1 %v13497_v52  ;;  %v1227_v52 = vmax.f32 %v13912_v54, 0.0 }
 0x19a   : > { %2166 = vmatprep.mubr.f32.mxu1 %v12060_v32 }
 0x19d   : > { %2167 = vmatmul.mubr.f32.gmra.mrb[42].mxu1 %v13515_v17  ;;  %2257 = vxpose.xlu0.b32.start.end [1/1] (short) %v1222_v61, 128 }
 0x19e   : > { %2172 = vmatprep.mubr.f32.mxu1 %v12060_v32 }
 0x1a1   : > { %2173 = vmatmul.mubr.f32.gmra.mrb[44].mxu1 %v13734_v6  ;;  %2321 = vxpose.xlu1.b32.start.end [1/1] (short) %v1224_v35, 128 }
 0x1a2   : > { %2178 = vmatprep.mubr.f32.mxu1 %v12060_v32 }
 0x1a5   : > { %2179 = vmatmul.mubr.f32.gmra.mrb[46].mxu1 %v1331_v28  ;;  %v14109_v28 = vrot.slane %v2213_v62, %v2189_v37 }
 0x1da   : > { %2385 = vxpose.xlu0.b32.start.end [1/1] (short) %v1226_v43, 128  ;;  %v14111_v43 = vrot.slane %v2213_v62, %v2193_v53 }
 0x1de   : > { %2417 = vxpose.xlu1.b32.start.end [1/1] (short) %v1227_v52, 128 }
 0x1e0   : > { %v14005_v2 = vpop.trf.xlu0 }
 0x1e4   : > { %v14007_v17 = vpop.trf.xlu1  ;;  %v14009_v29 = vpop.trf.xlu0 }
 0x1e8   : > { %v14011_v6 = vpop.trf.xlu1  ;;  %v14013_v14 = vpop.trf.xlu0 }
 0x1ec   : > { %v14015_v59 = vpop.trf.xlu1  ;;  %v14017_v39 = vpop.trf.xlu0 }
 0x1f0   : > { %v14019_v0 = vpop.trf.xlu1  ;;  %v14021_v13 = vpop.trf.xlu0 }
 0x1f4   : > { %v14023_v54 = vpop.trf.xlu1  ;;  %v14025_v16 = vpop.trf.xlu0 }
 0x1f8   : > { %v14027_v4 = vpop.trf.xlu1  ;;  %v14029_v50 = vpop.trf.xlu0 }
 0x1fc   : > { %v14031_v3 = vpop.trf.xlu1  ;;  %v14033_v7 = vpop.trf.xlu0 }
 0x200   : > { %v14035_v36 = vpop.trf.xlu1  ;;  %v14037_v1 = vpop.trf.xlu0 }
 0x204   : > { %v14039_v63 = vpop.trf.xlu1  ;;  %v14041_v11 = vpop.trf.xlu0 }
 0x208   : > { %v14043_v12 = vpop.trf.xlu1  ;;  %v14045_v46 = vpop.trf.xlu0 }
 0x20c   : > { %v14047_v5 = vpop.trf.xlu1  ;;  %v14049_v20 = vpop.trf.xlu0 }
 0x210   : > { %v14051_v38 = vpop.trf.xlu1  ;;  %v14053_v23 = vpop.trf.xlu0 }
 0x214   : > { %v14055_v10 = vpop.trf.xlu1  ;;  %v14057_v24 = vpop.trf.xlu0 }
 0x218   : > { %v14060_v25 = vpop.trf.xlu1  ;;  %v14062_v60 = vpop.trf.xlu0  ;;  %2449 = vxpose.xlu0.b32.start.end [1/1] (short) %v1228_v27, 128 }
 0x21c   : > { %v14065_v34 = vpop.trf.xlu1  ;;  %2481 = vxpose.xlu1.b32.start.end [1/1] (short) %v1229_v40, 128  ;;  %v14067_v21 = vpop.trf.xlu0 }
 0x21d   : > { %17521 = vst [vmem:[#allocation11_spill] sm:$0xff] %v14065_v34 }
 0x220   : > { %v2273_v31 = vpop.trf.xlu0  ;;  %v14078_v55 = vpop.trf.xlu1 }
 0x221   : > { %10288 = vmatprep.mubr.msk.f32.mxu0 %vm2513_vm0, %v2273_v31  ;;  %17522 = vst [vmem:[#allocation12_spill] sm:$0xff] %v14078_v55 }
 0x224   : > { %v2274_v44 = vpop.trf.xlu0  ;;  %v14084_v45 = vpop.trf.xlu1 }
 0x228   : > { %v2275_v33 = vpop.trf.xlu0  ;;  %v14088_v48 = vpop.trf.xlu1 }
 0x22c   : > { %v14070_v22 = vpop.trf.xlu0  ;;  %v14094_v47 = vpop.trf.xlu1 }
 0x230   : > { %v14072_v9 = vpop.trf.xlu0  ;;  %v14100_v32 = vpop.trf.xlu1 }
 0x234   : > { %v14074_v30 = vpop.trf.xlu0  ;;  %v14114_v40 = vpop.trf.xlu1 }
 0x238   : > { %v14076_v26 = vpop.trf.xlu0 }
 0x23c   : > { %v14080_v15 = vpop.trf.xlu0 }
 0x240   : > { %v14082_v8 = vpop.trf.xlu0 }
 0x244   : > { %v14086_v41 = vpop.trf.xlu0 }
 0x248   : > { %v14090_v42 = vpop.trf.xlu0 }
 0x24c   : > { %v14092_v51 = vpop.trf.xlu0 }
 0x250   : > { %v2285_v49 = vpop.trf.xlu0 }
 0x251   : > { %10306 = vmatprep.mubr.msk.f32.mxu1 %vm2513_vm0, %v2285_v49 }
 0x254   : > { %v2286_v61 = vpop.trf.xlu0 }
 0x258   : > { %v2287_v56 = vpop.trf.xlu0 }
 0x25c   : > { %v2138_v35 = vpop.f32.mrb[32].mxu1 }
 0x25d   : > { %v2197_v52 = vmul.f32 %v14105_v57, %v2138_v35  ;;  %v2140_v27 = vpop.f32.mrb[33].mxu1  ;;  %v14124_v35 = vpop.trf.xlu1 }
 0x25e   : > { %v2198_v31 = vmul.f32 %v14107_v58, %v2140_v27 }
 0x25f   : > { %v2225_v19 = vadd.f32 %v14109_v28, %v2197_v52 }
 0x260   : > { %v14119_v18 = vadd.f32 %v14111_v43, %v2198_v31  ;;  %v2144_v49 = vpop.f32.mrb[34].mxu1 }
 0x261   : > { %v2241_v55 = vmax.f32 %v2225_v19, 0.0  ;;  %v2199_v37 = vmul.f32 %v14105_v57, %v2144_v49  ;;  %v2146_v34 = vpop.f32.mrb[35].mxu1 }
 0x262   : > { %17523 = vst [vmem:[#allocation13_spill] sm:$0xff] %v14119_v18  ;;  %v2200_v53 = vmul.f32 %v14107_v58, %v2146_v34 }
 0x263   : > { %v2227_v62 = vadd.f32 %v14109_v28, %v2199_v37  ;;  %10286 = vmatprep.subr.mxu0 %v2241_v55  ;;  %11438 = vmatprep.subr.mxu1 %v2241_v55  ;;  %v2288_v37 = vpop.trf.xlu0 }
 0x264   : > { %v2228_v27 = vadd.f32 %v14111_v43, %v2200_v53  ;;  %v2150_v52 = vpop.f32.mrb[36].mxu1  ;;  %10287 = vmatpush3.msra.mxu0 %v2241_v55  ;;  %11439 = vmatpush3.msra.mxu1 %v2241_v55 }
 0x265   : > { %v2243_v31 = vmax.f32 %v2227_v62, 0.0  ;;  %v2201_v18 = vmul.f32 %v14105_v57, %v2150_v52  ;;  %v2152_v19 = vpop.f32.mrb[37].mxu1  ;;  %10289 = vmatmul.mubr.msk.f32.vlgmr.msra.gmra.mrb[40].mxu0 %vm2513_vm0, %v2274_v44  ;;  %10307 = vmatmul.mubr.msk.f32.vlgmr.msra.gmra.mrb[48].mxu1 %vm2513_vm0, %v2286_v61 }
 0x266   : > { %v2244_v34 = vmax.f32 %v2228_v27, 0.0  ;;  %v2202_v49 = vmul.f32 %v14107_v58, %v2152_v19  ;;  %10291 = vmatprep.mubr.msk.f32.mxu0 %vm2513_vm0, %v2275_v33  ;;  %10309 = vmatprep.mubr.msk.f32.mxu1 %vm2513_vm0, %v2287_v56  ;;  %v14140_v33 = vpop.trf.xlu1 }
 0x267   : > { %v2229_v53 = vadd.f32 %v14109_v28, %v2201_v18  ;;  %10312 = vmatprep.subr.mxu0 %v2243_v31 }
 0x268   : > { %v14135_v55 = vadd.f32 %v14111_v43, %v2202_v49  ;;  %v2156_v62 = vpop.f32.mrb[38].mxu1  ;;  %10313 = vmatpush3.msra.mxu0 %v2243_v31  ;;  %10520 = vmatprep.subr.mxu1 %v2244_v34 }
 0x269   : > { %v2245_v44 = vmax.f32 %v2229_v53, 0.0  ;;  %v2158_v52 = vpop.f32.mrb[39].mxu1  ;;  %10292 = vmatmul.mubr.msk.f32.gmra.mrb[42].mxu0 %vm2513_vm0, %v14070_v22  ;;  %10310 = vmatmul.mubr.msk.f32.gmra.mrb[50].mxu1 %vm2513_vm0, %v2288_v37 }
 0x26a   : > { %17524 = vst [vmem:[#allocation14_spill] sm:$0xff] %v14135_v55  ;;  %v2204_v61 = vmul.f32 %v14107_v58, %v2158_v52  ;;  %10294 = vmatprep.mubr.msk.f32.mxu0 %vm2513_vm0, %v14072_v9  ;;  %v14154_v19 = vpop.trf.xlu1 }
 0x26b   : > { %10338 = vmatprep.subr.mxu0 %v2245_v44  ;;  %10521 = vmatpush3.xpose.msra.mxu1 %v2244_v34 }
 0x26c   : > { %v14146_v18 = vadd.f32 %v14111_v43, %v2204_v61  ;;  %v2162_v56 = vpop.f32.mrb[40].mxu1  ;;  %v2203_v61 = vmul.f32 %v14105_v57, %v2156_v62 }
 0x26d   : > { %v2164_v27 = vpop.f32.mrb[41].mxu1  ;;  %10295 = vmatmul.mubr.msk.f32.gmra.mrb[44].mxu0 %vm2513_vm0, %v14074_v30 }
 0x26e   : > { %17525 = vst [vmem:[#allocation15_spill] sm:$0xff] %v14146_v18  ;;  %v17333_v22 = vmax.f32 %v14146_v18, 0.0  ;;  %v2206_v31 = vmul.f32 %v14107_v58, %v2164_v27  ;;  %10297 = vmatprep.mubr.msk.f32.mxu0 %vm2513_vm0, %v14076_v26  ;;  %v2231_v62 = vadd.f32 %v14109_v28, %v2203_v61 }
 0x270   : > { %v14157_v9 = vadd.f32 %v14111_v43, %v2206_v31  ;;  %v2168_v34 = vpop.f32.mrb[42].mxu1  ;;  %10572 = vmatprep.subr.mxu1 %v17333_v22  ;;  %v2247_v61 = vmax.f32 %v2231_v62, 0.0 }
 0x271   : > { %v2207_v49 = vmul.f32 %v14105_v57, %v2168_v34  ;;  %v2170_v37 = vpop.f32.mrb[43].mxu1  ;;  %10298 = vmatmul.mubr.msk.f32.gmra.mrb[46].mxu0 %vm2513_vm0, %v14080_v15  ;;  %v2345_v15 = vpop.trf.xlu1 }
 0x272   : > { %17526 = vst [vmem:[#allocation16_spill] sm:$0xff] %v14157_v9  ;;  %v2208_v30 = vmul.f32 %v14107_v58, %v2170_v37  ;;  %10300 = vmatprep.mubr.msk.f32.mxu0 %vm2513_vm0, %v14082_v8 }
 0x273   : > { %v14168_v26 = vadd.f32 %v14109_v28, %v2207_v49 }
 0x274   : > { %v14171_v53 = vadd.f32 %v14111_v43, %v2208_v30  ;;  %v2174_v52 = vpop.f32.mrb[44].mxu1 }
 0x275   : > { %v2209_v27 = vmul.f32 %v14105_v57, %v2174_v52  ;;  %v2176_v31 = vpop.f32.mrb[45].mxu1  ;;  %10301 = vmatmul.mubr.msk.f32.gmra.mrb[48].mxu0 %vm2513_vm0, %v14086_v41 }
 0x276   : > { %17527 = vst [vmem:[#allocation17_spill] sm:$0xff] %v14171_v53  ;;  %v2210_v34 = vmul.f32 %v14107_v58, %v2176_v31  ;;  %10303 = vmatprep.mubr.msk.f32.mxu0 %vm2513_vm0, %v14090_v42 }
 0x277   : > { %v14181_v8 = vadd.f32 %v14109_v28, %v2209_v27  ;;  %v2346_v27 = vpop.trf.xlu1 }
 0x278   : > { %v14184_v49 = vadd.f32 %v14111_v43, %v2210_v34  ;;  %v2180_v37 = vpop.f32.mrb[46].mxu1  ;;  %v14199_v34 = vpop.trf.xlu0 }
 0x279   : > { %v2211_v30 = vmul.f32 %v14105_v57, %v2180_v37  ;;  %v2182_v52 = vpop.f32.mrb[47].mxu1  ;;  %10304 = vmatmul.mubr.msk.f32.gmra.mrb[50].mxu0 %vm2513_vm0, %v14092_v51 }
 0x27a   : > { %17528 = vst [vmem:[#allocation18_spill] sm:$0xff] %v14184_v49  ;;  %v2212_v41 = vmul.f32 %v14107_v58, %v2182_v52  ;;  %10314 = vmatprep.mubr.msk.f32.mxu0 %vm2513_vm0, %v14005_v2 }
 0x27b   : > { %v14194_v42 = vadd.f32 %v14109_v28, %v2211_v30  ;;  %v2347_v2 = vpop.trf.xlu1 }
 0x27c   : > { %v14197_v31 = vadd.f32 %v14111_v43, %v2212_v41  ;;  %v14209_v51 = vpop.trf.xlu0  ;;  %v2251_v43 = vmax.f32 %v14168_v26, 0.0 }
 0x27d   : > { %10315 = vmatmul.mubr.msk.f32.vlgmr.msra.gmra.mrb[52].mxu0 %vm2513_vm0, %v14009_v29  ;;  %v2255_v62 = vmax.f32 %v14194_v42, 0.0 }
 0x27e   : > { %17529 = vst [vmem:[#allocation19_spill] sm:$0xff] %v14197_v31  ;;  %10339 = vmatpush3.msra.mxu0 %v2245_v44  ;;  %10317 = vmatprep.mubr.msk.f32.mxu0 %vm2513_vm0, %v14013_v14 }
 0x27f   : > { %10364 = vmatprep.subr.mxu0 %v2247_v61  ;;  %v2348_v29 = vpop.trf.xlu1 }
 0x280   : > { %v14215_v58 = vpop.trf.xlu0 }
 0x281   : > { %10318 = vmatmul.mubr.msk.f32.gmra.mrb[54].mxu0 %vm2513_vm0, %v14017_v39 }
 0x282   : > { %10320 = vmatprep.mubr.msk.f32.mxu0 %vm2513_vm0, %v14021_v13 }
 0x283   : > { %v2349_v14 = vpop.trf.xlu1 }
 0x284   : > { %v14225_v39 = vpop.trf.xlu0 }
 0x285   : > { %10321 = vmatmul.mubr.msk.f32.gmra.mrb[56].mxu0 %vm2513_vm0, %v14025_v16 }
 0x286   : > { %10323 = vmatprep.mubr.msk.f32.mxu0 %vm2513_vm0, %v14029_v50  ;;  %v2205_v50 = vmul.f32 %v14105_v57, %v2162_v56 }
 0x287   : > { %v2350_v13 = vpop.trf.xlu1 }
 0x288   : > { %v14231_v16 = vpop.trf.xlu0 }
 0x289   : > { %10324 = vmatmul.mubr.msk.f32.gmra.mrb[58].mxu0 %vm2513_vm0, %v14033_v7  ;;  %v2233_v7 = vadd.f32 %v14109_v28, %v2205_v50 }
 0x28a   : > { %10326 = vmatprep.mubr.msk.f32.mxu0 %vm2513_vm0, %v14037_v1 }
 0x28b   : > { %v2351_v1 = vpop.trf.xlu1 }
 0x28d   : > { %10327 = vmatmul.mubr.msk.f32.gmra.mrb[60].mxu0 %vm2513_vm0, %v14041_v11  ;;  %v14243_v11 = vpop.trf.xlu0 }
 0x28e   : > { %10329 = vmatprep.mubr.msk.f32.mxu0 %vm2513_vm0, %v14045_v46  ;;  %v2249_v46 = vmax.f32 %v2233_v7, 0.0 }
 0x291   : > { %10330 = vmatmul.mubr.msk.f32.gmra.mrb[62].mxu0 %vm2513_vm0, %v14049_v20  ;;  %v2352_v20 = vpop.trf.xlu1 }
 0x292   : > { %10332 = vmatprep.mubr.msk.f32.mxu0 %vm2513_vm0, %v14053_v23  ;;  %v14249_v23 = vpop.trf.xlu0 }
 0x295   : > { %10333 = vmatmul.mubr.msk.f32.gmra.mrb[64].mxu0 %vm2513_vm0, %v14057_v24  ;;  %v14255_v24 = vpop.trf.xlu1 }
 0x296   : > { %10335 = vmatprep.mubr.msk.f32.mxu0 %vm2513_vm0, %v14062_v60  ;;  %v2408_v60 = vpop.trf.xlu0 }
 0x299   : > { %10336 = vmatmul.mubr.msk.f32.gmra.mrb[66].mxu0 %vm2513_vm0, %v14067_v21  ;;  %v14263_v21 = vpop.trf.xlu1 }
 0x29a   : > { %10340 = vmatprep.mubr.msk.f32.mxu0 %vm2513_vm0, %v14084_v45  ;;  %v2409_v45 = vpop.trf.xlu0 }
 0x29d   : > { %10341 = vmatmul.mubr.msk.f32.vlgmr.msra.gmra.mrb[68].mxu0 %vm2513_vm0, %v14088_v48  ;;  %v14268_v48 = vpop.trf.xlu1 }
 0x29e   : > { %10365 = vmatpush3.msra.mxu0 %v2247_v61  ;;  %10343 = vmatprep.mubr.msk.f32.mxu0 %vm2513_vm0, %v14094_v47  ;;  %v2410_v47 = vpop.trf.xlu0 }
 0x29f   : > { %10390 = vmatprep.subr.mxu0 %v2249_v46 }
 0x2a1   : > { %10344 = vmatmul.mubr.msk.f32.gmra.mrb[70].mxu0 %vm2513_vm0, %v14100_v32  ;;  %v14273_v32 = vpop.trf.xlu1 }
 0x2a2   : > { %10346 = vmatprep.mubr.msk.f32.mxu0 %vm2513_vm0, %v14114_v40  ;;  %v2411_v57 = vpop.trf.xlu0 }
 0x2a5   : > { %10347 = vmatmul.mubr.msk.f32.gmra.mrb[72].mxu0 %vm2513_vm0, %v14124_v35  ;;  %v14279_v28 = vpop.trf.xlu1 }
 0x2a6   : > { %10349 = vmatprep.mubr.msk.f32.mxu0 %vm2513_vm0, %v14140_v33  ;;  %v2412_v40 = vpop.trf.xlu0 }
 0x2a9   : > { %10350 = vmatmul.mubr.msk.f32.gmra.mrb[74].mxu0 %vm2513_vm0, %v14154_v19  ;;  %v2438_v35 = vpop.trf.xlu1 }
 0x2aa   : > { %10352 = vmatprep.mubr.msk.f32.mxu0 %vm2513_vm0, %v2345_v15 }
 0x2ad   : > { %10353 = vmatmul.mubr.msk.f32.gmra.mrb[76].mxu0 %vm2513_vm0, %v2346_v27 }
 0x2ae   : > { %10355 = vmatprep.mubr.msk.f32.mxu0 %vm2513_vm0, %v2347_v2 }
 0x2b1   : > { %10356 = vmatmul.mubr.msk.f32.gmra.mrb[78].mxu0 %vm2513_vm0, %v2348_v29 }
 0x2b2   : > { %10358 = vmatprep.mubr.msk.f32.mxu0 %vm2513_vm0, %v2349_v14 }
 0x2b5   : > { %10359 = vmatmul.mubr.msk.f32.gmra.mrb[80].mxu0 %vm2513_vm0, %v2350_v13 }
 0x2b6   : > { %10361 = vmatprep.mubr.msk.f32.mxu0 %vm2513_vm0, %v2351_v1 }
 0x2b9   : > { %10362 = vmatmul.mubr.msk.f32.gmra.mrb[82].mxu0 %vm2513_vm0, %v2352_v20 }
 0x2ba   : > { %10366 = vmatprep.mubr.msk.f32.mxu0 %vm2513_vm0, %v14007_v17  ;;  %v2413_v17 = vpop.trf.xlu0 }
 0x2bd   : > { %10367 = vmatmul.mubr.msk.f32.vlgmr.msra.gmra.mrb[84].mxu0 %vm2513_vm0, %v14011_v6  ;;  %v2439_v6 = vpop.trf.xlu1 }
 0x2be   : > { %10391 = vmatpush3.msra.mxu0 %v2249_v46  ;;  %10369 = vmatprep.mubr.msk.f32.mxu0 %vm2513_vm0, %v14015_v59  ;;  %v2414_v59 = vpop.trf.xlu0 }
 0x2bf   : > { %10416 = vmatprep.subr.mxu0 %v2251_v43 }
 0x2c1   : > { %10370 = vmatmul.mubr.msk.f32.gmra.mrb[86].mxu0 %vm2513_vm0, %v14019_v0  ;;  %v2440_v0 = vpop.trf.xlu1 }
 0x2c2   : > { %10372 = vmatprep.mubr.msk.f32.mxu0 %vm2513_vm0, %v14023_v54  ;;  %v2415_v54 = vpop.trf.xlu0 }
 0x2c5   : > { %10373 = vmatmul.mubr.msk.f32.gmra.mrb[88].mxu0 %vm2513_vm0, %v14027_v4  ;;  %v2441_v4 = vpop.trf.xlu1 }
 0x2c6   : > { %10375 = vmatprep.mubr.msk.f32.mxu0 %vm2513_vm0, %v14031_v3  ;;  %v17530_v3 = vld [vmem:[#allocation11_spill] sm:$0xff] }
 0x2c9   : > { %10376 = vmatmul.mubr.msk.f32.gmra.mrb[90].mxu0 %vm2513_vm0, %v14035_v36  ;;  %v2416_v36 = vpop.trf.xlu0 }
 0x2ca   : > { %10378 = vmatprep.mubr.msk.f32.mxu0 %vm2513_vm0, %v14039_v63  ;;  %v17531_v63 = vld [vmem:[#allocation12_spill] sm:$0xff] }
 0x2cd   : > { %10379 = vmatmul.mubr.msk.f32.gmra.mrb[92].mxu0 %vm2513_vm0, %v14043_v12  ;;  %v2442_v12 = vpop.trf.xlu1 }
 0x2ce   : > { %10381 = vmatprep.mubr.msk.f32.mxu0 %vm2513_vm0, %v14047_v5  ;;  %v2465_v5 = vpop.trf.xlu0 }
 0x2d1   : > { %10382 = vmatmul.mubr.msk.f32.gmra.mrb[94].mxu0 %vm2513_vm0, %v14051_v38  ;;  %v2253_v38 = vmax.f32 %v14181_v8, 0.0 }
 0x2d2   : > { %10384 = vmatprep.mubr.msk.f32.mxu0 %vm2513_vm0, %v14055_v10  ;;  %v2443_v10 = vpop.trf.xlu1 }
 0x2d5   : > { %10385 = vmatmul.mubr.msk.f32.gmra.mrb[96].mxu0 %vm2513_vm0, %v14060_v25  ;;  %v2466_v25 = vpop.trf.xlu0 }
 0x2d6   : > { %10387 = vmatprep.mubr.msk.f32.mxu0 %vm2513_vm0, %v17530_v3  ;;  %v2444_v44 = vpop.trf.xlu1 }
 0x2d9   : > { %10388 = vmatmul.mubr.msk.f32.gmra.mrb[98].mxu0 %vm2513_vm0, %v17531_v63  ;;  %v2467_v33 = vpop.trf.xlu0 }
 0x2da   : > { %10392 = vmatprep.mubr.msk.f32.mxu0 %vm2513_vm0, %v14199_v34  ;;  %v2445_v56 = vpop.trf.xlu1 }
 0x2dd   : > { %10393 = vmatmul.mubr.msk.f32.vlgmr.msra.gmra.mrb[100].mxu0 %vm2513_vm0, %v14209_v51  ;;  %v2468_v19 = vpop.trf.xlu0 }
 0x2de   : > { %10417 = vmatpush3.msra.mxu0 %v2251_v43  ;;  %10395 = vmatprep.mubr.msk.f32.mxu0 %vm2513_vm0, %v14215_v58  ;;  %v2446_v26 = vpop.trf.xlu1 }
 0x2df   : > { %10442 = vmatprep.subr.mxu0 %v2253_v38 }
 0x2e1   : > { %10396 = vmatmul.mubr.msk.f32.gmra.mrb[102].mxu0 %vm2513_vm0, %v14225_v39  ;;  %v2469_v15 = vpop.trf.xlu0  ;;  %v17532_v39 = vld [vmem:[#allocation13_spill] sm:$0xff] }
 0x2e2   : > { %10398 = vmatprep.mubr.msk.f32.mxu0 %vm2513_vm0, %v14231_v16  ;;  %v2447_v8 = vpop.trf.xlu1  ;;  %v2242_v13 = vmax.f32 %v17532_v39, 0.0 }
 0x2e5   : > { %10399 = vmatmul.mubr.msk.f32.gmra.mrb[104].mxu0 %vm2513_vm0, %v14243_v11  ;;  %v2470_v37 = vpop.trf.xlu0 }
 0x2e6   : > { %10401 = vmatprep.mubr.msk.f32.mxu0 %vm2513_vm0, %v14249_v23  ;;  %v2448_v30 = vpop.trf.xlu1 }
 0x2e9   : > { %10402 = vmatmul.mubr.msk.f32.gmra.mrb[106].mxu0 %vm2513_vm0, %v2408_v60  ;;  %v2471_v52 = vpop.trf.xlu0 }
 0x2ea   : > { %10404 = vmatprep.mubr.msk.f32.mxu0 %vm2513_vm0, %v2409_v45  ;;  %v2497_v41 = vpop.trf.xlu1 }
 0x2ed   : > { %10405 = vmatmul.mubr.msk.f32.gmra.mrb[108].mxu0 %vm2513_vm0, %v2410_v47  ;;  %v2472_v42 = vpop.trf.xlu0 }
 0x2ee   : > { %10407 = vmatprep.mubr.msk.f32.mxu0 %vm2513_vm0, %v2411_v57  ;;  %v2498_v27 = vpop.trf.xlu1 }
 0x2f1   : > { %10408 = vmatmul.mubr.msk.f32.gmra.mrb[110].mxu0 %vm2513_vm0, %v2412_v40  ;;  %v2473_v61 = vpop.trf.xlu0 }
 0x2f2   : > { %10410 = vmatprep.mubr.msk.f32.mxu0 %vm2513_vm0, %v2413_v17  ;;  %v2499_v34 = vpop.trf.xlu1  ;;  %v17334_v17 = vmax.f32 %v14135_v55, 0.0 }
 0x2f5   : > { %10411 = vmatmul.mubr.msk.f32.gmra.mrb[112].mxu0 %vm2513_vm0, %v2414_v59  ;;  %v2474_v51 = vpop.trf.xlu0 }
 0x2f6   : > { %10413 = vmatprep.mubr.msk.f32.mxu0 %vm2513_vm0, %v2415_v54  ;;  %v14353_v2 = vpop.trf.xlu1 }
 0x2f9   : > { %10414 = vmatmul.mubr.msk.f32.gmra.mrb[114].mxu0 %vm2513_vm0, %v2416_v36  ;;  %v2475_v58 = vpop.trf.xlu0 }
 0x2fa   : > { %10418 = vmatprep.mubr.msk.f32.mxu0 %vm2513_vm0, %v14255_v24  ;;  %v14357_v29 = vpop.trf.xlu1 }
 0x2fd   : > { %10419 = vmatmul.mubr.msk.f32.vlgmr.msra.gmra.mrb[116].mxu0 %vm2513_vm0, %v14263_v21  ;;  %v2476_v16 = vpop.trf.xlu0 }
 0x2fe   : > { %10443 = vmatpush3.msra.mxu0 %v2253_v38  ;;  %10421 = vmatprep.mubr.msk.f32.mxu0 %vm2513_vm0, %v14268_v48  ;;  %v14362_v14 = vpop.trf.xlu1 }
 0x2ff   : > { %10468 = vmatprep.subr.mxu0 %v2255_v62 }
 0x301   : > { %10422 = vmatmul.mubr.msk.f32.gmra.mrb[118].mxu0 %vm2513_vm0, %v14273_v32  ;;  %v2477_v7 = vpop.trf.xlu0 }
 0x302   : > { %10424 = vmatprep.mubr.msk.f32.mxu0 %vm2513_vm0, %v14279_v28  ;;  %v2503_v50 = vpop.trf.xlu1 }
 0x305   : > { %10425 = vmatmul.mubr.msk.f32.gmra.mrb[120].mxu0 %vm2513_vm0, %v2438_v35  ;;  %v2478_v11 = vpop.trf.xlu0 }
 0x306   : > { %10427 = vmatprep.mubr.msk.f32.mxu0 %vm2513_vm0, %v2439_v6  ;;  %v2504_v1 = vpop.trf.xlu1 }
 0x309   : > { %10428 = vmatmul.mubr.msk.f32.gmra.mrb[122].mxu0 %vm2513_vm0, %v2440_v0  ;;  %v2479_v20 = vpop.trf.xlu0 }
 0x30a   : > { %10430 = vmatprep.mubr.msk.f32.mxu0 %vm2513_vm0, %v2441_v4  ;;  %v2505_v46 = vpop.trf.xlu1 }
 0x30d   : > { %10431 = vmatmul.mubr.msk.f32.gmra.mrb[124].mxu0 %vm2513_vm0, %v2442_v12  ;;  %v2480_v24 = vpop.trf.xlu0 }
 0x30e   : > { %10433 = vmatprep.mubr.msk.f32.mxu0 %vm2513_vm0, %v2443_v10  ;;  %v2506_v23 = vpop.trf.xlu1 }
 0x311   : > { %10434 = vmatmul.mubr.msk.f32.gmra.mrb[126].mxu0 %vm2513_vm0, %v2444_v44 }
 0x312   : > { %10436 = vmatprep.mubr.msk.f32.mxu0 %vm2513_vm0, %v2445_v56  ;;  %v2507_v60 = vpop.trf.xlu1 }
 0x315   : > { %10437 = vmatmul.mubr.msk.f32.gmra.mrb[128].mxu0 %vm2513_vm0, %v2446_v26 }
 0x316   : > { %10439 = vmatprep.mubr.msk.f32.mxu0 %vm2513_vm0, %v2447_v8  ;;  %v2508_v0 = vpop.trf.xlu1 }
 0x319   : > { %10440 = vmatmul.mubr.msk.f32.gmra.mrb[130].mxu0 %vm2513_vm0, %v2448_v30 }
 0x31a   : > { %10444 = vmatprep.mubr.msk.f32.mxu0 %vm2513_vm0, %v2465_v5  ;;  %v2509_v5 = vpop.trf.xlu1 }
 0x31d   : > { %10445 = vmatmul.mubr.msk.f32.vlgmr.msra.gmra.mrb[132].mxu0 %vm2513_vm0, %v2466_v25 }
 0x31e   : > { %10469 = vmatpush3.msra.mxu0 %v2255_v62  ;;  %10447 = vmatprep.mubr.msk.f32.mxu0 %vm2513_vm0, %v2467_v33 }
 0x31f   : > { %10494 = vmatprep.subr.mxu0 %v2242_v13 }
 0x321   : > { %10448 = vmatmul.mubr.msk.f32.gmra.mrb[134].mxu0 %vm2513_vm0, %v2468_v19  ;;  %v2510_v19 = vpop.trf.xlu1 }
 0x322   : > { %10450 = vmatprep.mubr.msk.f32.mxu0 %vm2513_vm0, %v2469_v15 }
 0x325   : > { %10451 = vmatmul.mubr.msk.f32.gmra.mrb[136].mxu0 %vm2513_vm0, %v2470_v37  ;;  %v2511_v30 = vpop.trf.xlu1 }
 0x326   : > { %10453 = vmatprep.mubr.msk.f32.mxu0 %vm2513_vm0, %v2471_v52 }
 0x329   : > { %10454 = vmatmul.mubr.msk.f32.gmra.mrb[138].mxu0 %vm2513_vm0, %v2472_v42 }
 0x32a   : > { %10456 = vmatprep.mubr.msk.f32.mxu0 %vm2513_vm0, %v2473_v61 }
 0x32d   : > { %10457 = vmatmul.mubr.msk.f32.gmra.mrb[140].mxu0 %vm2513_vm0, %v2474_v51  ;;  %v2512_v51 = vpop.trf.xlu1 }
 0x32e   : > { %10459 = vmatprep.mubr.msk.f32.mxu0 %vm2513_vm0, %v2475_v58 }
 0x331   : > { %10460 = vmatmul.mubr.msk.f32.gmra.mrb[142].mxu0 %vm2513_vm0, %v2476_v16 }
 0x332   : > { %10462 = vmatprep.mubr.msk.f32.mxu0 %vm2513_vm0, %v2477_v7 }
 0x335   : > { %10463 = vmatmul.mubr.msk.f32.gmra.mrb[144].mxu0 %vm2513_vm0, %v2478_v11 }
 0x336   : > { %10465 = vmatprep.mubr.msk.f32.mxu0 %vm2513_vm0, %v2479_v20 }
 0x338   : > { %v10290_v21 = vpop.f32.mrb[40].mxu0  ;;  %v10308_v45 = vpop.f32.mrb[48].mxu1 }
 0x339   : > { %v14380_v48 = vmul.f32 0.35355338, %v10290_v21  ;;  %v2628_v47 = vpop.f32.mrb[41].mxu0  ;;  %10466 = vmatmul.mubr.msk.f32.gmra.mrb[146].mxu0 %vm2513_vm0, %v2480_v24  ;;  %v2688_v32 = vpop.f32.mrb[49].mxu1  ;;  %v14387_v28 = vmul.f32 0.35355338, %v10308_v45 }
 0x33a   : > { %v14383_v57 = vmul.f32 0.35355338, %v2628_v47  ;;  %10470 = vmatprep.mubr.msk.f32.mxu0 %vm2513_vm0, %v2497_v41  ;;  %v14390_v40 = vmul.f32 0.35355338, %v2688_v32 }
 0x33b   : > { %4188 = vmax.xlane.f32.xlu1 %v14380_v48 }
 0x33c   : > { %4186 = vmax.xlane.f32.xlu0 %v14383_v57  ;;  %v10293_v43 = vpop.f32.mrb[42].mxu0  ;;  %v10311_v35 = vpop.f32.mrb[50].mxu1 }
 0x33d   : > { %v2638_v6 = vpop.f32.mrb[43].mxu0  ;;  %10471 = vmatmul.mubr.msk.f32.vlgmr.msra.gmra.mrb[148].mxu0 %vm2513_vm0, %v2498_v27  ;;  %v2698_v59 = vpop.f32.mrb[51].mxu1  ;;  %v14399_v4 = vmul.f32 0.35355338, %v10311_v35  ;;  %v14401_v3 = vmul.f32 0.35355338, %v10293_v43 }
 0x33e   : > { %10495 = vmatpush3.xpose.msra.mxu0 %v2242_v13  ;;  %10473 = vmatprep.mubr.msk.f32.mxu0 %vm2513_vm0, %v2499_v34  ;;  %v14409_v12 = vmul.f32 0.35355338, %v2698_v59  ;;  %v14411_v38 = vmul.f32 0.35355338, %v2638_v6 }
 0x33f   : > { %10546 = vmatprep.subr.mxu0 %v17334_v17  ;;  %4212 = vmax.xlane.f32.xlu1 %v14387_v28 }
 0x340   : > { %v10296_v54 = vpop.f32.mrb[44].mxu0  ;;  %4210 = vmax.xlane.f32.xlu0 %v14390_v40 }
 0x341   : > { %v2648_v36 = vpop.f32.mrb[45].mxu0  ;;  %10474 = vmatmul.mubr.msk.f32.gmra.mrb[150].mxu0 %vm2513_vm0, %v14353_v2  ;;  %v14418_v44 = vmul.f32 0.35355338, %v10296_v54 }
 0x342   : > { %10476 = vmatprep.mubr.msk.f32.mxu0 %vm2513_vm0, %v14357_v29  ;;  %v14421_v56 = vmul.f32 0.35355338, %v2648_v36 }
 0x343   : > { %4192 = vmax.xlane.f32.xlu1 %v14401_v3 }
 0x344   : > { %v10299_v63 = vpop.f32.mrb[46].mxu0  ;;  %4216 = vmax.xlane.f32.xlu0 %v14399_v4 }
 0x345   : > { %v2658_v10 = vpop.f32.mrb[47].mxu0  ;;  %10477 = vmatmul.mubr.msk.f32.gmra.mrb[152].mxu0 %vm2513_vm0, %v14362_v14  ;;  %v14426_v15 = vmul.f32 0.35355338, %v10299_v63 }
 0x346   : > { %10479 = vmatprep.mubr.msk.f32.mxu0 %vm2513_vm0, %v2503_v50  ;;  %v14429_v37 = vmul.f32 0.35355338, %v2658_v10 }
 0x347   : > { %4190 = vmax.xlane.f32.xlu1 %v14411_v38 }
 0x348   : > { %v10302_v25 = vpop.f32.mrb[48].mxu0  ;;  %4214 = vmax.xlane.f32.xlu0 %v14409_v12 }
 0x349   : > { %v2668_v33 = vpop.f32.mrb[49].mxu0  ;;  %10480 = vmatmul.mubr.msk.f32.gmra.mrb[154].mxu0 %vm2513_vm0, %v2504_v1  ;;  %v14434_v52 = vmul.f32 0.35355338, %v10302_v25 }
 0x34a   : > { %10482 = vmatprep.mubr.msk.f32.mxu0 %vm2513_vm0, %v2505_v46  ;;  %v14437_v42 = vmul.f32 0.35355338, %v2668_v33 }
 0x34b   : > { %4196 = vmax.xlane.f32.xlu1 %v14418_v44 }
 0x34c   : > { %4194 = vmax.xlane.f32.xlu0 %v14421_v56  ;;  %v10305_v26 = vpop.f32.mrb[50].mxu0 }
 0x34d   : > { %v2678_v8 = vpop.f32.mrb[51].mxu0  ;;  %10483 = vmatmul.mubr.msk.f32.gmra.mrb[156].mxu0 %vm2513_vm0, %v2506_v23  ;;  %v14442_v34 = vmul.f32 0.35355338, %v10305_v26 }
 0x34e   : > { %10485 = vmatprep.mubr.msk.f32.mxu0 %vm2513_vm0, %v2507_v60  ;;  %v14445_v2 = vmul.f32 0.35355338, %v2678_v8 }
 0x34f   : > { %4200 = vmax.xlane.f32.xlu1 %v14426_v15 }
 0x350   : > { %v10316_v62 = vpop.f32.mrb[52].mxu0  ;;  %4198 = vmax.xlane.f32.xlu0 %v14429_v37 }
 0x351   : > { %v2821_v41 = vpop.f32.mrb[53].mxu0  ;;  %10486 = vmatmul.mubr.msk.f32.gmra.mrb[158].mxu0 %vm2513_vm0, %v2508_v0  ;;  %v14450_v58 = vmul.f32 0.35355338, %v10316_v62 }
 0x352   : > { %10488 = vmatprep.mubr.msk.f32.mxu0 %vm2513_vm0, %v2509_v5  ;;  %v14457_v16 = vmul.f32 0.35355338, %v2821_v41 }
 0x353   : > { %4204 = vmax.xlane.f32.xlu1 %v14434_v52 }
 0x354   : > { %v10319_v27 = vpop.f32.mrb[54].mxu0  ;;  %4202 = vmax.xlane.f32.xlu0 %v14437_v42 }
 0x355   : > { %v2831_v61 = vpop.f32.mrb[55].mxu0  ;;  %10489 = vmatmul.mubr.msk.f32.gmra.mrb[160].mxu0 %vm2513_vm0, %v2510_v19  ;;  %v14453_v39 = vmul.f32 0.35355338, %v10319_v27 }
 0x356   : > { %10491 = vmatprep.mubr.msk.f32.mxu0 %vm2513_vm0, %v2511_v30  ;;  %v14459_v7 = vmul.f32 0.35355338, %v2831_v61 }
 0x357   : > { %4208 = vmax.xlane.f32.xlu1 %v14442_v34 }
 0x358   : > { %v10322_v29 = vpop.f32.mrb[56].mxu0  ;;  %4206 = vmax.xlane.f32.xlu0 %v14445_v2 }
 0x359   : > { %v2841_v14 = vpop.f32.mrb[57].mxu0  ;;  %10492 = vmatmul.mubr.msk.f32.gmra.mrb[162].mxu0 %vm2513_vm0, %v2512_v51  ;;  %v14463_v46 = vmul.f32 0.35355338, %v10322_v29 }
 0x35a   : > { %v14466_v24 = vmul.f32 0.35355338, %v2841_v14 }
 0x35b   : > { %4220 = vmax.xlane.f32.xlu1 %v14450_v58 }
 0x35c   : > { %v10325_v13 = vpop.f32.mrb[58].mxu0  ;;  %4224 = vmax.xlane.f32.xlu0 %v14453_v39 }
 0x35d   : > { %v2851_v50 = vpop.f32.mrb[59].mxu0  ;;  %v14469_v45 = vmul.f32 0.35355338, %v10325_v13 }
 0x35e   : > { %v14472_v43 = vmul.f32 0.35355338, %v2851_v50 }
 0x35f   : > { %4218 = vmax.xlane.f32.xlu1 %v14457_v16 }
 0x360   : > { %v10328_v1 = vpop.f32.mrb[60].mxu0  ;;  %4222 = vmax.xlane.f32.xlu0 %v14459_v7 }
 0x361   : > { %v2861_v11 = vpop.f32.mrb[61].mxu0  ;;  %v14477_v0 = vmul.f32 0.35355338, %v10328_v1 }
 0x362   : > { %v14483_v5 = vmul.f32 0.35355338, %v2861_v11 }
 0x364   : > { %v10331_v20 = vpop.f32.mrb[62].mxu0  ;;  %4228 = vmax.xlane.f32.xlu0 %v14463_v46 }
 0x365   : > { %v2871_v23 = vpop.f32.mrb[63].mxu0  ;;  %v14489_v19 = vmul.f32 0.35355338, %v10331_v20 }
 0x366   : > { %v14495_v30 = vmul.f32 0.35355338, %v2871_v23 }
 0x368   : > { %v10334_v60 = vpop.f32.mrb[64].mxu0  ;;  %4226 = vmax.xlane.f32.xlu0 %v14466_v24 }
 0x369   : > { %v2881_v21 = vpop.f32.mrb[65].mxu0  ;;  %v14501_v51 = vmul.f32 0.35355338, %v10334_v60 }
 0x36a   : > { %v14507_v50 = vmul.f32 0.35355338, %v2881_v21 }
 0x36c   : > { %v10337_v47 = vpop.f32.mrb[66].mxu0  ;;  %4232 = vmax.xlane.f32.xlu0 %v14469_v45 }
 0x36d   : > { %v2891_v32 = vpop.f32.mrb[67].mxu0  ;;  %v14513_v23 = vmul.f32 0.35355338, %v10337_v47 }
 0x36e   : > { %v14519_v21 = vmul.f32 0.35355338, %v2891_v32 }
 0x370   : > { %v10342_v35 = vpop.f32.mrb[68].mxu0  ;;  %4230 = vmax.xlane.f32.xlu0 %v14472_v43  ;;  %17538 = vst [vmem:[#allocation22_spill] sm:$0xff] %v14519_v21 }
 0x371   : > { %v14475_v6 = vmul.f32 0.35355338, %v10342_v35  ;;  %v3014_v59 = vpop.f32.mrb[69].mxu0 }
 0x372   : > { %v14481_v36 = vmul.f32 0.35355338, %v3014_v59 }
 0x373   : > { %4252 = vmax.xlane.f32.xlu1 %v14475_v6 }
 0x374   : > { %v10345_v54 = vpop.f32.mrb[70].mxu0  ;;  %4236 = vmax.xlane.f32.xlu0 %v14477_v0 }
 0x375   : > { %v3024_v63 = vpop.f32.mrb[71].mxu0  ;;  %v14487_v25 = vmul.f32 0.35355338, %v10345_v54 }
 0x376   : > { %v14493_v8 = vmul.f32 0.35355338, %v3024_v63 }
 0x377   : > { %4250 = vmax.xlane.f32.xlu1 %v14481_v36  ;;  %17533 = vst [vmem:[#allocation11_spill] sm:$0xff] %v14487_v25 }
 0x378   : > { %v10348_v10 = vpop.f32.mrb[72].mxu0  ;;  %4234 = vmax.xlane.f32.xlu0 %v14483_v5 }
 0x379   : > { %v3034_v33 = vpop.f32.mrb[73].mxu0  ;;  %v14499_v27 = vmul.f32 0.35355338, %v10348_v10 }
 0x37a   : > { %v14505_v14 = vmul.f32 0.35355338, %v3034_v33 }
 0x37b   : > { %4256 = vmax.xlane.f32.xlu1 %v14487_v25  ;;  %17534 = vst [vmem:[#allocation12_spill] sm:$0xff] %v14499_v27 }
 0x37c   : > { %4240 = vmax.xlane.f32.xlu0 %v14489_v19  ;;  %v10351_v26 = vpop.f32.mrb[74].mxu0  ;;  %17535 = vst [vmem:[#allocation13_spill] sm:$0xff] %v14505_v14 }
 0x37d   : > { %v3044_v62 = vpop.f32.mrb[75].mxu0  ;;  %v14511_v11 = vmul.f32 0.35355338, %v10351_v26 }
 0x37e   : > { %v14517_v35 = vmul.f32 0.35355338, %v3044_v62 }
 0x37f   : > { %4254 = vmax.xlane.f32.xlu1 %v14493_v8  ;;  %17536 = vst [vmem:[#allocation20_spill] sm:$0xff] %v14511_v11 }
 0x380   : > { %4238 = vmax.xlane.f32.xlu0 %v14495_v30  ;;  %v10354_v41 = vpop.f32.mrb[76].mxu0  ;;  %17537 = vst [vmem:[#allocation21_spill] sm:$0xff] %v14517_v35 }
 0x381   : > { %v3054_v61 = vpop.f32.mrb[77].mxu0  ;;  %v14523_v63 = vmul.f32 0.35355338, %v10354_v41 }
 0x382   : > { %v14529_v26 = vmul.f32 0.35355338, %v3054_v61 }
 0x383   : > { %4260 = vmax.xlane.f32.xlu1 %v14499_v27  ;;  %17539 = vst [vmem:[#allocation23_spill] sm:$0xff] %v14523_v63 }
 0x384   : > { %4244 = vmax.xlane.f32.xlu0 %v14501_v51  ;;  %v10357_v29 = vpop.f32.mrb[78].mxu0  ;;  %17541 = vst [vmem:[#allocation25_spill] sm:$0xff] %v14529_v26 }
 0x385   : > { %v3064_v13 = vpop.f32.mrb[79].mxu0  ;;  %v14535_v41 = vmul.f32 0.35355338, %v10357_v29 }
 0x386   : > { %v14541_v61 = vmul.f32 0.35355338, %v3064_v13 }
 0x387   : > { %4258 = vmax.xlane.f32.xlu1 %v14505_v14  ;;  %17543 = vst [vmem:[#allocation27_spill] sm:$0xff] %v14535_v41 }
 0x388   : > { %4242 = vmax.xlane.f32.xlu0 %v14507_v50  ;;  %v10360_v1 = vpop.f32.mrb[80].mxu0  ;;  %17545 = vst [vmem:[#allocation29_spill] sm:$0xff] %v14541_v61 }
 0x389   : > { %v3074_v20 = vpop.f32.mrb[81].mxu0  ;;  %v14547_v29 = vmul.f32 0.35355338, %v10360_v1 }
 0x38a   : > { %v14553_v13 = vmul.f32 0.35355338, %v3074_v20 }
 0x38b   : > { %4264 = vmax.xlane.f32.xlu1 %v14511_v11  ;;  %17547 = vst [vmem:[#allocation31_spill] sm:$0xff] %v14547_v29 }
 0x38c   : > { %4248 = vmax.xlane.f32.xlu0 %v14513_v23  ;;  %v10363_v60 = vpop.f32.mrb[82].mxu0  ;;  %17549 = vst [vmem:[#allocation33_spill] sm:$0xff] %v14553_v13 }
 0x38d   : > { %v3084_v59 = vpop.f32.mrb[83].mxu0  ;;  %v14525_v47 = vmul.f32 0.35355338, %v10363_v60 }
 0x38e   : > { %v14531_v32 = vmul.f32 0.35355338, %v3084_v59 }
 0x38f   : > { %4262 = vmax.xlane.f32.xlu1 %v14517_v35  ;;  %17540 = vst [vmem:[#allocation24_spill] sm:$0xff] %v14525_v47 }
 0x390   : > { %v10368_v54 = vpop.f32.mrb[84].mxu0  ;;  %4246 = vmax.xlane.f32.xlu0 %v14519_v21  ;;  %17542 = vst [vmem:[#allocation26_spill] sm:$0xff] %v14531_v32 }
 0x391   : > { %v3207_v10 = vpop.f32.mrb[85].mxu0  ;;  %v14559_v1 = vmul.f32 0.35355338, %v10368_v54 }
 0x392   : > { %v14565_v20 = vmul.f32 0.35355338, %v3207_v10 }
 0x393   : > { %4268 = vmax.xlane.f32.xlu1 %v14523_v63  ;;  %17551 = vst [vmem:[#allocation35_spill] sm:$0xff] %v14559_v1 }
 0x394   : > { %v10371_v33 = vpop.f32.mrb[86].mxu0  ;;  %4280 = vmax.xlane.f32.xlu0 %v14525_v47  ;;  %17553 = vst [vmem:[#allocation37_spill] sm:$0xff] %v14565_v20 }
 0x395   : > { %v3217_v62 = vpop.f32.mrb[87].mxu0  ;;  %v14537_v60 = vmul.f32 0.35355338, %v10371_v33 }
 0x396   : > { %v14543_v59 = vmul.f32 0.35355338, %v3217_v62 }
 0x397   : > { %4266 = vmax.xlane.f32.xlu1 %v14529_v26  ;;  %17544 = vst [vmem:[#allocation28_spill] sm:$0xff] %v14537_v60 }
 0x398   : > { %v10374_v22 = vpop.f32.mrb[88].mxu0  ;;  %4278 = vmax.xlane.f32.xlu0 %v14531_v32  ;;  %17546 = vst [vmem:[#allocation30_spill] sm:$0xff] %v14543_v59 }
 0x399   : > { %v3227_v17 = vpop.f32.mrb[89].mxu0  ;;  %v14549_v33 = vmul.f32 0.35355338, %v10374_v22 }
 0x39a   : > { %v14555_v62 = vmul.f32 0.35355338, %v3227_v17 }
 0x39b   : > { %4272 = vmax.xlane.f32.xlu1 %v14535_v41  ;;  %17548 = vst [vmem:[#allocation32_spill] sm:$0xff] %v14549_v33 }
 0x39c   : > { %v10377_v31 = vpop.f32.mrb[90].mxu0  ;;  %4288 = vmax.xlane.f32.xlu0 %v14537_v60  ;;  %17550 = vst [vmem:[#allocation34_spill] sm:$0xff] %v14555_v62 }
 0x39d   : > { %v3237_v49 = vpop.f32.mrb[91].mxu0  ;;  %v14561_v22 = vmul.f32 0.35355338, %v10377_v31 }
 0x39e   : > { %v14567_v17 = vmul.f32 0.35355338, %v3237_v49 }
 0x39f   : > { %4270 = vmax.xlane.f32.xlu1 %v14541_v61  ;;  %17552 = vst [vmem:[#allocation36_spill] sm:$0xff] %v14561_v22 }
 0x3a0   : > { %v10380_v18 = vpop.f32.mrb[92].mxu0  ;;  %4286 = vmax.xlane.f32.xlu0 %v14543_v59  ;;  %17554 = vst [vmem:[#allocation38_spill] sm:$0xff] %v14567_v17 }
 0x3a1   : > { %v3247_v53 = vpop.f32.mrb[93].mxu0  ;;  %v14573_v31 = vmul.f32 0.35355338, %v10380_v18 }
 0x3a2   : > { %v14579_v49 = vmul.f32 0.35355338, %v3247_v53 }
 0x3a3   : > { %4276 = vmax.xlane.f32.xlu1 %v14547_v29  ;;  %17556 = vst [vmem:[#allocation40_spill] sm:$0xff] %v14573_v31 }
 0x3a4   : > { %v10383_v55 = vpop.f32.mrb[94].mxu0  ;;  %4292 = vmax.xlane.f32.xlu0 %v14549_v33  ;;  %17558 = vst [vmem:[#allocation42_spill] sm:$0xff] %v14579_v49 }
 0x3a5   : > { %v3257_v9 = vpop.f32.mrb[95].mxu0  ;;  %v14585_v18 = vmul.f32 0.35355338, %v10383_v55 }
 0x3a6   : > { %v14591_v53 = vmul.f32 0.35355338, %v3257_v9 }
 0x3a7   : > { %4274 = vmax.xlane.f32.xlu1 %v14553_v13  ;;  %17560 = vst [vmem:[#allocation44_spill] sm:$0xff] %v14585_v18 }
 0x3a8   : > { %v10386_v60 = vpop.f32.mrb[96].mxu0  ;;  %4290 = vmax.xlane.f32.xlu0 %v14555_v62  ;;  %17562 = vst [vmem:[#allocation46_spill] sm:$0xff] %v14591_v53 }
 0x3a9   : > { %v3267_v59 = vpop.f32.mrb[97].mxu0  ;;  %v14597_v55 = vmul.f32 0.35355338, %v10386_v60 }
 0x3aa   : > { %v14603_v9 = vmul.f32 0.35355338, %v3267_v59 }
 0x3ab   : > { %4284 = vmax.xlane.f32.xlu1 %v14559_v1  ;;  %17564 = vst [vmem:[#allocation48_spill] sm:$0xff] %v14597_v55 }
 0x3ac   : > { %v10389_v29 = vpop.f32.mrb[98].mxu0  ;;  %4296 = vmax.xlane.f32.xlu0 %v14561_v22  ;;  %17566 = vst [vmem:[#allocation50_spill] sm:$0xff] %v14603_v9 }
 0x3ad   : > { %v3277_v33 = vpop.f32.mrb[99].mxu0  ;;  %v14613_v32 = vmul.f32 0.35355338, %v10389_v29 }
 0x3ae   : > { %v14571_v54 = vmul.f32 0.35355338, %v3277_v33 }
 0x3af   : > { %4282 = vmax.xlane.f32.xlu1 %v14565_v20  ;;  %17568 = vst [vmem:[#allocation52_spill] sm:$0xff] %v14613_v32 }
 0x3b0   : > { %4294 = vmax.xlane.f32.xlu0 %v14567_v17  ;;  %v10394_v62 = vpop.f32.mrb[100].mxu0  ;;  %17555 = vst [vmem:[#allocation39_spill] sm:$0xff] %v14571_v54 }
 0x3b1   : > { %v3400_v13 = vpop.f32.mrb[101].mxu0  ;;  %v14577_v10 = vmul.f32 0.35355338, %v10394_v62 }
 0x3b2   : > { %v14583_v33 = vmul.f32 0.35355338, %v3400_v13 }
 0x3b3   : > { %4310 = vmax.xlane.f32.xlu1 %v14571_v54  ;;  %17557 = vst [vmem:[#allocation41_spill] sm:$0xff] %v14577_v10 }
 0x3b4   : > { %4300 = vmax.xlane.f32.xlu0 %v14573_v31  ;;  %v10397_v22 = vpop.f32.mrb[102].mxu0  ;;  %17559 = vst [vmem:[#allocation43_spill] sm:$0xff] %v14583_v33 }
 0x3b5   : > { %v3410_v1 = vpop.f32.mrb[103].mxu0  ;;  %v14589_v62 = vmul.f32 0.35355338, %v10397_v22 }
 0x3b6   : > { %v14595_v13 = vmul.f32 0.35355338, %v3410_v1 }
 0x3b7   : > { %4316 = vmax.xlane.f32.xlu1 %v14577_v10  ;;  %17561 = vst [vmem:[#allocation45_spill] sm:$0xff] %v14589_v62 }
 0x3b8   : > { %4298 = vmax.xlane.f32.xlu0 %v14579_v49  ;;  %v10400_v17 = vpop.f32.mrb[104].mxu0  ;;  %17563 = vst [vmem:[#allocation47_spill] sm:$0xff] %v14595_v13 }
 0x3b9   : > { %v3420_v20 = vpop.f32.mrb[105].mxu0  ;;  %v14601_v22 = vmul.f32 0.35355338, %v10400_v17 }
 0x3ba   : > { %v14611_v60 = vmul.f32 0.35355338, %v3420_v20 }
 0x3bb   : > { %4314 = vmax.xlane.f32.xlu1 %v14583_v33  ;;  %17565 = vst [vmem:[#allocation49_spill] sm:$0xff] %v14601_v22 }
 0x3bc   : > { %4304 = vmax.xlane.f32.xlu0 %v14585_v18  ;;  %v10403_v54 = vpop.f32.mrb[106].mxu0  ;;  %17567 = vst [vmem:[#allocation51_spill] sm:$0xff] %v14611_v60 }
 0x3bd   : > { %v3430_v31 = vpop.f32.mrb[107].mxu0 }
 0x3be   : > { %v14632_v41 = vmul.f32 0.35355338, %v3430_v31 }
 0x3bf   : > { %4320 = vmax.xlane.f32.xlu1 %v14589_v62 }
 0x3c0   : > { %4302 = vmax.xlane.f32.xlu0 %v14591_v53  ;;  %v10406_v49 = vpop.f32.mrb[108].mxu0  ;;  %17572 = vst [vmem:[#allocation56_spill] sm:$0xff] %v14632_v41 }
 0x3c1   : > { %v3440_v10 = vpop.f32.mrb[109].mxu0 }
 0x3c3   : > { %4318 = vmax.xlane.f32.xlu1 %v14595_v13 }
 0x3c4   : > { %4308 = vmax.xlane.f32.xlu0 %v14597_v55  ;;  %v10409_v18 = vpop.f32.mrb[110].mxu0  ;;  %v14621_v55 = vmul.f32 0.35355338, %v10403_v54 }
 0x3c5   : > { %v3450_v33 = vpop.f32.mrb[111].mxu0 }
 0x3c6   : > { %17570 = vst [vmem:[#allocation54_spill] sm:$0xff] %v14621_v55 }
 0x3c7   : > { %4324 = vmax.xlane.f32.xlu1 %v14601_v22 }
 0x3c8   : > { %v14606_v62 = vpop.xlane.xlu1 %4188  ;;  %4306 = vmax.xlane.f32.xlu0 %v14603_v9  ;;  %v14609_v1 = vpop.f32.mrb[112].mxu0 }
 0x3c9   : > { %v4187_v53 = vpop.xlane.xlu0 %4186  ;;  %v3460_v13 = vpop.f32.mrb[113].mxu0 }
 0x3ca   : > { %v14619_v59 = vmul.f32 0.35355338, %v3460_v13  ;;  %v4442_v9 = vsub.f32 %v14383_v57, %v4187_v53 }
 0x3cb   : > { %4322 = vmax.xlane.f32.xlu1 %v14611_v60 }
 0x3cc   : > { %v14616_v17 = vpop.xlane.xlu1 %4212  ;;  %4312 = vmax.xlane.f32.xlu0 %v14613_v32  ;;  %17569 = vst [vmem:[#allocation53_spill] sm:$0xff] %v14619_v59  ;;  %v10415_v22 = vpop.f32.mrb[114].mxu0  ;;  %v4570_v13 = vmul.f32 1.442695, %v4442_v9 }
 0x3cd   : > { %v4211_v61 = vpop.xlane.xlu0 %4210  ;;  %v14624_v20 = vpop.f32.mrb[115].mxu0  ;;  %v14628_v29 = vmul.f32 0.35355338, %v10415_v22  ;;  %v14641_v22 = vmul.f32 0.35355338, %v10406_v49 }
 0x3ce   : > { %v4454_v32 = vsub.f32 %v14390_v40, %v4211_v61  ;;  %11546 = vpow2.f32 %v4570_v13  ;;  %v14658_v13 = vmul.f32 0.35355338, %v10409_v18 }
 0x3cf   : > { %4328 = vmax.xlane.f32.xlu1 %v14621_v55  ;;  %17571 = vst [vmem:[#allocation55_spill] sm:$0xff] %v14628_v29  ;;  %17574 = vst [vmem:[#allocation58_spill] sm:$0xff] %v14641_v22 }
 0x3d0   : > { %4338 = vmax.xlane.f32.xlu0 %v14619_v59  ;;  %v14630_v60 = vpop.f32.mrb[116].mxu0  ;;  %v14635_v26 = vpop.xlane.xlu1 %4192  ;;  %v4594_v59 = vmul.f32 1.442695, %v4454_v32  ;;  %17577 = vst [vmem:[#allocation61_spill] sm:$0xff] %v14658_v13 }
 0x3d1   : > { %v4217_v54 = vpop.xlane.xlu0 %4216  ;;  %v3593_v47 = vpop.f32.mrb[117].mxu0 }
 0x3d2   : > { %v14639_v57 = vmul.f32 0.35355338, %v3593_v47  ;;  %11548 = vpow2.f32 %v4594_v59  ;;  %v4457_v47 = vsub.f32 %v14399_v4, %v4217_v54  ;;  %v4443_v54 = vsub.f32 %v14380_v48, %v14606_v62 }
 0x3d3   : > { %4326 = vmax.xlane.f32.xlu1 %v14632_v41  ;;  %v14649_v41 = vmul.f32 0.35355338, %v3440_v10 }
 0x3d4   : > { %4344 = vmax.xlane.f32.xlu0 %v14628_v29  ;;  %17573 = vst [vmem:[#allocation57_spill] sm:$0xff] %v14639_v57  ;;  %v10423_v53 = vpop.f32.mrb[118].mxu0  ;;  %v4191_v40 = vpop.xlane.xlu1 %4190 }
 0x3d5   : > { %v4215_v31 = vpop.xlane.xlu0 %4214  ;;  %v14643_v55 = vpop.f32.mrb[119].mxu0  ;;  %v14647_v61 = vmul.f32 0.35355338, %v10423_v53  ;;  %17576 = vst [vmem:[#allocation60_spill] sm:$0xff] %v14649_v41  ;;  %v4444_v53 = vsub.f32 %v14411_v38, %v4191_v40 }
 0x3d6   : > { %v4456_v40 = vsub.f32 %v14409_v12, %v4215_v31 }
 0x3d7   : > { %4332 = vmax.xlane.f32.xlu1 %v14641_v22  ;;  %17575 = vst [vmem:[#allocation59_spill] sm:$0xff] %v14647_v61  ;;  %v4574_v38 = vmul.f32 1.442695, %v4444_v53 }
 0x3d8   : > { %4346 = vmax.xlane.f32.xlu0 %v14639_v57  ;;  %v10426_v9 = vpop.f32.mrb[120].mxu0  ;;  %v4600_v57 = vmul.f32 1.442695, %v4457_v47  ;;  %v14665_v59 = vpop.xlane.xlu1 %4196  ;;  %v14675_v47 = vmul.f32 0.35355338, %v3450_v33 }
 0x3d9   : > { %v4195_v49 = vpop.xlane.xlu0 %4194  ;;  %v14652_v29 = vpop.f32.mrb[121].mxu0  ;;  %v14688_v62 = vmul.f32 0.35355338, %v10426_v9  ;;  %v4598_v12 = vmul.f32 1.442695, %v4456_v40 }
 0x3da   : > { %v14667_v4 = vpop.eup %11546  ;;  %17579 = vst [vmem:[#allocation63_spill] sm:$0xff] %v14675_v47  ;;  %11550 = vpow2.f32 %v4600_v57  ;;  %v14693_v57 = vmul.f32 0.35355338, %v14609_v1  ;;  %v4446_v1 = vsub.f32 %v14421_v56, %v4195_v49  ;;  %v14724_v56 = vmul.f32 0.35355338, %v14630_v60 }
 0x3db   : > { %4330 = vmax.xlane.f32.xlu1 %v14649_v41  ;;  %17578 = vst [vmem:[#allocation62_spill] sm:$0xff] %v14667_v4  ;;  %17581 = vst [vmem:[#allocation65_spill] sm:$0xff] %v14688_v62  ;;  %11552 = vpow2.f32 %v4574_v38 }
 0x3dc   : > { %4352 = vmax.xlane.f32.xlu0 %v14647_v61  ;;  %v14656_v32 = vpop.f32.mrb[122].mxu0  ;;  %v14682_v63 = vpop.eup %11548  ;;  %17582 = vst [vmem:[#allocation66_spill] sm:$0xff] %v14693_v57  ;;  %17585 = vst [vmem:[#allocation69_spill] sm:$0xff] %v14724_v56  ;;  %v4578_v49 = vmul.f32 1.442695, %v4446_v1 }
 0x3dd   : > { %v14661_v22 = vpop.xlane.xlu0 %4198  ;;  %v14663_v10 = vpop.f32.mrb[123].mxu0  ;;  %17580 = vst [vmem:[#allocation64_spill] sm:$0xff] %v14682_v63 }
 0x3de   : > { %v14685_v48 = vpop.xlane.xlu1 %4200 }
 0x3df   : > { %4336 = vmax.xlane.f32.xlu1 %v14658_v13  ;;  %v4572_v13 = vmul.f32 1.442695, %v4443_v54  ;;  %v4455_v54 = vsub.f32 %v14387_v28, %v14616_v17  ;;  %v4445_v17 = vsub.f32 %v14401_v3, %v14635_v26  ;;  %v4448_v26 = vsub.f32 %v14429_v37, %v14661_v22 }
 0x3e0   : > { %4826 = vadd.xlane.f32.xlu0 %v14667_v4  ;;  %v14673_v18 = vpop.f32.mrb[124].mxu0 }
 0x3e1   : > { %v14678_v61 = vpop.xlane.xlu0 %4202  ;;  %v14680_v41 = vpop.f32.mrb[125].mxu0  ;;  %11554 = vpow2.f32 %v4572_v13  ;;  %v4596_v28 = vmul.f32 1.442695, %v4455_v54  ;;  %v4576_v54 = vmul.f32 1.442695, %v4445_v17 }
 0x3e2   : > { %11556 = vpow2.f32 %v4598_v12  ;;  %v14753_v17 = vmul.f32 0.35355338, %v14656_v32  ;;  %v4582_v22 = vmul.f32 1.442695, %v4448_v26  ;;  %v4450_v32 = vsub.f32 %v14437_v42, %v14678_v61 }
 0x3e3   : > { %4334 = vmax.xlane.f32.xlu1 %v14675_v47  ;;  %v14706_v47 = vmul.f32 0.35355338, %v14624_v20  ;;  %11558 = vpow2.f32 %v4596_v28  ;;  %v4447_v28 = vsub.f32 %v14418_v44, %v14665_v59  ;;  %v14787_v42 = vmul.f32 0.35355338, %v14673_v18 }
 0x3e4   : > { %4850 = vadd.xlane.f32.xlu0 %v14682_v63  ;;  %v14690_v33 = vpop.f32.mrb[126].mxu0  ;;  %v14713_v63 = vpop.xlane.xlu1 %4204  ;;  %11560 = vpow2.f32 %v4578_v49  ;;  %17589 = vst [vmem:[#allocation73_spill] sm:$0xff] %v14753_v17  ;;  %v14758_v49 = vmul.f32 0.35355338, %v14643_v55  ;;  %v14804_v18 = vmul.f32 0.35355338, %v14652_v29 }
 0x3e5   : > { %v14695_v31 = vpop.xlane.xlu0 %4206  ;;  %v14697_v53 = vpop.f32.mrb[127].mxu0  ;;  %17583 = vst [vmem:[#allocation67_spill] sm:$0xff] %v14706_v47  ;;  %11562 = vpow2.f32 %v4576_v54  ;;  %v4580_v44 = vmul.f32 1.442695, %v4447_v28  ;;  %v4449_v28 = vsub.f32 %v14426_v15, %v14685_v48  ;;  %17593 = vst [vmem:[#allocation77_spill] sm:$0xff] %v14787_v42 }
 0x3e6   : > { %v14715_v13 = vpop.eup %11550  ;;  %17590 = vst [vmem:[#allocation74_spill] sm:$0xff] %v14758_v49  ;;  %11564 = vpow2.f32 %v4582_v22  ;;  %v4586_v22 = vmul.f32 1.442695, %v4450_v32  ;;  %17595 = vst [vmem:[#allocation79_spill] sm:$0xff] %v14804_v18 }
 0x3e7   : > { %4340 = vmax.xlane.f32.xlu1 %v14693_v57  ;;  %17584 = vst [vmem:[#allocation68_spill] sm:$0xff] %v14715_v13  ;;  %v14730_v57 = vpop.eup %11552  ;;  %11566 = vpow2.f32 %v4580_v44  ;;  %v4584_v44 = vmul.f32 1.442695, %v4449_v28  ;;  %v4451_v28 = vsub.f32 %v14434_v52, %v14713_v63 }
 0x3e8   : > { %4356 = vmax.xlane.f32.xlu0 %v14688_v62  ;;  %v14703_v9 = vpop.f32.mrb[128].mxu0  ;;  %17586 = vst [vmem:[#allocation70_spill] sm:$0xff] %v14730_v57  ;;  %11568 = vpow2.f32 %v4586_v22  ;;  %v14819_v22 = vmul.f32 0.35355338, %v14690_v33 }
 0x3e9   : > { %v14709_v38 = vpop.xlane.xlu0 %4224  ;;  %v14711_v40 = vpop.f32.mrb[129].mxu0  ;;  %11570 = vpow2.f32 %v4584_v44  ;;  %v4588_v52 = vmul.f32 1.442695, %v4451_v28 }
 0x3ea   : > { %17597 = vst [vmem:[#allocation81_spill] sm:$0xff] %v14819_v22 }
 0x3eb   : > { %4342 = vmax.xlane.f32.xlu1 %v14706_v47  ;;  %v14733_v47 = vpop.xlane.xlu1 %4208  ;;  %11572 = vpow2.f32 %v4588_v52 }
 0x3ec   : > { %4856 = vadd.xlane.f32.xlu0 %v14715_v13  ;;  %v14721_v20 = vpop.f32.mrb[130].mxu0  ;;  %v14744_v13 = vpop.eup %11554  ;;  %v4453_v28 = vsub.f32 %v14442_v34, %v14733_v47 }
 0x3ed   : > { %v14726_v12 = vpop.xlane.xlu0 %4222  ;;  %v14728_v62 = vpop.f32.mrb[131].mxu0  ;;  %17587 = vst [vmem:[#allocation71_spill] sm:$0xff] %v14744_v13 }
 0x3ee   : > { %v14746_v4 = vpop.eup %11556  ;;  %v4592_v52 = vmul.f32 1.442695, %v4453_v28 }
 0x3ef   : > { %4348 = vmax.xlane.f32.xlu1 %v14724_v56  ;;  %17588 = vst [vmem:[#allocation72_spill] sm:$0xff] %v14746_v4  ;;  %v14776_v26 = vpop.eup %11558 }
 0x3f0   : > { %4830 = vadd.xlane.f32.xlu0 %v14730_v57  ;;  %v14736_v3 = vpop.f32.mrb[132].mxu0  ;;  %17591 = vst [vmem:[#allocation75_spill] sm:$0xff] %v14776_v26 }
 0x3f1   : > { %v14740_v60 = vpop.xlane.xlu0 %4228  ;;  %v14742_v1 = vpop.f32.mrb[133].mxu0 }
 0x3f3   : > { %4828 = vadd.xlane.f32.xlu1 %v14744_v13  ;;  %v14764_v13 = vpop.xlane.xlu1 %4220 }
 0x3f4   : > { %4854 = vadd.xlane.f32.xlu0 %v14746_v4  ;;  %v14755_v37 = vpop.f32.mrb[134].mxu0  ;;  %v14778_v4 = vpop.eup %11560  ;;  %v4459_v34 = vsub.f32 %v14450_v58, %v14764_v13 }
 0x3f5   : > { %v14760_v56 = vpop.xlane.xlu0 %4226  ;;  %v14762_v57 = vpop.f32.mrb[135].mxu0  ;;  %17592 = vst [vmem:[#allocation76_spill] sm:$0xff] %v14778_v4 }
 0x3f6   : > { %v14795_v11 = vpop.eup %11562  ;;  %v4604_v58 = vmul.f32 1.442695, %v4459_v34  ;;  %v14904_v34 = vmul.f32 0.35355338, %v14721_v20  ;;  %v14922_v20 = vmul.f32 0.35355338, %v14728_v62 }
 0x3f7   : > { %4350 = vmax.xlane.f32.xlu1 %v14758_v49  ;;  %17594 = vst [vmem:[#allocation78_spill] sm:$0xff] %v14795_v11 }
 0x3f8   : > { %4360 = vmax.xlane.f32.xlu0 %v14753_v17  ;;  %v14768_v59 = vpop.f32.mrb[136].mxu0  ;;  %v14783_v17 = vpop.xlane.xlu1 %4218  ;;  %17611 = vst [vmem:[#allocation95_spill] sm:$0xff] %v14904_v34  ;;  %17613 = vst [vmem:[#allocation97_spill] sm:$0xff] %v14922_v20 }
 0x3f9   : > { %v14772_v54 = vpop.xlane.xlu0 %4232  ;;  %v14774_v55 = vpop.f32.mrb[137].mxu0  ;;  %v4458_v13 = vsub.f32 %v14457_v16, %v14783_v17 }
 0x3fb   : > { %4852 = vadd.xlane.f32.xlu1 %v14776_v26  ;;  %v4602_v16 = vmul.f32 1.442695, %v4458_v13 }
 0x3fc   : > { %4834 = vadd.xlane.f32.xlu0 %v14778_v4  ;;  %v14789_v61 = vpop.f32.mrb[138].mxu0  ;;  %v14810_v4 = vpop.eup %11564 }
 0x3fd   : > { %v14791_v49 = vpop.xlane.xlu0 %4230  ;;  %v14793_v35 = vpop.f32.mrb[139].mxu0  ;;  %17596 = vst [vmem:[#allocation80_spill] sm:$0xff] %v14810_v4 }
 0x3fe   : > { %v14829_v44 = vpop.eup %11566 }
 0x3ff   : > { %4832 = vadd.xlane.f32.xlu1 %v14795_v11  ;;  %17598 = vst [vmem:[#allocation82_spill] sm:$0xff] %v14829_v44  ;;  %v14844_v27 = vpop.eup %11568 }
 0x400   : > { %v14798_v15 = vpop.xlane.xlu1 %4252  ;;  %4364 = vmax.xlane.f32.xlu0 %v14787_v42  ;;  %v14801_v48 = vpop.f32.mrb[140].mxu0  ;;  %v4452_v42 = vsub.f32 %v14445_v2, %v14695_v31  ;;  %17601 = vst [vmem:[#allocation85_spill] sm:$0xff] %v14844_v27 }
 0x401   : > { %v14806_v32 = vpop.xlane.xlu0 %4236  ;;  %v14808_v26 = vpop.f32.mrb[141].mxu0 }
 0x402   : > { %v14861_v21 = vpop.eup %11570 }
 0x403   : > { %4354 = vmax.xlane.f32.xlu1 %v14804_v18  ;;  %v4590_v18 = vmul.f32 1.442695, %v4452_v42  ;;  %v14853_v42 = vmul.f32 0.35355338, %v14703_v9  ;;  %17604 = vst [vmem:[#allocation88_spill] sm:$0xff] %v14861_v21 }
 0x404   : > { %v14815_v11 = vpop.xlane.xlu1 %4250  ;;  %4838 = vadd.xlane.f32.xlu0 %v14810_v4  ;;  %v14821_v29 = vpop.f32.mrb[142].mxu0  ;;  %v14838_v4 = vmul.f32 0.35355338, %v14663_v10  ;;  %v14870_v9 = vmul.f32 0.35355338, %v14711_v40 }
 0x405   : > { %v14825_v25 = vpop.xlane.xlu0 %4234  ;;  %v14827_v14 = vpop.f32.mrb[143].mxu0  ;;  %17602 = vst [vmem:[#allocation86_spill] sm:$0xff] %v14853_v42  ;;  %11574 = vpow2.f32 %v4590_v18 }
 0x406   : > { %17600 = vst [vmem:[#allocation84_spill] sm:$0xff] %v14838_v4  ;;  %17605 = vst [vmem:[#allocation89_spill] sm:$0xff] %v14870_v9  ;;  %11576 = vpow2.f32 %v4592_v52 }
 0x407   : > { %4836 = vadd.xlane.f32.xlu1 %v14829_v44  ;;  %11578 = vpow2.f32 %v4604_v58 }
 0x408   : > { %v14832_v63 = vpop.xlane.xlu1 %4256  ;;  %4368 = vmax.xlane.f32.xlu0 %v14819_v22  ;;  %v14835_v33 = vpop.f32.mrb[144].mxu0  ;;  %11580 = vpow2.f32 %v4602_v16  ;;  %v4463_v16 = vsub.f32 %v14463_v46, %v14740_v60 }
 0x409   : > { %17599 = vst [vmem:[#allocation83_spill] sm:$0xff] %v14832_v63  ;;  %v14840_v2 = vpop.xlane.xlu0 %4240  ;;  %v14842_v31 = vpop.f32.mrb[145].mxu0 }
 0x40a   : > { %v4612_v46 = vmul.f32 1.442695, %v4463_v16 }
 0x40b   : > { %4358 = vmax.xlane.f32.xlu1 %v14838_v4  ;;  %v14875_v4 = vmul.f32 0.35355338, %v14680_v41  ;;  %v4461_v41 = vsub.f32 %v14453_v39, %v14709_v38 }
 0x40c   : > { %v14849_v44 = vpop.xlane.xlu1 %4254  ;;  %4842 = vadd.xlane.f32.xlu0 %v14844_v27  ;;  %v14855_v10 = vpop.f32.mrb[146].mxu0 }
 0x40d   : > { %v14857_v22 = vpop.xlane.xlu0 %4238  ;;  %v14859_v63 = vpop.f32.mrb[147].mxu0  ;;  %17606 = vst [vmem:[#allocation90_spill] sm:$0xff] %v14875_v4  ;;  %v4608_v38 = vmul.f32 1.442695, %v4461_v41 }
 0x40e   : > { %17603 = vst [vmem:[#allocation87_spill] sm:$0xff] %v14859_v63 }
 0x40f   : > { %4840 = vadd.xlane.f32.xlu1 %v14861_v21  ;;  %11582 = vpow2.f32 %v4608_v38 }
 0x410   : > { %v14866_v47 = vpop.xlane.xlu1 %4260  ;;  %4372 = vmax.xlane.f32.xlu0 %v14853_v42  ;;  %v14872_v18 = vpop.f32.mrb[148].mxu0 }
 0x411   : > { %v14877_v27 = vpop.xlane.xlu0 %4244  ;;  %v14879_v63 = vpop.f32.mrb[149].mxu0 }
 0x412   : > { %17607 = vst [vmem:[#allocation91_spill] sm:$0xff] %v14879_v63  ;;  %v14895_v63 = vpop.eup %11572 }
 0x413   : > { %4362 = vmax.xlane.f32.xlu1 %v14875_v4  ;;  %17609 = vst [vmem:[#allocation93_spill] sm:$0xff] %v14895_v63  ;;  %v14897_v52 = vpop.eup %11574  ;;  %v14911_v4 = vmul.f32 0.35355338, %v14697_v53 }
 0x414   : > { %v14884_v28 = vpop.xlane.xlu1 %4258  ;;  %4370 = vmax.xlane.f32.xlu0 %v14870_v9  ;;  %v14887_v40 = vpop.f32.mrb[150].mxu0  ;;  %17610 = vst [vmem:[#allocation94_spill] sm:$0xff] %v14897_v52  ;;  %v4460_v9 = vsub.f32 %v14459_v7, %v14726_v12 }
 0x415   : > { %v14891_v42 = vpop.xlane.xlu0 %4242  ;;  %v14893_v21 = vpop.f32.mrb[151].mxu0  ;;  %17612 = vst [vmem:[#allocation96_spill] sm:$0xff] %v14911_v4 }
 0x416   : > { %17608 = vst [vmem:[#allocation92_spill] sm:$0xff] %v14893_v21  ;;  %v4606_v7 = vmul.f32 1.442695, %v4460_v9  ;;  %v4462_v9 = vsub.f32 %v14466_v24, %v14760_v56 }
 0x417   : > { %4844 = vadd.xlane.f32.xlu1 %v14895_v63 }
 0x418   : > { %v14900_v17 = vpop.xlane.xlu1 %4264  ;;  %4846 = vadd.xlane.f32.xlu0 %v14897_v52  ;;  %v14906_v39 = vpop.f32.mrb[152].mxu0  ;;  %11584 = vpow2.f32 %v4606_v7 }
 0x419   : > { %v14913_v21 = vpop.xlane.xlu0 %4248  ;;  %v14915_v58 = vpop.f32.mrb[153].mxu0  ;;  %11586 = vpow2.f32 %v4612_v46 }
 0x41a   : > { %v14930_v52 = vpop.eup %11576 }
 0x41b   : > { %4366 = vmax.xlane.f32.xlu1 %v14911_v4  ;;  %17614 = vst [vmem:[#allocation98_spill] sm:$0xff] %v14930_v52  ;;  %v14946_v63 = vpop.eup %11578 }
 0x41c   : > { %v14918_v13 = vpop.xlane.xlu1 %4262  ;;  %4376 = vmax.xlane.f32.xlu0 %v14904_v34  ;;  %v14924_v41 = vpop.f32.mrb[154].mxu0  ;;  %17617 = vst [vmem:[#allocation101_spill] sm:$0xff] %v14946_v63 }
 0x41d   : > { %v14926_v53 = vpop.xlane.xlu0 %4246  ;;  %v14928_v12 = vpop.f32.mrb[155].mxu0 }
 0x41f   : > { %4848 = vadd.xlane.f32.xlu1 %v14930_v52  ;;  %v14949_v52 = vmul.f32 0.35355338, %v14742_v1 }
 0x420   : > { %v14935_v4 = vpop.xlane.xlu1 %4268  ;;  %4374 = vmax.xlane.f32.xlu0 %v14922_v20  ;;  %v14938_v62 = vpop.f32.mrb[156].mxu0  ;;  %v4610_v20 = vmul.f32 1.442695, %v4462_v9  ;;  %v4465_v9 = vsub.f32 %v14469_v45, %v14772_v54  ;;  %v4464_v45 = vsub.f32 %v14472_v43, %v14791_v49 }
 0x421   : > { %17615 = vst [vmem:[#allocation99_spill] sm:$0xff] %v14938_v62  ;;  %v14942_v38 = vpop.xlane.xlu0 %4280  ;;  %v14944_v34 = vpop.f32.mrb[157].mxu0  ;;  %17618 = vst [vmem:[#allocation102_spill] sm:$0xff] %v14949_v52 }
 0x422   : > { %17616 = vst [vmem:[#allocation100_spill] sm:$0xff] %v14944_v34  ;;  %v14961_v62 = vpop.eup %11580  ;;  %11588 = vpow2.f32 %v4610_v20  ;;  %v4616_v20 = vmul.f32 1.442695, %v4465_v9  ;;  %v4614_v9 = vmul.f32 1.442695, %v4464_v45 }
 0x423   : > { %4860 = vadd.xlane.f32.xlu1 %v14946_v63  ;;  %17621 = vst [vmem:[#allocation105_spill] sm:$0xff] %v14961_v62  ;;  %v14963_v34 = vpop.eup %11582  ;;  %v15022_v45 = vmul.f32 0.35355338, %v14774_v55 }
 0x424   : > { %v14952_v60 = vpop.xlane.xlu1 %4266  ;;  %4378 = vmax.xlane.f32.xlu0 %v14949_v52  ;;  %v14955_v7 = vpop.f32.mrb[158].mxu0  ;;  %17622 = vst [vmem:[#allocation106_spill] sm:$0xff] %v14963_v34  ;;  %v14974_v52 = vmul.f32 0.35355338, %v14736_v3  ;;  %v14991_v3 = vmul.f32 0.35355338, %v14755_v37  ;;  %11590 = vpow2.f32 %v4616_v20 }
 0x425   : > { %17619 = vst [vmem:[#allocation103_spill] sm:$0xff] %v14955_v7  ;;  %v14957_v24 = vpop.xlane.xlu0 %4278  ;;  %v14959_v56 = vpop.f32.mrb[159].mxu0  ;;  %11592 = vpow2.f32 %v4614_v9  ;;  %17630 = vst [vmem:[#allocation114_spill] sm:$0xff] %v15022_v45  ;;  %v4466_v9 = vsub.f32 %v14483_v5, %v14825_v25  ;;  %v15050_v25 = vmul.f32 0.35355338, %v14821_v29 }
 0x426   : > { %17620 = vst [vmem:[#allocation104_spill] sm:$0xff] %v14959_v56  ;;  %17624 = vst [vmem:[#allocation108_spill] sm:$0xff] %v14974_v52  ;;  %v14980_v56 = vpop.eup %11584 }
 0x427   : > { %4858 = vadd.xlane.f32.xlu1 %v14961_v62  ;;  %17625 = vst [vmem:[#allocation109_spill] sm:$0xff] %v14980_v56  ;;  %17626 = vst [vmem:[#allocation110_spill] sm:$0xff] %v14991_v3  ;;  %v15006_v43 = vpop.eup %11586 }
 0x428   : > { %v14966_v1 = vpop.xlane.xlu1 %4272  ;;  %4864 = vadd.xlane.f32.xlu0 %v14963_v34  ;;  %v14969_v16 = vpop.f32.mrb[160].mxu0  ;;  %17628 = vst [vmem:[#allocation112_spill] sm:$0xff] %v15006_v43  ;;  %17634 = vst [vmem:[#allocation118_spill] sm:$0xff] %v15050_v25 }
 0x429   : > { %17623 = vst [vmem:[#allocation107_spill] sm:$0xff] %v14969_v16  ;;  %v14976_v63 = vpop.xlane.xlu0 %4288  ;;  %v14978_v7 = vpop.f32.mrb[161].mxu0  ;;  %v14998_v16 = vmul.f32 0.35355338, %v14762_v57  ;;  %v4467_v57 = vsub.f32 %v14477_v0, %v14806_v32  ;;  %v15031_v0 = vmul.f32 0.35355338, %v14789_v61 }
 0x42b   : > { %4380 = vmax.xlane.f32.xlu1 %v14974_v52  ;;  %17627 = vst [vmem:[#allocation111_spill] sm:$0xff] %v14998_v16  ;;  %17631 = vst [vmem:[#allocation115_spill] sm:$0xff] %v15031_v0 }
 0x42c   : > { %v14983_v46 = vpop.xlane.xlu1 %4270  ;;  %4862 = vadd.xlane.f32.xlu0 %v14980_v56  ;;  %v14986_v34 = vpop.f32.mrb[162].mxu0 }
 0x42d   : > { %v14993_v54 = vpop.xlane.xlu0 %4286  ;;  %v14995_v62 = vpop.f32.mrb[163].mxu0 }
 0x42e   : > { %v15008_v37 = vpop.eup %11588 }
 0x42f   : > { %4384 = vmax.xlane.f32.xlu1 %v14991_v3  ;;  %v15035_v32 = vpop.eup %11590 }
 0x430   : > { %v15001_v52 = vpop.xlane.xlu1 %4276  ;;  %4382 = vmax.xlane.f32.xlu0 %v14998_v16  ;;  %v15017_v16 = vmul.f32 0.35355338, %v14768_v59  ;;  %17632 = vst [vmem:[#allocation116_spill] sm:$0xff] %v15035_v32  ;;  %v15046_v5 = vpop.eup %11592 }
 0x431   : > { %v15004_v56 = vpop.xlane.xlu0 %4292 }
 0x432   : > { %17629 = vst [vmem:[#allocation113_spill] sm:$0xff] %v15017_v16 }
 0x433   : > { %4868 = vadd.xlane.f32.xlu1 %v15006_v43  ;;  %v4620_v43 = vmul.f32 1.442695, %v4467_v57  ;;  %v15042_v57 = vmul.f32 0.35355338, %v14801_v48  ;;  %v15060_v48 = vmul.f32 0.35355338, %v14793_v35 }
 0x434   : > { %v15011_v49 = vpop.xlane.xlu1 %4274  ;;  %4866 = vadd.xlane.f32.xlu0 %v15008_v37 }
 0x435   : > { %v15019_v20 = vpop.xlane.xlu0 %4290  ;;  %11594 = vpow2.f32 %v4620_v43  ;;  %17633 = vst [vmem:[#allocation117_spill] sm:$0xff] %v15042_v57  ;;  %v4469_v43 = vsub.f32 %v14489_v19, %v14840_v2  ;;  %17635 = vst [vmem:[#allocation119_spill] sm:$0xff] %v15060_v48  ;;  %v15071_v19 = vmul.f32 0.35355338, %v14827_v14  ;;  %v4471_v14 = vsub.f32 %v14501_v51, %v14877_v27 }
 0x436   : > { %v15104_v51 = vmul.f32 0.35355338, %v14808_v26 }
 0x437   : > { %4388 = vmax.xlane.f32.xlu1 %v15017_v16  ;;  %v4618_v16 = vmul.f32 1.442695, %v4466_v9  ;;  %17636 = vst [vmem:[#allocation120_spill] sm:$0xff] %v15071_v19 }
 0x438   : > { %v15025_v3 = vpop.xlane.xlu1 %4284  ;;  %4386 = vmax.xlane.f32.xlu0 %v15022_v45  ;;  %17641 = vst [vmem:[#allocation125_spill] sm:$0xff] %v15104_v51 }
 0x439   : > { %v15033_v59 = vpop.xlane.xlu0 %4296  ;;  %11596 = vpow2.f32 %v4618_v16  ;;  %v4468_v16 = vsub.f32 %v14495_v30, %v14857_v22 }
 0x43b   : > { %4392 = vmax.xlane.f32.xlu1 %v15031_v0  ;;  %v4624_v0 = vmul.f32 1.442695, %v4469_v43  ;;  %v4622_v30 = vmul.f32 1.442695, %v4468_v16  ;;  %v15108_v16 = vmul.f32 0.35355338, %v14855_v10 }
 0x43c   : > { %v15038_v55 = vpop.xlane.xlu1 %4282  ;;  %4872 = vadd.xlane.f32.xlu0 %v15035_v32  ;;  %v17701_v32 = vld [vmem:[#allocation16_spill] sm:$0xff] }
 0x43d   : > { %v15044_v45 = vpop.xlane.xlu0 %4294  ;;  %11598 = vpow2.f32 %v4624_v0  ;;  %v15099_v0 = vmul.f32 0.35355338, %v14842_v31  ;;  %17642 = vst [vmem:[#allocation126_spill] sm:$0xff] %v15108_v16  ;;  %v4473_v31 = vsub.f32 %v14513_v23, %v14913_v21  ;;  %v17647_v21 = vld [vmem:[#allocation12_spill] sm:$0xff] }
 0x43f   : > { %4396 = vmax.xlane.f32.xlu1 %v15042_v57  ;;  %v4475_v57 = vsub.f32 %v14475_v6, %v14798_v15  ;;  %v15075_v35 = vpop.eup %11594  ;;  %v4474_v15 = vsub.f32 %v14481_v36, %v14815_v11  ;;  %v4628_v36 = vmul.f32 1.442695, %v4471_v14  ;;  %v4470_v11 = vsub.f32 %v14507_v50, %v14891_v42  ;;  %17640 = vst [vmem:[#allocation124_spill] sm:$0xff] %v15099_v0 }
 0x440   : > { %v15052_v61 = vpop.xlane.xlu1 %4310  ;;  %4870 = vadd.xlane.f32.xlu0 %v15046_v5  ;;  %17637 = vst [vmem:[#allocation121_spill] sm:$0xff] %v15075_v35 }
 0x441   : > { %v15057_v9 = vpop.xlane.xlu0 %4300  ;;  %v4636_v6 = vmul.f32 1.442695, %v4475_v57  ;;  %v4626_v50 = vmul.f32 1.442695, %v4470_v11  ;;  %v4479_v11 = vsub.f32 %v17647_v21, %v14866_v47  ;;  %v17651_v47 = vld [vmem:[#allocation13_spill] sm:$0xff] }
 0x442   : > { %v4478_v21 = vsub.f32 %v17651_v47, %v14884_v28 }
 0x443   : > { %4400 = vmax.xlane.f32.xlu1 %v15050_v25  ;;  %v15079_v25 = vmul.f32 0.35355338, %v14835_v33  ;;  %11600 = vpow2.f32 %v4636_v6  ;;  %v4634_v33 = vmul.f32 1.442695, %v4474_v15  ;;  %v4476_v6 = vsub.f32 %v14493_v8, %v14849_v44  ;;  %v17644_v44 = vld [vmem:[#allocation22_spill] sm:$0xff] }
 0x444   : > { %v15065_v29 = vpop.xlane.xlu1 %4316  ;;  %4390 = vmax.xlane.f32.xlu0 %v15060_v48  ;;  %v15090_v48 = vpop.eup %11596  ;;  %11602 = vpow2.f32 %v4622_v30  ;;  %v4632_v8 = vmul.f32 1.442695, %v4473_v31  ;;  %v4472_v14 = vsub.f32 %v17644_v44, %v14926_v53 }
 0x445   : > { %v15073_v2 = vpop.xlane.xlu0 %4298  ;;  %17638 = vst [vmem:[#allocation122_spill] sm:$0xff] %v15079_v25  ;;  %17639 = vst [vmem:[#allocation123_spill] sm:$0xff] %v15090_v48  ;;  %11604 = vpow2.f32 %v4634_v33  ;;  %v4638_v10 = vmul.f32 1.442695, %v4476_v6 }
 0x446   : > { %11606 = vpow2.f32 %v4628_v36 }
 0x447   : > { %4398 = vmax.xlane.f32.xlu1 %v15071_v19  ;;  %v15119_v42 = vpop.eup %11598  ;;  %11608 = vpow2.f32 %v4626_v50  ;;  %v4630_v50 = vmul.f32 1.442695, %v4472_v14  ;;  %v17653_v14 = vld [vmem:[#allocation11_spill] sm:$0xff] }
 0x448   : > { %v15083_v43 = vpop.xlane.xlu1 %4314  ;;  %4876 = vadd.xlane.f32.xlu0 %v15075_v35  ;;  %17643 = vst [vmem:[#allocation127_spill] sm:$0xff] %v15119_v42  ;;  %11610 = vpow2.f32 %v4638_v10  ;;  %v4644_v10 = vmul.f32 1.442695, %v4479_v11  ;;  %v15242_v35 = vmul.f32 0.35355338, %v14915_v58 }
 0x449   : > { %v15088_v22 = vpop.xlane.xlu0 %4304  ;;  %11612 = vpow2.f32 %v4632_v8  ;;  %v17652_v8 = vld [vmem:[#allocation83_spill] sm:$0xff]  ;;  %v15255_v58 = vmul.f32 0.35355338, %v14928_v12  ;;  %v17686_v12 = vld [vmem:[#allocation26_spill] sm:$0xff] }
 0x44a   : > { %11614 = vpow2.f32 %v4630_v50  ;;  %v15172_v50 = vmul.f32 0.35355338, %v14887_v40 }
 0x44b   : > { %4404 = vmax.xlane.f32.xlu1 %v15079_v25  ;;  %11616 = vpow2.f32 %v4644_v10  ;;  %v17658_v10 = vld [vmem:[#allocation20_spill] sm:$0xff] }
 0x44c   : > { %v15093_v57 = vpop.xlane.xlu1 %4320  ;;  %4874 = vadd.xlane.f32.xlu0 %v15090_v48  ;;  %17657 = vst [vmem:[#allocation131_spill] sm:$0xff] %v15172_v50 }
 0x44d   : > { %v15101_v27 = vpop.xlane.xlu0 %4302  ;;  %v15129_v36 = vpop.eup %11600 }
 0x44e   : > { %17645 = vst [vmem:[#allocation22_spill] sm:$0xff] %v15129_v36  ;;  %v15131_v23 = vpop.eup %11602 }
 0x44f   : > { %4402 = vmax.xlane.f32.xlu1 %v15099_v0  ;;  %17646 = vst [vmem:[#allocation128_spill] sm:$0xff] %v15131_v23  ;;  %v15141_v53 = vpop.eup %11604  ;;  %v4477_v0 = vsub.f32 %v17653_v14, %v17652_v8 }
 0x450   : > { %v15112_v15 = vpop.xlane.xlu1 %4318  ;;  %4394 = vmax.xlane.f32.xlu0 %v15104_v51  ;;  %17648 = vst [vmem:[#allocation12_spill] sm:$0xff] %v15141_v53  ;;  %v15143_v44 = vpop.eup %11606 }
 0x451   : > { %v15117_v26 = vpop.xlane.xlu0 %4308  ;;  %17649 = vst [vmem:[#allocation129_spill] sm:$0xff] %v15143_v44  ;;  %v15158_v51 = vpop.eup %11608  ;;  %v4640_v28 = vmul.f32 1.442695, %v4477_v0 }
 0x452   : > { %17654 = vst [vmem:[#allocation13_spill] sm:$0xff] %v15158_v51 }
 0x453   : > { %4408 = vmax.xlane.f32.xlu1 %v15108_v16  ;;  %v15147_v16 = vmul.f32 0.35355338, %v14872_v18  ;;  %v4642_v18 = vmul.f32 1.442695, %v4478_v21  ;;  %v4481_v21 = vsub.f32 %v17658_v10, %v14900_v17  ;;  %v17663_v10 = vld [vmem:[#allocation87_spill] sm:$0xff] }
 0x454   : > { %v15122_v30 = vpop.xlane.xlu1 %4324  ;;  %4880 = vadd.xlane.f32.xlu0 %v15119_v42 }
 0x455   : > { %v15127_v33 = vpop.xlane.xlu0 %4306  ;;  %17650 = vst [vmem:[#allocation130_spill] sm:$0xff] %v15147_v16  ;;  %11618 = vpow2.f32 %v4642_v18 }
 0x456   : > { %11620 = vpow2.f32 %v4640_v28  ;;  %v15194_v28 = vmul.f32 0.35355338, %v17663_v10  ;;  %v17668_v10 = vld [vmem:[#allocation23_spill] sm:$0xff] }
 0x457   : > { %4892 = vadd.xlane.f32.xlu1 %v15129_v36 }
 0x458   : > { %v15136_v6 = vpop.xlane.xlu1 %4322  ;;  %4878 = vadd.xlane.f32.xlu0 %v15131_v23  ;;  %17664 = vst [vmem:[#allocation87_spill] sm:$0xff] %v15194_v28 }
 0x459   : > { %v15139_v31 = vpop.xlane.xlu0 %4312 }
 0x45b   : > { %4890 = vadd.xlane.f32.xlu1 %v15141_v53 }
 0x45c   : > { %v15151_v25 = vpop.xlane.xlu1 %4328  ;;  %4884 = vadd.xlane.f32.xlu0 %v15143_v44  ;;  %v15166_v44 = vpop.eup %11610 }
 0x45d   : > { %v15156_v19 = vpop.xlane.xlu0 %4338  ;;  %17655 = vst [vmem:[#allocation83_spill] sm:$0xff] %v15166_v44  ;;  %v15168_v36 = vpop.eup %11612 }
 0x45e   : > { %17656 = vst [vmem:[#allocation11_spill] sm:$0xff] %v15168_v36  ;;  %v15181_v14 = vpop.eup %11614 }
 0x45f   : > { %4412 = vmax.xlane.f32.xlu1 %v15147_v16  ;;  %17660 = vst [vmem:[#allocation132_spill] sm:$0xff] %v15181_v14  ;;  %v4648_v16 = vmul.f32 1.442695, %v4481_v21  ;;  %v15191_v18 = vpop.eup %11616 }
 0x460   : > { %v15161_v11 = vpop.xlane.xlu1 %4326  ;;  %4882 = vadd.xlane.f32.xlu0 %v15158_v51 }
 0x461   : > { %v15164_v47 = vpop.xlane.xlu0 %4344  ;;  %11622 = vpow2.f32 %v4648_v16  ;;  %v4483_v16 = vsub.f32 %v17668_v10, %v14935_v4  ;;  %v17673_v10 = vld [vmem:[#allocation92_spill] sm:$0xff] }
 0x463   : > { %4894 = vadd.xlane.f32.xlu1 %v15166_v44  ;;  %v17661_v44 = vld [vmem:[#allocation21_spill] sm:$0xff] }
 0x464   : > { %v15176_v8 = vpop.xlane.xlu1 %4332  ;;  %4888 = vadd.xlane.f32.xlu0 %v15168_v36  ;;  %v4480_v40 = vsub.f32 %v17661_v44, %v14918_v13  ;;  %17662 = vst [vmem:[#allocation21_spill] sm:$0xff] %v15191_v18  ;;  %v15200_v44 = vpop.eup %11618 }
 0x465   : > { %v15179_v0 = vpop.xlane.xlu0 %4346  ;;  %17665 = vst [vmem:[#allocation133_spill] sm:$0xff] %v15200_v44  ;;  %v15202_v21 = vpop.eup %11620 }
 0x466   : > { %17659 = vst [vmem:[#allocation20_spill] sm:$0xff] %v15179_v0  ;;  %v4646_v36 = vmul.f32 1.442695, %v4480_v40  ;;  %17666 = vst [vmem:[#allocation134_spill] sm:$0xff] %v15202_v21 }
 0x467   : > { %4416 = vmax.xlane.f32.xlu1 %v15172_v50 }
 0x468   : > { %v15186_v51 = vpop.xlane.xlu1 %4330  ;;  %4886 = vadd.xlane.f32.xlu0 %v15181_v14  ;;  %v15206_v14 = vmul.f32 0.35355338, %v14906_v39 }
 0x469   : > { %v15189_v17 = vpop.xlane.xlu0 %4352 }
 0x46a   : > { %17667 = vst [vmem:[#allocation135_spill] sm:$0xff] %v15206_v14 }
 0x46b   : > { %4900 = vadd.xlane.f32.xlu1 %v15191_v18 }
 0x46c   : > { %v15197_v50 = vpop.xlane.xlu1 %4336  ;;  %4406 = vmax.xlane.f32.xlu0 %v15194_v28  ;;  %v17669_v28 = vld [vmem:[#allocation91_spill] sm:$0xff] }
 0x46d   : > { %v4827_v13 = vpop.xlane.xlu0 %4826  ;;  %v15216_v53 = vmul.f32 0.35355338, %v17669_v28  ;;  %v17675_v28 = vld [vmem:[#allocation24_spill] sm:$0xff] }
 0x46e   : > { %11624 = vrcp.f32 %v4827_v13  ;;  %v4652_v13 = vmul.f32 1.442695, %v4483_v16  ;;  %v4489_v16 = vsub.f32 %v17675_v28, %v14942_v38  ;;  %17677 = vst [vmem:[#allocation24_spill] sm:$0xff] %v15242_v35 }
 0x46f   : > { %4898 = vadd.xlane.f32.xlu1 %v15200_v44  ;;  %11626 = vpow2.f32 %v4646_v36  ;;  %17670 = vst [vmem:[#allocation23_spill] sm:$0xff] %v15216_v53  ;;  %v17671_v44 = vld [vmem:[#allocation25_spill] sm:$0xff]  ;;  %v15226_v36 = vpop.eup %11622 }
 0x470   : > { %v15210_v40 = vpop.xlane.xlu1 %4334  ;;  %4896 = vadd.xlane.f32.xlu0 %v15202_v21  ;;  %v4482_v39 = vsub.f32 %v17671_v44, %v14952_v60  ;;  %17672 = vst [vmem:[#allocation91_spill] sm:$0xff] %v15226_v36  ;;  %v15229_v21 = vmul.f32 0.35355338, %v17673_v10  ;;  %11628 = vpow2.f32 %v4652_v13  ;;  %v17678_v10 = vld [vmem:[#allocation62_spill] sm:$0xff]  ;;  %v15247_v13 = vmul.f32 0.35355338, %v14924_v41 }
 0x471   : > { %v15213_v18 = vpop.xlane.xlu0 %4850  ;;  %v4664_v38 = vmul.f32 1.442695, %v4489_v16  ;;  %v17682_v41 = vld [vmem:[#allocation29_spill] sm:$0xff] }
 0x472   : > { %17674 = vst [vmem:[#allocation25_spill] sm:$0xff] %v15229_v21  ;;  %17679 = vst [vmem:[#allocation62_spill] sm:$0xff] %v15247_v13  ;;  %v4484_v16 = vsub.f32 %v17682_v41, %v14983_v46 }
 0x473   : > { %4420 = vmax.xlane.f32.xlu1 %v15206_v14  ;;  %v4650_v14 = vmul.f32 1.442695, %v4482_v39  ;;  %v17680_v39 = vld [vmem:[#allocation27_spill] sm:$0xff] }
 0x474   : > { %v15221_v42 = vpop.xlane.xlu1 %4340  ;;  %4410 = vmax.xlane.f32.xlu0 %v15216_v53  ;;  %v4485_v28 = vsub.f32 %v17680_v39, %v14966_v1  ;;  %17681 = vst [vmem:[#allocation27_spill] sm:$0xff] %v15255_v58  ;;  %v17683_v1 = vld [vmem:[#allocation100_spill] sm:$0xff] }
 0x475   : > { %v15224_v4 = vpop.xlane.xlu0 %4356  ;;  %11630 = vpow2.f32 %v4650_v14 }
 0x476   : > { %11632 = vpow2.f32 %v4664_v38  ;;  %v4654_v38 = vmul.f32 1.442695, %v4484_v16 }
 0x477   : > { %4904 = vadd.xlane.f32.xlu1 %v15226_v36 }
 0x478   : > { %v15234_v23 = vpop.xlane.xlu1 %4342  ;;  %4414 = vmax.xlane.f32.xlu0 %v15229_v21  ;;  %v11625_v60 = vpop.eup %11624 }
 0x479   : > { %v15237_v44 = vpop.xlane.xlu0 %4856  ;;  %v15239_v53 = vpop.eup %11626  ;;  %v5083_v48 = vmul.f32 %v11625_v60, %v17678_v10  ;;  %v4656_v60 = vmul.f32 1.442695, %v4485_v28  ;;  %v17687_v28 = vld [vmem:[#allocation104_spill] sm:$0xff] }
 0x47a   : > { %17676 = vst [vmem:[#allocation92_spill] sm:$0xff] %v15239_v53  ;;  %v15266_v39 = vpop.eup %11628  ;;  %v15275_v41 = vmul.f32 0.35355338, %v17687_v28  ;;  %v17695_v28 = vld [vmem:[#allocation28_spill] sm:$0xff] }
 0x47b   : > { %4902 = vadd.xlane.f32.xlu1 %v15239_v53  ;;  %10496 = vmatprep.mubr.f32.mxu0 %v5083_v48  ;;  %v15262_v48 = vmul.f32 0.35355338, %v17683_v1  ;;  %17685 = vst [vmem:[#allocation100_spill] sm:$0xff] %v15266_v39  ;;  %v4488_v53 = vsub.f32 %v17686_v12, %v14957_v24  ;;  %v17693_v24 = vld [vmem:[#allocation31_spill] sm:$0xff] }
 0x47c   : > { %v15251_v36 = vpop.xlane.xlu1 %4348  ;;  %4418 = vmax.xlane.f32.xlu0 %v15242_v35  ;;  %17688 = vst [vmem:[#allocation26_spill] sm:$0xff] %v15275_v41 }
 0x47d   : > { %v4831_v21 = vpop.xlane.xlu0 %4830  ;;  %17684 = vst [vmem:[#allocation29_spill] sm:$0xff] %v15262_v48 }
 0x47e   : > { %11634 = vrcp.f32 %v4831_v21 }
 0x47f   : > { %4424 = vmax.xlane.f32.xlu1 %v15247_v13  ;;  %v15279_v1 = vpop.eup %11630  ;;  %v4662_v13 = vmul.f32 1.442695, %v4488_v53  ;;  %v4493_v53 = vsub.f32 %v17695_v28, %v14976_v63  ;;  %v17698_v28 = vld [vmem:[#allocation71_spill] sm:$0xff] }
 0x480   : > { %v4829_v14 = vpop.xlane.xlu1 %4828  ;;  %4422 = vmax.xlane.f32.xlu0 %v15255_v58  ;;  %17690 = vst [vmem:[#allocation136_spill] sm:$0xff] %v15279_v1  ;;  %v17691_v58 = vld [vmem:[#allocation99_spill] sm:$0xff]  ;;  %v15290_v12 = vpop.eup %11632 }
 0x481   : > { %v15264_v10 = vpop.xlane.xlu0 %4854  ;;  %11636 = vrcp.f32 %v4829_v14  ;;  %v15282_v35 = vmul.f32 0.35355338, %v17691_v58  ;;  %17694 = vst [vmem:[#allocation31_spill] sm:$0xff] %v15290_v12  ;;  %v17696_v58 = vld [vmem:[#allocation30_spill] sm:$0xff] }
 0x482   : > { %11638 = vpow2.f32 %v4656_v60  ;;  %v4487_v60 = vsub.f32 %v17693_v24, %v15001_v52  ;;  %v17697_v52 = vld [vmem:[#allocation33_spill] sm:$0xff] }
 0x483   : > { %4908 = vadd.xlane.f32.xlu1 %v15266_v39  ;;  %17692 = vst [vmem:[#allocation99_spill] sm:$0xff] %v15282_v35  ;;  %11640 = vpow2.f32 %v4654_v38  ;;  %v4486_v24 = vsub.f32 %v17697_v52, %v15011_v49 }
 0x484   : > { %v15271_v46 = vpop.xlane.xlu1 %4350  ;;  %4426 = vmax.xlane.f32.xlu0 %v15262_v48  ;;  %11642 = vpow2.f32 %v4662_v13  ;;  %v4492_v48 = vsub.f32 %v17696_v58, %v14993_v54  ;;  %v15301_v13 = vmul.f32 0.35355338, %v14978_v7  ;;  %v4672_v58 = vmul.f32 1.442695, %v4493_v53 }
 0x485   : > { %v15277_v21 = vpop.xlane.xlu0 %4360 }
 0x486   : > { %17689 = vst [vmem:[#allocation104_spill] sm:$0xff] %v15277_v21  ;;  %v17470_v21 = vmax.f32 %v17701_v32, 0.0  ;;  %v4670_v49 = vmul.f32 1.442695, %v4492_v48 }
 0x487   : > { %4906 = vadd.xlane.f32.xlu1 %v15279_v1  ;;  %v4660_v1 = vmul.f32 1.442695, %v4487_v60 }
 0x488   : > { %v15287_v16 = vpop.xlane.xlu1 %4852  ;;  %4430 = vmax.xlane.f32.xlu0 %v15275_v41  ;;  %v11635_v39 = vpop.eup %11634 }
 0x489   : > { %v4835_v14 = vpop.xlane.xlu0 %4834 }
 0x48a   : > { %11644 = vrcp.f32 %v4835_v14  ;;  %v17702_v14 = vld [vmem:[#allocation14_spill] sm:$0xff] }
 0x48b   : > { %4428 = vmax.xlane.f32.xlu1 %v15282_v35  ;;  %v11637_v38 = vpop.eup %11636  ;;  %v17700_v35 = vld [vmem:[#allocation70_spill] sm:$0xff]  ;;  %v17703_v7 = vmax.f32 %v17702_v14, 0.0 }
 0x48c   : > { %v4833_v41 = vpop.xlane.xlu1 %4832  ;;  %4920 = vadd.xlane.f32.xlu0 %v15290_v12  ;;  %v5085_v0 = vmul.f32 %v11637_v38, %v17698_v28  ;;  %v15306_v54 = vpop.eup %11638  ;;  %v5087_v60 = vmul.f32 %v11635_v39, %v17700_v35 }
 0x48d   : > { %11646 = vrcp.f32 %v4833_v41  ;;  %v15303_v63 = vpop.xlane.xlu0 %4364  ;;  %17699 = vst [vmem:[#allocation28_spill] sm:$0xff] %v15306_v54  ;;  %v4658_v41 = vmul.f32 1.442695, %v4486_v24  ;;  %v15318_v39 = vpop.eup %11640  ;;  %v17709_v24 = vld [vmem:[#allocation34_spill] sm:$0xff] }
 0x48e   : > { %10497 = vmatmul.mubr.f32.vlgmr.msra.gmra.mrb[164].mxu0 %v5085_v0  ;;  %11648 = vpow2.f32 %v4660_v1  ;;  %17704 = vst [vmem:[#allocation30_spill] sm:$0xff] %v15318_v39  ;;  %v17705_v0 = vld [vmem:[#allocation32_spill] sm:$0xff]  ;;  %v17706_v1 = vld [vmem:[#allocation103_spill] sm:$0xff]  ;;  %v15326_v38 = vpop.eup %11642  ;;  %v4494_v28 = vsub.f32 %v17709_v24, %v15019_v20 }
 0x48f   : > { %4912 = vadd.xlane.f32.xlu1 %v15306_v54  ;;  %10547 = vmatpush3.xpose.msra.mxu0 %v17703_v7  ;;  %11650 = vpow2.f32 %v4672_v58  ;;  %v4495_v48 = vsub.f32 %v17705_v0, %v15004_v56  ;;  %v15323_v53 = vmul.f32 0.35355338, %v17706_v1  ;;  %17708 = vst [vmem:[#allocation71_spill] sm:$0xff] %v15326_v38  ;;  %v15332_v58 = vmul.f32 0.35355338, %v14995_v62 }
 0x490   : > { %10499 = vmatprep.mubr.f32.mxu0 %v5087_v60  ;;  %v15313_v52 = vpop.xlane.xlu1 %4354  ;;  %10598 = vmatprep.subr.mxu0 %v17470_v21  ;;  %11652 = vpow2.f32 %v4670_v49  ;;  %v4674_v0 = vmul.f32 1.442695, %v4494_v28  ;;  %v17712_v21 = vld [vmem:[#allocation76_spill] sm:$0xff] }
 0x491   : > { %4434 = vmax.xlane.f32.xlu0 %v15301_v13  ;;  %v4839_v35 = vpop.xlane.xlu0 %4838  ;;  %17707 = vst [vmem:[#allocation33_spill] sm:$0xff] %v15323_v53  ;;  %11654 = vpow2.f32 %v4658_v41  ;;  %v4676_v14 = vmul.f32 1.442695, %v4495_v48  ;;  %v17710_v41 = vld [vmem:[#allocation35_spill] sm:$0xff]  ;;  %v17714_v48 = vld [vmem:[#allocation36_spill] sm:$0xff] }
 0x492   : > { %11656 = vrcp.f32 %v4839_v35  ;;  %v4491_v1 = vsub.f32 %v17710_v41, %v15025_v3  ;;  %v17711_v35 = vld [vmem:[#allocation78_spill] sm:$0xff] }
 0x493   : > { %4910 = vadd.xlane.f32.xlu1 %v15318_v39 }
 0x494   : > { %v4837_v60 = vpop.xlane.xlu1 %4836  ;;  %v11645_v49 = vpop.eup %11644  ;;  %v4668_v28 = vmul.f32 1.442695, %v4491_v1 }
 0x495   : > { %4918 = vadd.xlane.f32.xlu0 %v15326_v38  ;;  %v15334_v56 = vpop.xlane.xlu0 %4368  ;;  %11658 = vrcp.f32 %v4837_v60  ;;  %v5091_v12 = vmul.f32 %v11645_v49, %v17712_v21  ;;  %v4497_v60 = vsub.f32 %v17714_v48, %v15033_v59  ;;  %v17717_v21 = vld [vmem:[#allocation38_spill] sm:$0xff] }
 0x496   : > { %11660 = vpow2.f32 %v4676_v14  ;;  %v4496_v49 = vsub.f32 %v17717_v21, %v15044_v45 }
 0x497   : > { %v11647_v7 = vpop.eup %11646  ;;  %4432 = vmax.xlane.f32.xlu1 %v15323_v53  ;;  %11662 = vpow2.f32 %v4674_v0  ;;  %v17719_v0 = vld [vmem:[#allocation41_spill] sm:$0xff] }
 0x498   : > { %v15339_v20 = vpop.xlane.xlu1 %4358  ;;  %v5089_v24 = vmul.f32 %v11647_v7, %v17711_v35  ;;  %v15344_v38 = vpop.eup %11648  ;;  %v17716_v7 = vld [vmem:[#allocation37_spill] sm:$0xff]  ;;  %v4507_v1 = vsub.f32 %v17719_v0, %v15065_v29  ;;  %v4678_v45 = vmul.f32 1.442695, %v4496_v49  ;;  %v17722_v29 = vld [vmem:[#allocation82_spill] sm:$0xff]  ;;  %v17725_v49 = vld [vmem:[#allocation43_spill] sm:$0xff] }
 0x499   : > { %4438 = vmax.xlane.f32.xlu0 %v15332_v58  ;;  %v4843_v62 = vpop.xlane.xlu0 %4842  ;;  %17713 = vst [vmem:[#allocation70_spill] sm:$0xff] %v15344_v38  ;;  %v15349_v3 = vpop.eup %11650  ;;  %v4490_v41 = vsub.f32 %v17716_v7, %v15038_v55  ;;  %v4506_v39 = vsub.f32 %v17725_v49, %v15083_v43  ;;  %v17730_v49 = vld [vmem:[#allocation85_spill] sm:$0xff] }
 0x49a   : > { %10500 = vmatmul.mubr.f32.gmra.mrb[166].mxu0 %v5089_v24  ;;  %17715 = vst [vmem:[#allocation16_spill] sm:$0xff] %v15349_v3  ;;  %v15353_v53 = vpop.eup %11652  ;;  %11664 = vrcp.f32 %v4843_v62  ;;  %v17720_v62 = vld [vmem:[#allocation40_spill] sm:$0xff]  ;;  %v4700_v0 = vmul.f32 1.442695, %v4507_v1 }
 0x49b   : > { %4916 = vadd.xlane.f32.xlu1 %v15344_v38  ;;  %10502 = vmatprep.mubr.f32.mxu0 %v5091_v12  ;;  %v15360_v14 = vpop.eup %11654  ;;  %v4680_v12 = vmul.f32 1.442695, %v4497_v60  ;;  %v4666_v48 = vmul.f32 1.442695, %v4490_v41  ;;  %v4499_v21 = vsub.f32 %v17720_v62, %v15057_v9  ;;  %v15382_v9 = vmul.f32 0.35355338, %v14986_v34 }
 0x49c   : > { %v4841_v35 = vpop.xlane.xlu1 %4840  ;;  %17718 = vst [vmem:[#allocation14_spill] sm:$0xff] %v15360_v14  ;;  %v11657_v24 = vpop.eup %11656 }
 0x49d   : > { %4928 = vadd.xlane.f32.xlu0 %v15349_v3  ;;  %v15358_v59 = vpop.xlane.xlu0 %4372  ;;  %11666 = vrcp.f32 %v4841_v35  ;;  %v17721_v3 = vld [vmem:[#allocation107_spill] sm:$0xff] }
 0x49e   : > { %11668 = vpow2.f32 %v4668_v28  ;;  %v15370_v38 = vmul.f32 0.35355338, %v17721_v3  ;;  %v17723_v28 = vld [vmem:[#allocation42_spill] sm:$0xff] }
 0x49f   : > { %4914 = vadd.xlane.f32.xlu1 %v15360_v14  ;;  %v11659_v55 = vpop.eup %11658  ;;  %11670 = vpow2.f32 %v4680_v12  ;;  %v4498_v41 = vsub.f32 %v17723_v28, %v15073_v2  ;;  %v17724_v14 = vld [vmem:[#allocation80_spill] sm:$0xff]  ;;  %v4684_v2 = vmul.f32 1.442695, %v4499_v21 }
 0x4a0   : > { %v15365_v7 = vpop.xlane.xlu1 %4362  ;;  %v5093_v35 = vmul.f32 %v11659_v55, %v17722_v29  ;;  %v5095_v54 = vmul.f32 %v11657_v24, %v17724_v14  ;;  %v15385_v3 = vpop.eup %11660  ;;  %11672 = vpow2.f32 %v4666_v48  ;;  %v17726_v12 = vld [vmem:[#allocation44_spill] sm:$0xff]  ;;  %v17727_v14 = vld [vmem:[#allocation45_spill] sm:$0xff]  ;;  %v17728_v48 = vld [vmem:[#allocation47_spill] sm:$0xff] }
 0x4a1   : > { %4926 = vadd.xlane.f32.xlu0 %v15353_v53  ;;  %v15373_v60 = vpop.xlane.xlu0 %4370  ;;  %v4501_v1 = vsub.f32 %v17726_v12, %v15088_v22  ;;  %11674 = vpow2.f32 %v4678_v45  ;;  %v4509_v24 = vsub.f32 %v17727_v14, %v15093_v57  ;;  %v15392_v43 = vpop.eup %11662  ;;  %v4682_v62 = vmul.f32 1.442695, %v4498_v41 }
 0x4a2   : > { %10503 = vmatmul.mubr.f32.gmra.mrb[168].mxu0 %v5093_v35  ;;  %11676 = vpow2.f32 %v4700_v0  ;;  %v4698_v35 = vmul.f32 1.442695, %v4506_v39  ;;  %v4508_v45 = vsub.f32 %v17728_v48, %v15112_v15  ;;  %v17729_v0 = vld [vmem:[#allocation88_spill] sm:$0xff] }
 0x4a3   : > { %4436 = vmax.xlane.f32.xlu1 %v15370_v38  ;;  %10505 = vmatprep.mubr.f32.mxu0 %v5095_v54  ;;  %v4688_v54 = vmul.f32 1.442695, %v4501_v1  ;;  %v4704_v57 = vmul.f32 1.442695, %v4509_v24  ;;  %v17732_v24 = vld [vmem:[#allocation46_spill] sm:$0xff] }
 0x4a4   : > { %v4845_v55 = vpop.xlane.xlu1 %4844  ;;  %v11665_v29 = vpop.eup %11664  ;;  %v4702_v1 = vmul.f32 1.442695, %v4508_v45 }
 0x4a5   : > { %4932 = vadd.xlane.f32.xlu0 %v15385_v3  ;;  %v4847_v34 = vpop.xlane.xlu0 %4846  ;;  %11678 = vrcp.f32 %v4845_v55  ;;  %v5099_v12 = vmul.f32 %v11665_v29, %v17730_v49  ;;  %v17734_v29 = vld [vmem:[#allocation48_spill] sm:$0xff] }
 0x4a6   : > { %11680 = vrcp.f32 %v4847_v34  ;;  %v4500_v34 = vsub.f32 %v17732_v24, %v15101_v27  ;;  %v17740_v24 = vld [vmem:[#allocation51_spill] sm:$0xff] }
 0x4a7   : > { %4440 = vmax.xlane.f32.xlu1 %v15382_v9  ;;  %v11667_v22 = vpop.eup %11666  ;;  %11682 = vpow2.f32 %v4684_v2 }
 0x4a8   : > { %v15397_v21 = vpop.xlane.xlu1 %4366  ;;  %v5097_v41 = vmul.f32 %v11667_v22, %v17729_v0  ;;  %v15403_v39 = vpop.eup %11668  ;;  %11684 = vpow2.f32 %v4682_v62  ;;  %v4686_v0 = vmul.f32 1.442695, %v4500_v34 }
 0x4a9   : > { %4930 = vadd.xlane.f32.xlu0 %v15392_v43  ;;  %v15400_v28 = vpop.xlane.xlu0 %4376  ;;  %11686 = vpow2.f32 %v4698_v35  ;;  %v15407_v15 = vpop.eup %11670  ;;  %v4503_v35 = vsub.f32 %v17734_v29, %v15117_v26  ;;  %v17736_v26 = vld [vmem:[#allocation93_spill] sm:$0xff]  ;;  %v4510_v29 = vsub.f32 %v17740_v24, %v15136_v6 }
 0x4aa   : > { %10506 = vmatmul.mubr.f32.gmra.mrb[170].mxu0 %v5097_v41  ;;  %17731 = vst [vmem:[#allocation32_spill] sm:$0xff] %v15407_v15  ;;  %11688 = vpow2.f32 %v4688_v54  ;;  %v15412_v14 = vpop.eup %11672  ;;  %v17735_v54 = vld [vmem:[#allocation49_spill] sm:$0xff] }
 0x4ab   : > { %4924 = vadd.xlane.f32.xlu1 %v15403_v39  ;;  %10508 = vmatprep.mubr.f32.mxu0 %v5099_v12  ;;  %11690 = vpow2.f32 %v4704_v57  ;;  %v15417_v62 = vpop.eup %11674  ;;  %v4511_v48 = vsub.f32 %v17735_v54, %v15122_v30  ;;  %v4692_v12 = vmul.f32 1.442695, %v4503_v35  ;;  %v17738_v30 = vld [vmem:[#allocation94_spill] sm:$0xff] }
 0x4ac   : > { %v4849_v55 = vpop.xlane.xlu1 %4848  ;;  %11692 = vrcp.f32 %v15213_v18  ;;  %17733 = vst [vmem:[#allocation103_spill] sm:$0xff] %v15417_v62  ;;  %v15422_v22 = vpop.eup %11676  ;;  %v17742_v54 = vld [vmem:[#allocation50_spill] sm:$0xff] }
 0x4ad   : > { %4936 = vadd.xlane.f32.xlu0 %v15407_v15  ;;  %v15410_v2 = vpop.xlane.xlu0 %4374  ;;  %11694 = vrcp.f32 %v4849_v55  ;;  %v4708_v55 = vmul.f32 1.442695, %v4511_v48 }
 0x4ae   : > { %11696 = vpow2.f32 %v4702_v1 }
 0x4af   : > { %4922 = vadd.xlane.f32.xlu1 %v15412_v14  ;;  %v11679_v57 = vpop.eup %11678  ;;  %11698 = vrcp.f32 %v15287_v16 }
 0x4b0   : > { %v4861_v45 = vpop.xlane.xlu1 %4860  ;;  %v11681_v18 = vpop.eup %11680  ;;  %11700 = vrcp.f32 %v15264_v10  ;;  %v5101_v41 = vmul.f32 %v11679_v57, %v17736_v26  ;;  %v4502_v57 = vsub.f32 %v17742_v54, %v15127_v33 }
 0x4b1   : > { %4934 = vadd.xlane.f32.xlu0 %v15417_v62  ;;  %v15428_v27 = vpop.xlane.xlu0 %4378  ;;  %v15432_v49 = vpop.eup %11682  ;;  %11702 = vrcp.f32 %v15237_v44  ;;  %v5103_v1 = vmul.f32 %v11681_v18, %v17738_v30  ;;  %v17744_v18 = vld [vmem:[#allocation54_spill] sm:$0xff] }
 0x4b2   : > { %17737 = vst [vmem:[#allocation34_spill] sm:$0xff] %v15432_v49  ;;  %v15437_v16 = vpop.eup %11684  ;;  %11704 = vrcp.f32 %v4861_v45  ;;  %10509 = vmatmul.mubr.f32.gmra.mrb[172].mxu0 %v5101_v41  ;;  %v4706_v45 = vmul.f32 1.442695, %v4510_v29  ;;  %v4513_v26 = vsub.f32 %v17744_v18, %v15151_v25  ;;  %v17747_v29 = vld [vmem:[#allocation98_spill] sm:$0xff]  ;;  %v17748_v18 = vld [vmem:[#allocation64_spill] sm:$0xff] }
 0x4b3   : > { %4956 = vadd.xlane.f32.xlu1 %v15422_v22  ;;  %17739 = vst [vmem:[#allocation35_spill] sm:$0xff] %v15437_v16  ;;  %v15441_v34 = vpop.eup %11686  ;;  %10511 = vmatprep.mubr.f32.mxu0 %v5103_v1  ;;  %v17745_v1 = vld [vmem:[#allocation52_spill] sm:$0xff] }
 0x4b4   : > { %v4859_v10 = vpop.xlane.xlu1 %4858  ;;  %v15444_v35 = vpop.eup %11688 }
 0x4b5   : > { %11706 = vrcp.f32 %v4859_v10  ;;  %4940 = vadd.xlane.f32.xlu0 %v15432_v49  ;;  %v4865_v44 = vpop.xlane.xlu0 %4864  ;;  %17741 = vst [vmem:[#allocation78_spill] sm:$0xff] %v15444_v35  ;;  %v15448_v48 = vpop.eup %11690  ;;  %v17746_v10 = vld [vmem:[#allocation56_spill] sm:$0xff] }
 0x4b6   : > { %11708 = vpow2.f32 %v4686_v0  ;;  %17743 = vst [vmem:[#allocation76_spill] sm:$0xff] %v15448_v48  ;;  %v11693_v6 = vpop.eup %11692  ;;  %v4505_v0 = vsub.f32 %v17745_v1, %v15139_v31  ;;  %v4712_v31 = vmul.f32 1.442695, %v4513_v26  ;;  %v17751_v26 = vld [vmem:[#allocation72_spill] sm:$0xff] }
 0x4b7   : > { %11710 = vpow2.f32 %v4692_v12  ;;  %4954 = vadd.xlane.f32.xlu1 %v15441_v34  ;;  %v11695_v30 = vpop.eup %11694  ;;  %v4690_v12 = vmul.f32 1.442695, %v4502_v57  ;;  %v5107_v49 = vmul.f32 %v11693_v6, %v17748_v18  ;;  %v17750_v6 = vld [vmem:[#allocation75_spill] sm:$0xff] }
 0x4b8   : > { %11712 = vpow2.f32 %v4708_v55  ;;  %v15453_v41 = vpop.xlane.xlu1 %4380  ;;  %v15458_v24 = vpop.eup %11696  ;;  %v4512_v55 = vsub.f32 %v17746_v10, %v15161_v11  ;;  %v5105_v54 = vmul.f32 %v11695_v30, %v17747_v29  ;;  %v17749_v30 = vld [vmem:[#allocation39_spill] sm:$0xff] }
 0x4b9   : > { %11714 = vrcp.f32 %v4865_v44  ;;  %4938 = vadd.xlane.f32.xlu0 %v15437_v16  ;;  %v4863_v33 = vpop.xlane.xlu0 %4862  ;;  %v11699_v25 = vpop.eup %11698  ;;  %v4696_v16 = vmul.f32 1.442695, %v4505_v0 }
 0x4ba   : > { %11716 = vrcp.f32 %v4863_v33  ;;  %v11701_v15 = vpop.eup %11700  ;;  %10512 = vmatmul.mubr.f32.gmra.mrb[174].mxu0 %v5105_v54  ;;  %v4504_v33 = vsub.f32 %v17749_v30, %v15052_v61  ;;  %v4710_v10 = vmul.f32 1.442695, %v4512_v55  ;;  %v5109_v29 = vmul.f32 %v11699_v25, %v17750_v6  ;;  %v17754_v55 = vld [vmem:[#allocation101_spill] sm:$0xff]  ;;  %v17756_v6 = vld [vmem:[#allocation68_spill] sm:$0xff] }
 0x4bb   : > { %4960 = vadd.xlane.f32.xlu1 %v15448_v48  ;;  %11718 = vpow2.f32 %v4706_v45  ;;  %v11703_v1 = vpop.eup %11702  ;;  %10514 = vmatprep.mubr.f32.mxu0 %v5107_v49  ;;  %v5111_v54 = vmul.f32 %v11701_v15, %v17751_v26  ;;  %v17752_v49 = vld [vmem:[#allocation58_spill] sm:$0xff]  ;;  %v17753_v48 = vld [vmem:[#allocation105_spill] sm:$0xff] }
 0x4bc   : > { %v15465_v44 = vpop.xlane.xlu1 %4384  ;;  %v11705_v57 = vpop.eup %11704  ;;  %11720 = vpow2.f32 %v4690_v12  ;;  %v4515_v0 = vsub.f32 %v17752_v49, %v15176_v8  ;;  %v4694_v30 = vmul.f32 1.442695, %v4504_v33  ;;  %v17759_v33 = vld [vmem:[#allocation67_spill] sm:$0xff] }
 0x4bd   : > { %4944 = vadd.xlane.f32.xlu0 %v15444_v35  ;;  %v15468_v11 = vpop.xlane.xlu0 %4382  ;;  %11722 = vpow2.f32 %v4712_v31  ;;  %v5117_v25 = vmul.f32 %v11705_v57, %v17754_v55  ;;  %v17755_v31 = vld [vmem:[#allocation55_spill] sm:$0xff] }
 0x4be   : > { %10515 = vmatmul.mubr.f32.gmra.mrb[176].mxu0 %v5109_v29  ;;  %11724 = vpow2.f32 %v4696_v16  ;;  %v4521_v8 = vsub.f32 %v17755_v31, %v15164_v47  ;;  %v5113_v29 = vmul.f32 %v11703_v1, %v17756_v6  ;;  %v17758_v16 = vld [vmem:[#allocation60_spill] sm:$0xff]  ;;  %v4716_v49 = vmul.f32 1.442695, %v4515_v0  ;;  %v17760_v47 = vld [vmem:[#allocation15_spill] sm:$0xff] }
 0x4bf   : > { %v11707_v45 = vpop.eup %11706  ;;  %4958 = vadd.xlane.f32.xlu1 %v15458_v24  ;;  %10517 = vmatprep.mubr.f32.mxu0 %v5111_v54  ;;  %11726 = vpow2.f32 %v4710_v10  ;;  %v4514_v54 = vsub.f32 %v17758_v16, %v15186_v51  ;;  %v4520_v10 = vsub.f32 %v17759_v33, %v15234_v23  ;;  %v17761_v1 = vmax.f32 %v17760_v47, 0.0 }
 0x4c0   : > { %v15475_v18 = vpop.eup %11708  ;;  %v4869_v35 = vpop.xlane.xlu1 %4868  ;;  %v5115_v62 = vmul.f32 %v11707_v45, %v17753_v48  ;;  %v17757_v45 = vld [vmem:[#allocation17_spill] sm:$0xff]  ;;  %v4728_v23 = vmul.f32 1.442695, %v4521_v8 }
 0x4c1   : > { %v15480_v61 = vpop.eup %11710  ;;  %4942 = vadd.xlane.f32.xlu0 %v15475_v18  ;;  %v4867_v12 = vpop.xlane.xlu0 %4866  ;;  %v17485_v26 = vmax.f32 %v17757_v45, 0.0  ;;  %11728 = vrcp.f32 %v4869_v35  ;;  %v17762_v35 = vld [vmem:[#allocation109_spill] sm:$0xff]  ;;  %v4714_v31 = vmul.f32 1.442695, %v4514_v54  ;;  %v4726_v33 = vmul.f32 1.442695, %v4520_v10 }
 0x4c2   : > { %v15484_v15 = vpop.eup %11712  ;;  %10522 = vmatprep.mubr.f32.mxu1 %v5115_v62  ;;  %11730 = vrcp.f32 %v4867_v12  ;;  %10518 = vmatmul.mubr.f32.gmra.mrb[178].mxu0 %v5113_v29  ;;  %v17763_v12 = vld [vmem:[#allocation106_spill] sm:$0xff]  ;;  %v17764_v29 = vld [vmem:[#allocation61_spill] sm:$0xff]  ;;  %v17767_v10 = vld [vmem:[#allocation63_spill] sm:$0xff] }
 0x4c3   : > { %v11715_v48 = vpop.eup %11714  ;;  %10523 = vmatmul.mubr.f32.vlgmr.msra.gmra.mrb[52].mxu1 %v5117_v25  ;;  %4964 = vadd.xlane.f32.xlu1 %v15484_v15  ;;  %11732 = vpow2.f32 %v4694_v30  ;;  %v4517_v16 = vsub.f32 %v17764_v29, %v15197_v50  ;;  %v17769_v29 = vld [vmem:[#allocation66_spill] sm:$0xff] }
 0x4c4   : > { %v11717_v57 = vpop.eup %11716  ;;  %10573 = vmatpush3.xpose.msra.mxu1 %v17761_v1  ;;  %v15497_v62 = vpop.xlane.xlu1 %4388  ;;  %v5121_v25 = vmul.f32 %v11715_v48, %v17763_v12  ;;  %11734 = vpow2.f32 %v4716_v49  ;;  %v17765_v48 = vld [vmem:[#allocation59_spill] sm:$0xff]  ;;  %v4516_v1 = vsub.f32 %v17767_v10, %v15210_v40 }
 0x4c5   : > { %10624 = vmatprep.subr.mxu1 %v17485_v26  ;;  %4948 = vadd.xlane.f32.xlu0 %v15480_v61  ;;  %v15502_v51 = vpop.xlane.xlu0 %4386  ;;  %v5119_v55 = vmul.f32 %v11717_v57, %v17762_v35  ;;  %v15505_v0 = vpop.eup %11718  ;;  %11736 = vpow2.f32 %v4728_v23  ;;  %v4525_v54 = vsub.f32 %v17765_v48, %v15189_v17  ;;  %v4720_v50 = vmul.f32 1.442695, %v4517_v16  ;;  %v17770_v48 = vld [vmem:[#allocation65_spill] sm:$0xff] }
 0x4c6   : > { %v15509_v6 = vpop.eup %11720  ;;  %11738 = vpow2.f32 %v4714_v31  ;;  %v4519_v16 = vsub.f32 %v17769_v29, %v15221_v42  ;;  %v4527_v10 = vsub.f32 %v17770_v48, %v15224_v4  ;;  %v17774_v4 = vld [vmem:[#allocation53_spill] sm:$0xff] }
 0x4c7   : > { %4962 = vadd.xlane.f32.xlu1 %v15505_v0  ;;  %10525 = vmatprep.mubr.f32.mxu1 %v5119_v55  ;;  %v15516_v8 = vpop.eup %11722  ;;  %11740 = vpow2.f32 %v4726_v33  ;;  %v4736_v12 = vmul.f32 1.442695, %v4525_v54  ;;  %v17771_v54 = vld [vmem:[#allocation112_spill] sm:$0xff] }
 0x4c8   : > { %v15513_v47 = vpop.xlane.xlu1 %4392  ;;  %10526 = vmatmul.mubr.f32.gmra.mrb[54].mxu1 %v5121_v25  ;;  %v15520_v57 = vpop.eup %11724  ;;  %v17768_v25 = vld [vmem:[#allocation74_spill] sm:$0xff] }
 0x4c9   : > { %4946 = vadd.xlane.f32.xlu0 %v15509_v6  ;;  %v4873_v30 = vpop.xlane.xlu0 %4872  ;;  %17766 = vst [vmem:[#allocation36_spill] sm:$0xff] %v15520_v57  ;;  %v15523_v49 = vpop.eup %11726  ;;  %v4524_v31 = vsub.f32 %v17768_v25, %v15271_v46 }
 0x4ca   : > { %11742 = vrcp.f32 %v4873_v30  ;;  %v4718_v30 = vmul.f32 1.442695, %v4516_v1  ;;  %v4518_v1 = vsub.f32 %v17774_v4, %v15156_v19 }
 0x4cb   : > { %4968 = vadd.xlane.f32.xlu1 %v15516_v8  ;;  %v11729_v55 = vpop.eup %11728 }
 0x4cc   : > { %v15527_v35 = vpop.xlane.xlu1 %4396  ;;  %v11731_v17 = vpop.eup %11730 }
 0x4cd   : > { %4952 = vadd.xlane.f32.xlu0 %v15520_v57  ;;  %v4871_v23 = vpop.xlane.xlu0 %4870  ;;  %v5123_v40 = vmul.f32 %v11731_v17, %v15008_v37  ;;  %v15536_v33 = vpop.eup %11732  ;;  %v5125_v57 = vmul.f32 %v11729_v55, %v17771_v54  ;;  %v4734_v37 = vmul.f32 1.442695, %v4524_v31  ;;  %v4740_v55 = vmul.f32 1.442695, %v4527_v10 }
 0x4ce   : > { %11744 = vrcp.f32 %v4871_v23  ;;  %v15546_v42 = vpop.eup %11734  ;;  %v4724_v23 = vmul.f32 1.442695, %v4519_v16 }
 0x4cf   : > { %4966 = vadd.xlane.f32.xlu1 %v15523_v49  ;;  %11746 = vpow2.f32 %v4720_v50  ;;  %10528 = vmatprep.mubr.f32.mxu1 %v5123_v40  ;;  %17772 = vst [vmem:[#allocation37_spill] sm:$0xff] %v15546_v42  ;;  %v15549_v50 = vpop.eup %11736  ;;  %v4722_v40 = vmul.f32 1.442695, %v4518_v1  ;;  %v17781_v1 = vld [vmem:[#allocation116_spill] sm:$0xff] }
 0x4d0   : > { %v15540_v26 = vpop.xlane.xlu1 %4400  ;;  %11748 = vpow2.f32 %v4736_v12  ;;  %10529 = vmatmul.mubr.f32.gmra.mrb[56].mxu1 %v5125_v57  ;;  %17773 = vst [vmem:[#allocation38_spill] sm:$0xff] %v15549_v50  ;;  %v15555_v25 = vpop.eup %11738  ;;  %v17777_v57 = vld [vmem:[#allocation79_spill] sm:$0xff] }
 0x4d1   : > { %4950 = vadd.xlane.f32.xlu0 %v15536_v33  ;;  %v15544_v46 = vpop.xlane.xlu0 %4390  ;;  %11750 = vpow2.f32 %v4718_v30  ;;  %17775 = vst [vmem:[#allocation41_spill] sm:$0xff] %v15555_v25  ;;  %v15558_v12 = vpop.eup %11740  ;;  %v4526_v31 = vsub.f32 %v17777_v57, %v15313_v52  ;;  %v17778_v30 = vld [vmem:[#allocation69_spill] sm:$0xff]  ;;  %v17779_v52 = vld [vmem:[#allocation104_spill] sm:$0xff] }
 0x4d2   : > { %17776 = vst [vmem:[#allocation40_spill] sm:$0xff] %v15558_v12  ;;  %11752 = vpow2.f32 %v4734_v37  ;;  %v4523_v48 = vsub.f32 %v17778_v30, %v15251_v36 }
 0x4d3   : > { %4972 = vadd.xlane.f32.xlu1 %v15546_v42  ;;  %11754 = vpow2.f32 %v4724_v23  ;;  %v17780_v23 = vld [vmem:[#allocation73_spill] sm:$0xff]  ;;  %v17782_v42 = vld [vmem:[#allocation20_spill] sm:$0xff] }
 0x4d4   : > { %v15553_v17 = vpop.xlane.xlu1 %4398  ;;  %v11743_v16 = vpop.eup %11742  ;;  %11756 = vpow2.f32 %v4740_v55  ;;  %v4529_v57 = vsub.f32 %v17780_v23, %v17779_v52  ;;  %v4732_v30 = vmul.f32 1.442695, %v4523_v48 }
 0x4d5   : > { %4984 = vadd.xlane.f32.xlu0 %v15549_v50  ;;  %v4877_v29 = vpop.xlane.xlu0 %4876  ;;  %v4738_v50 = vmul.f32 1.442695, %v4526_v31  ;;  %v5129_v55 = vmul.f32 %v11743_v16, %v17781_v1  ;;  %v17786_v31 = vld [vmem:[#allocation108_spill] sm:$0xff] }
 0x4d6   : > { %11758 = vrcp.f32 %v4877_v29 }
 0x4d7   : > { %4970 = vadd.xlane.f32.xlu1 %v15555_v25  ;;  %v17783_v25 = vld [vmem:[#allocation57_spill] sm:$0xff] }
 0x4d8   : > { %v11745_v19 = vpop.eup %11744  ;;  %v15565_v10 = vpop.xlane.xlu1 %4404  ;;  %v4522_v36 = vsub.f32 %v17783_v25, %v17782_v42  ;;  %v4744_v25 = vmul.f32 1.442695, %v4529_v57 }
 0x4d9   : > { %4982 = vadd.xlane.f32.xlu0 %v15558_v12  ;;  %v4875_v54 = vpop.xlane.xlu0 %4874  ;;  %v5127_v37 = vmul.f32 %v11745_v19, %v15046_v5  ;;  %v15569_v4 = vpop.eup %11746  ;;  %v17785_v5 = vld [vmem:[#allocation84_spill] sm:$0xff] }
 0x4da   : > { %11760 = vrcp.f32 %v4875_v54  ;;  %v15577_v29 = vpop.eup %11748  ;;  %v4528_v19 = vsub.f32 %v17785_v5, %v15339_v20  ;;  %v4539_v54 = vsub.f32 %v17786_v31, %v15453_v41 }
 0x4db   : > { %4976 = vadd.xlane.f32.xlu1 %v15569_v4  ;;  %10531 = vmatprep.mubr.f32.mxu1 %v5127_v37  ;;  %17784 = vst [vmem:[#allocation107_spill] sm:$0xff] %v15577_v29  ;;  %11762 = vpow2.f32 %v4722_v40  ;;  %v15588_v42 = vpop.eup %11750  ;;  %v4730_v37 = vmul.f32 1.442695, %v4522_v36  ;;  %v17790_v36 = vld [vmem:[#allocation90_spill] sm:$0xff] }
 0x4dc   : > { %v15581_v12 = vpop.xlane.xlu1 %4402  ;;  %10532 = vmatmul.mubr.f32.gmra.mrb[58].mxu1 %v5129_v55  ;;  %11764 = vpow2.f32 %v4738_v50  ;;  %v15591_v40 = vpop.eup %11752  ;;  %v4742_v20 = vmul.f32 1.442695, %v4528_v19  ;;  %v4764_v41 = vmul.f32 1.442695, %v4539_v54  ;;  %v17789_v50 = vld [vmem:[#allocation77_spill] sm:$0xff]  ;;  %v17791_v19 = vld [vmem:[#allocation102_spill] sm:$0xff] }
 0x4dd   : > { %4992 = vadd.xlane.f32.xlu0 %v15577_v29  ;;  %v15586_v16 = vpop.xlane.xlu0 %4394  ;;  %17787 = vst [vmem:[#allocation82_spill] sm:$0xff] %v15591_v40  ;;  %11766 = vpow2.f32 %v4732_v30  ;;  %v15595_v52 = vpop.eup %11754  ;;  %v4531_v57 = vsub.f32 %v17789_v50, %v15303_v63  ;;  %v4530_v30 = vsub.f32 %v17790_v36, %v15365_v7  ;;  %v4538_v31 = vsub.f32 %v17791_v19, %v15428_v27  ;;  %v17792_v29 = vld [vmem:[#allocation123_spill] sm:$0xff]  ;;  %v17793_v50 = vld [vmem:[#allocation121_spill] sm:$0xff] }
 0x4de   : > { %v15598_v1 = vpop.eup %11756  ;;  %11768 = vpow2.f32 %v4744_v25 }
 0x4df   : > { %4974 = vadd.xlane.f32.xlu1 %v15588_v42  ;;  %17788 = vst [vmem:[#allocation42_spill] sm:$0xff] %v15598_v1  ;;  %11770 = vpow2.f32 %v4730_v37  ;;  %v4748_v37 = vmul.f32 1.442695, %v4531_v57  ;;  %v4746_v36 = vmul.f32 1.442695, %v4530_v30 }
 0x4e0   : > { %v15593_v48 = vpop.xlane.xlu1 %4408  ;;  %v11759_v55 = vpop.eup %11758  ;;  %11772 = vpow2.f32 %v4742_v20  ;;  %v4762_v27 = vmul.f32 1.442695, %v4538_v31  ;;  %v17799_v31 = vld [vmem:[#allocation111_spill] sm:$0xff] }
 0x4e1   : > { %4990 = vadd.xlane.f32.xlu0 %v15591_v40  ;;  %v4881_v23 = vpop.xlane.xlu0 %4880  ;;  %11774 = vpow2.f32 %v4764_v41  ;;  %v5133_v7 = vmul.f32 %v11759_v55, %v17793_v50  ;;  %v17795_v41 = vld [vmem:[#allocation110_spill] sm:$0xff] }
 0x4e2   : > { %11776 = vrcp.f32 %v4881_v23  ;;  %v4541_v19 = vsub.f32 %v17795_v41, %v15465_v44 }
 0x4e3   : > { %4980 = vadd.xlane.f32.xlu1 %v15595_v52 }
 0x4e4   : > { %v11761_v5 = vpop.eup %11760  ;;  %v4893_v54 = vpop.xlane.xlu1 %4892 }
 0x4e5   : > { %4996 = vadd.xlane.f32.xlu0 %v15598_v1  ;;  %v4879_v25 = vpop.xlane.xlu0 %4878  ;;  %v5131_v40 = vmul.f32 %v11761_v5, %v17792_v29  ;;  %v15609_v63 = vpop.eup %11762  ;;  %v17796_v29 = vld [vmem:[#allocation81_spill] sm:$0xff]  ;;  %v4768_v5 = vmul.f32 1.442695, %v4541_v19 }
 0x4e6   : > { %11778 = vrcp.f32 %v4879_v25  ;;  %v15613_v20 = vpop.eup %11764  ;;  %v4533_v57 = vsub.f32 %v17796_v29, %v15334_v56  ;;  %v4540_v56 = vsub.f32 %v17799_v31, %v15468_v11 }
 0x4e7   : > { %4978 = vadd.xlane.f32.xlu1 %v15609_v63  ;;  %10534 = vmatprep.mubr.f32.mxu1 %v5131_v40  ;;  %17794 = vst [vmem:[#allocation80_spill] sm:$0xff] %v15613_v20  ;;  %11780 = vrcp.f32 %v4893_v54  ;;  %v15620_v55 = vpop.eup %11766  ;;  %v17797_v40 = vld [vmem:[#allocation96_spill] sm:$0xff] }
 0x4e8   : > { %v4891_v1 = vpop.xlane.xlu1 %4890  ;;  %10535 = vmatmul.mubr.f32.gmra.mrb[60].mxu1 %v5133_v7  ;;  %v4532_v30 = vsub.f32 %v17797_v40, %v15397_v21  ;;  %v15625_v44 = vpop.eup %11768  ;;  %v4752_v25 = vmul.f32 1.442695, %v4533_v57  ;;  %v4766_v11 = vmul.f32 1.442695, %v4540_v56  ;;  %v17802_v40 = vld [vmem:[#allocation86_spill] sm:$0xff] }
 0x4e9   : > { %11782 = vrcp.f32 %v4891_v1  ;;  %4994 = vadd.xlane.f32.xlu0 %v15613_v20  ;;  %v4885_v23 = vpop.xlane.xlu0 %4884  ;;  %17798 = vst [vmem:[#allocation43_spill] sm:$0xff] %v15625_v44  ;;  %v15631_v54 = vpop.eup %11770  ;;  %v4535_v31 = vsub.f32 %v17802_v40, %v15358_v59  ;;  %v17806_v59 = vld [vmem:[#allocation12_spill] sm:$0xff] }
 0x4ea   : > { %11784 = vpow2.f32 %v4748_v37  ;;  %v15634_v50 = vpop.eup %11772  ;;  %v4750_v7 = vmul.f32 1.442695, %v4532_v30  ;;  %v17803_v30 = vld [vmem:[#allocation128_spill] sm:$0xff] }
 0x4eb   : > { %11786 = vpow2.f32 %v4746_v36  ;;  %4988 = vadd.xlane.f32.xlu1 %v15620_v55  ;;  %17800 = vst [vmem:[#allocation44_spill] sm:$0xff] %v15634_v50  ;;  %v15636_v21 = vpop.eup %11774 }
 0x4ec   : > { %11788 = vpow2.f32 %v4762_v27  ;;  %v15629_v1 = vpop.xlane.xlu1 %4412  ;;  %v11777_v36 = vpop.eup %11776  ;;  %v17801_v27 = vld [vmem:[#allocation113_spill] sm:$0xff] }
 0x4ed   : > { %11790 = vrcp.f32 %v4885_v23  ;;  %5000 = vadd.xlane.f32.xlu0 %v15625_v44  ;;  %v4883_v37 = vpop.xlane.xlu0 %4882  ;;  %v4543_v41 = vsub.f32 %v17801_v27, %v15497_v62  ;;  %v17805_v27 = vld [vmem:[#allocation114_spill] sm:$0xff] }
 0x4ee   : > { %11792 = vrcp.f32 %v4883_v37 }
 0x4ef   : > { %4986 = vadd.xlane.f32.xlu1 %v15631_v54  ;;  %11794 = vpow2.f32 %v4768_v5  ;;  %v17804_v5 = vld [vmem:[#allocation127_spill] sm:$0xff] }
 0x4f0   : > { %v4895_v19 = vpop.xlane.xlu1 %4894  ;;  %v11779_v29 = vpop.eup %11778  ;;  %11796 = vpow2.f32 %v4752_v25  ;;  %v5137_v56 = vmul.f32 %v11777_v36, %v17804_v5  ;;  %v4772_v25 = vmul.f32 1.442695, %v4543_v41  ;;  %v17809_v5 = vld [vmem:[#allocation18_spill] sm:$0xff] }
 0x4f1   : > { %4998 = vadd.xlane.f32.xlu0 %v15634_v50  ;;  %v4889_v57 = vpop.xlane.xlu0 %4888  ;;  %v11781_v23 = vpop.eup %11780  ;;  %11798 = vrcp.f32 %v4895_v19  ;;  %v5135_v37 = vmul.f32 %v11779_v29, %v17803_v30  ;;  %v4542_v50 = vsub.f32 %v17805_v27, %v15502_v51  ;;  %v4756_v51 = vmul.f32 1.442695, %v4535_v31 }
 0x4f2   : > { %11800 = vpow2.f32 %v4750_v7  ;;  %v17807_v7 = vld [vmem:[#allocation89_spill] sm:$0xff] }
 0x4f3   : > { %v11783_v44 = vpop.eup %11782  ;;  %5020 = vadd.xlane.f32.xlu1 %v15636_v21  ;;  %11802 = vpow2.f32 %v4766_v11  ;;  %10537 = vmatprep.mubr.f32.mxu1 %v5135_v37  ;;  %v4534_v29 = vsub.f32 %v17807_v7, %v15373_v60  ;;  %v17808_v11 = vld [vmem:[#allocation22_spill] sm:$0xff]  ;;  %v4770_v60 = vmul.f32 1.442695, %v4542_v50  ;;  %v17813_v50 = vld [vmem:[#allocation95_spill] sm:$0xff] }
 0x4f4   : > { %v15647_v62 = vpop.eup %11784  ;;  %v15651_v20 = vpop.xlane.xlu1 %4416  ;;  %v5147_v19 = vmul.f32 %v11783_v44, %v17806_v59  ;;  %11804 = vrcp.f32 %v4889_v57  ;;  %10538 = vmatmul.mubr.f32.gmra.mrb[62].mxu1 %v5137_v56  ;;  %v5149_v41 = vmul.f32 %v11781_v23, %v17808_v11  ;;  %v17497_v44 = vmax.f32 %v17809_v5, 0.0  ;;  %v17810_v57 = vld [vmem:[#allocation115_spill] sm:$0xff] }
 0x4f5   : > { %v15654_v40 = vpop.eup %11786  ;;  %5004 = vadd.xlane.f32.xlu0 %v15647_v62  ;;  %v4887_v36 = vpop.xlane.xlu0 %4886  ;;  %v4545_v56 = vsub.f32 %v17810_v57, %v15513_v47  ;;  %v17811_v59 = vmax.f32 %v17701_v32, 0.0  ;;  %v4754_v7 = vmul.f32 1.442695, %v4534_v29  ;;  %v17814_v47 = vld [vmem:[#allocation129_spill] sm:$0xff] }
 0x4f6   : > { %v15660_v30 = vpop.eup %11788  ;;  %11806 = vrcp.f32 %v4887_v36  ;;  %10548 = vmatprep.mubr.f32.mxu0 %v5147_v19  ;;  %v17812_v19 = vld [vmem:[#allocation13_spill] sm:$0xff] }
 0x4f7   : > { %v11791_v37 = vpop.eup %11790  ;;  %10549 = vmatmul.mubr.f32.vlgmr.msra.gmra.mrb[180].mxu0 %v5149_v41  ;;  %5018 = vadd.xlane.f32.xlu1 %v15660_v30  ;;  %11808 = vpow2.f32 %v4772_v25  ;;  %v4537_v25 = vsub.f32 %v17813_v50, %v15400_v28  ;;  %v4776_v57 = vmul.f32 1.442695, %v4545_v56 }
 0x4f8   : > { %v11793_v27 = vpop.eup %11792  ;;  %10599 = vmatpush3.xpose.msra.mxu0 %v17811_v59  ;;  %v4901_v23 = vpop.xlane.xlu1 %4900  ;;  %11810 = vpow2.f32 %v4756_v51  ;;  %v5141_v41 = vmul.f32 %v11791_v37, %v17814_v47  ;;  %v17816_v59 = vld [vmem:[#allocation119_spill] sm:$0xff] }
 0x4f9   : > { %10650 = vmatprep.subr.mxu0 %v17497_v44  ;;  %5002 = vadd.xlane.f32.xlu0 %v15654_v40  ;;  %v4407_v31 = vpop.xlane.xlu0 %4406  ;;  %v5139_v36 = vmul.f32 %v11793_v27, %v17812_v19  ;;  %v15672_v11 = vpop.eup %11794  ;;  %11812 = vpow2.f32 %v4770_v60  ;;  %v4544_v44 = vsub.f32 %v17816_v59, %v15544_v46  ;;  %v17818_v51 = vld [vmem:[#allocation83_spill] sm:$0xff]  ;;  %v4760_v47 = vmul.f32 1.442695, %v4537_v25  ;;  %v17820_v46 = vld [vmem:[#allocation117_spill] sm:$0xff] }
 0x4fa   : > { %v15677_v32 = vpop.eup %11796  ;;  %11814 = vpow2.f32 %v4754_v7  ;;  %v4547_v59 = vsub.f32 %v17820_v46, %v15527_v35  ;;  %v17823_v35 = vld [vmem:[#allocation87_spill] sm:$0xff] }
 0x4fb   : > { %17815 = vst [vmem:[#allocation45_spill] sm:$0xff] %v15677_v32  ;;  %5024 = vadd.xlane.f32.xlu1 %v15672_v11  ;;  %10540 = vmatprep.mubr.f32.mxu1 %v5139_v36  ;;  %v11799_v29 = vpop.eup %11798  ;;  %v17819_v36 = vld [vmem:[#allocation97_spill] sm:$0xff] }
 0x4fc   : > { %v4899_v27 = vpop.xlane.xlu1 %4898  ;;  %10541 = vmatmul.mubr.f32.gmra.mrb[64].mxu1 %v5141_v41  ;;  %v15682_v19 = vpop.eup %11800  ;;  %v5151_v37 = vmul.f32 %v11799_v29, %v17818_v51  ;;  %v4536_v60 = vsub.f32 %v17819_v36, %v15410_v2  ;;  %v4774_v41 = vmul.f32 1.442695, %v4544_v44  ;;  %v17821_v29 = vld [vmem:[#allocation132_spill] sm:$0xff]  ;;  %v4780_v46 = vmul.f32 1.442695, %v4547_v59 }
 0x4fd   : > { %17817 = vst [vmem:[#allocation47_spill] sm:$0xff] %v15682_v19  ;;  %5008 = vadd.xlane.f32.xlu0 %v15677_v32  ;;  %v4897_v28 = vpop.xlane.xlu0 %4896  ;;  %v15686_v50 = vpop.eup %11802  ;;  %11816 = vrcp.f32 %v4899_v27 }
 0x4fe   : > { %v11805_v56 = vpop.eup %11804  ;;  %11818 = vrcp.f32 %v4897_v28  ;;  %10551 = vmatprep.mubr.f32.mxu0 %v5151_v37  ;;  %v4758_v51 = vmul.f32 1.442695, %v4536_v60  ;;  %v4552_v28 = vsub.f32 %v17823_v35, %v4407_v31  ;;  %v17824_v37 = vld [vmem:[#allocation11_spill] sm:$0xff] }
 0x4ff   : > { %5022 = vadd.xlane.f32.xlu1 %v15686_v50  ;;  %11820 = vpow2.f32 %v4776_v57  ;;  %v5145_v36 = vmul.f32 %v11805_v56, %v17824_v37  ;;  %v17827_v56 = vld [vmem:[#allocation23_spill] sm:$0xff] }
 0x500   : > { %v11807_v7 = vpop.eup %11806  ;;  %v15693_v32 = vpop.xlane.xlu1 %4420  ;;  %11822 = vrcp.f32 %v4901_v23  ;;  %v17826_v23 = vld [vmem:[#allocation125_spill] sm:$0xff]  ;;  %v4790_v31 = vmul.f32 1.442695, %v4552_v28 }
 0x501   : > { %5006 = vadd.xlane.f32.xlu0 %v15682_v19  ;;  %v4411_v25 = vpop.xlane.xlu0 %4410  ;;  %v5143_v2 = vmul.f32 %v11807_v7, %v17821_v29  ;;  %v15697_v27 = vpop.eup %11808  ;;  %11824 = vpow2.f32 %v4760_v47  ;;  %v4546_v57 = vsub.f32 %v17826_v23, %v15586_v16  ;;  %v17829_v29 = vld [vmem:[#allocation118_spill] sm:$0xff] }
 0x502   : > { %17822 = vst [vmem:[#allocation88_spill] sm:$0xff] %v15697_v27  ;;  %v15702_v44 = vpop.eup %11810  ;;  %11826 = vpow2.f32 %v4774_v41  ;;  %v4554_v59 = vsub.f32 %v17827_v56, %v4411_v25  ;;  %v4549_v16 = vsub.f32 %v17829_v29, %v15540_v26  ;;  %v17831_v23 = vld [vmem:[#allocation134_spill] sm:$0xff] }
 0x503   : > { %5028 = vadd.xlane.f32.xlu1 %v15697_v27  ;;  %10543 = vmatprep.mubr.f32.mxu1 %v5143_v2  ;;  %17825 = vst [vmem:[#allocation85_spill] sm:$0xff] %v15702_v44  ;;  %v15707_v60 = vpop.eup %11812  ;;  %11828 = vpow2.f32 %v4758_v51  ;;  %v4778_v2 = vmul.f32 1.442695, %v4546_v57  ;;  %v17832_v27 = vld [vmem:[#allocation120_spill] sm:$0xff] }
 0x504   : > { %v4905_v19 = vpop.xlane.xlu1 %4904  ;;  %10544 = vmatmul.mubr.f32.gmra.mrb[66].mxu1 %v5145_v36  ;;  %v15710_v7 = vpop.eup %11814  ;;  %11830 = vpow2.f32 %v4780_v46  ;;  %v4794_v25 = vmul.f32 1.442695, %v4554_v59  ;;  %v17830_v36 = vld [vmem:[#allocation25_spill] sm:$0xff]  ;;  %v4548_v26 = vsub.f32 %v17832_v27, %v15553_v17  ;;  %v17835_v17 = vld [vmem:[#allocation24_spill] sm:$0xff] }
 0x505   : > { %5012 = vadd.xlane.f32.xlu0 %v15702_v44  ;;  %v4415_v47 = vpop.xlane.xlu0 %4414  ;;  %17828 = vst [vmem:[#allocation46_spill] sm:$0xff] %v15710_v7  ;;  %11832 = vrcp.f32 %v4905_v19  ;;  %v17833_v19 = vld [vmem:[#allocation133_spill] sm:$0xff] }
 0x506   : > { %v4556_v46 = vsub.f32 %v17830_v36, %v4415_v47 }
 0x507   : > { %5026 = vadd.xlane.f32.xlu1 %v15707_v60  ;;  %v11817_v41 = vpop.eup %11816 }
 0x508   : > { %v4903_v35 = vpop.xlane.xlu1 %4902  ;;  %v11819_v37 = vpop.eup %11818  ;;  %v5155_v57 = vmul.f32 %v11817_v41, %v17833_v19  ;;  %v4798_v59 = vmul.f32 1.442695, %v4556_v46  ;;  %v4782_v41 = vmul.f32 1.442695, %v4548_v26 }
 0x509   : > { %11834 = vrcp.f32 %v4903_v35  ;;  %5010 = vadd.xlane.f32.xlu0 %v15710_v7  ;;  %v4419_v51 = vpop.xlane.xlu0 %4418  ;;  %v15716_v28 = vpop.eup %11820  ;;  %v5153_v56 = vmul.f32 %v11819_v37, %v17831_v23  ;;  %v4784_v35 = vmul.f32 1.442695, %v4549_v16  ;;  %v17836_v37 = vld [vmem:[#allocation21_spill] sm:$0xff] }
 0x50a   : > { %11836 = vpow2.f32 %v4790_v31  ;;  %v11823_v44 = vpop.eup %11822  ;;  %v4558_v27 = vsub.f32 %v17835_v17, %v4419_v51 }
 0x50b   : > { %5032 = vadd.xlane.f32.xlu1 %v15716_v28  ;;  %v15724_v29 = vpop.eup %11824  ;;  %11838 = vpow2.f32 %v4778_v2  ;;  %10552 = vmatmul.mubr.f32.gmra.mrb[182].mxu0 %v5153_v56  ;;  %v5157_v36 = vmul.f32 %v11823_v44, %v17836_v37  ;;  %v17838_v2 = vld [vmem:[#allocation124_spill] sm:$0xff]  ;;  %v17840_v44 = vld [vmem:[#allocation27_spill] sm:$0xff] }
 0x50c   : > { %17834 = vst [vmem:[#allocation48_spill] sm:$0xff] %v15724_v29  ;;  %v15726_v7 = vpop.xlane.xlu1 %4424  ;;  %10554 = vmatprep.mubr.f32.mxu0 %v5155_v57  ;;  %v15729_v31 = vpop.eup %11826  ;;  %11840 = vpow2.f32 %v4794_v25  ;;  %v4550_v23 = vsub.f32 %v17838_v2, %v15581_v12  ;;  %v4802_v51 = vmul.f32 1.442695, %v4558_v27  ;;  %v17842_v12 = vld [vmem:[#allocation122_spill] sm:$0xff]  ;;  %v17843_v2 = vld [vmem:[#allocation92_spill] sm:$0xff]  ;;  %v17844_v27 = vld [vmem:[#allocation91_spill] sm:$0xff] }
 0x50d   : > { %5016 = vadd.xlane.f32.xlu0 %v15724_v29  ;;  %v4423_v47 = vpop.xlane.xlu0 %4422  ;;  %v15734_v16 = vpop.eup %11828  ;;  %11842 = vpow2.f32 %v4784_v35  ;;  %v4551_v17 = vsub.f32 %v17842_v12, %v15565_v10  ;;  %v17846_v10 = vld [vmem:[#allocation126_spill] sm:$0xff] }
 0x50e   : > { %17837 = vst [vmem:[#allocation49_spill] sm:$0xff] %v15734_v16  ;;  %v15738_v19 = vpop.eup %11830  ;;  %11844 = vpow2.f32 %v4798_v59  ;;  %v4560_v26 = vsub.f32 %v17840_v44, %v4423_v47  ;;  %v4786_v37 = vmul.f32 1.442695, %v4550_v23  ;;  %v4553_v23 = vsub.f32 %v17846_v10, %v15593_v48 }
 0x50f   : > { %5030 = vadd.xlane.f32.xlu1 %v15729_v31  ;;  %10555 = vmatmul.mubr.f32.gmra.mrb[184].mxu0 %v5157_v36  ;;  %17839 = vst [vmem:[#allocation93_spill] sm:$0xff] %v15738_v19  ;;  %v11833_v46 = vpop.eup %11832  ;;  %11846 = vpow2.f32 %v4782_v41 }
 0x510   : > { %v4909_v56 = vpop.xlane.xlu1 %4908  ;;  %v5161_v47 = vmul.f32 %v11833_v46, %v17844_v27  ;;  %v4806_v41 = vmul.f32 1.442695, %v4560_v26  ;;  %v4792_v48 = vmul.f32 1.442695, %v4553_v23 }
 0x511   : > { %5014 = vadd.xlane.f32.xlu0 %v15734_v16  ;;  %v4427_v25 = vpop.xlane.xlu0 %4426  ;;  %11848 = vrcp.f32 %v4909_v56 }
 0x513   : > { %v11835_v57 = vpop.eup %11834  ;;  %5036 = vadd.xlane.f32.xlu1 %v15738_v19  ;;  %v17845_v19 = vld [vmem:[#allocation29_spill] sm:$0xff] }
 0x514   : > { %v15743_v35 = vpop.eup %11836  ;;  %v4907_v36 = vpop.xlane.xlu1 %4906  ;;  %v5159_v29 = vmul.f32 %v11835_v57, %v17843_v2  ;;  %v4562_v16 = vsub.f32 %v17845_v19, %v4427_v25  ;;  %v4788_v57 = vmul.f32 1.442695, %v4551_v17  ;;  %v17847_v19 = vld [vmem:[#allocation26_spill] sm:$0xff] }
 0x515   : > { %17841 = vst [vmem:[#allocation94_spill] sm:$0xff] %v15743_v35  ;;  %11850 = vrcp.f32 %v4907_v36  ;;  %5046 = vadd.xlane.f32.xlu0 %v15743_v35  ;;  %v4431_v59 = vpop.xlane.xlu0 %4430  ;;  %v15750_v44 = vpop.eup %11838  ;;  %v17849_v17 = vld [vmem:[#allocation130_spill] sm:$0xff] }
 0x516   : > { %11852 = vpow2.f32 %v4802_v51  ;;  %10557 = vmatprep.mubr.f32.mxu0 %v5159_v29  ;;  %v15756_v56 = vpop.eup %11840  ;;  %v4810_v29 = vmul.f32 1.442695, %v4562_v16  ;;  %v4564_v25 = vsub.f32 %v17847_v19, %v4431_v59 }
 0x517   : > { %5034 = vadd.xlane.f32.xlu1 %v15750_v44  ;;  %10558 = vmatmul.mubr.f32.gmra.mrb[186].mxu0 %v5161_v47  ;;  %11854 = vpow2.f32 %v4786_v37  ;;  %v15763_v51 = vpop.eup %11842  ;;  %v4555_v37 = vsub.f32 %v17849_v17, %v15629_v1  ;;  %v17851_v1 = vld [vmem:[#allocation131_spill] sm:$0xff]  ;;  %v17852_v17 = vld [vmem:[#allocation136_spill] sm:$0xff] }
 0x518   : > { %v15758_v12 = vpop.xlane.xlu1 %4428  ;;  %11856 = vpow2.f32 %v4806_v41  ;;  %v15767_v26 = vpop.eup %11844  ;;  %v4814_v47 = vmul.f32 1.442695, %v4564_v25 }
 0x519   : > { %5050 = vadd.xlane.f32.xlu0 %v15756_v56  ;;  %v15761_v46 = vpop.xlane.xlu0 %4920  ;;  %17848 = vst [vmem:[#allocation51_spill] sm:$0xff] %v15767_v26  ;;  %11858 = vpow2.f32 %v4788_v57  ;;  %v15771_v2 = vpop.eup %11846  ;;  %v4796_v23 = vmul.f32 1.442695, %v4555_v37  ;;  %v4557_v57 = vsub.f32 %v17851_v1, %v15651_v20 }
 0x51a   : > { %11860 = vpow2.f32 %v4810_v29  ;;  %v17853_v29 = vld [vmem:[#allocation135_spill] sm:$0xff] }
 0x51b   : > { %5040 = vadd.xlane.f32.xlu1 %v15763_v51  ;;  %v11849_v27 = vpop.eup %11848  ;;  %11862 = vpow2.f32 %v4792_v48  ;;  %v4559_v25 = vsub.f32 %v17853_v29, %v15693_v32  ;;  %v17854_v48 = vld [vmem:[#allocation100_spill] sm:$0xff] }
 0x51c   : > { %v4913_v36 = vpop.xlane.xlu1 %4912 }
 0x51d   : > { %5054 = vadd.xlane.f32.xlu0 %v15767_v26  ;;  %11864 = vrcp.f32 %v4913_v36  ;;  %v4800_v36 = vmul.f32 1.442695, %v4557_v57  ;;  %v4804_v32 = vmul.f32 1.442695, %v4559_v25 }
 0x51e   : > { %v4435_v16 = vpop.xlane.xlu0 %4434 }
 0x51f   : > { %v11851_v41 = vpop.eup %11850  ;;  %v4566_v59 = vsub.f32 %v15301_v13, %v4435_v16  ;;  %5038 = vadd.xlane.f32.xlu1 %v15771_v2  ;;  %v5165_v13 = vmul.f32 %v11849_v27, %v17854_v48 }
 0x520   : > { %v15776_v10 = vpop.eup %11852  ;;  %v4911_v19 = vpop.xlane.xlu1 %4910  ;;  %v5163_v26 = vmul.f32 %v11851_v41, %v17852_v17 }
 0x521   : > { %17850 = vst [vmem:[#allocation50_spill] sm:$0xff] %v15776_v10  ;;  %11866 = vrcp.f32 %v4911_v19  ;;  %5058 = vadd.xlane.f32.xlu0 %v15776_v10  ;;  %v15785_v16 = vpop.eup %11854  ;;  %v4818_v35 = vmul.f32 1.442695, %v4566_v59 }
 0x522   : > { %11868 = vpow2.f32 %v4814_v47  ;;  %v4919_v37 = vpop.xlane.xlu0 %4918  ;;  %10560 = vmatprep.mubr.f32.mxu0 %v5163_v26  ;;  %v15788_v20 = vpop.eup %11856  ;;  %v17856_v47 = vld [vmem:[#allocation62_spill] sm:$0xff] }
 0x523   : > { %5042 = vadd.xlane.f32.xlu1 %v15785_v16  ;;  %10561 = vmatmul.mubr.f32.gmra.mrb[188].mxu0 %v5165_v13  ;;  %17855 = vst [vmem:[#allocation54_spill] sm:$0xff] %v15788_v20  ;;  %11870 = vpow2.f32 %v4796_v23  ;;  %v15791_v1 = vpop.eup %11858  ;;  %v4561_v59 = vsub.f32 %v17856_v47, %v15726_v7  ;;  %v17859_v7 = vld [vmem:[#allocation99_spill] sm:$0xff]  ;;  %v17861_v47 = vld [vmem:[#allocation28_spill] sm:$0xff] }
 0x524   : > { %v4433_v41 = vpop.xlane.xlu1 %4432  ;;  %11872 = vpow2.f32 %v4818_v35  ;;  %v15797_v19 = vpop.eup %11860  ;;  %v4563_v13 = vsub.f32 %v17859_v7, %v15758_v12 }
 0x525   : > { %5062 = vadd.xlane.f32.xlu0 %v15788_v20  ;;  %17857 = vst [vmem:[#allocation52_spill] sm:$0xff] %v15797_v19  ;;  %11874 = vpow2.f32 %v4800_v36  ;;  %v15799_v57 = vpop.eup %11862  ;;  %v4808_v48 = vmul.f32 1.442695, %v4561_v59 }
 0x526   : > { %v4439_v27 = vpop.xlane.xlu0 %4438  ;;  %11876 = vpow2.f32 %v4804_v32  ;;  %v4812_v12 = vmul.f32 1.442695, %v4563_v13 }
 0x527   : > { %v4568_v26 = vsub.f32 %v15332_v58, %v4439_v27  ;;  %5044 = vadd.xlane.f32.xlu1 %v15791_v1  ;;  %v11865_v29 = vpop.eup %11864  ;;  %11878 = vrcp.f32 %v4919_v37  ;;  %v17860_v27 = vld [vmem:[#allocation30_spill] sm:$0xff] }
 0x528   : > { %v4917_v23 = vpop.xlane.xlu1 %4916  ;;  %v5169_v37 = vmul.f32 %v11865_v29, %v17861_v47 }
 0x529   : > { %v4822_v17 = vmul.f32 1.442695, %v4568_v26  ;;  %5066 = vadd.xlane.f32.xlu0 %v15797_v19 }
 0x52a   : > { %v4929_v35 = vpop.xlane.xlu0 %4928 }
 0x52b   : > { %v11867_v25 = vpop.eup %11866  ;;  %11880 = vpow2.f32 %v4822_v17  ;;  %5048 = vadd.xlane.f32.xlu1 %v15799_v57 }
 0x52c   : > { %v15803_v58 = vpop.eup %11868  ;;  %11882 = vrcp.f32 %v4917_v23  ;;  %v4915_v36 = vpop.xlane.xlu1 %4914  ;;  %v5167_v32 = vmul.f32 %v11867_v25, %v17860_v27  ;;  %v17864_v23 = vld [vmem:[#allocation33_spill] sm:$0xff] }
 0x52d   : > { %17858 = vst [vmem:[#allocation56_spill] sm:$0xff] %v15803_v58  ;;  %11884 = vrcp.f32 %v4915_v36  ;;  %5070 = vadd.xlane.f32.xlu0 %v15803_v58  ;;  %v15810_v26 = vpop.eup %11870  ;;  %v4565_v25 = vsub.f32 %v17864_v23, %v4433_v41 }
 0x52e   : > { %17862 = vst [vmem:[#allocation98_spill] sm:$0xff] %v15810_v26  ;;  %v4927_v59 = vpop.xlane.xlu0 %4926  ;;  %10563 = vmatprep.mubr.f32.mxu0 %v5167_v32  ;;  %11886 = vpow2.f32 %v4808_v48  ;;  %v15813_v17 = vpop.eup %11872 }
 0x52f   : > { %5052 = vadd.xlane.f32.xlu1 %v15810_v26  ;;  %10564 = vmatmul.mubr.f32.gmra.mrb[190].mxu0 %v5169_v37  ;;  %17863 = vst [vmem:[#allocation64_spill] sm:$0xff] %v15813_v17  ;;  %11888 = vrcp.f32 %v15761_v46  ;;  %v15818_v36 = vpop.eup %11874  ;;  %v4816_v47 = vmul.f32 1.442695, %v4565_v25 }
 0x530   : > { %v4437_v7 = vpop.xlane.xlu1 %4436  ;;  %17865 = vst [vmem:[#allocation39_spill] sm:$0xff] %v15818_v36  ;;  %v15820_v27 = vpop.eup %11876  ;;  %11890 = vpow2.f32 %v4812_v12  ;;  %v17868_v12 = vld [vmem:[#allocation70_spill] sm:$0xff] }
 0x531   : > { %5074 = vadd.xlane.f32.xlu0 %v15813_v17  ;;  %v4567_v48 = vsub.f32 %v15370_v38, %v4437_v7  ;;  %v11879_v32 = vpop.eup %11878  ;;  %11892 = vpow2.f32 %v4816_v47  ;;  %v17867_v7 = vld [vmem:[#allocation14_spill] sm:$0xff]  ;;  %v17870_v47 = vld [vmem:[#allocation31_spill] sm:$0xff] }
 0x532   : > { %v4933_v29 = vpop.xlane.xlu0 %4932  ;;  %11894 = vrcp.f32 %v4927_v59 }
 0x533   : > { %5056 = vadd.xlane.f32.xlu1 %v15818_v36  ;;  %v4820_v17 = vmul.f32 1.442695, %v4567_v48 }
 0x534   : > { %v4441_v13 = vpop.xlane.xlu1 %4440 }
 0x535   : > { %v15824_v37 = vpop.eup %11880  ;;  %v4569_v58 = vsub.f32 %v15382_v9, %v4441_v13  ;;  %11896 = vpow2.f32 %v4820_v17 }
 0x536   : > { %17866 = vst [vmem:[#allocation75_spill] sm:$0xff] %v15824_v37  ;;  %v11883_v46 = vpop.eup %11882  ;;  %5078 = vadd.xlane.f32.xlu0 %v15824_v37  ;;  %v4931_v41 = vpop.xlane.xlu0 %4930  ;;  %v17869_v37 = vld [vmem:[#allocation71_spill] sm:$0xff] }
 0x537   : > { %v11885_v23 = vpop.eup %11884  ;;  %5060 = vadd.xlane.f32.xlu1 %v15820_v27  ;;  %v5173_v25 = vmul.f32 %v11883_v46, %v17868_v12  ;;  %v5175_v26 = vmul.f32 %v11879_v32, %v17869_v37  ;;  %v4824_v48 = vmul.f32 1.442695, %v4569_v58 }
 0x538   : > { %v4925_v38 = vpop.xlane.xlu1 %4924  ;;  %v5171_v19 = vmul.f32 %v11885_v23, %v17867_v7  ;;  %v15830_v20 = vpop.eup %11886 }
 0x539   : > { %v11889_v10 = vpop.eup %11888  ;;  %11898 = vrcp.f32 %v4925_v38 }
 0x53a   : > { %v4937_v36 = vpop.xlane.xlu0 %4936  ;;  %10566 = vmatprep.mubr.f32.mxu0 %v5171_v19  ;;  %v5177_v13 = vmul.f32 %v11889_v10, %v17870_v47  ;;  %v15836_v23 = vpop.eup %11890  ;;  %v17871_v47 = vld [vmem:[#allocation19_spill] sm:$0xff] }
 0x53b   : > { %5064 = vadd.xlane.f32.xlu1 %v15830_v20  ;;  %10567 = vmatmul.mubr.f32.gmra.mrb[192].mxu0 %v5173_v25  ;;  %v15839_v59 = vpop.eup %11892 }
 0x53c   : > { %v4923_v9 = vpop.xlane.xlu1 %4922  ;;  %10569 = vmatprep.mubr.f32.mxu0 %v5175_v26  ;;  %v11895_v26 = vpop.eup %11894 }
 0x53d   : > { %11900 = vrcp.f32 %v4923_v9 }
 0x53e   : > { %v4935_v46 = vpop.xlane.xlu0 %4934  ;;  %11902 = vrcp.f32 %v4929_v35 }
 0x53f   : > { %5068 = vadd.xlane.f32.xlu1 %v15836_v23  ;;  %10570 = vmatmul.mubr.f32.gmra.mrb[194].mxu0 %v5177_v13  ;;  %11904 = vpow2.f32 %v4824_v48  ;;  %v15842_v17 = vpop.eup %11896  ;;  %v5183_v48 = vmul.f32 %v11895_v26, %v15353_v53  ;;  %v2256_v13 = vmax.f32 %v17871_v47, 0.0  ;;  %v17873_v53 = vld [vmem:[#allocation16_spill] sm:$0xff] }
 0x540   : > { %v4957_v19 = vpop.xlane.xlu1 %4956  ;;  %11906 = vrcp.f32 %v4931_v41 }
 0x541   : > { %11908 = vrcp.f32 %v4933_v29 }
 0x542   : > { %v4941_v58 = vpop.xlane.xlu0 %4940  ;;  %11910 = vrcp.f32 %v4935_v46 }
 0x543   : > { %5072 = vadd.xlane.f32.xlu1 %v15839_v59  ;;  %11912 = vrcp.f32 %v4957_v19  ;;  %v11899_v35 = vpop.eup %11898 }
 0x544   : > { %v4955_v10 = vpop.xlane.xlu1 %4954  ;;  %v5181_v7 = vmul.f32 %v11899_v35, %v15403_v39 }
 0x545   : > { %11914 = vrcp.f32 %v4955_v10 }
 0x546   : > { %v4939_v32 = vpop.xlane.xlu0 %4938  ;;  %11916 = vrcp.f32 %v4937_v36 }
 0x547   : > { %v11901_v37 = vpop.eup %11900  ;;  %5076 = vadd.xlane.f32.xlu1 %v15842_v17  ;;  %11918 = vrcp.f32 %v4939_v32 }
 0x548   : > { %v4961_v41 = vpop.xlane.xlu1 %4960  ;;  %v5179_v38 = vmul.f32 %v11901_v37, %v15412_v14  ;;  %v11903_v29 = vpop.eup %11902  ;;  %11920 = vrcp.f32 %v4941_v58  ;;  %v17872_v14 = vmax.f32 %v17757_v45, 0.0 }
 0x549   : > { %v15847_v12 = vpop.eup %11904  ;;  %11922 = vrcp.f32 %v4961_v41  ;;  %v5185_v19 = vmul.f32 %v11903_v29, %v17873_v53  ;;  %v17874_v29 = vld [vmem:[#allocation103_spill] sm:$0xff] }
 0x54a   : > { %v4945_v25 = vpop.xlane.xlu0 %4944  ;;  %10574 = vmatprep.mubr.f32.mxu1 %v5179_v38  ;;  %v11907_v9 = vpop.eup %11906 }
 0x54b   : > { %5080 = vadd.xlane.f32.xlu1 %v15847_v12  ;;  %10575 = vmatmul.mubr.f32.vlgmr.msra.gmra.mrb[68].mxu1 %v5181_v7  ;;  %v11909_v36 = vpop.eup %11908  ;;  %v5187_v58 = vmul.f32 %v11907_v9, %v15392_v43  ;;  %v17875_v43 = vmax.f32 %v17809_v5, 0.0 }
 0x54c   : > { %10625 = vmatpush3.xpose.msra.mxu1 %v17872_v14  ;;  %v4959_v39 = vpop.xlane.xlu1 %4958  ;;  %10577 = vmatprep.mubr.f32.mxu1 %v5183_v48  ;;  %v11911_v46 = vpop.eup %11910  ;;  %v5189_v41 = vmul.f32 %v11909_v36, %v15385_v3  ;;  %v17877_v36 = vld [vmem:[#allocation35_spill] sm:$0xff] }
 0x54d   : > { %11924 = vrcp.f32 %v4959_v39  ;;  %10676 = vmatprep.subr.mxu1 %v2256_v13  ;;  %v11913_v26 = vpop.eup %11912  ;;  %v5191_v48 = vmul.f32 %v11911_v46, %v17874_v29 }
 0x54e   : > { %v4943_v10 = vpop.xlane.xlu0 %4942  ;;  %v5213_v37 = vmul.f32 %v11913_v26, %v15422_v22 }
 0x54f   : > { %v11915_v35 = vpop.eup %11914  ;;  %11926 = vrcp.f32 %v4943_v10  ;;  %10578 = vmatmul.mubr.f32.gmra.mrb[70].mxu1 %v5185_v19  ;;  %v17878_v10 = vld [vmem:[#allocation34_spill] sm:$0xff] }
 0x550   : > { %11928 = vrcp.f32 %v4945_v25  ;;  %v4965_v32 = vpop.xlane.xlu1 %4964  ;;  %10580 = vmatprep.mubr.f32.mxu1 %v5187_v58  ;;  %v5211_v45 = vmul.f32 %v11915_v35, %v15441_v34  ;;  %v11917_v38 = vpop.eup %11916  ;;  %v17876_v34 = vld [vmem:[#allocation32_spill] sm:$0xff] }
 0x551   : > { %v11919_v14 = vpop.eup %11918  ;;  %11930 = vrcp.f32 %v4965_v32  ;;  %v5193_v22 = vmul.f32 %v11917_v38, %v17876_v34  ;;  %v17879_v35 = vld [vmem:[#allocation76_spill] sm:$0xff] }
 0x552   : > { %v4949_v7 = vpop.xlane.xlu0 %4948  ;;  %10600 = vmatprep.mubr.f32.mxu0 %v5211_v45  ;;  %v11921_v9 = vpop.eup %11920  ;;  %v5195_v53 = vmul.f32 %v11919_v14, %v17877_v36 }
 0x553   : > { %10581 = vmatmul.mubr.f32.gmra.mrb[72].mxu1 %v5189_v41  ;;  %10601 = vmatmul.mubr.f32.vlgmr.msra.gmra.mrb[196].mxu0 %v5213_v37  ;;  %v11923_v39 = vpop.eup %11922  ;;  %v5197_v58 = vmul.f32 %v11921_v9, %v17878_v10 }
 0x554   : > { %10651 = vmatpush3.xpose.msra.mxu0 %v17875_v43  ;;  %v4963_v25 = vpop.xlane.xlu1 %4962  ;;  %10583 = vmatprep.mubr.f32.mxu1 %v5191_v48  ;;  %v5217_v32 = vmul.f32 %v11923_v39, %v17879_v35 }
 0x555   : > { %11932 = vrcp.f32 %v4963_v25 }
 0x556   : > { %11934 = vrcp.f32 %v4949_v7  ;;  %v4947_v3 = vpop.xlane.xlu0 %4946  ;;  %v17880_v7 = vld [vmem:[#allocation78_spill] sm:$0xff] }
 0x557   : > { %v11925_v19 = vpop.eup %11924  ;;  %11936 = vrcp.f32 %v4947_v3  ;;  %10584 = vmatmul.mubr.f32.gmra.mrb[74].mxu1 %v5193_v22 }
 0x558   : > { %v4969_v46 = vpop.xlane.xlu1 %4968  ;;  %10586 = vmatprep.mubr.f32.mxu1 %v5195_v53  ;;  %v5215_v26 = vmul.f32 %v11925_v19, %v15458_v24 }
 0x559   : > { %v11927_v5 = vpop.eup %11926  ;;  %11938 = vrcp.f32 %v4969_v46 }
 0x55a   : > { %v11929_v45 = vpop.eup %11928  ;;  %v4953_v37 = vpop.xlane.xlu0 %4952  ;;  %10603 = vmatprep.mubr.f32.mxu0 %v5215_v26  ;;  %v5199_v41 = vmul.f32 %v11927_v5, %v15475_v18 }
 0x55b   : > { %10587 = vmatmul.mubr.f32.gmra.mrb[76].mxu1 %v5197_v58  ;;  %10604 = vmatmul.mubr.f32.gmra.mrb[198].mxu0 %v5217_v32  ;;  %v5201_v29 = vmul.f32 %v11929_v45, %v17880_v7  ;;  %v11931_v48 = vpop.eup %11930  ;;  %v17881_v32 = vld [vmem:[#allocation36_spill] sm:$0xff] }
 0x55c   : > { %v4967_v38 = vpop.xlane.xlu1 %4966  ;;  %10589 = vmatprep.mubr.f32.mxu1 %v5199_v41  ;;  %v5221_v18 = vmul.f32 %v11931_v48, %v15484_v15 }
 0x55d   : > { %11940 = vrcp.f32 %v4967_v38 }
 0x55e   : > { %11942 = vrcp.f32 %v4953_v37  ;;  %v4951_v24 = vpop.xlane.xlu0 %4950 }
 0x55f   : > { %v11933_v14 = vpop.eup %11932  ;;  %11944 = vrcp.f32 %v4951_v24  ;;  %10590 = vmatmul.mubr.f32.gmra.mrb[78].mxu1 %v5201_v29 }
 0x560   : > { %v11935_v43 = vpop.eup %11934  ;;  %v4973_v25 = vpop.xlane.xlu1 %4972  ;;  %v5219_v9 = vmul.f32 %v11933_v14, %v15505_v0  ;;  %v17883_v14 = vld [vmem:[#allocation37_spill] sm:$0xff] }
 0x561   : > { %v11937_v34 = vpop.eup %11936  ;;  %v10498_v22 = vpop.f32.mrb[164].mxu0  ;;  %v5205_v53 = vmul.f32 %v11935_v43, %v15480_v61  ;;  %11946 = vrcp.f32 %v4973_v25 }
 0x562   : > { %v4985_v39 = vpop.xlane.xlu0 %4984  ;;  %10606 = vmatprep.mubr.f32.mxu0 %v5219_v9  ;;  %v5203_v3 = vmul.f32 %v11937_v34, %v15509_v6  ;;  %v5404_v36 = vpop.f32.mrb[165].mxu0 }
 0x563   : > { %10607 = vmatmul.mubr.f32.gmra.mrb[200].mxu0 %v5221_v18  ;;  %6498 = vxpose.xlu0.b32.start [1/16] (narrow) %v5404_v36, 8  ;;  %v11939_v46 = vpop.eup %11938 }
 0x564   : > { %10592 = vmatprep.mubr.f32.mxu1 %v5203_v3  ;;  %v4971_v19 = vpop.xlane.xlu1 %4970  ;;  %v5225_v6 = vmul.f32 %v11939_v46, %v15516_v8  ;;  %v17882_v8 = vld [vmem:[#allocation41_spill] sm:$0xff] }
 0x565   : > { %11948 = vrcp.f32 %v4971_v19  ;;  %10593 = vmatmul.mubr.f32.gmra.mrb[80].mxu1 %v5205_v53 }
 0x566   : > { %v4983_v0 = vpop.xlane.xlu0 %4982 }
 0x567   : > { %v11941_v26 = vpop.eup %11940  ;;  %6499 = vxpose.xlu0.b32.cont [2/16] (narrow) %v10498_v22, 8 }
 0x568   : > { %v11943_v5 = vpop.eup %11942  ;;  %v4977_v15 = vpop.xlane.xlu1 %4976  ;;  %v5223_v10 = vmul.f32 %v11941_v26, %v15523_v49 }
 0x569   : > { %v11945_v58 = vpop.eup %11944  ;;  %v5209_v45 = vmul.f32 %v11943_v5, %v17881_v32  ;;  %11950 = vrcp.f32 %v4977_v15 }
 0x56a   : > { %v4993_v35 = vpop.xlane.xlu0 %4992  ;;  %10609 = vmatprep.mubr.f32.mxu0 %v5223_v10  ;;  %v5207_v61 = vmul.f32 %v11945_v58, %v15536_v33 }
 0x56b   : > { %10610 = vmatmul.mubr.f32.gmra.mrb[202].mxu0 %v5225_v6  ;;  %v11947_v38 = vpop.eup %11946 }
 0x56c   : > { %10595 = vmatprep.mubr.f32.mxu1 %v5207_v61  ;;  %v4975_v37 = vpop.xlane.xlu1 %4974  ;;  %v5229_v43 = vmul.f32 %v11947_v38, %v17883_v14  ;;  %v17885_v38 = vld [vmem:[#allocation38_spill] sm:$0xff] }
 0x56d   : > { %11952 = vrcp.f32 %v4975_v37  ;;  %10596 = vmatmul.mubr.f32.gmra.mrb[82].mxu1 %v5209_v45  ;;  %v10501_v41 = vpop.f32.mrb[166].mxu0  ;;  %v17884_v45 = vld [vmem:[#allocation40_spill] sm:$0xff] }
 0x56e   : > { %v4991_v7 = vpop.xlane.xlu0 %4990  ;;  %v5414_v29 = vpop.f32.mrb[167].mxu0  ;;  %11954 = vrcp.f32 %v4983_v0 }
 0x56f   : > { %v11949_v49 = vpop.eup %11948  ;;  %6500 = vxpose.xlu0.b32.cont [3/16] (narrow) %v5414_v29, 8 }
 0x570   : > { %v4981_v48 = vpop.xlane.xlu1 %4980  ;;  %v5227_v24 = vmul.f32 %v11949_v49, %v17882_v8 }
 0x571   : > { %11956 = vrcp.f32 %v4981_v48 }
 0x572   : > { %v4997_v33 = vpop.xlane.xlu0 %4996  ;;  %10612 = vmatprep.mubr.f32.mxu0 %v5227_v24 }
 0x573   : > { %10613 = vmatmul.mubr.f32.gmra.mrb[204].mxu0 %v5229_v43  ;;  %6501 = vxpose.xlu0.b32.cont [4/16] (narrow) %v10501_v41, 8  ;;  %v11951_v9 = vpop.eup %11950 }
 0x574   : > { %v4979_v25 = vpop.xlane.xlu1 %4978  ;;  %v5233_v19 = vmul.f32 %v11951_v9, %v15569_v4 }
 0x575   : > { %11958 = vrcp.f32 %v4979_v25  ;;  %v10504_v34 = vpop.f32.mrb[168].mxu0  ;;  %v17886_v25 = vld [vmem:[#allocation82_spill] sm:$0xff] }
 0x576   : > { %v4995_v18 = vpop.xlane.xlu0 %4994  ;;  %v5424_v3 = vpop.f32.mrb[169].mxu0  ;;  %11960 = vrcp.f32 %v4985_v39 }
 0x577   : > { %v11953_v22 = vpop.eup %11952  ;;  %6502 = vxpose.xlu0.b32.cont [5/16] (narrow) %v5424_v3, 8  ;;  %11962 = vrcp.f32 %v4991_v7 }
 0x578   : > { %v4989_v36 = vpop.xlane.xlu1 %4988  ;;  %v5231_v53 = vmul.f32 %v11953_v22, %v15588_v42  ;;  %v11955_v26 = vpop.eup %11954 }
 0x579   : > { %11964 = vrcp.f32 %v4989_v36  ;;  %v5239_v37 = vmul.f32 %v11955_v26, %v17884_v45 }
 0x57a   : > { %v5001_v46 = vpop.xlane.xlu0 %5000  ;;  %10615 = vmatprep.mubr.f32.mxu0 %v5231_v53 }
 0x57b   : > { %10616 = vmatmul.mubr.f32.gmra.mrb[206].mxu0 %v5233_v19  ;;  %6503 = vxpose.xlu0.b32.cont [6/16] (narrow) %v10504_v34, 8  ;;  %v11957_v5 = vpop.eup %11956  ;;  %v17888_v19 = vld [vmem:[#allocation80_spill] sm:$0xff] }
 0x57c   : > { %v4987_v0 = vpop.xlane.xlu1 %4986  ;;  %v5237_v4 = vmul.f32 %v11957_v5, %v15595_v52 }
 0x57d   : > { %11966 = vrcp.f32 %v4987_v0  ;;  %v10507_v15 = vpop.f32.mrb[170].mxu0 }
 0x57e   : > { %v4999_v10 = vpop.xlane.xlu0 %4998  ;;  %v5434_v39 = vpop.f32.mrb[171].mxu0  ;;  %11968 = vrcp.f32 %v4993_v35 }
 0x57f   : > { %v11959_v58 = vpop.eup %11958  ;;  %6504 = vxpose.xlu0.b32.cont [7/16] (narrow) %v5434_v39, 8  ;;  %11970 = vrcp.f32 %v4995_v18 }
 0x580   : > { %v5021_v6 = vpop.xlane.xlu1 %5020  ;;  %v5235_v42 = vmul.f32 %v11959_v58, %v15609_v63  ;;  %v11961_v61 = vpop.eup %11960  ;;  %11972 = vrcp.f32 %v4997_v33 }
 0x581   : > { %11974 = vrcp.f32 %v4999_v10  ;;  %v11963_v35 = vpop.eup %11962  ;;  %v5241_v7 = vmul.f32 %v11961_v61, %v17885_v38  ;;  %v17889_v10 = vld [vmem:[#allocation42_spill] sm:$0xff] }
 0x582   : > { %v5005_v32 = vpop.xlane.xlu0 %5004  ;;  %10618 = vmatprep.mubr.f32.mxu0 %v5235_v42  ;;  %11976 = vrcp.f32 %v5021_v6  ;;  %v5247_v9 = vmul.f32 %v11963_v35, %v17886_v25  ;;  %v17890_v42 = vld [vmem:[#allocation44_spill] sm:$0xff] }
 0x583   : > { %10619 = vmatmul.mubr.f32.gmra.mrb[208].mxu0 %v5237_v4  ;;  %6505 = vxpose.xlu0.b32.cont [8/16] (narrow) %v10507_v15, 8  ;;  %v11965_v63 = vpop.eup %11964 }
 0x584   : > { %v5019_v41 = vpop.xlane.xlu1 %5018  ;;  %10621 = vmatprep.mubr.f32.mxu0 %v5239_v37  ;;  %v5245_v14 = vmul.f32 %v11965_v63, %v15620_v55  ;;  %v17887_v55 = vld [vmem:[#allocation107_spill] sm:$0xff] }
 0x585   : > { %11978 = vrcp.f32 %v5019_v41  ;;  %v10510_v52 = vpop.f32.mrb[172].mxu0 }
 0x586   : > { %v5003_v29 = vpop.xlane.xlu0 %5002  ;;  %11980 = vrcp.f32 %v5001_v46  ;;  %v5444_v48 = vpop.f32.mrb[173].mxu0 }
 0x587   : > { %v11967_v49 = vpop.eup %11966  ;;  %10622 = vmatmul.mubr.f32.gmra.mrb[210].mxu0 %v5241_v7  ;;  %11982 = vrcp.f32 %v5003_v29  ;;  %6506 = vxpose.xlu0.b32.cont [9/16] (narrow) %v5444_v48, 8 }
 0x588   : > { %v5025_v8 = vpop.xlane.xlu1 %5024  ;;  %v5243_v24 = vmul.f32 %v11967_v49, %v15631_v54  ;;  %v11969_v43 = vpop.eup %11968  ;;  %11984 = vrcp.f32 %v5005_v32 }
 0x589   : > { %v11971_v34 = vpop.eup %11970  ;;  %11986 = vrcp.f32 %v5025_v8  ;;  %v5249_v3 = vmul.f32 %v11969_v43, %v17887_v55 }
 0x58a   : > { %v5009_v33 = vpop.xlane.xlu0 %5008  ;;  %10626 = vmatprep.mubr.f32.mxu1 %v5243_v24  ;;  %v11973_v18 = vpop.eup %11972  ;;  %v5251_v46 = vmul.f32 %v11971_v34, %v17888_v19 }
 0x58b   : > { %10627 = vmatmul.mubr.f32.vlgmr.msra.gmra.mrb[84].mxu1 %v5245_v14  ;;  %v11975_v54 = vpop.eup %11974  ;;  %6507 = vxpose.xlu0.b32.cont [10/16] (narrow) %v10510_v52, 8  ;;  %v5253_v58 = vmul.f32 %v11973_v18, %v17889_v10 }
 0x58c   : > { %10677 = vmatpush3.xpose.msra.mxu1 %v2256_v13  ;;  %v5023_v22 = vpop.xlane.xlu1 %5022  ;;  %10629 = vmatprep.mubr.f32.mxu1 %v5247_v9  ;;  %v11977_v36 = vpop.eup %11976  ;;  %v5255_v4 = vmul.f32 %v11975_v54, %v17890_v42 }
 0x58d   : > { %11988 = vrcp.f32 %v5023_v22  ;;  %v10513_v26 = vpop.f32.mrb[174].mxu0  ;;  %v5277_v13 = vmul.f32 %v11977_v36, %v15636_v21  ;;  %v17891_v21 = vld [vmem:[#allocation43_spill] sm:$0xff] }
 0x58e   : > { %v5007_v53 = vpop.xlane.xlu0 %5006  ;;  %v5454_v5 = vpop.f32.mrb[175].mxu0 }
 0x58f   : > { %v11979_v0 = vpop.eup %11978  ;;  %11990 = vrcp.f32 %v5007_v53  ;;  %10630 = vmatmul.mubr.f32.gmra.mrb[86].mxu1 %v5249_v3  ;;  %6508 = vxpose.xlu0.b32.cont [11/16] (narrow) %v5454_v5, 8 }
 0x590   : > { %11992 = vrcp.f32 %v5009_v33  ;;  %v5029_v15 = vpop.xlane.xlu1 %5028  ;;  %10632 = vmatprep.mubr.f32.mxu1 %v5251_v46  ;;  %v5275_v47 = vmul.f32 %v11979_v0, %v15660_v30  ;;  %v11981_v39 = vpop.eup %11980  ;;  %v17894_v0 = vld [vmem:[#allocation88_spill] sm:$0xff] }
 0x591   : > { %v11983_v61 = vpop.eup %11982  ;;  %v10516_v32 = vpop.f32.mrb[176].mxu0  ;;  %11994 = vrcp.f32 %v5029_v15  ;;  %v5257_v30 = vmul.f32 %v11981_v39, %v17891_v21  ;;  %v17895_v15 = vld [vmem:[#allocation46_spill] sm:$0xff]  ;;  %v17897_v21 = vld [vmem:[#allocation49_spill] sm:$0xff] }
 0x592   : > { %v5013_v6 = vpop.xlane.xlu0 %5012  ;;  %10652 = vmatprep.mubr.f32.mxu0 %v5275_v47  ;;  %v5464_v45 = vpop.f32.mrb[177].mxu0  ;;  %v5259_v63 = vmul.f32 %v11983_v61, %v15654_v40  ;;  %v17892_v40 = vld [vmem:[#allocation47_spill] sm:$0xff] }
 0x593   : > { %10633 = vmatmul.mubr.f32.gmra.mrb[88].mxu1 %v5253_v58  ;;  %10653 = vmatmul.mubr.f32.vlgmr.msra.gmra.mrb[212].mxu0 %v5277_v13  ;;  %v11985_v41 = vpop.eup %11984  ;;  %v17896_v13 = vld [vmem:[#allocation85_spill] sm:$0xff] }
 0x594   : > { %v5027_v37 = vpop.xlane.xlu1 %5026  ;;  %10635 = vmatprep.mubr.f32.mxu1 %v5255_v4  ;;  %6509 = vxpose.xlu0.b32.cont [12/16] (narrow) %v10513_v26, 8  ;;  %v11987_v35 = vpop.eup %11986  ;;  %v5261_v43 = vmul.f32 %v11985_v41, %v15647_v62 }
 0x595   : > { %11996 = vrcp.f32 %v5027_v37  ;;  %v10519_v49 = vpop.f32.mrb[178].mxu0  ;;  %v5281_v33 = vmul.f32 %v11987_v35, %v15672_v11  ;;  %v17898_v35 = vld [vmem:[#allocation48_spill] sm:$0xff] }
 0x596   : > { %11998 = vrcp.f32 %v5013_v6  ;;  %v5011_v38 = vpop.xlane.xlu0 %5010  ;;  %v10524_v7 = vpop.f32.mrb[52].mxu1 }
 0x597   : > { %v11989_v29 = vpop.eup %11988  ;;  %12000 = vrcp.f32 %v5011_v38  ;;  %v5549_v52 = vpop.f32.mrb[53].mxu1  ;;  %10636 = vmatmul.mubr.f32.gmra.mrb[90].mxu1 %v5257_v30 }
 0x598   : > { %v5474_v48 = vpop.f32.mrb[179].mxu0  ;;  %v5033_v8 = vpop.xlane.xlu1 %5032  ;;  %6530 = vxpose.xlu1.b32.start [1/16] (narrow) %v5549_v52, 8  ;;  %10638 = vmatprep.mubr.f32.mxu1 %v5259_v63  ;;  %v5279_v24 = vmul.f32 %v11989_v29, %v15686_v50  ;;  %v17893_v50 = vld [vmem:[#allocation45_spill] sm:$0xff] }
 0x599   : > { %v11991_v14 = vpop.eup %11990  ;;  %6510 = vxpose.xlu0.b32.cont [13/16] (narrow) %v5464_v45, 8  ;;  %12002 = vrcp.f32 %v5033_v8 }
 0x59a   : > { %v11993_v25 = vpop.eup %11992  ;;  %v5017_v9 = vpop.xlane.xlu0 %5016  ;;  %10655 = vmatprep.mubr.f32.mxu0 %v5279_v24  ;;  %v5263_v34 = vmul.f32 %v11991_v14, %v17892_v40  ;;  %v17899_v24 = vld [vmem:[#allocation93_spill] sm:$0xff] }
 0x59b   : > { %v10527_v18 = vpop.f32.mrb[54].mxu1  ;;  %10639 = vmatmul.mubr.f32.gmra.mrb[92].mxu1 %v5261_v43  ;;  %10656 = vmatmul.mubr.f32.gmra.mrb[214].mxu0 %v5281_v33  ;;  %v5265_v55 = vmul.f32 %v11993_v25, %v17893_v50  ;;  %v11995_v62 = vpop.eup %11994 }
 0x59c   : > { %v5559_v22 = vpop.f32.mrb[55].mxu1  ;;  %v5031_v54 = vpop.xlane.xlu1 %5030  ;;  %6531 = vxpose.xlu1.b32.cont [2/16] (narrow) %v10524_v7, 8  ;;  %10641 = vmatprep.mubr.f32.mxu1 %v5263_v34  ;;  %v5285_v26 = vmul.f32 %v11995_v62, %v17894_v0 }
 0x59d   : > { %6511 = vxpose.xlu0.b32.cont [14/16] (narrow) %v10516_v32, 8  ;;  %12004 = vrcp.f32 %v5031_v54 }
 0x59e   : > { %12006 = vrcp.f32 %v5017_v9  ;;  %v5015_v11 = vpop.xlane.xlu0 %5014 }
 0x59f   : > { %v11997_v3 = vpop.eup %11996  ;;  %12008 = vrcp.f32 %v5015_v11  ;;  %10642 = vmatmul.mubr.f32.gmra.mrb[94].mxu1 %v5265_v55 }
 0x5a0   : > { %v11999_v36 = vpop.eup %11998  ;;  %v5037_v53 = vpop.xlane.xlu1 %5036  ;;  %6532 = vxpose.xlu1.b32.cont [3/16] (narrow) %v5559_v22, 8  ;;  %v5283_v19 = vmul.f32 %v11997_v3, %v15707_v60 }
 0x5a1   : > { %v12001_v46 = vpop.eup %12000  ;;  %6512 = vxpose.xlu0.b32.cont [15/16] (narrow) %v5474_v48, 8  ;;  %v5269_v10 = vmul.f32 %v11999_v36, %v17896_v13  ;;  %12010 = vrcp.f32 %v5037_v53 }
 0x5a2   : > { %v5047_v5 = vpop.xlane.xlu0 %5046  ;;  %10658 = vmatprep.mubr.f32.mxu0 %v5283_v19  ;;  %v5267_v47 = vmul.f32 %v12001_v46, %v17895_v15 }
 0x5a3   : > { %10659 = vmatmul.mubr.f32.gmra.mrb[216].mxu0 %v5285_v26  ;;  %v10530_v39 = vpop.f32.mrb[56].mxu1  ;;  %v12003_v60 = vpop.eup %12002 }
 0x5a4   : > { %10644 = vmatprep.mubr.f32.mxu1 %v5267_v47  ;;  %6533 = vxpose.xlu1.b32.cont [4/16] (narrow) %v10527_v18, 8  ;;  %v5035_v58 = vpop.xlane.xlu1 %5034  ;;  %v5569_v6 = vpop.f32.mrb[57].mxu1  ;;  %v5289_v41 = vmul.f32 %v12003_v60, %v15716_v28  ;;  %v15922_v47 = vld [vmem:[#allocation2] sm:$0xff] }
 0x5a5   : > { %6513 = vxpose.xlu0.b32.end [16/16] (narrow) %v10519_v49, 8  ;;  %12012 = vrcp.f32 %v5035_v58  ;;  %10645 = vmatmul.mubr.f32.gmra.mrb[96].mxu1 %v5269_v10  ;;  %v17902_v60 = vld [vmem:[#allocation51_spill] sm:$0xff] }
 0x5a6   : > { %v5051_v42 = vpop.xlane.xlu0 %5050 }
 0x5a7   : > { %v12005_v4 = vpop.eup %12004  ;;  %12014 = vrcp.f32 %v5051_v42 }
 0x5a8   : > { %v12007_v61 = vpop.eup %12006  ;;  %6534 = vxpose.xlu1.b32.cont [5/16] (narrow) %v5569_v6, 8  ;;  %v5041_v32 = vpop.xlane.xlu1 %5040  ;;  %v5287_v45 = vmul.f32 %v12005_v4, %v15729_v31 }
 0x5a9   : > { %v12009_v37 = vpop.eup %12008  ;;  %v5273_v38 = vmul.f32 %v12007_v61, %v17898_v35  ;;  %12016 = vrcp.f32 %v5041_v32 }
 0x5aa   : > { %10661 = vmatprep.mubr.f32.mxu0 %v5287_v45  ;;  %v5271_v30 = vmul.f32 %v12009_v37, %v17897_v21  ;;  %v5055_v63 = vpop.xlane.xlu0 %5054  ;;  %v17903_v37 = vld [vmem:[#allocation39_spill] sm:$0xff]  ;;  %v17904_v21 = vld [vmem:[#allocation50_spill] sm:$0xff] }
 0x5ab   : > { %10662 = vmatmul.mubr.f32.gmra.mrb[218].mxu0 %v5289_v41  ;;  %v12011_v29 = vpop.eup %12010 }
 0x5ac   : > { %10647 = vmatprep.mubr.f32.mxu1 %v5271_v30  ;;  %6535 = vxpose.xlu1.b32.cont [6/16] (narrow) %v10530_v39, 8  ;;  %v5039_v7 = vpop.xlane.xlu1 %5038  ;;  %v5293_v14 = vmul.f32 %v12011_v29, %v17899_v24 }
 0x5ad   : > { %12018 = vrcp.f32 %v5039_v7  ;;  %10648 = vmatmul.mubr.f32.gmra.mrb[98].mxu1 %v5273_v38 }
 0x5ae   : > { %v5059_v33 = vpop.xlane.xlu0 %5058 }
 0x5af   : > { %v12013_v49 = vpop.eup %12012  ;;  %v10533_v52 = vpop.f32.mrb[58].mxu1 }
 0x5b0   : > { %v5579_v31 = vpop.f32.mrb[59].mxu1  ;;  %v5043_v48 = vpop.xlane.xlu1 %5042  ;;  %v5291_v28 = vmul.f32 %v12013_v49, %v15750_v44 }
 0x5b1   : > { %v12015_v8 = vpop.eup %12014  ;;  %12020 = vrcp.f32 %v5043_v48  ;;  %6536 = vxpose.xlu1.b32.cont [7/16] (narrow) %v5579_v31, 8  ;;  %v17905_v31 = vld [vmem:[#allocation54_spill] sm:$0xff] }
 0x5b2   : > { %10664 = vmatprep.mubr.f32.mxu0 %v5291_v28  ;;  %v5307_v43 = vmul.f32 %v12015_v8, %v15756_v56  ;;  %12022 = vrcp.f32 %v5047_v5  ;;  %v5063_v18 = vpop.xlane.xlu0 %5062 }
 0x5b3   : > { %10665 = vmatmul.mubr.f32.gmra.mrb[220].mxu0 %v5293_v14  ;;  %v12017_v9 = vpop.eup %12016 }
 0x5b4   : > { %10678 = vmatprep.mubr.f32.mxu1 %v5307_v43  ;;  %v5045_v25 = vpop.xlane.xlu1 %5044  ;;  %v5297_v22 = vmul.f32 %v12017_v9, %v15763_v51  ;;  %v17900_v51 = vld [vmem:[#allocation94_spill] sm:$0xff]  ;;  %v17906_v43 = vld [vmem:[#allocation52_spill] sm:$0xff] }
 0x5b5   : > { %12024 = vrcp.f32 %v5045_v25  ;;  %6537 = vxpose.xlu1.b32.cont [8/16] (narrow) %v10533_v52, 8 }
 0x5b6   : > { %v5067_v36 = vpop.xlane.xlu0 %5066 }
 0x5b7   : > { %v12019_v40 = vpop.eup %12018 }
 0x5b8   : > { %v5049_v34 = vpop.xlane.xlu1 %5048  ;;  %v5295_v44 = vmul.f32 %v12019_v40, %v15771_v2 }
 0x5b9   : > { %12026 = vrcp.f32 %v5049_v34 }
 0x5ba   : > { %10667 = vmatprep.mubr.f32.mxu0 %v5295_v44  ;;  %12028 = vrcp.f32 %v5055_v63  ;;  %v5071_v26 = vpop.xlane.xlu0 %5070 }
 0x5bb   : > { %v12021_v54 = vpop.eup %12020  ;;  %v10536_v50 = vpop.f32.mrb[60].mxu1  ;;  %10668 = vmatmul.mubr.f32.gmra.mrb[222].mxu0 %v5297_v22 }
 0x5bc   : > { %v5589_v56 = vpop.f32.mrb[61].mxu1  ;;  %v5053_v55 = vpop.xlane.xlu1 %5052  ;;  %v5299_v62 = vmul.f32 %v12021_v54, %v15785_v16 }
 0x5bd   : > { %12030 = vrcp.f32 %v5053_v55  ;;  %6538 = vxpose.xlu1.b32.cont [9/16] (narrow) %v5589_v56, 8  ;;  %v12023_v11 = vpop.eup %12022  ;;  %v17908_v56 = vld [vmem:[#allocation64_spill] sm:$0xff] }
 0x5be   : > { %10670 = vmatprep.mubr.f32.mxu0 %v5299_v62  ;;  %12032 = vrcp.f32 %v5059_v33  ;;  %v5303_v19 = vmul.f32 %v12023_v11, %v17900_v51  ;;  %v5075_v61 = vpop.xlane.xlu0 %5074 }
 0x5bf   : > { %v12025_v3 = vpop.eup %12024 }
 0x5c0   : > { %v5057_v2 = vpop.xlane.xlu1 %5056  ;;  %v5301_v53 = vmul.f32 %v12025_v3, %v15791_v1  ;;  %v17901_v1 = vld [vmem:[#allocation98_spill] sm:$0xff] }
 0x5c1   : > { %12034 = vrcp.f32 %v5057_v2  ;;  %6539 = vxpose.xlu1.b32.cont [10/16] (narrow) %v10536_v50, 8  ;;  %v17909_v2 = vld [vmem:[#allocation75_spill] sm:$0xff] }
 0x5c2   : > { %10671 = vmatmul.mubr.f32.gmra.mrb[224].mxu0 %v5301_v53  ;;  %12036 = vrcp.f32 %v5063_v18  ;;  %v17907_v18 = vld [vmem:[#allocation56_spill] sm:$0xff] }
 0x5c3   : > { %v12027_v46 = vpop.eup %12026  ;;  %10673 = vmatprep.mubr.f32.mxu0 %v5303_v19  ;;  %v5079_v52 = vpop.xlane.xlu0 %5078 }
 0x5c4   : > { %v5061_v0 = vpop.xlane.xlu1 %5060  ;;  %v5305_v16 = vmul.f32 %v12027_v46, %v15799_v57  ;;  %v12029_v5 = vpop.eup %12028 }
 0x5c5   : > { %12038 = vrcp.f32 %v5061_v0  ;;  %v5311_v6 = vmul.f32 %v12029_v5, %v17902_v60 }
 0x5c6   : > { %10674 = vmatmul.mubr.f32.gmra.mrb[226].mxu0 %v5305_v16  ;;  %12040 = vrcp.f32 %v5067_v36 }
 0x5c7   : > { %v12031_v15 = vpop.eup %12030  ;;  %8046 = vmatprep.mubr.f32.mxu0 %v15922_v47  ;;  %v10539_v10 = vpop.f32.mrb[62].mxu1 }
 0x5c8   : > { %v5309_v13 = vmul.f32 %v12031_v15, %v17901_v1  ;;  %v5065_v58 = vpop.xlane.xlu1 %5064  ;;  %v5599_v39 = vpop.f32.mrb[63].mxu1 }
 0x5c9   : > { %12042 = vrcp.f32 %v5065_v58  ;;  %v12033_v42 = vpop.eup %12032  ;;  %6540 = vxpose.xlu1.b32.cont [11/16] (narrow) %v5599_v39, 8 }
 0x5ca   : > { %v10550_v57 = vpop.f32.mrb[180].mxu0  ;;  %10679 = vmatmul.mubr.f32.vlgmr.msra.gmra.mrb[100].mxu1 %v5309_v13  ;;  %12044 = vrcp.f32 %v5071_v26  ;;  %v5315_v30 = vmul.f32 %v12033_v42, %v17904_v21 }
 0x5cb   : > { %v12035_v4 = vpop.eup %12034  ;;  %v5694_v32 = vpop.f32.mrb[181].mxu0  ;;  %10681 = vmatprep.mubr.f32.mxu1 %v5311_v6 }
 0x5cc   : > { %v5069_v45 = vpop.xlane.xlu1 %5068  ;;  %6562 = vxpose.xlu0.b32.start [1/16] (narrow) %v5694_v32, 8  ;;  %v5313_v41 = vmul.f32 %v12035_v4, %v17903_v37  ;;  %v12037_v35 = vpop.eup %12036 }
 0x5cd   : > { %12046 = vrcp.f32 %v5069_v45  ;;  %6541 = vxpose.xlu1.b32.cont [12/16] (narrow) %v10539_v10, 8  ;;  %v5319_v48 = vmul.f32 %v12037_v35, %v17905_v31 }
 0x5ce   : > { %10682 = vmatmul.mubr.f32.gmra.mrb[102].mxu1 %v5313_v41  ;;  %12048 = vrcp.f32 %v5075_v61 }
 0x5cf   : > { %v12039_v38 = vpop.eup %12038  ;;  %v10542_v7 = vpop.f32.mrb[64].mxu1  ;;  %10684 = vmatprep.mubr.f32.mxu1 %v5315_v30 }
 0x5d0   : > { %v5073_v63 = vpop.xlane.xlu1 %5072  ;;  %v5609_v29 = vpop.f32.mrb[65].mxu1  ;;  %6563 = vxpose.xlu0.b32.cont [2/16] (narrow) %v10550_v57, 8  ;;  %v5317_v49 = vmul.f32 %v12039_v38, %v15820_v27 }
 0x5d1   : > { %12050 = vrcp.f32 %v5073_v63  ;;  %v12041_v28 = vpop.eup %12040  ;;  %6542 = vxpose.xlu1.b32.cont [13/16] (narrow) %v5609_v29, 8  ;;  %v7710_v63 = vld [vmem:[%s17326_s8 + $0x80] sm:$0xff]  ;;  %v7711_v29 = vld [vmem:[%s17326_s8 + $0x88] sm:$0xff] }
 0x5d2   : > { %10685 = vmatmul.mubr.f32.gmra.mrb[104].mxu1 %v5317_v49  ;;  %12052 = vrcp.f32 %v5079_v52  ;;  %v5323_v33 = vmul.f32 %v12041_v28, %v17906_v43  ;;  %v7742_v49 = vld [vmem:[%s17326_s8 + $0x180] sm:$0xff]  ;;  %v11150_v31 = vpack.c.bf16 %v7711_v29, %v7710_v63  ;;  %v7695_v28 = vld [vmem:[%s17326_s8 + $0x8] sm:$0xff] }
 0x5d3   : > { %v12043_v8 = vpop.eup %12042  ;;  %10687 = vmatprep.mubr.f32.mxu1 %v5319_v48  ;;  %v7694_v48 = vld [vmem:[%s17326_s8] sm:$0xff] }
 0x5d4   : > { %v5077_v24 = vpop.xlane.xlu1 %5076  ;;  %v5321_v14 = vmul.f32 %v12043_v8, %v15830_v20  ;;  %v12045_v25 = vpop.eup %12044  ;;  %v7743_v8 = vld [vmem:[%s17326_s8 + $0x188] sm:$0xff]  ;;  %11151 = vmatprep.subr.bf16.mxu0 %v11150_v31  ;;  %v7702_v29 = vld [vmem:[%s17326_s8 + $0x40] sm:$0xff] }
 0x5d5   : > { %12054 = vrcp.f32 %v5077_v24  ;;  %6543 = vxpose.xlu1.b32.cont [14/16] (narrow) %v10542_v7, 8  ;;  %v5327_v22 = vmul.f32 %v12045_v25, %v17907_v18  ;;  %v11182_v43 = vpack.c.bf16 %v7743_v8, %v7742_v49  ;;  %v7727_v25 = vld [vmem:[%s17326_s8 + $0x108] sm:$0xff]  ;;  %v7734_v31 = vld [vmem:[%s17326_s8 + $0x140] sm:$0xff]  ;;  %v7721_v8 = vld [vmem:[%s17326_s8 + $0xd8] sm:$0xff] }
 0x5d6   : > { %10688 = vmatmul.mubr.f32.gmra.mrb[106].mxu1 %v5321_v14  ;;  %v11152_v14 = vpack.c.bf16 %v7695_v28, %v7694_v48  ;;  %v7703_v49 = vld [vmem:[%s17326_s8 + $0x48] sm:$0xff]  ;;  %v7720_v28 = vld [vmem:[%s17326_s8 + $0xd0] sm:$0xff] }
 0x5d7   : > { %v12047_v27 = vpop.eup %12046  ;;  %v10545_v9 = vpop.f32.mrb[66].mxu1  ;;  %10690 = vmatprep.mubr.f32.mxu1 %v5323_v33  ;;  %v7726_v33 = vld [vmem:[%s17326_s8 + $0x100] sm:$0xff]  ;;  %11183 = vmatprep.subr.bf16.mxu1 %v11182_v43  ;;  %v11168_v48 = vpack.c.bf16 %v7703_v49, %v7702_v29  ;;  %v11170_v43 = vpack.c.bf16 %v7721_v8, %v7720_v28  ;;  %v6893_v49 = vld [vmem:[#allocation4 + $0x10] sm:$0x1]  ;;  %v7759_v8 = vld [vmem:[%s17326_s8 + $0x208] sm:$0xff] }
 0x5d8   : > { %v5081_v40 = vpop.xlane.xlu1 %5080  ;;  %v5619_v34 = vpop.f32.mrb[67].mxu1  ;;  %v5325_v44 = vmul.f32 %v12047_v27, %v15836_v23  ;;  %11153 = vmatpush3.bf16.msra.mxu0 %v11152_v14  ;;  %v7735_v14 = vld [vmem:[%s17326_s8 + $0x148] sm:$0xff]  ;;  %v7758_v28 = vld [vmem:[%s17326_s8 + $0x200] sm:$0xff] }
 0x5d9   : > { %12056 = vrcp.f32 %v5081_v40  ;;  %v12049_v54 = vpop.eup %12048  ;;  %6544 = vxpose.xlu1.b32.cont [15/16] (narrow) %v5619_v34, 8  ;;  %v7712_v40 = vld [vmem:[%s17326_s8 + $0x90] sm:$0xff]  ;;  %v7713_v34 = vld [vmem:[%s17326_s8 + $0x98] sm:$0xff] }
 0x5da   : > { %10691 = vmatmul.mubr.f32.gmra.mrb[108].mxu1 %v5325_v44  ;;  %v5331_v55 = vmul.f32 %v12049_v54, %v17908_v56  ;;  %v7744_v44 = vld [vmem:[%s17326_s8 + $0x190] sm:$0xff]  ;;  %v11154_v18 = vpack.c.bf16 %v7713_v34, %v7712_v40  ;;  %v7697_v54 = vld [vmem:[%s17326_s8 + $0x18] sm:$0xff] }
 0x5db   : > { %v12051_v20 = vpop.eup %12050  ;;  %10693 = vmatprep.mubr.f32.mxu1 %v5327_v22  ;;  %v7696_v22 = vld [vmem:[%s17326_s8 + $0x10] sm:$0xff]  ;;  %v7705_v40 = vld [vmem:[%s17326_s8 + $0x58] sm:$0xff] }
 0x5dc   : > { %v5329_v50 = vmul.f32 %v12051_v20, %v15839_v59  ;;  %v12053_v62 = vpop.eup %12052  ;;  %v7745_v20 = vld [vmem:[%s17326_s8 + $0x198] sm:$0xff]  ;;  %11155 = vmatprep.subr.bf16.mxu0 %v11154_v18 }
 0x5dd   : > { %6545 = vxpose.xlu1.b32.end [16/16] (narrow) %v10545_v9, 8  ;;  %v5335_v53 = vmul.f32 %v12053_v62, %v17909_v2  ;;  %v11184_v9 = vpack.c.bf16 %v7727_v25, %v7726_v33  ;;  %v11186_v56 = vpack.c.bf16 %v7745_v20, %v7744_v44  ;;  %v7715_v62 = vld [vmem:[%s17326_s8 + $0xa8] sm:$0xff]  ;;  %v11200_v33 = vpack.c.bf16 %v7735_v14, %v7734_v31  ;;  %v7753_v25 = vld [vmem:[%s17326_s8 + $0x1d8] sm:$0xff]  ;;  %v7736_v44 = vld [vmem:[%s17326_s8 + $0x150] sm:$0xff] }
 0x5de   : > { %10694 = vmatmul.mubr.f32.gmra.mrb[110].mxu1 %v5329_v50  ;;  %v10553_v3 = vpop.f32.mrb[182].mxu0  ;;  %v11156_v50 = vpack.c.bf16 %v7697_v54, %v7696_v22  ;;  %v7722_v22 = vld [vmem:[%s17326_s8 + $0xe0] sm:$0xff]  ;;  %v7723_v54 = vld [vmem:[%s17326_s8 + $0xe8] sm:$0xff]  ;;  %v7737_v20 = vld [vmem:[%s17326_s8 + $0x158] sm:$0xff] }
 0x5df   : > { %v12055_v11 = vpop.eup %12054  ;;  %10696 = vmatprep.mubr.f32.mxu1 %v5331_v55  ;;  %v5704_v36 = vpop.f32.mrb[183].mxu0  ;;  %11185 = vmatpush3.bf16.msra.mxu1 %v11184_v9  ;;  %v7714_v55 = vld [vmem:[%s17326_s8 + $0xa0] sm:$0xff]  ;;  %v7704_v9 = vld [vmem:[%s17326_s8 + $0x50] sm:$0xff] }
 0x5e0   : > { %v5333_v23 = vmul.f32 %v12055_v11, %v15842_v17  ;;  %6564 = vxpose.xlu0.b32.cont [3/16] (narrow) %v5704_v36, 8  ;;  %v7728_v11 = vld [vmem:[%s17326_s8 + $0x110] sm:$0xff]  ;;  %v7729_v36 = vld [vmem:[%s17326_s8 + $0x118] sm:$0xff]  ;;  %11157 = vmatpush3.bf16.msra.mxu0 %v11156_v50  ;;  %v11172_v18 = vpack.c.bf16 %v7705_v40, %v7704_v9  ;;  %v11174_v50 = vpack.c.bf16 %v7723_v54, %v7722_v22  ;;  %v7807_v9 = vld [vmem:[%s17326_s8 + $0x388] sm:$0xff] }
 0x5e1   : > { %11187 = vmatprep.subr.bf16.mxu1 %v11186_v56  ;;  %v11188_v2 = vpack.c.bf16 %v7729_v36, %v7728_v11  ;;  %v11204_v56 = vpack.c.bf16 %v7737_v20, %v7736_v44  ;;  %v7755_v11 = vld [vmem:[%s17326_s8 + $0x1e8] sm:$0xff]  ;;  %v7776_v40 = vld [vmem:[%s17326_s8 + $0x290] sm:$0xff]  ;;  %v7790_v22 = vld [vmem:[%s17326_s8 + $0x300] sm:$0xff] }
 0x5e2   : > { %10697 = vmatmul.mubr.f32.gmra.mrb[112].mxu1 %v5333_v23  ;;  %v10556_v19 = vpop.f32.mrb[184].mxu0  ;;  %v7791_v54 = vld [vmem:[%s17326_s8 + $0x308] sm:$0xff] }
 0x5e3   : > { %v12057_v51 = vpop.eup %12056  ;;  %10699 = vmatprep.mubr.f32.mxu1 %v5335_v53  ;;  %v5714_v46 = vpop.f32.mrb[185].mxu0  ;;  %v7746_v53 = vld [vmem:[%s17326_s8 + $0x1a0] sm:$0xff]  ;;  %11189 = vmatpush3.bf16.msra.mxu1 %v11188_v2  ;;  %v7707_v2 = vld [vmem:[%s17326_s8 + $0x68] sm:$0xff] }
 0x5e4   : > { %v5337_v59 = vmul.f32 %v12057_v51, %v15847_v12  ;;  %6565 = vxpose.xlu0.b32.cont [4/16] (narrow) %v10553_v3, 8  ;;  %v11158_v3 = vpack.c.bf16 %v7715_v62, %v7714_v55  ;;  %v7747_v51 = vld [vmem:[%s17326_s8 + $0x1a8] sm:$0xff]  ;;  %v7754_v62 = vld [vmem:[%s17326_s8 + $0x1e0] sm:$0xff] }
 0x5e6   : > { %10700 = vmatmul.mubr.f32.gmra.mrb[114].mxu1 %v5337_v59  ;;  %11159 = vmatprep.subr.bf16.mxu0 %v11158_v3  ;;  %v7699_v59 = vld [vmem:[%s17326_s8 + $0x28] sm:$0xff] }
 0x5e8   : > { %6566 = vxpose.xlu0.b32.cont [5/16] (narrow) %v5714_v46, 8  ;;  %v7698_v46 = vld [vmem:[%s17326_s8 + $0x20] sm:$0xff] }
 0x5ea   : > { %v10559_v0 = vpop.f32.mrb[186].mxu0 }
 0x5eb   : > { %v5724_v16 = vpop.f32.mrb[187].mxu0 }
 0x5ec   : > { %6567 = vxpose.xlu0.b32.cont [6/16] (narrow) %v10556_v19, 8 }
 0x5f0   : > { %6568 = vxpose.xlu0.b32.cont [7/16] (narrow) %v5724_v16, 8  ;;  %v7730_v16 = vld [vmem:[%s17326_s8 + $0x120] sm:$0xff] }
 0x5f4   : > { %6569 = vxpose.xlu0.b32.cont [8/16] (narrow) %v10559_v0, 8  ;;  %v11190_v0 = vpack.c.bf16 %v7747_v51, %v7746_v53  ;;  %v11206_v53 = vpack.c.bf16 %v7755_v11, %v7754_v62  ;;  %v7738_v51 = vld [vmem:[%s17326_s8 + $0x160] sm:$0xff]  ;;  %v7760_v11 = vld [vmem:[%s17326_s8 + $0x210] sm:$0xff] }
 0x5f6   : > { %v10562_v26 = vpop.f32.mrb[188].mxu0  ;;  %11191 = vmatprep.subr.bf16.mxu1 %v11190_v0  ;;  %v7725_v0 = vld [vmem:[%s17326_s8 + $0xf8] sm:$0xff] }
 0x5f7   : > { %v5734_v17 = vpop.f32.mrb[189].mxu0 }
 0x5f8   : > { %6570 = vxpose.xlu0.b32.cont [9/16] (narrow) %v5734_v17, 8  ;;  %v11160_v17 = vpack.c.bf16 %v7699_v59, %v7698_v46  ;;  %v7724_v59 = vld [vmem:[%s17326_s8 + $0xf0] sm:$0xff] }
 0x5fa   : > { %11161 = vmatpush3.bf16.msra.mxu0 %v11160_v17  ;;  %v12063_v17 = vld [vmem:[#allocation2 + $0x11] sm:$0xff] }
 0x5fc   : > { %6571 = vxpose.xlu0.b32.cont [10/16] (narrow) %v10562_v26, 8 }
 0x602   : > { %v10565_v5 = vpop.f32.mrb[190].mxu0 }
 0x603   : > { %v5744_v15 = vpop.f32.mrb[191].mxu0 }
 0x604   : > { %6572 = vxpose.xlu0.b32.cont [11/16] (narrow) %v5744_v15, 8  ;;  %v7717_v15 = vld [vmem:[%s17326_s8 + $0xb8] sm:$0xff] }
 0x608   : > { %6573 = vxpose.xlu0.b32.cont [12/16] (narrow) %v10565_v5, 8  ;;  %v7716_v5 = vld [vmem:[%s17326_s8 + $0xb0] sm:$0xff] }
 0x60e   : > { %v10568_v1 = vpop.f32.mrb[192].mxu0 }
 0x60f   : > { %v5754_v13 = vpop.f32.mrb[193].mxu0 }
 0x610   : > { %6574 = vxpose.xlu0.b32.cont [13/16] (narrow) %v5754_v13, 8 }
 0x612   : > { %v10571_v12 = vpop.f32.mrb[194].mxu0 }
 0x613   : > { %v5764_v10 = vpop.f32.mrb[195].mxu0 }
 0x614   : > { %6575 = vxpose.xlu0.b32.cont [14/16] (narrow) %v10568_v1, 8  ;;  %v7731_v1 = vld [vmem:[%s17326_s8 + $0x128] sm:$0xff] }
 0x618   : > { %6576 = vxpose.xlu0.b32.cont [15/16] (narrow) %v5764_v10, 8  ;;  %v11192_v10 = vpack.c.bf16 %v7731_v1, %v7730_v16  ;;  %v7739_v16 = vld [vmem:[%s17326_s8 + $0x168] sm:$0xff] }
 0x619   : > { %v11208_v1 = vpack.c.bf16 %v7739_v16, %v7738_v51  ;;  %v7809_v16 = vld [vmem:[%s17326_s8 + $0x398] sm:$0xff] }
 0x61a   : > { %11193 = vmatpush3.bf16.msra.mxu1 %v11192_v10  ;;  %v7757_v10 = vld [vmem:[%s17326_s8 + $0x1f8] sm:$0xff] }
 0x61c   : > { %6577 = vxpose.xlu0.b32.end [16/16] (narrow) %v10571_v12, 8  ;;  %v11162_v12 = vpack.c.bf16 %v7717_v15, %v7716_v5  ;;  %v6810_v5 = vrot.slane %v12063_v17, 7  ;;  %v11178_v15 = vpack.c.bf16 %v7725_v0, %v7724_v59  ;;  %v7808_v0 = vld [vmem:[%s17326_s8 + $0x390] sm:$0xff] }
 0x61e   : > { %v10576_v58 = vpop.f32.mrb[68].mxu1  ;;  %11163 = vmatprep.subr.bf16.mxu0 %v11162_v12  ;;  %v7756_v12 = vld [vmem:[%s17326_s8 + $0x1f0] sm:$0xff]  ;;  %6843 = vst [vmem:[#allocation4 + $0x20] sm:$0xfe] %v6810_v5  ;;  %6845 = vst [vmem:[#allocation4 + $0x30] sm:$0x1] %v6810_v5 }
 0x61f   : > { %v5839_v39 = vpop.f32.mrb[69].mxu1 }
 0x620   : > { %6594 = vxpose.xlu1.b32.start [1/16] (narrow) %v5839_v39, 8  ;;  %v7749_v39 = vld [vmem:[%s17326_s8 + $0x1b8] sm:$0xff] }
 0x621   : > { %v6546_v46 = vpop.trf.xlu1 }
 0x622   : > { %v10579_v60 = vpop.f32.mrb[70].mxu1 }
 0x623   : > { %v5849_v6 = vpop.f32.mrb[71].mxu1 }
 0x624   : > { %6595 = vxpose.xlu1.b32.cont [2/16] (narrow) %v10576_v58, 8  ;;  %v7748_v58 = vld [vmem:[%s17326_s8 + $0x1b0] sm:$0xff] }
 0x625   : > { %v16191_v62 = vld [vmem:[#allocation4 + $0x20] sm:$0xff] }
 0x626   : > { %v10582_v42 = vpop.f32.mrb[72].mxu1  ;;  %v10602_v57 = vpop.f32.mrb[196].mxu0  ;;  %v6895_v51 = vld [vmem:[#allocation4 + $0x20] sm:$0xfe] }
 0x627   : > { %v5859_v4 = vpop.f32.mrb[73].mxu1  ;;  %v5984_v61 = vpop.f32.mrb[197].mxu0 }
 0x628   : > { %6626 = vxpose.xlu0.b32.start [1/16] (narrow) %v5984_v61, 8  ;;  %6596 = vxpose.xlu1.b32.cont [3/16] (narrow) %v5849_v6, 8  ;;  %v7701_v6 = vld [vmem:[%s17326_s8 + $0x38] sm:$0xff]  ;;  %v7718_v61 = vld [vmem:[%s17326_s8 + $0xc0] sm:$0xff] }
 0x62a   : > { %v10585_v32 = vpop.f32.mrb[74].mxu1 }
 0x62b   : > { %v5869_v45 = vpop.f32.mrb[75].mxu1 }
 0x62c   : > { %6627 = vxpose.xlu0.b32.cont [2/16] (narrow) %v10602_v57, 8  ;;  %6597 = vxpose.xlu1.b32.cont [4/16] (narrow) %v10579_v60, 8  ;;  %v7700_v60 = vld [vmem:[%s17326_s8 + $0x30] sm:$0xff] }
 0x62d   : > { %v7732_v57 = vld [vmem:[%s17326_s8 + $0x130] sm:$0xff] }
 0x62e   : > { %v15940_v37 = vpop.f32.mrb[76].mxu1  ;;  %v10605_v41 = vpop.f32.mrb[198].mxu0 }
 0x62f   : > { %v5879_v21 = vpop.f32.mrb[77].mxu1  ;;  %v5994_v30 = vpop.f32.mrb[199].mxu0 }
 0x630   : > { %6628 = vxpose.xlu0.b32.cont [3/16] (narrow) %v5994_v30, 8  ;;  %6598 = vxpose.xlu1.b32.cont [5/16] (narrow) %v5859_v4, 8  ;;  %v11164_v4 = vpack.c.bf16 %v7701_v6, %v7700_v60  ;;  %v11210_v60 = vpack.c.bf16 %v7757_v10, %v7756_v12  ;;  %v7740_v6 = vld [vmem:[%s17326_s8 + $0x170] sm:$0xff]  ;;  %v7779_v12 = vld [vmem:[%s17326_s8 + $0x2a8] sm:$0xff] }
 0x631   : > { %v7792_v10 = vld [vmem:[%s17326_s8 + $0x310] sm:$0xff] }
 0x632   : > { %v15942_v35 = vpop.f32.mrb[78].mxu1  ;;  %11165 = vmatpush3.bf16.msra.mxu0 %v11164_v4  ;;  %v7774_v4 = vld [vmem:[%s17326_s8 + $0x280] sm:$0xff] }
 0x633   : > { %v15944_v38 = vpop.f32.mrb[79].mxu1 }
 0x634   : > { %6629 = vxpose.xlu0.b32.cont [4/16] (narrow) %v10605_v41, 8  ;;  %6599 = vxpose.xlu1.b32.cont [6/16] (narrow) %v10582_v42, 8  ;;  %v11194_v42 = vpack.c.bf16 %v7749_v39, %v7748_v58  ;;  %v7708_v58 = vld [vmem:[%s17326_s8 + $0x70] sm:$0xff]  ;;  %v7709_v39 = vld [vmem:[%s17326_s8 + $0x78] sm:$0xff] }
 0x636   : > { %v10608_v7 = vpop.f32.mrb[200].mxu0  ;;  %11195 = vmatprep.subr.bf16.mxu1 %v11194_v42  ;;  %v11180_v42 = vpack.c.bf16 %v7709_v39, %v7708_v58  ;;  %v12066_v58 = vld [vmem:[#allocation2 + $0x41] sm:$0xff] }
 0x637   : > { %v6004_v52 = vpop.f32.mrb[201].mxu0  ;;  %v6816_v39 = vrot.slane %v12066_v58, 7 }
 0x638   : > { %v15964_v24 = vpop.f32.mrb[80].mxu1  ;;  %6630 = vxpose.xlu0.b32.cont [5/16] (narrow) %v6004_v52, 8  ;;  %6600 = vxpose.xlu1.b32.cont [7/16] (narrow) %v5869_v45, 8  ;;  %v7733_v45 = vld [vmem:[%s17326_s8 + $0x138] sm:$0xff] }
 0x639   : > { %v15972_v27 = vpop.f32.mrb[81].mxu1  ;;  %6855 = vst [vmem:[#allocation4 + $0x80] sm:$0xfe] %v6816_v39  ;;  %6857 = vst [vmem:[#allocation4 + $0x90] sm:$0x1] %v6816_v39 }
 0x63c   : > { %6631 = vxpose.xlu0.b32.cont [6/16] (narrow) %v10608_v7, 8  ;;  %6601 = vxpose.xlu1.b32.cont [8/16] (narrow) %v10585_v32, 8  ;;  %v7719_v32 = vld [vmem:[%s17326_s8 + $0xc8] sm:$0xff] }
 0x63d   : > { %v11166_v41 = vpack.c.bf16 %v7719_v32, %v7718_v61  ;;  %v7751_v7 = vld [vmem:[%s17326_s8 + $0x1c8] sm:$0xff] }
 0x63e   : > { %v10611_v23 = vpop.f32.mrb[202].mxu0  ;;  %v7775_v61 = vld [vmem:[%s17326_s8 + $0x288] sm:$0xff] }
 0x63f   : > { %v6014_v19 = vpop.f32.mrb[203].mxu0  ;;  %11167 = vmatprep.subr.bf16.mxu0 %v11166_v41  ;;  %v12064_v32 = vld [vmem:[#allocation2 + $0x21] sm:$0xff] }
 0x640   : > { %v16019_v26 = vpop.f32.mrb[82].mxu1  ;;  %6632 = vxpose.xlu0.b32.cont [7/16] (narrow) %v6014_v19, 8  ;;  %6602 = vxpose.xlu1.b32.cont [9/16] (narrow) %v5879_v21, 8  ;;  %v11196_v21 = vpack.c.bf16 %v7733_v45, %v7732_v57  ;;  %v7741_v57 = vld [vmem:[%s17326_s8 + $0x178] sm:$0xff]  ;;  %v6812_v45 = vrot.slane %v12064_v32, 7 }
 0x641   : > { %v16030_v13 = vpop.f32.mrb[83].mxu1  ;;  %11169 = vmatpush3.bf16.msra.mxu0 %v11168_v48  ;;  %v11212_v41 = vpack.c.bf16 %v7741_v57, %v7740_v6  ;;  %v6957_v48 = vrot.slane %v6893_v49, 1  ;;  %v7762_v57 = vld [vmem:[%s17326_s8 + $0x220] sm:$0xff] }
 0x642   : > { %11197 = vmatpush3.bf16.msra.mxu1 %v11196_v21  ;;  %11171 = vmatprep.subr.bf16.mxu0 %v11170_v43  ;;  %v11214_v21 = vpack.c.bf16 %v7775_v61, %v7774_v4  ;;  %6847 = vst [vmem:[#allocation4 + $0x40] sm:$0xfe] %v6812_v45  ;;  %6849 = vst [vmem:[#allocation4 + $0x50] sm:$0x1] %v6812_v45  ;;  %v7763_v4 = vld [vmem:[%s17326_s8 + $0x228] sm:$0xff]  ;;  %v12067_v61 = vld [vmem:[#allocation2 + $0x51] sm:$0xff] }
 0x643   : > { %v6818_v32 = vrot.slane %v12067_v61, 7 }
 0x644   : > { %6633 = vxpose.xlu0.b32.cont [8/16] (narrow) %v10611_v23, 8  ;;  %6603 = vxpose.xlu1.b32.cont [10/16] (narrow) %v15940_v37, 8  ;;  %v7750_v37 = vld [vmem:[%s17326_s8 + $0x1c0] sm:$0xff] }
 0x645   : > { %v11198_v52 = vpack.c.bf16 %v7751_v7, %v7750_v37  ;;  %11173 = vmatpush3.bf16.msra.mxu0 %v11172_v18  ;;  %v7706_v23 = vld [vmem:[%s17326_s8 + $0x60] sm:$0xff]  ;;  %v7777_v18 = vld [vmem:[%s17326_s8 + $0x298] sm:$0xff]  ;;  %6859 = vst [vmem:[#allocation4 + $0xa0] sm:$0xfe] %v6818_v32  ;;  %6861 = vst [vmem:[#allocation4 + $0xb0] sm:$0x1] %v6818_v32 }
 0x646   : > { %v10614_v30 = vpop.f32.mrb[204].mxu0  ;;  %11175 = vmatprep.subr.bf16.mxu0 %v11174_v50  ;;  %v11176_v19 = vpack.c.bf16 %v7707_v2, %v7706_v23  ;;  %v6891_v37 = vld [vmem:[#allocation4] sm:$0xfe]  ;;  %v11218_v50 = vpack.c.bf16 %v7777_v18, %v7776_v40  ;;  %v7795_v40 = vld [vmem:[%s17326_s8 + $0x328] sm:$0xff]  ;;  %v7765_v18 = vld [vmem:[%s17326_s8 + $0x238] sm:$0xff] }
 0x647   : > { %v6024_v63 = vpop.f32.mrb[205].mxu0  ;;  %11199 = vmatprep.subr.bf16.mxu1 %v11198_v52  ;;  %v6956_v31 = vrot.slane %v6891_v37, 1  ;;  %v7810_v37 = vld [vmem:[%s17326_s8 + $0x3a0] sm:$0xff] }
 0x648   : > { %6634 = vxpose.xlu0.b32.cont [9/16] (narrow) %v6024_v63, 8  ;;  %6604 = vxpose.xlu1.b32.cont [11/16] (narrow) %v15944_v38, 8  ;;  %v7752_v38 = vld [vmem:[%s17326_s8 + $0x1d0] sm:$0xff]  ;;  %v7814_v32 = vld [vmem:[%s17326_s8 + $0x3c0] sm:$0xff] }
 0x649   : > { %v11202_v34 = vpack.c.bf16 %v7753_v25, %v7752_v38  ;;  %11201 = vmatpush3.bf16.msra.mxu1 %v11200_v33  ;;  %11177 = vmatpush3.bf16.msra.mxu0 %v11176_v19  ;;  %v12065_v33 = vld [vmem:[#allocation2 + $0x31] sm:$0xff]  ;;  %v11216_v25 = vpack.c.bf16 %v7759_v8, %v7758_v28  ;;  %v6897_v19 = vld [vmem:[#allocation4 + $0x30] sm:$0x1]  ;;  %v16207_v17 = vld [vmem:[#allocation4 + $0x40] sm:$0xff] }
 0x64a   : > { %11179 = vmatprep.subr.bf16.mxu0 %v11178_v15  ;;  %v6814_v38 = vrot.slane %v12065_v33, 7  ;;  %v6963_v59 = vrot.slane %v6897_v19, 1  ;;  %v11250_v15 = vpack.c.bf16 %v7809_v16, %v7808_v0  ;;  %v6901_v28 = vld [vmem:[#allocation4 + $0x50] sm:$0x1]  ;;  %v7783_v19 = vld [vmem:[%s17326_s8 + $0x2c8] sm:$0xff] }
 0x64b   : > { %11203 = vmatprep.subr.bf16.mxu1 %v11202_v34  ;;  %v7780_v33 = vld [vmem:[%s17326_s8 + $0x2b0] sm:$0xff] }
 0x64c   : > { %6635 = vxpose.xlu0.b32.cont [10/16] (narrow) %v10614_v30, 8  ;;  %6605 = vxpose.xlu1.b32.cont [12/16] (narrow) %v15942_v35, 8  ;;  %v6514_v35 = vpop.trf.xlu0  ;;  %v6892_v30 = vld [vmem:[#allocation4 + $0x8] sm:$0xfe]  ;;  %6851 = vst [vmem:[#allocation4 + $0x60] sm:$0xfe] %v6814_v38 }
 0x64d   : > { %v6811_v36 = vrot.slane %v6514_v35, 7  ;;  %11205 = vmatpush3.bf16.msra.mxu1 %v11204_v56  ;;  %11181 = vmatpush3.bf16.msra.mxu0 %v11180_v42  ;;  %v6959_v63 = vrot.slane %v6892_v30, 1  ;;  %6853 = vst [vmem:[#allocation4 + $0x70] sm:$0x1] %v6814_v38  ;;  %v11248_v56 = vpack.c.bf16 %v7791_v54, %v7790_v22  ;;  %v7793_v42 = vld [vmem:[%s17326_s8 + $0x318] sm:$0xff]  ;;  %v12068_v54 = vld [vmem:[#allocation2 + $0x61] sm:$0xff] }
 0x64e   : > { %v10617_v55 = vpop.f32.mrb[206].mxu0  ;;  %11207 = vmatprep.subr.bf16.mxu1 %v11206_v53  ;;  %11215 = vmatprep.subr.bf16.mxu0 %v11214_v21  ;;  %v11252_v21 = vpack.c.bf16 %v7793_v42, %v7792_v10  ;;  %v7796_v16 = vld [vmem:[%s17326_s8 + $0x330] sm:$0xff] }
 0x64f   : > { %v6034_v3 = vpop.f32.mrb[207].mxu0  ;;  %6844 = vst [vmem:[#allocation4 + $0x28] sm:$0xfe] %v6811_v36  ;;  %6846 = vst [vmem:[#allocation4 + $0x38] sm:$0x1] %v6811_v36 }
 0x650   : > { %6636 = vxpose.xlu0.b32.cont [11/16] (narrow) %v6034_v3, 8  ;;  %6606 = vxpose.xlu1.b32.cont [13/16] (narrow) %v15972_v27, 8  ;;  %v6813_v27 = vrot.slane %v6546_v46, 7  ;;  %v7761_v3 = vld [vmem:[%s17326_s8 + $0x218] sm:$0xff]  ;;  %v6962_v46 = vrot.slane %v6895_v51, 1  ;;  %v7782_v51 = vld [vmem:[%s17326_s8 + $0x2c0] sm:$0xff] }
 0x651   : > { %11209 = vmatpush3.bf16.msra.mxu1 %v11208_v1  ;;  %8047 = vmatmul.mubr.f32.vlgmr.msra.gmra.mrb[228].mxu0 %v15922_v47  ;;  %v6958_v47 = vsel %vm6955_vm1, %v6956_v31, %v6957_v48  ;;  %v11220_v23 = vpack.c.bf16 %v7761_v3, %v7760_v11  ;;  %v7778_v1 = vld [vmem:[%s17326_s8 + $0x2a0] sm:$0xff]  ;;  %v7811_v31 = vld [vmem:[%s17326_s8 + $0x3a8] sm:$0xff]  ;;  %v7812_v3 = vld [vmem:[%s17326_s8 + $0x3b0] sm:$0xff]  ;;  %v11230_v0 = vpack.c.bf16 %v7783_v19, %v7782_v51 }
 0x652   : > { %6848 = vst [vmem:[#allocation4 + $0x48] sm:$0xfe] %v6813_v27  ;;  %6850 = vst [vmem:[#allocation4 + $0x58] sm:$0x1] %v6813_v27  ;;  %11211 = vmatprep.subr.bf16.mxu1 %v11210_v60  ;;  %11217 = vmatpush3.bf16.msra.mxu0 %v11216_v25  ;;  %v6964_v6 = vsel %vm6955_vm1, %v6962_v46, %v6963_v59  ;;  %v6969_v25 = vrot.slane %v6901_v28, 1  ;;  %v7769_v28 = vld [vmem:[%s17326_s8 + $0x258] sm:$0xff] }
 0x653   : > { %11219 = vmatprep.subr.bf16.mxu0 %v11218_v50  ;;  %v6903_v22 = vld [vmem:[#allocation4 + $0x60] sm:$0xfe] }
 0x654   : > { %6637 = vxpose.xlu0.b32.cont [12/16] (narrow) %v10617_v55, 8  ;;  %6607 = vxpose.xlu1.b32.cont [14/16] (narrow) %v15964_v24, 8  ;;  %v6894_v24 = vld [vmem:[#allocation4 + $0x18] sm:$0x1]  ;;  %v6905_v11 = vld [vmem:[#allocation4 + $0x70] sm:$0x1] }
 0x655   : > { %v6960_v29 = vrot.slane %v6894_v24, 1  ;;  %11213 = vmatpush3.bf16.msra.mxu1 %v11212_v41  ;;  %v11222_v41 = vpack.c.bf16 %v7779_v12, %v7778_v1  ;;  %v6975_v46 = vrot.slane %v6905_v11, 1  ;;  %v7766_v1 = vld [vmem:[%s17326_s8 + $0x240] sm:$0xff]  ;;  %v7767_v12 = vld [vmem:[%s17326_s8 + $0x248] sm:$0xff] }
 0x656   : > { %v10620_v7 = vpop.f32.mrb[208].mxu0  ;;  %v16165_v43 = vld [vmem:[#allocation4 + $0x28] sm:$0xff]  ;;  %v6898_v35 = vld [vmem:[#allocation4 + $0x38] sm:$0x1]  ;;  %11221 = vmatpush3.bf16.msra.mxu0 %v11220_v23  ;;  %v7818_v11 = vld [vmem:[%s17326_s8 + $0x3e0] sm:$0xff] }
 0x657   : > { %v6044_v52 = vpop.f32.mrb[209].mxu0  ;;  %v6961_v14 = vsel %vm6955_vm1, %v6959_v63, %v6960_v29  ;;  %8051 = vmatprep.mubr.f32.mxu0 %v16165_v43  ;;  %v6896_v55 = vld [vmem:[#allocation4 + $0x28] sm:$0xfe]  ;;  %v6966_v2 = vrot.slane %v6898_v35, 1  ;;  %v11224_v63 = vpack.c.bf16 %v7763_v4, %v7762_v57  ;;  %11223 = vmatprep.subr.bf16.mxu0 %v11222_v41 }
 0x658   : > { %6638 = vxpose.xlu0.b32.cont [13/16] (narrow) %v6044_v52, 8  ;;  %6608 = vxpose.xlu1.b32.cont [15/16] (narrow) %v16030_v13, 8  ;;  %v7806_v13 = vld [vmem:[%s17326_s8 + $0x380] sm:$0xff]  ;;  %v6965_v36 = vrot.slane %v6896_v55, 1 }
 0x659   : > { %8151 = vmatprep.mubr.f32.mxu1 %v6961_v14  ;;  %v11246_v44 = vpack.c.bf16 %v7807_v9, %v7806_v13  ;;  %v16199_v53 = vld [vmem:[#allocation4 + $0x48] sm:$0xff]  ;;  %8052 = vmatmul.mubr.f32.gmra.mrb[230].mxu0 %v16191_v62  ;;  %v6902_v24 = vld [vmem:[#allocation4 + $0x58] sm:$0x1]  ;;  %v6899_v52 = vld [vmem:[#allocation4 + $0x40] sm:$0xfe]  ;;  %v11254_v14 = vpack.c.bf16 %v7811_v31, %v7810_v37 }
 0x65a   : > { %v16177_v34 = vpop.f32.mrb[210].mxu0  ;;  %8152 = vmatmul.mubr.f32.vlgmr.msra.gmra.mrb[116].mxu1 %v6958_v47  ;;  %v6967_v27 = vsel %vm6955_vm1, %v6965_v36, %v6966_v2  ;;  %v6900_v30 = vld [vmem:[#allocation4 + $0x48] sm:$0xfe]  ;;  %8056 = vmatprep.mubr.f32.mxu0 %v16199_v53  ;;  %v6972_v49 = vrot.slane %v6902_v24, 1  ;;  %v6968_v8 = vrot.slane %v6899_v52, 1  ;;  %v7781_v13 = vld [vmem:[%s17326_s8 + $0x2b8] sm:$0xff] }
 0x65b   : > { %v6054_v20 = vpop.f32.mrb[211].mxu0  ;;  %11247 = vmatprep.subr.bf16.mxu1 %v11246_v44  ;;  %8156 = vmatprep.mubr.f32.mxu1 %v6967_v27  ;;  %v6971_v29 = vrot.slane %v6900_v30, 1  ;;  %v7794_v9 = vld [vmem:[%s17326_s8 + $0x320] sm:$0xff]  ;;  %v11226_v47 = vpack.c.bf16 %v7781_v13, %v7780_v33  ;;  %v7813_v2 = vld [vmem:[%s17326_s8 + $0x3b8] sm:$0xff]  ;;  %v7784_v30 = vld [vmem:[%s17326_s8 + $0x2d0] sm:$0xff] }
 0x65c   : > { %6639 = vxpose.xlu0.b32.cont [14/16] (narrow) %v10620_v7, 8  ;;  %6609 = vxpose.xlu1.b32.end [16/16] (narrow) %v16019_v26, 8  ;;  %v11256_v44 = vpack.c.bf16 %v7795_v40, %v7794_v9  ;;  %v6970_v55 = vsel %vm6955_vm1, %v6968_v8, %v6969_v25  ;;  %v11258_v59 = vpack.c.bf16 %v7813_v2, %v7812_v3  ;;  %v16283_v27 = vld [vmem:[#allocation4 + $0x60] sm:$0xff]  ;;  %v7785_v24 = vld [vmem:[%s17326_s8 + $0x2d8] sm:$0xff]  ;;  %v7799_v31 = vld [vmem:[%s17326_s8 + $0x348] sm:$0xff] }
 0x65d   : > { %11249 = vmatpush3.bf16.msra.mxu1 %v11248_v56  ;;  %8057 = vmatmul.mubr.f32.gmra.mrb[232].mxu0 %v16207_v17  ;;  %v6973_v38 = vsel %vm6955_vm1, %v6971_v29, %v6972_v49  ;;  %v7798_v37 = vld [vmem:[%s17326_s8 + $0x340] sm:$0xff]  ;;  %v11234_v52 = vpack.c.bf16 %v7785_v24, %v7784_v30  ;;  %v7816_v25 = vld [vmem:[%s17326_s8 + $0x3d0] sm:$0xff]  ;;  %v7817_v13 = vld [vmem:[%s17326_s8 + $0x3d8] sm:$0xff] }
 0x65e   : > { %v10628_v26 = vpop.f32.mrb[84].mxu1  ;;  %8157 = vmatmul.mubr.f32.gmra.mrb[118].mxu1 %v6964_v6  ;;  %11251 = vmatprep.subr.bf16.mxu1 %v11250_v15  ;;  %v11232_v6 = vpack.c.bf16 %v7767_v12, %v7766_v1  ;;  %v11264_v33 = vpack.c.bf16 %v7799_v31, %v7798_v37  ;;  %v11266_v9 = vpack.c.bf16 %v7817_v13, %v7816_v25  ;;  %v7786_v40 = vld [vmem:[%s17326_s8 + $0x2e0] sm:$0xff]  ;;  %v7819_v3 = vld [vmem:[%s17326_s8 + $0x3e8] sm:$0xff]  ;;  %v7820_v1 = vld [vmem:[%s17326_s8 + $0x3f0] sm:$0xff] }
 0x65f   : > { %v6129_v5 = vpop.f32.mrb[85].mxu1  ;;  %11225 = vmatpush3.bf16.msra.mxu0 %v11224_v63  ;;  %8161 = vmatprep.mubr.f32.mxu1 %v6973_v38  ;;  %v7802_v2 = vld [vmem:[%s17326_s8 + $0x360] sm:$0xff] }
 0x660   : > { %6658 = vxpose.xlu1.b32.start [1/16] (narrow) %v6129_v5, 8  ;;  %6640 = vxpose.xlu0.b32.cont [15/16] (narrow) %v6054_v20, 8  ;;  %v6578_v60 = vpop.trf.xlu0  ;;  %v6820_v20 = vrot.slane %v12068_v54, 7  ;;  %v7797_v5 = vld [vmem:[%s17326_s8 + $0x338] sm:$0xff]  ;;  %v7770_v54 = vld [vmem:[%s17326_s8 + $0x260] sm:$0xff] }
 0x661   : > { %v6815_v45 = vrot.slane %v6578_v60, 7  ;;  %11253 = vmatpush3.bf16.msra.mxu1 %v11252_v21  ;;  %11227 = vmatprep.subr.bf16.mxu0 %v11226_v47  ;;  %v11260_v15 = vpack.c.bf16 %v7797_v5, %v7796_v16  ;;  %v7787_v47 = vld [vmem:[%s17326_s8 + $0x2e8] sm:$0xff]  ;;  %v7773_v16 = vld [vmem:[%s17326_s8 + $0x278] sm:$0xff] }
 0x662   : > { %v16233_v7 = vpop.f32.mrb[86].mxu1  ;;  %8162 = vmatmul.mubr.f32.gmra.mrb[120].mxu1 %v6970_v55  ;;  %11255 = vmatprep.subr.bf16.mxu1 %v11254_v14  ;;  %6863 = vst [vmem:[#allocation4 + $0xc0] sm:$0xfe] %v6820_v20  ;;  %6865 = vst [vmem:[#allocation4 + $0xd0] sm:$0x1] %v6820_v20  ;;  %v7771_v55 = vld [vmem:[%s17326_s8 + $0x268] sm:$0xff] }
 0x663   : > { %v6139_v48 = vpop.f32.mrb[87].mxu1  ;;  %6852 = vst [vmem:[#allocation4 + $0x68] sm:$0xfe] %v6815_v45  ;;  %6854 = vst [vmem:[#allocation4 + $0x78] sm:$0x1] %v6815_v45  ;;  %v7815_v45 = vld [vmem:[%s17326_s8 + $0x3c8] sm:$0xff] }
 0x664   : > { %6659 = vxpose.xlu1.b32.cont [2/16] (narrow) %v10628_v26, 8  ;;  %6641 = vxpose.xlu0.b32.end [16/16] (narrow) %v16177_v34, 8  ;;  %v7764_v34 = vld [vmem:[%s17326_s8 + $0x230] sm:$0xff]  ;;  %v6974_v26 = vrot.slane %v6903_v22, 1  ;;  %v11262_v21 = vpack.c.bf16 %v7815_v45, %v7814_v32  ;;  %v7801_v22 = vld [vmem:[%s17326_s8 + $0x358] sm:$0xff] }
 0x665   : > { %v11228_v35 = vpack.c.bf16 %v7765_v18, %v7764_v34  ;;  %11257 = vmatpush3.bf16.msra.mxu1 %v11256_v44  ;;  %v11238_v34 = vpack.c.bf16 %v7787_v47, %v7786_v40  ;;  %v7800_v18 = vld [vmem:[%s17326_s8 + $0x350] sm:$0xff] }
 0x666   : > { %v16260_v50 = vpop.f32.mrb[88].mxu1  ;;  %v10654_v56 = vpop.f32.mrb[212].mxu0  ;;  %11259 = vmatprep.subr.bf16.mxu1 %v11258_v59  ;;  %v6976_v61 = vsel %vm6955_vm1, %v6974_v26, %v6975_v46  ;;  %v7803_v26 = vld [vmem:[%s17326_s8 + $0x368] sm:$0xff]  ;;  %v7772_v46 = vld [vmem:[%s17326_s8 + $0x270] sm:$0xff] }
 0x667   : > { %v16266_v36 = vpop.f32.mrb[89].mxu1  ;;  %v6274_v23 = vpop.f32.mrb[213].mxu0  ;;  %11229 = vmatpush3.bf16.msra.mxu0 %v11228_v35  ;;  %v11240_v35 = vpack.c.bf16 %v7771_v55, %v7770_v54 }
 0x668   : > { %6690 = vxpose.xlu0.b32.start [1/16] (narrow) %v6274_v23, 8  ;;  %6660 = vxpose.xlu1.b32.cont [3/16] (narrow) %v6139_v48, 8  ;;  %v7768_v48 = vld [vmem:[%s17326_s8 + $0x250] sm:$0xff] }
 0x669   : > { %11231 = vmatprep.subr.bf16.mxu0 %v11230_v0  ;;  %11261 = vmatpush3.bf16.msra.mxu1 %v11260_v15  ;;  %v11236_v38 = vpack.c.bf16 %v7769_v28, %v7768_v48  ;;  %v7788_v23 = vld [vmem:[%s17326_s8 + $0x2f0] sm:$0xff]  ;;  %v11272_v0 = vpack.c.bf16 %v7803_v26, %v7802_v2  ;;  %v11244_v15 = vpack.c.bf16 %v7773_v16, %v7772_v46  ;;  %v6911_v46 = vld [vmem:[#allocation4 + $0xa0] sm:$0xfe] }
 0x66a   : > { %v16291_v10 = vpop.f32.mrb[90].mxu1  ;;  %v16293_v58 = vld [vmem:[#allocation4 + $0x68] sm:$0xff]  ;;  %v6906_v60 = vld [vmem:[#allocation4 + $0x78] sm:$0x1]  ;;  %11263 = vmatprep.subr.bf16.mxu1 %v11262_v21  ;;  %v6986_v16 = vrot.slane %v6911_v46, 1 }
 0x66b   : > { %v6904_v39 = vld [vmem:[#allocation4 + $0x68] sm:$0xfe]  ;;  %v16295_v42 = vpop.f32.mrb[91].mxu1  ;;  %8061 = vmatprep.mubr.f32.mxu0 %v16293_v58  ;;  %v6978_v4 = vrot.slane %v6906_v60, 1  ;;  %11233 = vmatpush3.bf16.msra.mxu0 %v11232_v6  ;;  %v7804_v6 = vld [vmem:[%s17326_s8 + $0x370] sm:$0xff] }
 0x66c   : > { %v6977_v57 = vrot.slane %v6904_v39, 1  ;;  %6691 = vxpose.xlu0.b32.cont [2/16] (narrow) %v10654_v56, 8  ;;  %6661 = vxpose.xlu1.b32.cont [4/16] (narrow) %v16233_v7, 8  ;;  %v12069_v7 = vld [vmem:[#allocation2 + $0x71] sm:$0xff]  ;;  %v11268_v56 = vpack.c.bf16 %v7801_v22, %v7800_v18 }
 0x66d   : > { %8062 = vmatmul.mubr.f32.gmra.mrb[234].mxu0 %v16283_v27  ;;  %v6822_v63 = vrot.slane %v12069_v7, 7  ;;  %11235 = vmatprep.subr.bf16.mxu0 %v11234_v52  ;;  %v7821_v39 = vld [vmem:[%s17326_s8 + $0x3f8] sm:$0xff] }
 0x66e   : > { %v6979_v41 = vsel %vm6955_vm1, %v6977_v57, %v6978_v4  ;;  %v16317_v29 = vpop.f32.mrb[92].mxu1  ;;  %v10657_v49 = vpop.f32.mrb[214].mxu0  ;;  %11265 = vmatpush3.bf16.msra.mxu1 %v11264_v33  ;;  %v11274_v60 = vpack.c.bf16 %v7821_v39, %v7820_v1  ;;  %v7838_v57 = vld [vmem:[%s17326_s8 + $0x480] sm:$0xff] }
 0x66f   : > { %8166 = vmatprep.mubr.f32.mxu1 %v6979_v41  ;;  %v16328_v8 = vpop.f32.mrb[93].mxu1  ;;  %v6284_v14 = vpop.f32.mrb[215].mxu0  ;;  %6867 = vst [vmem:[#allocation4 + $0xe0] sm:$0xfe] %v6822_v63  ;;  %6869 = vst [vmem:[#allocation4 + $0xf0] sm:$0x1] %v6822_v63  ;;  %11237 = vmatpush3.bf16.msra.mxu0 %v11236_v38 }
 0x670   : > { %8167 = vmatmul.mubr.f32.gmra.mrb[122].mxu1 %v6976_v61  ;;  %6692 = vxpose.xlu0.b32.cont [3/16] (narrow) %v6284_v14, 8  ;;  %v7839_v61 = vld [vmem:[%s17326_s8 + $0x488] sm:$0xff]  ;;  %v7870_v63 = vld [vmem:[%s17326_s8 + $0x580] sm:$0xff] }
 0x671   : > { %6662 = vxpose.xlu1.b32.cont [5/16] (narrow) %v16266_v36, 8  ;;  %11267 = vmatprep.subr.bf16.mxu1 %v11266_v9  ;;  %v11270_v36 = vpack.c.bf16 %v7819_v3, %v7818_v11  ;;  %v11278_v32 = vpack.c.bf16 %v7839_v61, %v7838_v57  ;;  %v12070_v9 = vld [vmem:[#allocation2 + $0x81] sm:$0xff] }
 0x672   : > { %v16343_v44 = vpop.f32.mrb[94].mxu1  ;;  %11239 = vmatprep.subr.bf16.mxu0 %v11238_v34  ;;  %11269 = vmatpush3.bf16.msra.mxu1 %v11268_v56  ;;  %v6824_v40 = vrot.slane %v12070_v9, 7  ;;  %v6909_v34 = vld [vmem:[#allocation4 + $0x90] sm:$0x1]  ;;  %v16419_v1 = vld [vmem:[#allocation4 + $0xa0] sm:$0xff] }
 0x673   : > { %v6179_v20 = vpop.f32.mrb[95].mxu1  ;;  %11241 = vmatpush3.bf16.msra.mxu0 %v11240_v35  ;;  %11271 = vmatprep.subr.bf16.mxu1 %v11270_v36  ;;  %v16411_v35 = vld [vmem:[#allocation4 + $0x80] sm:$0xff] }
 0x674   : > { %6693 = vxpose.xlu0.b32.cont [4/16] (narrow) %v10657_v49, 8  ;;  %v7871_v49 = vld [vmem:[%s17326_s8 + $0x588] sm:$0xff]  ;;  %6871 = vst [vmem:[#allocation4 + $0x100] sm:$0xfe] %v6824_v40  ;;  %6873 = vst [vmem:[#allocation4 + $0x110] sm:$0x1] %v6824_v40 }
 0x675   : > { %6663 = vxpose.xlu1.b32.cont [6/16] (narrow) %v16260_v50, 8  ;;  %v7789_v50 = vld [vmem:[%s17326_s8 + $0x2f8] sm:$0xff] }
 0x676   : > { %v10660_v51 = vpop.f32.mrb[216].mxu0  ;;  %v11242_v19 = vpack.c.bf16 %v7789_v50, %v7788_v23  ;;  %11273 = vmatpush3.bf16.msra.mxu1 %v11272_v0  ;;  %v6921_v9 = vld [vmem:[#allocation4 + $0xf0] sm:$0x1] }
 0x677   : > { %v6294_v59 = vpop.f32.mrb[217].mxu0  ;;  %11275 = vmatprep.subr.bf16.mxu1 %v11274_v60 }
 0x678   : > { %v10646_v5 = vpop.f32.mrb[96].mxu1  ;;  %6694 = vxpose.xlu0.b32.cont [5/16] (narrow) %v6294_v59, 8  ;;  %11243 = vmatprep.subr.bf16.mxu0 %v11242_v19  ;;  %v6913_v59 = vld [vmem:[#allocation4 + $0xb0] sm:$0x1] }
 0x679   : > { %6664 = vxpose.xlu1.b32.cont [7/16] (narrow) %v16295_v42, 8  ;;  %v6189_v12 = vpop.f32.mrb[97].mxu1  ;;  %11245 = vmatpush3.bf16.msra.mxu0 %v11244_v15  ;;  %v7805_v42 = vld [vmem:[%s17326_s8 + $0x378] sm:$0xff] }
 0x67a   : > { %v11276_v4 = vpack.c.bf16 %v7805_v42, %v7804_v6  ;;  %11279 = vmatprep.subr.bf16.mxu0 %v11278_v32 }
 0x67c   : > { %6695 = vxpose.xlu0.b32.cont [6/16] (narrow) %v10660_v51, 8  ;;  %11277 = vmatpush3.bf16.msra.mxu1 %v11276_v4 }
 0x67d   : > { %6665 = vxpose.xlu1.b32.cont [8/16] (narrow) %v16291_v10, 8 }
 0x67e   : > { %v10663_v45 = vpop.f32.mrb[218].mxu0 }
 0x67f   : > { %v6304_v41 = vpop.f32.mrb[219].mxu0 }
 0x680   : > { %v10649_v21 = vpop.f32.mrb[98].mxu1  ;;  %6696 = vxpose.xlu0.b32.cont [7/16] (narrow) %v6304_v41, 8 }
 0x681   : > { %6666 = vxpose.xlu1.b32.cont [9/16] (narrow) %v16328_v8, 8  ;;  %v6199_v30 = vpop.f32.mrb[99].mxu1 }
 0x684   : > { %6697 = vxpose.xlu0.b32.cont [8/16] (narrow) %v10663_v45, 8 }
 0x685   : > { %6667 = vxpose.xlu1.b32.cont [10/16] (narrow) %v16317_v29, 8  ;;  %v11310_v29 = vpack.c.bf16 %v7871_v49, %v7870_v63 }
 0x686   : > { %v10666_v10 = vpop.f32.mrb[220].mxu0 }
 0x687   : > { %v6314_v24 = vpop.f32.mrb[221].mxu0  ;;  %11311 = vmatprep.subr.bf16.mxu1 %v11310_v29 }
 0x688   : > { %6698 = vxpose.xlu0.b32.cont [9/16] (narrow) %v6314_v24, 8  ;;  %v6915_v24 = vld [vmem:[#allocation4 + $0xc0] sm:$0xfe] }
 0x689   : > { %6668 = vxpose.xlu1.b32.cont [11/16] (narrow) %v6179_v20, 8  ;;  %v6981_v20 = vrot.slane %v6909_v34, 1  ;;  %v6992_v63 = vrot.slane %v6915_v24, 1 }
 0x68c   : > { %6699 = vxpose.xlu0.b32.cont [10/16] (narrow) %v10666_v10, 8 }
 0x68d   : > { %6669 = vxpose.xlu1.b32.cont [12/16] (narrow) %v16343_v44, 8  ;;  %v6907_v44 = vld [vmem:[#allocation4 + $0x80] sm:$0xfe] }
 0x68e   : > { %v10669_v37 = vpop.f32.mrb[222].mxu0  ;;  %v6980_v54 = vrot.slane %v6907_v44, 1 }
 0x68f   : > { %v6324_v7 = vpop.f32.mrb[223].mxu0 }
 0x690   : > { %6700 = vxpose.xlu0.b32.cont [11/16] (narrow) %v6324_v7, 8  ;;  %v6982_v51 = vsel %vm6955_vm1, %v6980_v54, %v6981_v20  ;;  %v6999_v20 = vrot.slane %v6921_v9, 1 }
 0x691   : > { %6670 = vxpose.xlu1.b32.cont [13/16] (narrow) %v6189_v12, 8 }
 0x694   : > { %6701 = vxpose.xlu0.b32.cont [12/16] (narrow) %v10669_v37, 8  ;;  %v6917_v37 = vld [vmem:[#allocation4 + $0xd0] sm:$0x1] }
 0x695   : > { %6671 = vxpose.xlu1.b32.cont [14/16] (narrow) %v10646_v5, 8  ;;  %v10672_v52 = vpop.f32.mrb[224].mxu0  ;;  %v6987_v5 = vrot.slane %v6913_v59, 1  ;;  %v6993_v49 = vrot.slane %v6917_v37, 1  ;;  %v7030_v37 = vld [vmem:[#allocation4 + $0x50] sm:$0x3] }
 0x696   : > { %v6334_v31 = vpop.f32.mrb[225].mxu0 }
 0x697   : > { %v6988_v4 = vsel %vm6955_vm1, %v6986_v16, %v6987_v5  ;;  %v7840_v5 = vld [vmem:[%s17326_s8 + $0x490] sm:$0xff] }
 0x698   : > { %6702 = vxpose.xlu0.b32.cont [13/16] (narrow) %v6334_v31, 8 }
 0x699   : > { %6672 = vxpose.xlu1.b32.cont [15/16] (narrow) %v6199_v30, 8  ;;  %v10675_v48 = vpop.f32.mrb[226].mxu0 }
 0x69a   : > { %v6344_v28 = vpop.f32.mrb[227].mxu0 }
 0x69c   : > { %6703 = vxpose.xlu0.b32.cont [14/16] (narrow) %v10672_v52, 8  ;;  %v16427_v52 = vld [vmem:[#allocation4 + $0xc0] sm:$0xff] }
 0x69d   : > { %6673 = vxpose.xlu1.b32.end [16/16] (narrow) %v10649_v21, 8  ;;  %v10680_v8 = vpop.f32.mrb[100].mxu1 }
 0x69e   : > { %v6419_v14 = vpop.f32.mrb[101].mxu1 }
 0x6a0   : > { %6704 = vxpose.xlu0.b32.cont [15/16] (narrow) %v6344_v28, 8  ;;  %v6610_v33 = vpop.trf.xlu1 }
 0x6a1   : > { %6722 = vxpose.xlu1.b32.start [1/16] (narrow) %v6419_v14, 8  ;;  %v10683_v38 = vpop.f32.mrb[102].mxu1  ;;  %v6817_v25 = vrot.slane %v6610_v33, 7  ;;  %v7021_v33 = vld [vmem:[#allocation4 + $0x8] sm:$0xfc] }
 0x6a2   : > { %v6429_v13 = vpop.f32.mrb[103].mxu1  ;;  %v7088_v44 = vrot.slane %v7021_v33, 2  ;;  %v7035_v33 = vld [vmem:[#allocation4 + $0x78] sm:$0x3] }
 0x6a3   : > { %6856 = vst [vmem:[#allocation4 + $0x88] sm:$0xfe] %v6817_v25  ;;  %6858 = vst [vmem:[#allocation4 + $0x98] sm:$0x1] %v6817_v25  ;;  %v6994_v25 = vsel %vm6955_vm1, %v6992_v63, %v6993_v49  ;;  %v7843_v63 = vld [vmem:[%s17326_s8 + $0x4a8] sm:$0xff] }
 0x6a4   : > { %6705 = vxpose.xlu0.b32.end [16/16] (narrow) %v10675_v48, 8  ;;  %v16469_v49 = vld [vmem:[#allocation4 + $0x68] sm:$0xfc] }
 0x6a5   : > { %6723 = vxpose.xlu1.b32.cont [2/16] (narrow) %v10680_v8, 8  ;;  %v10686_v47 = vpop.f32.mrb[104].mxu1 }
 0x6a6   : > { %v6439_v18 = vpop.f32.mrb[105].mxu1 }
 0x6a8   : > { %v6642_v22 = vpop.trf.xlu0 }
 0x6a9   : > { %6724 = vxpose.xlu1.b32.cont [3/16] (narrow) %v6429_v13, 8  ;;  %v10689_v56 = vpop.f32.mrb[106].mxu1  ;;  %v6819_v55 = vrot.slane %v6642_v22, 7  ;;  %v6919_v13 = vld [vmem:[#allocation4 + $0xe0] sm:$0xfe] }
 0x6aa   : > { %v6449_v11 = vpop.f32.mrb[107].mxu1  ;;  %v16413_v3 = vld [vmem:[#allocation4 + $0x88] sm:$0xff]  ;;  %v6910_v23 = vld [vmem:[#allocation4 + $0x98] sm:$0x1]  ;;  %v16435_v22 = vld [vmem:[#allocation4 + $0xe0] sm:$0xff]  ;;  %v6998_v54 = vrot.slane %v6919_v13, 1 }
 0x6ab   : > { %v6908_v36 = vld [vmem:[#allocation4 + $0x88] sm:$0xfe]  ;;  %6860 = vst [vmem:[#allocation4 + $0xa8] sm:$0xfe] %v6819_v55  ;;  %6862 = vst [vmem:[#allocation4 + $0xb8] sm:$0x1] %v6819_v55  ;;  %8066 = vmatprep.mubr.f32.mxu0 %v16413_v3 }
 0x6ac   : > { %v6983_v50 = vrot.slane %v6908_v36, 1  ;;  %v6984_v2 = vrot.slane %v6910_v23, 1  ;;  %8067 = vmatmul.mubr.f32.gmra.mrb[236].mxu0 %v16411_v35  ;;  %v7025_v55 = vld [vmem:[#allocation4 + $0x28] sm:$0xfc]  ;;  %v7822_v36 = vld [vmem:[%s17326_s8 + $0x400] sm:$0xff] }
 0x6ad   : > { %6725 = vxpose.xlu1.b32.cont [4/16] (narrow) %v10683_v38, 8  ;;  %v10692_v19 = vpop.f32.mrb[108].mxu1  ;;  %v7023_v38 = vld [vmem:[#allocation4 + $0x18] sm:$0x3] }
 0x6ae   : > { %v6985_v26 = vsel %vm6955_vm1, %v6983_v50, %v6984_v2  ;;  %v6459_v0 = vpop.f32.mrb[109].mxu1  ;;  %v7089_v34 = vrot.slane %v7023_v38, 2  ;;  %v7823_v50 = vld [vmem:[%s17326_s8 + $0x408] sm:$0xff]  ;;  %v7024_v2 = vld [vmem:[#allocation4 + $0x20] sm:$0xfc]  ;;  %v7872_v38 = vld [vmem:[%s17326_s8 + $0x590] sm:$0xff] }
 0x6af   : > { %8171 = vmatprep.mubr.f32.mxu1 %v6985_v26 }
 0x6b0   : > { %8172 = vmatmul.mubr.f32.gmra.mrb[124].mxu1 %v6982_v51  ;;  %v7026_v51 = vld [vmem:[#allocation4 + $0x30] sm:$0x3]  ;;  %v7090_v59 = vsel %vm7084_vm2, %v7088_v44, %v7089_v34  ;;  %v7827_v44 = vld [vmem:[%s17326_s8 + $0x428] sm:$0xff]  ;;  %v7032_v34 = vld [vmem:[#allocation4 + $0x60] sm:$0xfc] }
 0x6b1   : > { %6726 = vxpose.xlu1.b32.cont [5/16] (narrow) %v6439_v18, 8  ;;  %v10695_v15 = vpop.f32.mrb[110].mxu1  ;;  %v7022_v18 = vld [vmem:[#allocation4 + $0x10] sm:$0x3] }
 0x6b2   : > { %v6469_v12 = vpop.f32.mrb[111].mxu1  ;;  %v16421_v39 = vld [vmem:[#allocation4 + $0xa8] sm:$0xff]  ;;  %v6914_v6 = vld [vmem:[#allocation4 + $0xb8] sm:$0x1]  ;;  %v7086_v23 = vrot.slane %v7022_v18, 2 }
 0x6b3   : > { %v6912_v60 = vld [vmem:[#allocation4 + $0xa8] sm:$0xfe]  ;;  %8071 = vmatprep.mubr.f32.mxu0 %v16421_v39  ;;  %v6990_v57 = vrot.slane %v6914_v6, 1 }
 0x6b4   : > { %v6989_v42 = vrot.slane %v6912_v60, 1  ;;  %8072 = vmatmul.mubr.f32.gmra.mrb[238].mxu0 %v16419_v1  ;;  %v7094_v60 = vrot.slane %v7025_v55, 2 }
 0x6b5   : > { %6727 = vxpose.xlu1.b32.cont [6/16] (narrow) %v10686_v47, 8  ;;  %v10698_v61 = vpop.f32.mrb[112].mxu1  ;;  %v7020_v47 = vld [vmem:[#allocation4] sm:$0xfc] }
 0x6b6   : > { %v6991_v32 = vsel %vm6955_vm1, %v6989_v42, %v6990_v57  ;;  %v6479_v45 = vpop.f32.mrb[113].mxu1  ;;  %v7091_v42 = vrot.slane %v7024_v2, 2  ;;  %v7029_v57 = vld [vmem:[#allocation4 + $0x48] sm:$0xfc] }
 0x6b7   : > { %8176 = vmatprep.mubr.f32.mxu1 %v6991_v32 }
 0x6b8   : > { %8177 = vmatmul.mubr.f32.gmra.mrb[126].mxu1 %v6988_v4  ;;  %v7824_v4 = vld [vmem:[%s17326_s8 + $0x410] sm:$0xff] }
 0x6b9   : > { %6728 = vxpose.xlu1.b32.cont [7/16] (narrow) %v6449_v11, 8  ;;  %v10701_v41 = vpop.f32.mrb[114].mxu1  ;;  %v7027_v11 = vld [vmem:[#allocation4 + $0x38] sm:$0x3] }
 0x6ba   : > { %v6489_v21 = vpop.f32.mrb[115].mxu1  ;;  %v7095_v6 = vrot.slane %v7027_v11, 2  ;;  %v16499_v11 = vld [vmem:[#allocation4 + $0x80] sm:$0xfc] }
 0x6bd   : > { %6729 = vxpose.xlu1.b32.cont [8/16] (narrow) %v10689_v56, 8  ;;  %v7085_v56 = vrot.slane %v7020_v47, 2  ;;  %v7826_v47 = vld [vmem:[%s17326_s8 + $0x420] sm:$0xff] }
 0x6bf   : > { %v7087_v32 = vsel %vm7084_vm2, %v7085_v56, %v7086_v23  ;;  %v7845_v56 = vld [vmem:[%s17326_s8 + $0x4b8] sm:$0xff]  ;;  %v7856_v23 = vld [vmem:[%s17326_s8 + $0x510] sm:$0xff] }
 0x6c1   : > { %6730 = vxpose.xlu1.b32.cont [9/16] (narrow) %v6459_v0, 8 }
 0x6c5   : > { %6731 = vxpose.xlu1.b32.cont [10/16] (narrow) %v10692_v19, 8 }
 0x6c9   : > { %6732 = vxpose.xlu1.b32.cont [11/16] (narrow) %v6469_v12, 8  ;;  %v7000_v12 = vsel %vm6955_vm1, %v6998_v54, %v6999_v20  ;;  %v7034_v54 = vld [vmem:[#allocation4 + $0x70] sm:$0x3] }
 0x6ca   : > { %v7844_v20 = vld [vmem:[%s17326_s8 + $0x4b0] sm:$0xff] }
 0x6cd   : > { %6733 = vxpose.xlu1.b32.cont [12/16] (narrow) %v10695_v15, 8  ;;  %v7841_v15 = vld [vmem:[%s17326_s8 + $0x498] sm:$0xff] }
 0x6ce   : > { %v11282_v24 = vpack.c.bf16 %v7841_v15, %v7840_v5  ;;  %v7104_v5 = vrot.slane %v7034_v54, 2  ;;  %v7037_v15 = vld [vmem:[#allocation4 + $0x88] sm:$0xfc]  ;;  %v7832_v54 = vld [vmem:[%s17326_s8 + $0x450] sm:$0xff] }
 0x6d1   : > { %6734 = vxpose.xlu1.b32.cont [13/16] (narrow) %v6479_v45, 8  ;;  %v11280_v45 = vpack.c.bf16 %v7823_v50, %v7822_v36  ;;  %v7857_v50 = vld [vmem:[%s17326_s8 + $0x518] sm:$0xff] }
 0x6d5   : > { %6735 = vxpose.xlu1.b32.cont [14/16] (narrow) %v10698_v61, 8 }
 0x6d9   : > { %6736 = vxpose.xlu1.b32.cont [15/16] (narrow) %v6489_v21, 8  ;;  %v7031_v21 = vld [vmem:[#allocation4 + $0x58] sm:$0x3] }
 0x6dd   : > { %6737 = vxpose.xlu1.b32.end [16/16] (narrow) %v10701_v41, 8  ;;  %v7092_v41 = vrot.slane %v7026_v51, 2  ;;  %v7106_v51 = vrot.slane %v16469_v49, 2 }
 0x6df   : > { %v7093_v13 = vsel %vm7084_vm2, %v7091_v42, %v7092_v41  ;;  %v7829_v42 = vld [vmem:[%s17326_s8 + $0x438] sm:$0xff] }
 0x6e1   : > { %v6674_v30 = vpop.trf.xlu1 }
 0x6e2   : > { %v6821_v10 = vrot.slane %v6674_v30, 7  ;;  %v7825_v30 = vld [vmem:[%s17326_s8 + $0x418] sm:$0xff] }
 0x6e3   : > { %v11284_v9 = vpack.c.bf16 %v7825_v30, %v7824_v4  ;;  %v11316_v4 = vpack.c.bf16 %v7857_v50, %v7856_v23  ;;  %v7859_v30 = vld [vmem:[%s17326_s8 + $0x528] sm:$0xff]  ;;  %v7044_v23 = vld [vmem:[#allocation4 + $0xc0] sm:$0xfc] }
 0x6e4   : > { %6864 = vst [vmem:[#allocation4 + $0xc8] sm:$0xfe] %v6821_v10  ;;  %6866 = vst [vmem:[#allocation4 + $0xd8] sm:$0x1] %v6821_v10  ;;  %v7028_v10 = vld [vmem:[#allocation4 + $0x40] sm:$0xfc] }
 0x6e8   : > { %v6706_v7 = vpop.trf.xlu0 }
 0x6e9   : > { %v6823_v29 = vrot.slane %v6706_v7, 7  ;;  %v7842_v7 = vld [vmem:[%s17326_s8 + $0x4a0] sm:$0xff] }
 0x6ea   : > { %v11286_v18 = vpack.c.bf16 %v7843_v63, %v7842_v7  ;;  %v7876_v7 = vld [vmem:[%s17326_s8 + $0x5b0] sm:$0xff]  ;;  %v7877_v63 = vld [vmem:[%s17326_s8 + $0x5b8] sm:$0xff] }
 0x6eb   : > { %v16429_v31 = vld [vmem:[#allocation4 + $0xc8] sm:$0xff]  ;;  %v6918_v28 = vld [vmem:[#allocation4 + $0xd8] sm:$0x1]  ;;  %6868 = vst [vmem:[#allocation4 + $0xe8] sm:$0xfe] %v6823_v29 }
 0x6ec   : > { %v6916_v48 = vld [vmem:[#allocation4 + $0xc8] sm:$0xfe]  ;;  %6870 = vst [vmem:[#allocation4 + $0xf8] sm:$0x1] %v6823_v29  ;;  %8076 = vmatprep.mubr.f32.mxu0 %v16429_v31  ;;  %v6996_v14 = vrot.slane %v6918_v28, 1  ;;  %v7854_v29 = vld [vmem:[%s17326_s8 + $0x500] sm:$0xff]  ;;  %v7096_v28 = vsel %vm7084_vm2, %v7094_v60, %v7095_v6  ;;  %v11290_v60 = vpack.c.bf16 %v7845_v56, %v7844_v20 }
 0x6ed   : > { %v6995_v8 = vrot.slane %v6916_v48, 1  ;;  %8077 = vmatmul.mubr.f32.gmra.mrb[240].mxu0 %v16427_v52  ;;  %v7855_v48 = vld [vmem:[%s17326_s8 + $0x508] sm:$0xff]  ;;  %v7828_v6 = vld [vmem:[%s17326_s8 + $0x430] sm:$0xff]  ;;  %v7878_v20 = vld [vmem:[%s17326_s8 + $0x5c0] sm:$0xff] }
 0x6ee   : > { %v11312_v55 = vpack.c.bf16 %v7855_v48, %v7854_v29  ;;  %v11292_v29 = vpack.c.bf16 %v7829_v42, %v7828_v6  ;;  %v7043_v48 = vld [vmem:[#allocation4 + $0xb8] sm:$0x3]  ;;  %v7879_v56 = vld [vmem:[%s17326_s8 + $0x5c8] sm:$0xff] }
 0x6ef   : > { %v6997_v40 = vsel %vm6955_vm1, %v6995_v8, %v6996_v14  ;;  %v7100_v8 = vrot.slane %v7029_v57, 2  ;;  %v7101_v14 = vrot.slane %v7031_v21, 2  ;;  %v7846_v57 = vld [vmem:[%s17326_s8 + $0x4c0] sm:$0xff]  ;;  %v7881_v6 = vld [vmem:[%s17326_s8 + $0x5d8] sm:$0xff] }
 0x6f0   : > { %8181 = vmatprep.mubr.f32.mxu1 %v6997_v40  ;;  %v7097_v40 = vrot.slane %v7028_v10, 2  ;;  %v7858_v21 = vld [vmem:[%s17326_s8 + $0x520] sm:$0xff]  ;;  %v7112_v10 = vrot.slane %v7037_v15, 2  ;;  %v7121_v15 = vrot.slane %v7044_v23, 2 }
 0x6f1   : > { %8182 = vmatmul.mubr.f32.gmra.mrb[128].mxu1 %v6994_v25  ;;  %v7873_v25 = vld [vmem:[%s17326_s8 + $0x598] sm:$0xff]  ;;  %v7102_v2 = vsel %vm7084_vm2, %v7100_v8, %v7101_v14  ;;  %v7830_v14 = vld [vmem:[%s17326_s8 + $0x440] sm:$0xff] }
 0x6f2   : > { %v16443_v19 = vld [vmem:[#allocation4 + $0xe8] sm:$0xff]  ;;  %v11314_v36 = vpack.c.bf16 %v7873_v25, %v7872_v38  ;;  %v7848_v38 = vld [vmem:[%s17326_s8 + $0x4d0] sm:$0xff]  ;;  %v11320_v25 = vpack.c.bf16 %v7859_v30, %v7858_v21 }
 0x6f3   : > { %v6920_v26 = vld [vmem:[#allocation4 + $0xe8] sm:$0xfe]  ;;  %v6922_v46 = vld [vmem:[#allocation4 + $0xf8] sm:$0x1]  ;;  %8081 = vmatprep.mubr.f32.mxu0 %v16443_v19  ;;  %v7050_v21 = vld [vmem:[#allocation4 + $0xf0] sm:$0x3] }
 0x6f4   : > { %v7001_v0 = vrot.slane %v6920_v26, 1  ;;  %v7002_v16 = vrot.slane %v6922_v46, 1  ;;  %8082 = vmatmul.mubr.f32.gmra.mrb[242].mxu0 %v16435_v22  ;;  %v7107_v26 = vrot.slane %v7035_v33, 2  ;;  %v7874_v46 = vld [vmem:[%s17326_s8 + $0x5a0] sm:$0xff]  ;;  %v7831_v33 = vld [vmem:[%s17326_s8 + $0x448] sm:$0xff]  ;;  %v7852_v30 = vld [vmem:[%s17326_s8 + $0x4f0] sm:$0xff] }
 0x6f5   : > { %8256 = vmatprep.mubr.f32.mxu0 %v7090_v59  ;;  %v7875_v59 = vld [vmem:[%s17326_s8 + $0x5a8] sm:$0xff] }
 0x6f6   : > { %v7003_v61 = vsel %vm6955_vm1, %v7001_v0, %v7002_v16  ;;  %v7103_v16 = vrot.slane %v7032_v34, 2  ;;  %v11318_v41 = vpack.c.bf16 %v7875_v59, %v7874_v46  ;;  %v7119_v34 = vrot.slane %v7043_v48, 2  ;;  %v7851_v46 = vld [vmem:[%s17326_s8 + $0x4e8] sm:$0xff] }
 0x6f7   : > { %8186 = vmatprep.mubr.f32.mxu1 %v7003_v61  ;;  %v7109_v61 = vrot.slane %v16499_v11, 2  ;;  %v7045_v11 = vld [vmem:[#allocation4 + $0xc8] sm:$0xfc]  ;;  %v11326_v59 = vpack.c.bf16 %v7879_v56, %v7878_v20 }
 0x6f8   : > { %8187 = vmatmul.mubr.f32.gmra.mrb[130].mxu1 %v7000_v12  ;;  %8257 = vmatmul.mubr.f32.vlgmr.msra.gmra.mrb[244].mxu0 %v7087_v32  ;;  %v7039_v12 = vld [vmem:[#allocation4 + $0x98] sm:$0x3]  ;;  %v7105_v49 = vsel %vm7084_vm2, %v7103_v16, %v7104_v5  ;;  %v7883_v48 = vld [vmem:[%s17326_s8 + $0x5e8] sm:$0xff] }
 0x6f9   : > { %8361 = vmatprep.mubr.f32.mxu1 %v16165_v43  ;;  %8261 = vmatprep.mubr.f32.mxu0 %v7096_v28  ;;  %v7098_v43 = vrot.slane %v7030_v37, 2  ;;  %v16542_v37 = vld [vmem:[#allocation4 + $0xa0] sm:$0xfc]  ;;  %v7042_v28 = vld [vmem:[#allocation4 + $0xb0] sm:$0x3] }
 0x6fa   : > { %11281 = vmatpush3.bf16.msra.mxu0 %v11280_v45  ;;  %v7847_v45 = vld [vmem:[%s17326_s8 + $0x4c8] sm:$0xff] }
 0x6fb   : > { %11283 = vmatprep.subr.bf16.mxu0 %v11282_v24  ;;  %v7099_v0 = vsel %vm7084_vm2, %v7097_v40, %v7098_v43  ;;  %v7113_v24 = vrot.slane %v7039_v12, 2  ;;  %v11294_v8 = vpack.c.bf16 %v7847_v45, %v7846_v57  ;;  %v11322_v40 = vpack.c.bf16 %v7877_v63, %v7876_v7  ;;  %v7860_v43 = vld [vmem:[%s17326_s8 + $0x530] sm:$0xff]  ;;  %v16604_v12 = vld [vmem:[%s17326_s8 + $0x460] sm:$0xff]  ;;  %v7865_v7 = vld [vmem:[%s17326_s8 + $0x558] sm:$0xff] }
 0x6fc   : > { %8362 = vmatmul.mubr.f32.vlgmr.msra.gmra.mrb[132].mxu1 %v16191_v62  ;;  %8262 = vmatmul.mubr.f32.gmra.mrb[246].mxu0 %v7093_v13  ;;  %v16510_v62 = vld [vmem:[#allocation4 + $0x90] sm:$0x3]  ;;  %v7115_v13 = vrot.slane %v16542_v37, 2  ;;  %v7170_v56 = vld [vmem:[#allocation4 + $0x48] sm:$0xfe] }
 0x6fd   : > { %8366 = vmatprep.mubr.f32.mxu1 %v16199_v53  ;;  %8266 = vmatprep.mubr.f32.mxu0 %v7102_v2  ;;  %v11288_v53 = vpack.c.bf16 %v7827_v44, %v7826_v47  ;;  %v7110_v32 = vrot.slane %v16510_v62, 2  ;;  %v7861_v47 = vld [vmem:[%s17326_s8 + $0x538] sm:$0xff]  ;;  %v7864_v37 = vld [vmem:[%s17326_s8 + $0x550] sm:$0xff] }
 0x6fe   : > { %11285 = vmatpush3.bf16.msra.mxu0 %v11284_v9  ;;  %11313 = vmatpush3.bf16.msra.mxu1 %v11312_v55  ;;  %v7849_v9 = vld [vmem:[%s17326_s8 + $0x4d8] sm:$0xff]  ;;  %v11296_v55 = vpack.c.bf16 %v7831_v33, %v7830_v14  ;;  %v11324_v62 = vpack.c.bf16 %v7861_v47, %v7860_v43  ;;  %v7128_v14 = vrot.slane %v7050_v21, 2  ;;  %v7836_v33 = vld [vmem:[%s17326_s8 + $0x470] sm:$0xff]  ;;  %v7902_v43 = vld [vmem:[%s17326_s8 + $0x680] sm:$0xff]  ;;  %v11332_v47 = vpack.c.bf16 %v7865_v7, %v7864_v37 }
 0x6ff   : > { %11287 = vmatprep.subr.bf16.mxu0 %v11286_v18  ;;  %11315 = vmatprep.subr.bf16.mxu1 %v11314_v36  ;;  %v7116_v18 = vrot.slane %v7042_v28, 2  ;;  %v7047_v36 = vld [vmem:[#allocation4 + $0xd8] sm:$0x3]  ;;  %v11298_v50 = vpack.c.bf16 %v7849_v9, %v7848_v38  ;;  %v7165_v9 = vld [vmem:[#allocation4 + $0x20] sm:$0xfe] }
 0x700   : > { %8367 = vmatmul.mubr.f32.gmra.mrb[134].mxu1 %v16207_v17  ;;  %8267 = vmatmul.mubr.f32.gmra.mrb[248].mxu0 %v7099_v0  ;;  %v7108_v17 = vsel %vm7084_vm2, %v7106_v51, %v7107_v26  ;;  %v7833_v2 = vld [vmem:[%s17326_s8 + $0x458] sm:$0xff]  ;;  %v7046_v51 = vld [vmem:[#allocation4 + $0xd0] sm:$0x3]  ;;  %v7850_v26 = vld [vmem:[%s17326_s8 + $0x4e0] sm:$0xff]  ;;  %v7125_v5 = vrot.slane %v7047_v36, 2  ;;  %v7229_v23 = vrot.slane %v7165_v9, 1 }
 0x701   : > { %8371 = vmatprep.mubr.f32.mxu1 %v16293_v58  ;;  %8271 = vmatprep.mubr.f32.mxu0 %v7108_v17  ;;  %v7041_v58 = vld [vmem:[#allocation4 + $0xa8] sm:$0xfc]  ;;  %v7862_v0 = vld [vmem:[%s17326_s8 + $0x540] sm:$0xff]  ;;  %v11300_v42 = vpack.c.bf16 %v7833_v2, %v7832_v54  ;;  %v7122_v57 = vrot.slane %v7046_v51, 2  ;;  %v11302_v45 = vpack.c.bf16 %v7851_v46, %v7850_v26  ;;  %v7837_v38 = vld [vmem:[%s17326_s8 + $0x478] sm:$0xff] }
 0x702   : > { %11289 = vmatpush3.bf16.msra.mxu0 %v11288_v53  ;;  %11317 = vmatpush3.bf16.msra.mxu1 %v11316_v4  ;;  %v7118_v44 = vrot.slane %v7041_v58, 2  ;;  %v7863_v53 = vld [vmem:[%s17326_s8 + $0x548] sm:$0xff]  ;;  %v7882_v58 = vld [vmem:[%s17326_s8 + $0x5e0] sm:$0xff]  ;;  %v11308_v36 = vpack.c.bf16 %v7837_v38, %v7836_v33  ;;  %v7171_v46 = vld [vmem:[#allocation4 + $0x50] sm:$0x1] }
 0x703   : > { %11291 = vmatprep.subr.bf16.mxu0 %v11290_v60  ;;  %11319 = vmatprep.subr.bf16.mxu1 %v11318_v41  ;;  %v7880_v60 = vld [vmem:[%s17326_s8 + $0x5d0] sm:$0xff]  ;;  %v7049_v4 = vld [vmem:[#allocation4 + $0xe8] sm:$0xfc]  ;;  %v7048_v41 = vld [vmem:[#allocation4 + $0xe0] sm:$0xfc]  ;;  %v11328_v17 = vpack.c.bf16 %v7863_v53, %v7862_v0  ;;  %v7123_v28 = vsel %vm7084_vm2, %v7121_v15, %v7122_v57 }
 0x704   : > { %8372 = vmatmul.mubr.f32.gmra.mrb[136].mxu1 %v16283_v27  ;;  %8272 = vmatmul.mubr.f32.gmra.mrb[250].mxu0 %v7105_v49  ;;  %v7114_v27 = vsel %vm7084_vm2, %v7112_v10, %v7113_v24  ;;  %v7120_v16 = vsel %vm7084_vm2, %v7118_v44, %v7119_v34  ;;  %v7853_v10 = vld [vmem:[%s17326_s8 + $0x4f8] sm:$0xff]  ;;  %v11330_v24 = vpack.c.bf16 %v7881_v6, %v7880_v60  ;;  %v7866_v34 = vld [vmem:[%s17326_s8 + $0x560] sm:$0xff]  ;;  %v7887_v51 = vld [vmem:[%s17326_s8 + $0x608] sm:$0xff]  ;;  %v7238_v60 = vrot.slane %v7170_v56, 1 }
 0x705   : > { %8376 = vmatprep.mubr.f32.mxu1 %v16413_v3  ;;  %8276 = vmatprep.mubr.f32.mxu0 %v7114_v27  ;;  %v7111_v3 = vsel %vm7084_vm2, %v7109_v61, %v7110_v32  ;;  %v7051_v61 = vld [vmem:[#allocation4 + $0xf8] sm:$0x3]  ;;  %v7835_v32 = vld [vmem:[%s17326_s8 + $0x468] sm:$0xff]  ;;  %v11334_v44 = vpack.c.bf16 %v7883_v48, %v7882_v58  ;;  %v7886_v2 = vld [vmem:[%s17326_s8 + $0x600] sm:$0xff] }
 0x706   : > { %11293 = vmatpush3.bf16.msra.mxu0 %v11292_v29  ;;  %11321 = vmatpush3.bf16.msra.mxu1 %v11320_v25  ;;  %v7131_v49 = vrot.slane %v7051_v61, 2  ;;  %v7166_v29 = vld [vmem:[#allocation4 + $0x28] sm:$0xfe]  ;;  %v7168_v25 = vld [vmem:[#allocation4 + $0x38] sm:$0x1]  ;;  %v7906_v7 = vld [vmem:[%s17326_s8 + $0x6a0] sm:$0xff] }
 0x707   : > { %11295 = vmatprep.subr.bf16.mxu0 %v11294_v8  ;;  %11323 = vmatprep.subr.bf16.mxu1 %v11322_v40  ;;  %v11304_v8 = vpack.c.bf16 %v7835_v32, %v16604_v12  ;;  %v7167_v40 = vld [vmem:[#allocation4 + $0x30] sm:$0x1]  ;;  %v7903_v27 = vld [vmem:[%s17326_s8 + $0x688] sm:$0xff]  ;;  %v7233_v20 = vrot.slane %v7168_v25, 1  ;;  %v7869_v15 = vld [vmem:[%s17326_s8 + $0x578] sm:$0xff]  ;;  %v7236_v32 = vrot.slane %v7171_v46, 1 }
 0x708   : > { %8377 = vmatmul.mubr.f32.gmra.mrb[138].mxu1 %v16411_v35  ;;  %8277 = vmatmul.mubr.f32.gmra.mrb[252].mxu0 %v7111_v3  ;;  %v7124_v35 = vrot.slane %v7045_v11, 2  ;;  %v7884_v3 = vld [vmem:[%s17326_s8 + $0x5f0] sm:$0xff]  ;;  %v11342_v26 = vpack.c.bf16 %v7903_v27, %v7902_v43  ;;  %v7174_v0 = vld [vmem:[#allocation4 + $0x68] sm:$0xfe]  ;;  %v7177_v48 = vld [vmem:[#allocation4 + $0x80] sm:$0xfe] }
 0x709   : > { %8381 = vmatprep.mubr.f32.mxu1 %v16421_v39  ;;  %8281 = vmatprep.mubr.f32.mxu0 %v7120_v16  ;;  %v7117_v39 = vsel %vm7084_vm2, %v7115_v13, %v7116_v18  ;;  %v11306_v13 = vpack.c.bf16 %v7853_v10, %v7852_v30  ;;  %v7867_v18 = vld [vmem:[%s17326_s8 + $0x568] sm:$0xff]  ;;  %v7905_v16 = vld [vmem:[%s17326_s8 + $0x698] sm:$0xff]  ;;  %v7888_v30 = vld [vmem:[%s17326_s8 + $0x610] sm:$0xff] }
 0x70a   : > { %11297 = vmatpush3.bf16.msra.mxu0 %v11296_v55  ;;  %11325 = vmatpush3.bf16.msra.mxu1 %v11324_v62  ;;  %v7126_v63 = vsel %vm7084_vm2, %v7124_v35, %v7125_v5  ;;  %v7885_v55 = vld [vmem:[%s17326_s8 + $0x5f8] sm:$0xff]  ;;  %v7169_v62 = vld [vmem:[#allocation4 + $0x40] sm:$0xfe]  ;;  %v11336_v53 = vpack.c.bf16 %v7867_v18, %v7866_v34  ;;  %v7868_v5 = vld [vmem:[%s17326_s8 + $0x570] sm:$0xff] }
 0x70b   : > { %11299 = vmatprep.subr.bf16.mxu0 %v11298_v50  ;;  %11327 = vmatprep.subr.bf16.mxu1 %v11326_v59  ;;  %v7172_v50 = vld [vmem:[#allocation4 + $0x58] sm:$0x1]  ;;  %v7904_v59 = vld [vmem:[%s17326_s8 + $0x690] sm:$0xff]  ;;  %v11338_v35 = vpack.c.bf16 %v7885_v55, %v7884_v3  ;;  %v7235_v61 = vrot.slane %v7169_v62, 1  ;;  %v11340_v10 = vpack.c.bf16 %v7869_v15, %v7868_v5  ;;  %v7890_v25 = vld [vmem:[%s17326_s8 + $0x620] sm:$0xff] }
 0x70c   : > { %8382 = vmatmul.mubr.f32.gmra.mrb[140].mxu1 %v16419_v1  ;;  %8282 = vmatmul.mubr.f32.gmra.mrb[254].mxu0 %v7117_v39  ;;  %v7130_v1 = vrot.slane %v7049_v4, 2  ;;  %v7239_v6 = vrot.slane %v7172_v50, 1  ;;  %v7934_v39 = vld [vmem:[%s17326_s8 + $0x780] sm:$0xff]  ;;  %v11344_v4 = vpack.c.bf16 %v7887_v51, %v7886_v2  ;;  %v11346_v21 = vpack.c.bf16 %v7905_v16, %v7904_v59  ;;  %v7179_v33 = vld [vmem:[#allocation4 + $0x90] sm:$0x1]  ;;  %v7909_v43 = vld [vmem:[%s17326_s8 + $0x6b8] sm:$0xff] }
 0x70d   : > { %8386 = vmatprep.mubr.f32.mxu1 %v16429_v31  ;;  %8286 = vmatprep.mubr.f32.mxu0 %v7126_v63  ;;  %v7127_v31 = vrot.slane %v7048_v41, 2  ;;  %v7175_v41 = vld [vmem:[#allocation4 + $0x70] sm:$0x1]  ;;  %v7907_v63 = vld [vmem:[%s17326_s8 + $0x6a8] sm:$0xff]  ;;  %v7248_v34 = vrot.slane %v7179_v33, 1  ;;  %v7894_v59 = vld [vmem:[%s17326_s8 + $0x640] sm:$0xff] }
 0x70e   : > { %11301 = vmatpush3.bf16.msra.mxu0 %v11300_v42  ;;  %11329 = vmatpush3.bf16.msra.mxu1 %v11328_v17  ;;  %v7132_v54 = vsel %vm7084_vm2, %v7130_v1, %v7131_v49  ;;  %v7935_v42 = vld [vmem:[%s17326_s8 + $0x788] sm:$0xff]  ;;  %v7889_v17 = vld [vmem:[%s17326_s8 + $0x618] sm:$0xff]  ;;  %v7240_v49 = vsel %vm6955_vm1, %v7238_v60, %v7239_v6  ;;  %v7242_v58 = vrot.slane %v7175_v41, 1  ;;  %v11350_v38 = vpack.c.bf16 %v7907_v63, %v7906_v7  ;;  %v7181_v18 = vld [vmem:[#allocation4 + $0xa0] sm:$0xfe] }
 0x70f   : > { %11303 = vmatprep.subr.bf16.mxu0 %v11302_v45  ;;  %11331 = vmatprep.subr.bf16.mxu1 %v11330_v24  ;;  %v7129_v11 = vsel %vm7084_vm2, %v7127_v31, %v7128_v14  ;;  %v7173_v45 = vld [vmem:[#allocation4 + $0x60] sm:$0xfe]  ;;  %v7244_v24 = vrot.slane %v7174_v0, 1  ;;  %v11374_v1 = vpack.c.bf16 %v7935_v42, %v7934_v39  ;;  %v7178_v31 = vld [vmem:[#allocation4 + $0x88] sm:$0xfe] }
 0x710   : > { %8387 = vmatmul.mubr.f32.gmra.mrb[142].mxu1 %v16427_v52  ;;  %8287 = vmatmul.mubr.f32.gmra.mrb[0].mxu0 %v7123_v28  ;;  %v7232_v52 = vrot.slane %v7166_v29, 1  ;;  %v7241_v29 = vrot.slane %v7173_v45, 1  ;;  %v7237_v28 = vsel %vm6955_vm1, %v7235_v61, %v7236_v32  ;;  %v7180_v14 = vld [vmem:[#allocation4 + $0x98] sm:$0x1]  ;;  %v7183_v3 = vld [vmem:[#allocation4 + $0xb0] sm:$0x1] }
 0x711   : > { %8391 = vmatprep.mubr.f32.mxu1 %v16443_v19  ;;  %8291 = vmatprep.mubr.f32.mxu0 %v7132_v54  ;;  %v7230_v19 = vrot.slane %v7167_v40, 1  ;;  %v7908_v40 = vld [vmem:[%s17326_s8 + $0x6b0] sm:$0xff]  ;;  %v7251_v27 = vrot.slane %v7180_v14, 1  ;;  %v7184_v56 = vld [vmem:[#allocation4 + $0xb8] sm:$0x1]  ;;  %v7911_v50 = vld [vmem:[%s17326_s8 + $0x6c8] sm:$0xff] }
 0x712   : > { %11305 = vmatpush3.bf16.msra.mxu0 %v11304_v8  ;;  %11333 = vmatpush3.bf16.msra.mxu1 %v11332_v47  ;;  %v7234_v12 = vsel %vm6955_vm1, %v7232_v52, %v7233_v20  ;;  %v11348_v8 = vpack.c.bf16 %v7889_v17, %v7888_v30  ;;  %v7250_v47 = vrot.slane %v7178_v31, 1  ;;  %v7243_v54 = vsel %vm6955_vm1, %v7241_v29, %v7242_v58  ;;  %v7182_v20 = vld [vmem:[#allocation4 + $0xa8] sm:$0xfe]  ;;  %v7188_v15 = vld [vmem:[#allocation4 + $0xd8] sm:$0x1]  ;;  %v16770_v33 = vld [vmem:[#allocation4 + $0x100] sm:$0xff] }
 0x713   : > { %11307 = vmatprep.subr.bf16.mxu0 %v11306_v13  ;;  %11335 = vmatprep.subr.bf16.mxu1 %v11334_v44  ;;  %v7231_v57 = vsel %vm6955_vm1, %v7229_v23, %v7230_v19  ;;  %v7891_v13 = vld [vmem:[%s17326_s8 + $0x628] sm:$0xff]  ;;  %v7247_v44 = vrot.slane %v7177_v48, 1  ;;  %v11354_v55 = vpack.c.bf16 %v7909_v43, %v7908_v40  ;;  %v7253_v23 = vrot.slane %v7181_v18, 1  ;;  %v7910_v19 = vld [vmem:[%s17326_s8 + $0x6c0] sm:$0xff]  ;;  %v7296_v60 = vld [vmem:[#allocation4 + $0x38] sm:$0x3] }
 0x714   : > { %8392 = vmatmul.mubr.f32.gmra.mrb[144].mxu1 %v16435_v22  ;;  %8292 = vmatmul.mubr.f32.gmra.mrb[2].mxu0 %v7129_v11  ;;  %v7176_v22 = vld [vmem:[#allocation4 + $0x78] sm:$0x1]  ;;  %v11352_v52 = vpack.c.bf16 %v7891_v13, %v7890_v25  ;;  %v7892_v11 = vld [vmem:[%s17326_s8 + $0x630] sm:$0xff]  ;;  %v7252_v51 = vsel %vm6955_vm1, %v7250_v47, %v7251_v27  ;;  %v7257_v62 = vrot.slane %v7184_v56, 1  ;;  %v7254_v46 = vrot.slane %v7183_v3, 1  ;;  %v7914_v40 = vld [vmem:[%s17326_s8 + $0x6e0] sm:$0xff] }
 0x715   : > { %8466 = vmatprep.mubr.f32.mxu0 %v7234_v12  ;;  %v7245_v37 = vrot.slane %v7176_v22, 1  ;;  %v16738_v0 = vld [vmem:[#allocation4 + $0x28] sm:$0xfc]  ;;  %v7249_v16 = vsel %vm6955_vm1, %v7247_v44, %v7248_v34  ;;  %v11358_v22 = vpack.c.bf16 %v7911_v50, %v7910_v19  ;;  %v7185_v39 = vld [vmem:[#allocation4 + $0xc0] sm:$0xfe]  ;;  %v7263_v30 = vrot.slane %v7188_v15, 1 }
 0x716   : > { %11309 = vmatpush3.bf16.msra.mxu0 %v11308_v36  ;;  %11337 = vmatpush3.bf16.msra.mxu1 %v11336_v53  ;;  %v7893_v36 = vld [vmem:[%s17326_s8 + $0x638] sm:$0xff]  ;;  %v7186_v5 = vld [vmem:[#allocation4 + $0xc8] sm:$0xfe]  ;;  %v7187_v42 = vld [vmem:[#allocation4 + $0xd0] sm:$0x1]  ;;  %v7360_v61 = vrot.slane %v16738_v0, 2 }
 0x717   : > { %11343 = vmatprep.subr.bf16.mxu0 %v11342_v26  ;;  %11339 = vmatprep.subr.bf16.mxu1 %v11338_v35  ;;  %v7246_v9 = vsel %vm6955_vm1, %v7244_v24, %v7245_v37  ;;  %v7256_v26 = vrot.slane %v7182_v20, 1  ;;  %v11356_v35 = vpack.c.bf16 %v7893_v36, %v7892_v11  ;;  %v7895_v12 = vld [vmem:[%s17326_s8 + $0x648] sm:$0xff]  ;;  %v16753_v32 = vld [vmem:[#allocation4 + $0xe0] sm:$0xfe]  ;;  %v16755_v45 = vld [vmem:[#allocation4 + $0xf0] sm:$0x1]  ;;  %v7255_v24 = vsel %vm6955_vm1, %v7253_v23, %v7254_v46 }
 0x718   : > { %v16744_v6 = vld [vmem:[#allocation4 + $0x48] sm:$0xfc]  ;;  %v7293_v17 = vld [vmem:[#allocation4 + $0x20] sm:$0xfc]  ;;  %v11360_v37 = vpack.c.bf16 %v7895_v12, %v7894_v59  ;;  %v7259_v7 = vrot.slane %v7185_v39, 1  ;;  %v7260_v63 = vrot.slane %v7187_v42, 1 }
 0x719   : > { %8467 = vmatmul.mubr.f32.vlgmr.msra.gmra.mrb[4].mxu0 %v7231_v57  ;;  %v7912_v57 = vld [vmem:[%s17326_s8 + $0x6d0] sm:$0xff]  ;;  %v7258_v41 = vsel %vm6955_vm1, %v7256_v26, %v7257_v62  ;;  %v16759_v29 = vld [vmem:[#allocation4 + $0x58] sm:$0x3]  ;;  %v7361_v48 = vrot.slane %v7296_v60, 2  ;;  %v7366_v31 = vrot.slane %v16744_v6, 2  ;;  %v7266_v25 = vrot.slane %v16755_v45, 1 }
 0x71a   : > { %8471 = vmatprep.mubr.f32.mxu0 %v7240_v49  ;;  %11345 = vmatpush3.bf16.msra.mxu0 %v11344_v4  ;;  %v7913_v4 = vld [vmem:[%s17326_s8 + $0x6d8] sm:$0xff]  ;;  %v16768_v14 = vld [vmem:[#allocation4 + $0x68] sm:$0xfc]  ;;  %v7357_v13 = vrot.slane %v7293_v17, 2  ;;  %v16784_v34 = vld [vmem:[%s17326_s8 + $0x700] sm:$0xff]  ;;  %v7367_v23 = vrot.slane %v16759_v29, 2 }
 0x71b   : > { %11347 = vmatprep.subr.bf16.mxu0 %v11346_v21  ;;  %11341 = vmatpush3.bf16.msra.mxu1 %v11340_v10  ;;  %v7262_v21 = vrot.slane %v7186_v5, 1  ;;  %v7295_v10 = vld [vmem:[#allocation4 + $0x30] sm:$0x3]  ;;  %v7192_v49 = vld [vmem:[#allocation4 + $0xf8] sm:$0x1]  ;;  %v11362_v58 = vpack.c.bf16 %v7913_v4, %v7912_v57  ;;  %v7915_v43 = vld [vmem:[%s17326_s8 + $0x6e8] sm:$0xff]  ;;  %v7362_v11 = vsel %vm7084_vm2, %v7360_v61, %v7361_v48 }
 0x71c   : > { %11375 = vmatprep.subr.bf16.mxu1 %v11374_v1  ;;  %v7190_v1 = vld [vmem:[#allocation4 + $0xe8] sm:$0xfe]  ;;  %v7269_v44 = vrot.slane %v7192_v49, 1  ;;  %v16794_v20 = vld [vmem:[#allocation4 + $0x110] sm:$0x1]  ;;  %v7898_v26 = vld [vmem:[%s17326_s8 + $0x660] sm:$0xff]  ;;  %v7368_v48 = vsel %vm7084_vm2, %v7366_v31, %v7367_v23 }
 0x71d   : > { %8472 = vmatmul.mubr.f32.gmra.mrb[6].mxu0 %v7237_v28  ;;  %v7896_v28 = vld [vmem:[%s17326_s8 + $0x650] sm:$0xff]  ;;  %v7264_v47 = vsel %vm6955_vm1, %v7262_v21, %v7263_v30  ;;  %v7268_v27 = vrot.slane %v7190_v1, 1  ;;  %v16789_v18 = vld [vmem:[%s17326_s8 + $0x708] sm:$0xff]  ;;  %v16796_v56 = vld [vmem:[#allocation4 + $0x40] sm:$0xfc]  ;;  %v7272_v42 = vrot.slane %v16794_v20, 1 }
 0x71e   : > { %8476 = vmatprep.mubr.f32.mxu0 %v7246_v9  ;;  %11349 = vmatpush3.bf16.msra.mxu0 %v11348_v8  ;;  %v7897_v8 = vld [vmem:[%s17326_s8 + $0x658] sm:$0xff]  ;;  %v7358_v9 = vrot.slane %v7295_v10, 2  ;;  %v16798_v3 = vld [vmem:[#allocation4 + $0x50] sm:$0x3]  ;;  %v7899_v62 = vld [vmem:[%s17326_s8 + $0x668] sm:$0xff]  ;;  %v11376_v39 = vpack.c.bf16 %v16789_v18, %v16784_v34  ;;  %v7363_v57 = vrot.slane %v16796_v56, 2 }
 0x71f   : > { %11351 = vmatprep.subr.bf16.mxu0 %v11350_v38  ;;  %v7265_v38 = vrot.slane %v16753_v32, 1  ;;  %v11364_v36 = vpack.c.bf16 %v7897_v8, %v7896_v28  ;;  %v7916_v0 = vld [vmem:[%s17326_s8 + $0x6f0] sm:$0xff]  ;;  %v7917_v12 = vld [vmem:[%s17326_s8 + $0x6f8] sm:$0xff]  ;;  %v7364_v4 = vrot.slane %v16798_v3, 2  ;;  %v7301_v30 = vld [vmem:[#allocation4 + $0x60] sm:$0xfc] }
 0x720   : > { %v7359_v5 = vsel %vm7084_vm2, %v7357_v13, %v7358_v9  ;;  %v7936_v60 = vld [vmem:[%s17326_s8 + $0x790] sm:$0xff]  ;;  %v16844_v32 = vld [vmem:[%s17326_s8 + $0x678] sm:$0xff]  ;;  %v16861_v1 = vld [vmem:[%s17326_s8 + $0x7a0] sm:$0xff] }
 0x721   : > { %v6738_v2 = vpop.trf.xlu1  ;;  %8477 = vmatmul.mubr.f32.gmra.mrb[8].mxu0 %v7243_v54  ;;  %v16791_v54 = vld [vmem:[#allocation4 + $0x100] sm:$0xfe]  ;;  %v16839_v61 = vld [vmem:[%s17326_s8 + $0x670] sm:$0xff]  ;;  %v16854_v21 = vld [vmem:[%s17326_s8 + $0x718] sm:$0xff] }
 0x722   : > { %v6825_v53 = vrot.slane %v6738_v2, 7  ;;  %8481 = vmatprep.mubr.f32.mxu0 %v7252_v51  ;;  %11353 = vmatpush3.bf16.msra.mxu0 %v11352_v52  ;;  %v7261_v52 = vsel %vm6955_vm1, %v7259_v7, %v7260_v63  ;;  %v16804_v2 = vld [vmem:[#allocation4 + $0x78] sm:$0x3]  ;;  %v11366_v51 = vpack.c.bf16 %v7915_v43, %v7914_v40  ;;  %v7271_v15 = vrot.slane %v16791_v54, 1  ;;  %v16849_v45 = vld [vmem:[%s17326_s8 + $0x710] sm:$0xff]  ;;  %v16866_v49 = vld [vmem:[%s17326_s8 + $0x7a8] sm:$0xff] }
 0x723   : > { %11355 = vmatprep.subr.bf16.mxu0 %v11354_v55  ;;  %v7303_v17 = vld [vmem:[#allocation4 + $0x70] sm:$0x3]  ;;  %v7373_v63 = vrot.slane %v16804_v2, 2  ;;  %v16871_v29 = vld [vmem:[%s17326_s8 + $0x880] sm:$0xff]  ;;  %v7967_v28 = vld [vmem:[%s17326_s8 + $0x888] sm:$0xff]  ;;  %v7365_v40 = vsel %vm7084_vm2, %v7363_v57, %v7364_v4  ;;  %v7369_v43 = vrot.slane %v7301_v30, 2  ;;  %v11380_v34 = vpack.c.bf16 %v16854_v21, %v16849_v45 }
 0x724   : > { %6872 = vst [vmem:[#allocation4 + $0x108] sm:$0xfe] %v6825_v53  ;;  %6874 = vst [vmem:[#allocation4 + $0x118] sm:$0x1] %v6825_v53  ;;  %v7372_v53 = vrot.slane %v16768_v14, 2  ;;  %v9770_v10 = vpop.f32.mrb[228].mxu0  ;;  %v7273_v9 = vsel %vm6955_vm1, %v7271_v15, %v7272_v42  ;;  %v11382_v3 = vpack.c.bf16 %v16866_v49, %v16861_v1 }
 0x725   : > { %8482 = vmatmul.mubr.f32.gmra.mrb[10].mxu0 %v7249_v16  ;;  %v7270_v16 = vsel %vm6955_vm1, %v7268_v27, %v7269_v44  ;;  %v16879_v8 = vld [vmem:[#allocation4 + $0x88] sm:$0xfc]  ;;  %v7370_v6 = vrot.slane %v7303_v17, 2  ;;  %v11372_v27 = vpack.c.bf16 %v16844_v32, %v16839_v61  ;;  %v16894_v18 = vld [vmem:[%s17326_s8 + $0x720] sm:$0xff]  ;;  %v16921_v2 = vld [vmem:[%s17326_s8 + $0x7b0] sm:$0xff] }
 0x726   : > { %8486 = vmatprep.mubr.f32.mxu0 %v7258_v41  ;;  %11357 = vmatpush3.bf16.msra.mxu0 %v11356_v35  ;;  %v7267_v35 = vsel %vm6955_vm1, %v7265_v38, %v7266_v25  ;;  %v11368_v41 = vpack.c.bf16 %v7899_v62, %v7898_v26  ;;  %v16881_v38 = vld [vmem:[#allocation4 + $0x98] sm:$0x3]  ;;  %v7423_v44 = vld [vmem:[#allocation4 + $0x48] sm:$0xff]  ;;  %v7374_v26 = vsel %vm7084_vm2, %v7372_v53, %v7373_v63  ;;  %v7422_v62 = vld [vmem:[#allocation4 + $0x40] sm:$0xff] }
 0x727   : > { %11359 = vmatprep.subr.bf16.mxu0 %v11358_v22  ;;  %v7937_v22 = vld [vmem:[%s17326_s8 + $0x798] sm:$0xff]  ;;  %v16899_v54 = vld [vmem:[%s17326_s8 + $0x728] sm:$0xff]  ;;  %v7379_v23 = vrot.slane %v16881_v38, 2  ;;  %v7371_v15 = vsel %vm7084_vm2, %v7369_v43, %v7370_v6  ;;  %v7968_v53 = vld [vmem:[%s17326_s8 + $0x890] sm:$0xff] }
 0x728   : > { %v11378_v7 = vpack.c.bf16 %v7937_v22, %v7936_v60  ;;  %v16940_v60 = vld [vmem:[#allocation4 + $0xa0] sm:$0xfc]  ;;  %v16949_v57 = vld [vmem:[%s17326_s8 + $0x730] sm:$0xff]  ;;  %v16954_v4 = vld [vmem:[%s17326_s8 + $0x738] sm:$0xff] }
 0x729   : > { %8487 = vmatmul.mubr.f32.gmra.mrb[12].mxu0 %v7255_v24  ;;  %v16956_v61 = vld [vmem:[#allocation4 + $0xb0] sm:$0x3]  ;;  %v7424_v49 = vld [vmem:[#allocation4 + $0x60] sm:$0xff]  ;;  %v7316_v43 = vld [vmem:[#allocation4 + $0xd8] sm:$0x3] }
 0x72a   : > { %8491 = vmatprep.mubr.f32.mxu0 %v7264_v47  ;;  %11361 = vmatpush3.bf16.msra.mxu0 %v11360_v37  ;;  %v11370_v37 = vpack.c.bf16 %v7917_v12, %v7916_v0  ;;  %v16885_v47 = vld [vmem:[#allocation4 + $0x80] sm:$0xfc]  ;;  %v7310_v0 = vld [vmem:[#allocation4 + $0xa8] sm:$0xfc]  ;;  %v7969_v12 = vld [vmem:[%s17326_s8 + $0x898] sm:$0xff] }
 0x72b   : > { %v16800_v55 = vld [vmem:[#allocation4 + $0x108] sm:$0xff]  ;;  %11363 = vmatprep.subr.bf16.mxu0 %v11362_v58  ;;  %v7196_v50 = vld [vmem:[#allocation4 + $0x118] sm:$0x1]  ;;  %v9771_v58 = vpop.f32.mrb[229].mxu0  ;;  %v7384_v30 = vrot.slane %v7310_v0, 2 }
 0x72c   : > { %v7194_v19 = vld [vmem:[#allocation4 + $0x108] sm:$0xfe]  ;;  %8396 = vmatprep.mubr.f32.mxu1 %v16800_v55  ;;  %v7275_v59 = vrot.slane %v7196_v50, 1  ;;  %v9772_v13 = vadd.f32 %v9771_v58, %v9770_v10  ;;  %v9773_v56 = vpop.f32.mrb[230].mxu0  ;;  %v16962_v10 = vld [vmem:[%s17326_s8 + $0x810] sm:$0xff]  ;;  %v7381_v58 = vrot.slane %v16940_v60, 2 }
 0x72d   : > { %v7274_v46 = vrot.slane %v7194_v19, 1  ;;  %8397 = vmatmul.mubr.f32.gmra.mrb[146].mxu1 %v16770_v33  ;;  %8492 = vmatmul.mubr.f32.gmra.mrb[14].mxu0 %v7261_v52  ;;  %v9826_v25 = vpop.f32.mrb[116].mxu1  ;;  %v16901_v52 = vld [vmem:[#allocation4 + $0x90] sm:$0x3]  ;;  %v16911_v19 = vld [vmem:[%s17326_s8 + $0x800] sm:$0xff]  ;;  %v16916_v50 = vld [vmem:[%s17326_s8 + $0x808] sm:$0xff] }
 0x72e   : > { %8496 = vmatprep.mubr.f32.mxu0 %v7270_v16  ;;  %8571 = vmatprep.mubr.f32.mxu1 %v7362_v11  ;;  %v9827_v31 = vpop.f32.mrb[117].mxu1  ;;  %v11406_v11 = vpack.c.bf16 %v7967_v28, %v16871_v29  ;;  %v7312_v16 = vld [vmem:[#allocation4 + $0xb8] sm:$0x3]  ;;  %v7376_v14 = vrot.slane %v16901_v52, 2  ;;  %v11408_v42 = vpack.c.bf16 %v16916_v50, %v16911_v19  ;;  %v11410_v29 = vpack.c.bf16 %v7969_v12, %v7968_v53  ;;  %v16982_v28 = vld [vmem:[%s17326_s8 + $0x8a0] sm:$0xff]  ;;  %v17043_v12 = vld [vmem:[%s17326_s8 + $0x750] sm:$0xff] }
 0x72f   : > { %11365 = vmatpush3.bf16.msra.mxu0 %v11364_v36  ;;  %v7276_v24 = vsel %vm6955_vm1, %v7274_v46, %v7275_v59  ;;  %v9828_v20 = vadd.f32 %v9827_v31, %v9826_v25  ;;  %v7378_v36 = vrot.slane %v16879_v8, 2  ;;  %v7375_v46 = vrot.slane %v16885_v47, 2  ;;  %v7941_v59 = vld [vmem:[%s17326_s8 + $0x7b8] sm:$0xff]  ;;  %v16984_v8 = vld [vmem:[#allocation4 + $0xc0] sm:$0xfc] }
 0x730   : > { %11367 = vmatprep.subr.bf16.mxu0 %v11366_v51  ;;  %v9774_v51 = vpop.f32.mrb[231].mxu0  ;;  %v11386_v21 = vpack.c.bf16 %v7941_v59, %v16921_v2  ;;  %v7385_v17 = vrot.slane %v7312_v16, 2  ;;  %v11388_v47 = vpack.c.bf16 %v16954_v4, %v16949_v57  ;;  %v16998_v31 = vld [vmem:[%s17326_s8 + $0x740] sm:$0xff]  ;;  %v17048_v60 = vld [vmem:[%s17326_s8 + $0x758] sm:$0xff] }
 0x731   : > { %8497 = vmatmul.mubr.f32.gmra.mrb[16].mxu0 %v7267_v35  ;;  %8572 = vmatmul.mubr.f32.vlgmr.msra.gmra.mrb[148].mxu1 %v7359_v5  ;;  %v16930_v35 = vadd.f32 %v9828_v20, %v9772_v13  ;;  %v9775_v5 = vadd.f32 %v9774_v51, %v9773_v56  ;;  %v9829_v22 = vpop.f32.mrb[118].mxu1  ;;  %v9776_v45 = vpop.f32.mrb[232].mxu0  ;;  %v7380_v1 = vsel %vm7084_vm2, %v7378_v36, %v7379_v23  ;;  %v7382_v13 = vrot.slane %v16956_v61, 2  ;;  %v17012_v56 = vld [vmem:[%s17326_s8 + $0x820] sm:$0xff]  ;;  %v7944_v36 = vld [vmem:[%s17326_s8 + $0x7d0] sm:$0xff] }
 0x732   : > { %8576 = vmatprep.mubr.f32.mxu1 %v7368_v48  ;;  %11377 = vmatpush3.bf16.msra.mxu1 %v11376_v39  ;;  %v11384_v39 = vpack.c.bf16 %v16899_v54, %v16894_v18  ;;  %v9830_v32 = vpop.f32.mrb[119].mxu1  ;;  %v9777_v63 = vpop.f32.mrb[233].mxu0  ;;  %v7943_v48 = vld [vmem:[%s17326_s8 + $0x7c8] sm:$0xff]  ;;  %v7377_v25 = vsel %vm7084_vm2, %v7375_v46, %v7376_v14  ;;  %v7386_v18 = vsel %vm7084_vm2, %v7384_v30, %v7385_v17  ;;  %v7426_v19 = vld [vmem:[#allocation4 + $0x80] sm:$0xff]  ;;  %v7391_v51 = vrot.slane %v7316_v43, 2  ;;  %v17059_v61 = vld [vmem:[%s17326_s8 + $0x830] sm:$0xff] }
 0x733   : > { %11369 = vmatpush3.bf16.msra.mxu0 %v11368_v41  ;;  %8501 = vmatprep.mubr.f32.mxu0 %v7276_v24  ;;  %v7425_v41 = vld [vmem:[#allocation4 + $0x68] sm:$0xff]  ;;  %v16967_v24 = vld [vmem:[%s17326_s8 + $0x818] sm:$0xff]  ;;  %v9778_v38 = vadd.f32 %v9777_v63, %v9776_v45  ;;  %v17032_v46 = vld [vmem:[#allocation4 + $0xe0] sm:$0xfc]  ;;  %v7383_v0 = vsel %vm7084_vm2, %v7381_v58, %v7382_v13 }
 0x734   : > { %11371 = vmatprep.subr.bf16.mxu0 %v11370_v37  ;;  %11379 = vmatprep.subr.bf16.mxu1 %v11378_v7  ;;  %v16972_v37 = vld [vmem:[%s17326_s8 + $0x7c0] sm:$0xff]  ;;  %v9831_v7 = vadd.f32 %v9830_v32, %v9829_v22  ;;  %v7427_v54 = vld [vmem:[#allocation4 + $0x88] sm:$0xff]  ;;  %v11412_v52 = vpack.c.bf16 %v16967_v24, %v16962_v10  ;;  %v7320_v14 = vld [vmem:[#allocation4 + $0xf8] sm:$0x3]  ;;  %v7393_v45 = vrot.slane %v17032_v46, 2 }
 0x735   : > { %8502 = vmatmul.mubr.f32.gmra.mrb[18].mxu0 %v7273_v9  ;;  %8577 = vmatmul.mubr.f32.gmra.mrb[150].mxu1 %v7365_v40  ;;  %v7971_v9 = vld [vmem:[%s17326_s8 + $0x8a8] sm:$0xff]  ;;  %v11390_v20 = vpack.c.bf16 %v7943_v48, %v16972_v37  ;;  %v17050_v22 = vld [vmem:[#allocation4 + $0xf0] sm:$0x3]  ;;  %v17064_v32 = vld [vmem:[%s17326_s8 + $0x838] sm:$0xff]  ;;  %v7397_v24 = vrot.slane %v7320_v14, 2 }
 0x736   : > { %8581 = vmatprep.mubr.f32.mxu1 %v7374_v26  ;;  %8676 = vmatprep.mubr.f32.mxu0 %v7423_v44  ;;  %v7314_v40 = vld [vmem:[#allocation4 + $0xc8] sm:$0xfc]  ;;  %v16991_v6 = vadd.f32 %v9831_v7, %v9775_v5  ;;  %v7315_v44 = vld [vmem:[#allocation4 + $0xd0] sm:$0x3]  ;;  %v11414_v50 = vpack.c.bf16 %v7971_v9, %v16982_v28  ;;  %v7945_v26 = vld [vmem:[%s17326_s8 + $0x7d8] sm:$0xff]  ;;  %v11420_v43 = vpack.c.bf16 %v17064_v32, %v17059_v61 }
 0x737   : > { %11373 = vmatpush3.bf16.msra.mxu0 %v11372_v27  ;;  %11381 = vmatpush3.bf16.msra.mxu1 %v11380_v34  ;;  %v17003_v27 = vld [vmem:[%s17326_s8 + $0x748] sm:$0xff]  ;;  %v9832_v34 = vpop.f32.mrb[120].mxu1  ;;  %v7390_v2 = vrot.slane %v7314_v40, 2  ;;  %v7388_v16 = vrot.slane %v7315_v44, 2  ;;  %v7973_v5 = vld [vmem:[%s17326_s8 + $0x8b8] sm:$0xff]  ;;  %v11394_v4 = vpack.c.bf16 %v7945_v26, %v7944_v36  ;;  %v7428_v30 = vld [vmem:[#allocation4 + $0xa0] sm:$0xff] }
 0x738   : > { %11383 = vmatprep.subr.bf16.mxu1 %v11382_v3  ;;  %11407 = vmatprep.subr.bf16.mxu0 %v11406_v11  ;;  %v17017_v3 = vld [vmem:[%s17326_s8 + $0x828] sm:$0xff]  ;;  %v7387_v11 = vrot.slane %v16984_v8, 2  ;;  %v9833_v23 = vpop.f32.mrb[121].mxu1  ;;  %v11392_v53 = vpack.c.bf16 %v17003_v27, %v16998_v31  ;;  %v7974_v7 = vld [vmem:[%s17326_s8 + $0x8c0] sm:$0xff]  ;;  %v7324_v48 = vld [vmem:[#allocation4 + $0x118] sm:$0x3]  ;;  %v11396_v8 = vpack.c.bf16 %v17048_v60, %v17043_v12 }
 0x739   : > { %8582 = vmatmul.mubr.f32.gmra.mrb[152].mxu1 %v7371_v15  ;;  %v9834_v59 = vadd.f32 %v9833_v23, %v9832_v34  ;;  %v7318_v15 = vld [vmem:[#allocation4 + $0xe8] sm:$0xfc]  ;;  %v11416_v57 = vpack.c.bf16 %v17017_v3, %v17012_v56  ;;  %v7323_v13 = vld [vmem:[#allocation4 + $0x110] sm:$0x3]  ;;  %v7958_v44 = vld [vmem:[%s17326_s8 + $0x840] sm:$0xff] }
 0x73a   : > { %8677 = vmatmul.mubr.f32.vlgmr.msra.gmra.mrb[20].mxu0 %v7422_v62  ;;  %8586 = vmatprep.mubr.f32.mxu1 %v7380_v1  ;;  %v17030_v62 = vld [vmem:[%s17326_s8 + $0x8b0] sm:$0xff]  ;;  %v7396_v10 = vrot.slane %v7318_v15, 2  ;;  %v7947_v37 = vld [vmem:[%s17326_s8 + $0x7e8] sm:$0xff]  ;;  %v7430_v56 = vld [vmem:[#allocation4 + $0xc0] sm:$0xff] }
 0x73b   : > { %8681 = vmatprep.mubr.f32.mxu0 %v7425_v41  ;;  %11385 = vmatpush3.bf16.msra.mxu1 %v11384_v39  ;;  %v17052_v39 = vadd.f32 %v9834_v59, %v9778_v38  ;;  %v17070_v41 = vld [vmem:[%s17326_s8 + $0x7e0] sm:$0xff]  ;;  %v11418_v17 = vpack.c.bf16 %v7973_v5, %v17030_v62  ;;  %v7975_v63 = vld [vmem:[%s17326_s8 + $0x8c8] sm:$0xff]  ;;  %v7948_v36 = vld [vmem:[%s17326_s8 + $0x7f0] sm:$0xff]  ;;  %v7400_v62 = vrot.slane %v7323_v13, 2 }
 0x73c   : > { %11409 = vmatpush3.bf16.msra.mxu0 %v11408_v42  ;;  %11387 = vmatprep.subr.bf16.mxu1 %v11386_v21  ;;  %v7429_v42 = vld [vmem:[#allocation4 + $0xa8] sm:$0xff]  ;;  %v7392_v21 = vsel %vm7084_vm2, %v7390_v2, %v7391_v51  ;;  %v17090_v38 = vld [vmem:[%s17326_s8 + $0x760] sm:$0xff]  ;;  %v11422_v31 = vpack.c.bf16 %v7975_v63, %v7974_v7  ;;  %v7949_v23 = vld [vmem:[%s17326_s8 + $0x7f8] sm:$0xff] }
 0x73d   : > { %8587 = vmatmul.mubr.f32.gmra.mrb[154].mxu1 %v7377_v25  ;;  %11411 = vmatprep.subr.bf16.mxu0 %v11410_v29  ;;  %v7394_v29 = vrot.slane %v17050_v22, 2  ;;  %v7322_v58 = vld [vmem:[#allocation4 + $0x108] sm:$0xfc]  ;;  %v7321_v25 = vld [vmem:[#allocation4 + $0x100] sm:$0xfc]  ;;  %v7977_v46 = vld [vmem:[%s17326_s8 + $0x8d8] sm:$0xff]  ;;  %v11402_v12 = vpack.c.bf16 %v7949_v23, %v7948_v36 }
 0x73e   : > { %8682 = vmatmul.mubr.f32.gmra.mrb[22].mxu0 %v7424_v49  ;;  %8591 = vmatprep.mubr.f32.mxu1 %v7386_v18  ;;  %v7389_v49 = vsel %vm7084_vm2, %v7387_v11, %v7388_v16  ;;  %v7931_v27 = vld [vmem:[%s17326_s8 + $0x768] sm:$0xff]  ;;  %v7402_v3 = vrot.slane %v7322_v58, 2  ;;  %v7403_v11 = vrot.slane %v7324_v48, 2  ;;  %v7399_v26 = vrot.slane %v7321_v25, 2  ;;  %v7932_v59 = vld [vmem:[%s17326_s8 + $0x770] sm:$0xff]  ;;  %v7933_v60 = vld [vmem:[%s17326_s8 + $0x778] sm:$0xff] }
 0x73f   : > { %8686 = vmatprep.mubr.f32.mxu0 %v7427_v54  ;;  %11389 = vmatpush3.bf16.msra.mxu1 %v11388_v47  ;;  %v11398_v47 = vpack.c.bf16 %v7947_v37, %v17070_v41  ;;  %v7959_v34 = vld [vmem:[%s17326_s8 + $0x848] sm:$0xff]  ;;  %v17106_v54 = vld [vmem:[#allocation4 + $0x58] sm:$0x1]  ;;  %v7395_v51 = vsel %vm7084_vm2, %v7393_v45, %v7394_v29  ;;  %v7438_v16 = vld [vmem:[#allocation4 + $0x40] sm:$0xfe] }
 0x740   : > { %11413 = vmatpush3.bf16.msra.mxu0 %v11412_v52  ;;  %11391 = vmatprep.subr.bf16.mxu1 %v11390_v20  ;;  %v9779_v1 = vpop.f32.mrb[234].mxu0  ;;  %v17104_v18 = vld [vmem:[#allocation4 + $0x48] sm:$0xfe]  ;;  %v7398_v20 = vsel %vm7084_vm2, %v7396_v10, %v7397_v24  ;;  %v7440_v5 = vld [vmem:[#allocation4 + $0x50] sm:$0x1]  ;;  %v7506_v45 = vrot.slane %v17106_v54, 1  ;;  %v7401_v10 = vsel %vm7084_vm2, %v7399_v26, %v7400_v62 }
 0x741   : > { %8592 = vmatmul.mubr.f32.gmra.mrb[156].mxu1 %v7383_v0  ;;  %11415 = vmatprep.subr.bf16.mxu0 %v11414_v50  ;;  %v9780_v28 = vpop.f32.mrb[235].mxu0  ;;  %v7431_v2 = vld [vmem:[#allocation4 + $0xc8] sm:$0xff]  ;;  %v11400_v0 = vpack.c.bf16 %v7931_v27, %v17090_v38  ;;  %v7960_v22 = vld [vmem:[%s17326_s8 + $0x850] sm:$0xff]  ;;  %v7505_v32 = vrot.slane %v17104_v18, 1  ;;  %v7978_v41 = vld [vmem:[%s17326_s8 + $0x8e0] sm:$0xff]  ;;  %v7502_v24 = vrot.slane %v7438_v16, 1 }
 0x742   : > { %8687 = vmatmul.mubr.f32.gmra.mrb[24].mxu0 %v7426_v19  ;;  %8596 = vmatprep.mubr.f32.mxu1 %v7392_v21  ;;  %v9781_v9 = vadd.f32 %v9780_v28, %v9779_v1  ;;  %v7976_v19 = vld [vmem:[%s17326_s8 + $0x8d0] sm:$0xff]  ;;  %v17126_v15 = vld [vmem:[#allocation4 + $0x68] sm:$0xfe]  ;;  %v7503_v37 = vrot.slane %v7440_v5, 1  ;;  %v7962_v63 = vld [vmem:[%s17326_s8 + $0x860] sm:$0xff] }
 0x743   : > { %8691 = vmatprep.mubr.f32.mxu0 %v7429_v42  ;;  %11393 = vmatpush3.bf16.msra.mxu1 %v11392_v53  ;;  %v9835_v40 = vpop.f32.mrb[122].mxu1  ;;  %v11424_v53 = vpack.c.bf16 %v7959_v34, %v7958_v44  ;;  %v7961_v42 = vld [vmem:[%s17326_s8 + $0x858] sm:$0xff]  ;;  %v11426_v61 = vpack.c.bf16 %v7977_v46, %v7976_v19  ;;  %v7979_v21 = vld [vmem:[%s17326_s8 + $0x8e8] sm:$0xff]  ;;  %v7511_v7 = vrot.slane %v17126_v15, 1  ;;  %v7442_v29 = vld [vmem:[#allocation4 + $0x60] sm:$0xfe]  ;;  %v7507_v13 = vsel %vm6955_vm1, %v7505_v32, %v7506_v45 }
 0x744   : > { %11417 = vmatpush3.bf16.msra.mxu0 %v11416_v57  ;;  %11395 = vmatprep.subr.bf16.mxu1 %v11394_v4  ;;  %v9836_v52 = vpop.f32.mrb[123].mxu1  ;;  %v7404_v57 = vsel %vm7084_vm2, %v7402_v3, %v7403_v11  ;;  %v7432_v4 = vld [vmem:[#allocation4 + $0xe0] sm:$0xff]  ;;  %v7963_v1 = vld [vmem:[%s17326_s8 + $0x868] sm:$0xff]  ;;  %v7444_v58 = vld [vmem:[#allocation4 + $0x70] sm:$0x1]  ;;  %v11428_v28 = vpack.c.bf16 %v7961_v42, %v7960_v22  ;;  %v7508_v34 = vrot.slane %v7442_v29, 1 }
 0x745   : > { %8597 = vmatmul.mubr.f32.gmra.mrb[158].mxu1 %v7389_v49  ;;  %11419 = vmatprep.subr.bf16.mxu0 %v11418_v17  ;;  %v9837_v50 = vadd.f32 %v9836_v52, %v9835_v40  ;;  %v7433_v17 = vld [vmem:[#allocation4 + $0xe8] sm:$0xff]  ;;  %v11404_v49 = vpack.c.bf16 %v7933_v60, %v7932_v59  ;;  %v7569_v25 = vld [vmem:[#allocation4 + $0x58] sm:$0x3]  ;;  %v17159_v40 = vld [vmem:[#allocation4 + $0x80] sm:$0xfe]  ;;  %v11432_v44 = vpack.c.bf16 %v7963_v1, %v7962_v63  ;;  %v7509_v52 = vrot.slane %v7444_v58, 1 }
 0x746   : > { %8692 = vmatmul.mubr.f32.gmra.mrb[26].mxu0 %v7428_v30  ;;  %8601 = vmatprep.mubr.f32.mxu1 %v7398_v20  ;;  %v7445_v30 = vld [vmem:[#allocation4 + $0x78] sm:$0x1]  ;;  %v17156_v48 = vld [vmem:[#allocation4 + $0x88] sm:$0xfe]  ;;  %v7980_v18 = vld [vmem:[%s17326_s8 + $0x8f0] sm:$0xff]  ;;  %v7634_v23 = vrot.slane %v7569_v25, 2 }
 0x747   : > { %8696 = vmatprep.mubr.f32.mxu0 %v7431_v2  ;;  %11397 = vmatpush3.bf16.msra.mxu1 %v11396_v8  ;;  %v17128_v14 = vadd.f32 %v9837_v50, %v9781_v9  ;;  %v7449_v8 = vld [vmem:[#allocation4 + $0x98] sm:$0x1]  ;;  %v7567_v38 = vld [vmem:[#allocation4 + $0x48] sm:$0xfc]  ;;  %v11430_v9 = vpack.c.bf16 %v7979_v21, %v7978_v41  ;;  %v7512_v27 = vrot.slane %v7445_v30, 1  ;;  %v7517_v20 = vrot.slane %v17156_v48, 1 }
 0x748   : > { %11421 = vmatpush3.bf16.msra.mxu0 %v11420_v43  ;;  %11399 = vmatprep.subr.bf16.mxu1 %v11398_v47  ;;  %v17161_v43 = vld [vmem:[#allocation4 + $0x90] sm:$0x1]  ;;  %v17163_v47 = vld [vmem:[#allocation4 + $0x40] sm:$0xfc]  ;;  %v7981_v54 = vld [vmem:[%s17326_s8 + $0x8f8] sm:$0xff]  ;;  %v7633_v36 = vrot.slane %v7567_v38, 2 }
 0x749   : > { %8602 = vmatmul.mubr.f32.gmra.mrb[160].mxu1 %v7395_v51  ;;  %11423 = vmatprep.subr.bf16.mxu0 %v11422_v31  ;;  %v7504_v31 = vsel %vm6955_vm1, %v7502_v24, %v7503_v37  ;;  %v7964_v3 = vld [vmem:[%s17326_s8 + $0x870] sm:$0xff]  ;;  %v7965_v11 = vld [vmem:[%s17326_s8 + $0x878] sm:$0xff]  ;;  %v7514_v19 = vrot.slane %v17159_v40, 1  ;;  %v7630_v2 = vrot.slane %v17163_v47, 2  ;;  %v11434_v51 = vpack.c.bf16 %v7981_v54, %v7980_v18  ;;  %v7451_v26 = vld [vmem:[#allocation4 + $0xa8] sm:$0xfe] }
 0x74a   : > { %8697 = vmatmul.mubr.f32.gmra.mrb[28].mxu0 %v7430_v56  ;;  %8606 = vmatprep.mubr.f32.mxu1 %v7404_v57  ;;  %v7518_v56 = vrot.slane %v7449_v8, 1  ;;  %v7568_v50 = vld [vmem:[#allocation4 + $0x50] sm:$0x3]  ;;  %v7453_v62 = vld [vmem:[#allocation4 + $0xb8] sm:$0x1]  ;;  %v7513_v59 = vsel %vm6955_vm1, %v7511_v7, %v7512_v27  ;;  %v12071_v15 = vld [vmem:[#allocation2] sm:$0xff]  ;;  %v7635_v45 = vsel %vm7084_vm2, %v7633_v36, %v7634_v23 }
 0x74b   : > { %8701 = vmatprep.mubr.f32.mxu0 %v7433_v17  ;;  %11401 = vmatpush3.bf16.msra.mxu1 %v11400_v0  ;;  %v7571_v46 = vld [vmem:[#allocation4 + $0x68] sm:$0xfc]  ;;  %v7573_v0 = vld [vmem:[#allocation4 + $0x78] sm:$0x3]  ;;  %v7450_v16 = vld [vmem:[#allocation4 + $0xa0] sm:$0xfe] }
 0x74c   : > { %11425 = vmatpush3.bf16.msra.mxu0 %v11424_v53  ;;  %11403 = vmatprep.subr.bf16.mxu1 %v11402_v12  ;;  %v7452_v5 = vld [vmem:[#allocation4 + $0xb0] sm:$0x1]  ;;  %v7510_v53 = vsel %vm6955_vm1, %v7508_v34, %v7509_v52  ;;  %v11436_v12 = vpack.c.bf16 %v7965_v11, %v7964_v3  ;;  %v7570_v60 = vld [vmem:[#allocation4 + $0x60] sm:$0xfc]  ;;  %v17186_v42 = vld [vmem:[#allocation4 + $0x88] sm:$0xfc]  ;;  %v7519_v32 = vsel %vm6955_vm1, %v7517_v20, %v7518_v56 }
 0x74d   : > { %8607 = vmatmul.mubr.f32.gmra.mrb[162].mxu1 %v7401_v10  ;;  %11427 = vmatprep.subr.bf16.mxu0 %v11426_v61  ;;  %v7572_v22 = vld [vmem:[#allocation4 + $0x70] sm:$0x3]  ;;  %v7631_v57 = vrot.slane %v7568_v50, 2  ;;  %v7639_v61 = vrot.slane %v7571_v46, 2  ;;  %v7640_v41 = vrot.slane %v7573_v0, 2  ;;  %v7520_v21 = vrot.slane %v7450_v16, 1 }
 0x74e   : > { %8702 = vmatmul.mubr.f32.gmra.mrb[30].mxu0 %v7432_v4  ;;  %8781 = vmatprep.mubr.f32.mxu1 %v7507_v13  ;;  %v7523_v4 = vrot.slane %v7451_v26, 1  ;;  %v7577_v30 = vld [vmem:[#allocation4 + $0x98] sm:$0x3]  ;;  %v7454_v17 = vld [vmem:[#allocation4 + $0xc0] sm:$0xfe]  ;;  %v7521_v10 = vrot.slane %v7452_v5, 1 }
 0x74f   : > { %8706 = vmatprep.mubr.f32.mxu0 %v16800_v55  ;;  %11405 = vmatpush3.bf16.msra.mxu1 %v11404_v49  ;;  %v7515_v55 = vrot.slane %v17161_v43, 1  ;;  %v7636_v24 = vrot.slane %v7570_v60, 2  ;;  %v7637_v37 = vrot.slane %v7572_v22, 2  ;;  %v7645_v7 = vrot.slane %v17186_v42, 2  ;;  %v7455_v1 = vld [vmem:[#allocation4 + $0xc8] sm:$0xfe] }
 0x750   : > { %11429 = vmatpush3.bf16.msra.mxu0 %v11428_v28  ;;  %v7457_v49 = vld [vmem:[#allocation4 + $0xd8] sm:$0x1]  ;;  %v7456_v29 = vld [vmem:[#allocation4 + $0xd0] sm:$0x1]  ;;  %v7632_v58 = vsel %vm7084_vm2, %v7630_v2, %v7631_v57  ;;  %v7646_v48 = vrot.slane %v7577_v30, 2  ;;  %v7526_v28 = vrot.slane %v7454_v17, 1  ;;  %v7641_v43 = vsel %vm7084_vm2, %v7639_v61, %v7640_v41 }
 0x751   : > { %11431 = vmatprep.subr.bf16.mxu0 %v11430_v9  ;;  %v7516_v63 = vsel %vm6955_vm1, %v7514_v19, %v7515_v55  ;;  %v7574_v8 = vld [vmem:[#allocation4 + $0x80] sm:$0xfc]  ;;  %v7576_v38 = vld [vmem:[#allocation4 + $0x90] sm:$0x3]  ;;  %v7579_v25 = vld [vmem:[#allocation4 + $0xa8] sm:$0xfc]  ;;  %v7522_v34 = vsel %vm6955_vm1, %v7520_v21, %v7521_v10  ;;  %v7638_v18 = vsel %vm7084_vm2, %v7636_v24, %v7637_v37 }
 0x752   : > { %8707 = vmatmul.mubr.f32.gmra.mrb[32].mxu0 %v16770_v33  ;;  %8782 = vmatmul.mubr.f32.vlgmr.msra.gmra.mrb[164].mxu1 %v7504_v31  ;;  %v7524_v33 = vrot.slane %v7453_v62, 1  ;;  %v7581_v13 = vld [vmem:[#allocation4 + $0xb8] sm:$0x3]  ;;  %v7458_v9 = vld [vmem:[#allocation4 + $0xe0] sm:$0xfe]  ;;  %v7529_v47 = vrot.slane %v7455_v1, 1  ;;  %v7647_v0 = vsel %vm7084_vm2, %v7645_v7, %v7646_v48 }
 0x753   : > { %8786 = vmatprep.mubr.f32.mxu1 %v7513_v59  ;;  %8711 = vmatprep.mubr.f32.mxu0 %v12071_v15  ;;  %v7530_v31 = vrot.slane %v7457_v49, 1  ;;  %v7460_v27 = vld [vmem:[#allocation4 + $0xf0] sm:$0x1]  ;;  %v7527_v54 = vrot.slane %v7456_v29, 1  ;;  %v7642_v52 = vrot.slane %v7574_v8, 2  ;;  %v7643_v3 = vrot.slane %v7576_v38, 2 }
 0x754   : > { %11433 = vmatpush3.bf16.msra.mxu0 %v11432_v44  ;;  %v7525_v40 = vsel %vm6955_vm1, %v7523_v4, %v7524_v33  ;;  %v7578_v44 = vld [vmem:[#allocation4 + $0xa0] sm:$0xfc]  ;;  %v7459_v20 = vld [vmem:[#allocation4 + $0xe8] sm:$0xfe]  ;;  %v7461_v56 = vld [vmem:[#allocation4 + $0xf8] sm:$0x1] }
 0x755   : > { %11435 = vmatprep.subr.bf16.mxu0 %v11434_v51  ;;  %v7651_v11 = vrot.slane %v7579_v25, 2  ;;  %v7652_v36 = vrot.slane %v7581_v13, 2  ;;  %v7532_v23 = vrot.slane %v7458_v9, 1  ;;  %v7533_v19 = vrot.slane %v7460_v27, 1  ;;  %v7580_v55 = vld [vmem:[#allocation4 + $0xb0] sm:$0x3] }
 0x756   : > { %8712 = vmatmul.mubr.f32.gmra.mrb[34].mxu0 %v12071_v15  ;;  %8787 = vmatmul.mubr.f32.gmra.mrb[166].mxu1 %v7510_v53  ;;  %v7648_v50 = vrot.slane %v7578_v44, 2  ;;  %v7462_v2 = vld [vmem:[#allocation4 + $0x100] sm:$0xfe]  ;;  %v7531_v51 = vsel %vm6955_vm1, %v7529_v47, %v7530_v31  ;;  %v7535_v26 = vrot.slane %v7459_v20, 1  ;;  %v7536_v62 = vrot.slane %v7461_v56, 1 }
 0x757   : > { %8791 = vmatprep.mubr.f32.mxu1 %v7519_v32  ;;  %8886 = vmatprep.mubr.f32.mxu0 %v7635_v45  ;;  %v7583_v46 = vld [vmem:[#allocation4 + $0xc8] sm:$0xfc]  ;;  %v7585_v59 = vld [vmem:[#allocation4 + $0xd8] sm:$0x3]  ;;  %v7528_v16 = vsel %vm6955_vm1, %v7526_v28, %v7527_v54  ;;  %v7464_v53 = vld [vmem:[#allocation4 + $0x110] sm:$0x1]  ;;  %v7653_v17 = vsel %vm7084_vm2, %v7651_v11, %v7652_v36  ;;  %v7534_v10 = vsel %vm6955_vm1, %v7532_v23, %v7533_v19 }
 0x758   : > { %11437 = vmatpush3.bf16.msra.mxu0 %v11436_v12  ;;  %v7463_v5 = vld [vmem:[#allocation4 + $0x108] sm:$0xfe]  ;;  %v7465_v15 = vld [vmem:[#allocation4 + $0x118] sm:$0x1]  ;;  %v7644_v12 = vsel %vm7084_vm2, %v7642_v52, %v7643_v3  ;;  %v7649_v60 = vrot.slane %v7580_v55, 2  ;;  %v7538_v22 = vrot.slane %v7462_v2, 1  ;;  %v7537_v45 = vsel %vm6955_vm1, %v7535_v26, %v7536_v62 }
 0x759   : > { %v7582_v42 = vld [vmem:[#allocation4 + $0xc0] sm:$0xfc]  ;;  %v7584_v57 = vld [vmem:[#allocation4 + $0xd0] sm:$0x3]  ;;  %v7657_v4 = vrot.slane %v7583_v46, 2  ;;  %v7658_v33 = vrot.slane %v7585_v59, 2 }
 0x75a   : > { %8792 = vmatmul.mubr.f32.gmra.mrb[168].mxu1 %v7516_v63  ;;  %v7467_v61 = vld [vmem:[#allocation4 + $0x128] sm:$0xfe]  ;;  %v7469_v32 = vld [vmem:[#allocation4 + $0x138] sm:$0x1]  ;;  %v7541_v41 = vrot.slane %v7463_v5, 1  ;;  %v7542_v21 = vrot.slane %v7465_v15, 1  ;;  %v7650_v1 = vsel %vm7084_vm2, %v7648_v50, %v7649_v60 }
 0x75b   : > { %8887 = vmatmul.mubr.f32.vlgmr.msra.gmra.mrb[36].mxu0 %v7632_v58  ;;  %8796 = vmatprep.mubr.f32.mxu1 %v7525_v40  ;;  %v7539_v30 = vrot.slane %v7464_v53, 1  ;;  %v7654_v24 = vrot.slane %v7582_v42, 2  ;;  %v7655_v37 = vrot.slane %v7584_v57, 2  ;;  %v7587_v7 = vld [vmem:[#allocation4 + $0xe8] sm:$0xfc]  ;;  %v7547_v49 = vrot.slane %v7467_v61, 1 }
 0x75c   : > { %8891 = vmatprep.mubr.f32.mxu0 %v7641_v43  ;;  %v7589_v63 = vld [vmem:[#allocation4 + $0xf8] sm:$0x3]  ;;  %v7548_v29 = vrot.slane %v7469_v32, 1  ;;  %v7466_v58 = vld [vmem:[#allocation4 + $0x120] sm:$0xfe]  ;;  %v7543_v38 = vsel %vm6955_vm1, %v7541_v41, %v7542_v21  ;;  %v7659_v25 = vsel %vm7084_vm2, %v7657_v4, %v7658_v33  ;;  %v7663_v9 = vrot.slane %v7587_v7, 2 }
 0x75d   : > { %v7468_v48 = vld [vmem:[#allocation4 + $0x130] sm:$0x1]  ;;  %v7586_v28 = vld [vmem:[#allocation4 + $0xe0] sm:$0xfc]  ;;  %v7540_v13 = vsel %vm6955_vm1, %v7538_v22, %v7539_v30  ;;  %v7664_v40 = vrot.slane %v7589_v63, 2  ;;  %v7544_v43 = vrot.slane %v7466_v58, 1  ;;  %v7656_v31 = vsel %vm7084_vm2, %v7654_v24, %v7655_v37 }
 0x75e   : > { %8797 = vmatmul.mubr.f32.gmra.mrb[170].mxu1 %v7522_v34  ;;  %v7588_v8 = vld [vmem:[#allocation4 + $0xf0] sm:$0x3]  ;;  %v7545_v47 = vrot.slane %v7468_v48, 1  ;;  %v7549_v27 = vsel %vm6955_vm1, %v7547_v49, %v7548_v29  ;;  %v7660_v44 = vrot.slane %v7586_v28, 2  ;;  %v7593_v54 = vld [vmem:[#allocation4 + $0x118] sm:$0x3] }
 0x75f   : > { %8892 = vmatmul.mubr.f32.gmra.mrb[38].mxu0 %v7638_v18  ;;  %8801 = vmatprep.mubr.f32.mxu1 %v7531_v51  ;;  %v7661_v34 = vrot.slane %v7588_v8, 2  ;;  %v7591_v18 = vld [vmem:[#allocation4 + $0x108] sm:$0xfc]  ;;  %v7590_v52 = vld [vmem:[#allocation4 + $0x100] sm:$0xfc]  ;;  %v7665_v11 = vsel %vm7084_vm2, %v7663_v9, %v7664_v40  ;;  %v7670_v19 = vrot.slane %v7593_v54, 2 }
 0x760   : > { %8896 = vmatprep.mubr.f32.mxu0 %v7647_v0  ;;  %v7592_v20 = vld [vmem:[#allocation4 + $0x110] sm:$0x3]  ;;  %v7595_v56 = vld [vmem:[#allocation4 + $0x128] sm:$0xfc]  ;;  %v7597_v3 = vld [vmem:[#allocation4 + $0x138] sm:$0x3]  ;;  %v7546_v36 = vsel %vm6955_vm1, %v7544_v43, %v7545_v47 }
 0x761   : > { %v7669_v23 = vrot.slane %v7591_v18, 2  ;;  %v7662_v55 = vsel %vm7084_vm2, %v7660_v44, %v7661_v34  ;;  %v7666_v50 = vrot.slane %v7590_v52, 2  ;;  %v7667_v2 = vrot.slane %v7592_v20, 2  ;;  %v7594_v62 = vld [vmem:[#allocation4 + $0x120] sm:$0xfc] }
 0x762   : > { %8802 = vmatmul.mubr.f32.gmra.mrb[172].mxu1 %v7528_v16  ;;  %v7675_v51 = vrot.slane %v7595_v56, 2  ;;  %v7676_v26 = vrot.slane %v7597_v3, 2  ;;  %v7596_v46 = vld [vmem:[#allocation4 + $0x130] sm:$0x3]  ;;  %v7672_v16 = vrot.slane %v7594_v62, 2 }
 0x763   : > { %8897 = vmatmul.mubr.f32.gmra.mrb[40].mxu0 %v7644_v12  ;;  %8806 = vmatprep.mubr.f32.mxu1 %v7537_v45  ;;  %v7671_v59 = vsel %vm7084_vm2, %v7669_v23, %v7670_v19  ;;  %v7668_v0 = vsel %vm7084_vm2, %v7666_v50, %v7667_v2  ;;  %v7673_v5 = vrot.slane %v7596_v46, 2 }
 0x764   : > { %8901 = vmatprep.mubr.f32.mxu0 %v7653_v17  ;;  %v7677_v15 = vsel %vm7084_vm2, %v7675_v51, %v7676_v26 }
 0x765   : > { %v7674_v53 = vsel %vm7084_vm2, %v7672_v16, %v7673_v5 }
 0x766   : > { %8807 = vmatmul.mubr.f32.gmra.mrb[174].mxu1 %v7534_v10 }
 0x767   : > { %8902 = vmatmul.mubr.f32.gmra.mrb[42].mxu0 %v7650_v1  ;;  %8811 = vmatprep.mubr.f32.mxu1 %v7543_v38 }
 0x768   : > { %8906 = vmatprep.mubr.f32.mxu0 %v7659_v25 }
 0x76a   : > { %8812 = vmatmul.mubr.f32.gmra.mrb[176].mxu1 %v7540_v13 }
 0x76b   : > { %8907 = vmatmul.mubr.f32.gmra.mrb[44].mxu0 %v7656_v31  ;;  %8816 = vmatprep.mubr.f32.mxu1 %v7549_v27 }
 0x76c   : > { %8911 = vmatprep.mubr.f32.mxu0 %v7665_v11 }
 0x76e   : > { %8817 = vmatmul.mubr.f32.gmra.mrb[178].mxu1 %v7546_v36 }
 0x76f   : > { %8912 = vmatmul.mubr.f32.gmra.mrb[46].mxu0 %v7662_v55 }
 0x770   : > { %8916 = vmatprep.mubr.f32.mxu0 %v7671_v59 }
 0x773   : > { %8917 = vmatmul.mubr.f32.gmra.mrb[48].mxu0 %v7668_v0 }
 0x774   : > { %8921 = vmatprep.mubr.f32.mxu0 %v7677_v15 }
 0x777   : > { %8922 = vmatmul.mubr.f32.gmra.mrb[50].mxu0 %v7674_v53 }
 0x77f   : > { %v9782_v12 = vpop.f32.mrb[236].mxu0 }
 0x780   : > { %v9783_v60 = vpop.f32.mrb[237].mxu0 }
 0x781   : > { %v9784_v22 = vadd.f32 %v9783_v60, %v9782_v12 }
 0x783   : > { %v9838_v42 = vpop.f32.mrb[124].mxu1 }
 0x784   : > { %v9839_v57 = vpop.f32.mrb[125].mxu1 }
 0x785   : > { %v9840_v4 = vadd.f32 %v9839_v57, %v9838_v42 }
 0x787   : > { %v8174_v33 = vadd.f32 %v9840_v4, %v9784_v22  ;;  %v9785_v61 = vpop.f32.mrb[238].mxu0 }
 0x788   : > { %v9786_v32 = vpop.f32.mrb[239].mxu0 }
 0x789   : > { %v9787_v45 = vadd.f32 %v9786_v32, %v9785_v61 }
 0x78b   : > { %v9841_v41 = vpop.f32.mrb[126].mxu1 }
 0x78c   : > { %v9842_v21 = vpop.f32.mrb[127].mxu1 }
 0x78d   : > { %v9843_v30 = vadd.f32 %v9842_v21, %v9841_v41 }
 0x78f   : > { %v8179_v17 = vadd.f32 %v9843_v30, %v9787_v45 }
 0x7c0   : > { %v9788_v10 = vpop.f32.mrb[240].mxu0 }
 0x7c1   : > { %v9789_v24 = vpop.f32.mrb[241].mxu0 }
 0x7c2   : > { %v9790_v37 = vadd.f32 %v9789_v24, %v9788_v10 }
 0x7c4   : > { %v9844_v7 = vpop.f32.mrb[128].mxu1 }
 0x7c5   : > { %v9845_v63 = vpop.f32.mrb[129].mxu1 }
 0x7c6   : > { %v9846_v1 = vadd.f32 %v9845_v63, %v9844_v7 }
 0x7c7   : > { %v9791_v29 = vpop.f32.mrb[242].mxu0 }
 0x7c8   : > { %v8184_v49 = vadd.f32 %v9846_v1, %v9790_v37  ;;  %v9792_v58 = vpop.f32.mrb[243].mxu0 }
 0x7c9   : > { %v9793_v48 = vadd.f32 %v9792_v58, %v9791_v29 }
 0x7cb   : > { %v9847_v28 = vpop.f32.mrb[130].mxu1  ;;  %v9882_v8 = vpop.f32.mrb[244].mxu0 }
 0x7cc   : > { %v9848_v38 = vpop.f32.mrb[131].mxu1  ;;  %v9883_v25 = vpop.f32.mrb[245].mxu0 }
 0x7cd   : > { %v9849_v13 = vadd.f32 %v9848_v38, %v9847_v28  ;;  %v9884_v9 = vadd.f32 %v9883_v25, %v9882_v8 }
 0x7cf   : > { %v8189_v40 = vadd.f32 %v9849_v13, %v9793_v48  ;;  %v9938_v43 = vpop.f32.mrb[132].mxu1  ;;  %v8259_v47 = vadd.f32 %v9884_v9, %v16930_v35  ;;  %v9885_v31 = vpop.f32.mrb[246].mxu0 }
 0x7d0   : > { %v9939_v27 = vpop.f32.mrb[133].mxu1  ;;  %v9886_v34 = vpop.f32.mrb[247].mxu0 }
 0x7d1   : > { %v9940_v44 = vadd.f32 %v9939_v27, %v9938_v43  ;;  %v9887_v18 = vadd.f32 %v9886_v34, %v9885_v31 }
 0x7d3   : > { %v8364_v54 = vadd.f32 %v9940_v44, %v8259_v47  ;;  %v9941_v52 = vpop.f32.mrb[134].mxu1  ;;  %v8264_v20 = vadd.f32 %v9887_v18, %v16991_v6  ;;  %v9888_v56 = vpop.f32.mrb[248].mxu0 }
 0x7d4   : > { %v9942_v3 = vpop.f32.mrb[135].mxu1  ;;  %v9889_v36 = vpop.f32.mrb[249].mxu0 }
 0x7d5   : > { %v9943_v11 = vadd.f32 %v9942_v3, %v9941_v52  ;;  %v9890_v23 = vadd.f32 %v9889_v36, %v9888_v56 }
 0x7d7   : > { %v8369_v19 = vadd.f32 %v9943_v11, %v8264_v20  ;;  %v9944_v55 = vpop.f32.mrb[136].mxu1  ;;  %v8269_v50 = vadd.f32 %v9890_v23, %v17052_v39  ;;  %v9891_v2 = vpop.f32.mrb[250].mxu0 }
 0x7d8   : > { %v9945_v35 = vpop.f32.mrb[137].mxu1  ;;  %v9892_v26 = vpop.f32.mrb[251].mxu0 }
 0x7d9   : > { %v9946_v51 = vadd.f32 %v9945_v35, %v9944_v55  ;;  %v9893_v62 = vadd.f32 %v9892_v26, %v9891_v2 }
 0x7db   : > { %v8374_v46 = vadd.f32 %v9946_v51, %v8269_v50  ;;  %v9947_v59 = vpop.f32.mrb[138].mxu1  ;;  %v8274_v0 = vadd.f32 %v9893_v62, %v17128_v14  ;;  %v9894_v16 = vpop.f32.mrb[252].mxu0 }
 0x7dc   : > { %v9948_v6 = vpop.f32.mrb[139].mxu1  ;;  %v9895_v15 = vpop.f32.mrb[253].mxu0 }
 0x7dd   : > { %v9949_v5 = vadd.f32 %v9948_v6, %v9947_v59  ;;  %v9896_v53 = vadd.f32 %v9895_v15, %v9894_v16 }
 0x7df   : > { %v8379_v12 = vadd.f32 %v9949_v5, %v8274_v0  ;;  %v9950_v60 = vpop.f32.mrb[140].mxu1  ;;  %v8279_v22 = vadd.f32 %v9896_v53, %v8174_v33  ;;  %v9897_v42 = vpop.f32.mrb[254].mxu0 }
 0x7e0   : > { %v9951_v57 = vpop.f32.mrb[141].mxu1  ;;  %v9898_v4 = vpop.f32.mrb[255].mxu0 }
 0x7e1   : > { %v9952_v39 = vadd.f32 %v9951_v57, %v9950_v60  ;;  %v9899_v61 = vadd.f32 %v9898_v4, %v9897_v42 }
 0x7e3   : > { %v8384_v32 = vadd.f32 %v9952_v39, %v8279_v22  ;;  %v9953_v45 = vpop.f32.mrb[142].mxu1  ;;  %v8284_v41 = vadd.f32 %v9899_v61, %v8179_v17  ;;  %v9900_v21 = vpop.f32.mrb[0].mxu0 }
 0x7e4   : > { %v9954_v30 = vpop.f32.mrb[143].mxu1  ;;  %v9901_v14 = vpop.f32.mrb[1].mxu0 }
 0x7e5   : > { %v9955_v10 = vadd.f32 %v9954_v30, %v9953_v45  ;;  %v9902_v24 = vadd.f32 %v9901_v14, %v9900_v21 }
 0x7e7   : > { %v8389_v37 = vadd.f32 %v9955_v10, %v8284_v41  ;;  %v9956_v7 = vpop.f32.mrb[144].mxu1  ;;  %v8289_v63 = vadd.f32 %v9902_v24, %v8184_v49  ;;  %v9903_v1 = vpop.f32.mrb[2].mxu0 }
 0x7e8   : > { %v9957_v29 = vpop.f32.mrb[145].mxu1  ;;  %v9904_v33 = vpop.f32.mrb[3].mxu0 }
 0x7e9   : > { %v9958_v58 = vadd.f32 %v9957_v29, %v9956_v7  ;;  %v9905_v48 = vadd.f32 %v9904_v33, %v9903_v1 }
 0x7eb   : > { %v8394_v28 = vadd.f32 %v9958_v58, %v8289_v63  ;;  %v8294_v8 = vadd.f32 %v9905_v48, %v8189_v40 }
 0x7ec   : > { %v9994_v38 = vpop.f32.mrb[4].mxu0 }
 0x7ed   : > { %v9995_v25 = vpop.f32.mrb[5].mxu0 }
 0x7ee   : > { %v9996_v13 = vadd.f32 %v9995_v25, %v9994_v38 }
 0x7f0   : > { %v8469_v9 = vadd.f32 %v9996_v13, %v8364_v54  ;;  %v9997_v17 = vpop.f32.mrb[6].mxu0 }
 0x7f1   : > { %v9998_v43 = vpop.f32.mrb[7].mxu0 }
 0x7f2   : > { %v9999_v47 = vadd.f32 %v9998_v43, %v9997_v17 }
 0x7f4   : > { %v8474_v31 = vadd.f32 %v9999_v47, %v8369_v19  ;;  %v10000_v27 = vpop.f32.mrb[8].mxu0 }
 0x7f5   : > { %v10001_v44 = vpop.f32.mrb[9].mxu0 }
 0x7f6   : > { %v10002_v34 = vadd.f32 %v10001_v44, %v10000_v27 }
 0x7f8   : > { %v8479_v18 = vadd.f32 %v10002_v34, %v8374_v46  ;;  %v10003_v49 = vpop.f32.mrb[10].mxu0 }
 0x7f9   : > { %v10004_v52 = vpop.f32.mrb[11].mxu0 }
 0x7fa   : > { %v10005_v20 = vadd.f32 %v10004_v52, %v10003_v49 }
 0x7fc   : > { %v8484_v56 = vadd.f32 %v10005_v20, %v8379_v12  ;;  %v10006_v3 = vpop.f32.mrb[12].mxu0 }
 0x7fd   : > { %v10007_v11 = vpop.f32.mrb[13].mxu0 }
 0x7fe   : > { %v10008_v36 = vadd.f32 %v10007_v11, %v10006_v3 }
 0x800   : > { %v8489_v40 = vadd.f32 %v10008_v36, %v8384_v32  ;;  %v9959_v23 = vpop.f32.mrb[146].mxu1  ;;  %v10009_v55 = vpop.f32.mrb[14].mxu0 }
 0x801   : > { %v9960_v50 = vpop.f32.mrb[147].mxu1  ;;  %v10010_v54 = vpop.f32.mrb[15].mxu0 }
 0x802   : > { %v9961_v2 = vadd.f32 %v9960_v50, %v9959_v23  ;;  %v10011_v35 = vadd.f32 %v10010_v54, %v10009_v55 }
 0x804   : > { %v8399_v51 = vadd.f32 %v9961_v2, %v8294_v8  ;;  %v8494_v19 = vadd.f32 %v10011_v35, %v8389_v37  ;;  %v10012_v26 = vpop.f32.mrb[16].mxu0  ;;  %v10050_v62 = vpop.f32.mrb[148].mxu1 }
 0x805   : > { %v10013_v59 = vpop.f32.mrb[17].mxu0  ;;  %v10051_v46 = vpop.f32.mrb[149].mxu1 }
 0x806   : > { %v10014_v0 = vadd.f32 %v10013_v59, %v10012_v26  ;;  %v10052_v16 = vadd.f32 %v10051_v46, %v10050_v62 }
 0x808   : > { %v8499_v6 = vadd.f32 %v10014_v0, %v8394_v28  ;;  %v8574_v5 = vadd.f32 %v10052_v16, %v8469_v9  ;;  %v10015_v15 = vpop.f32.mrb[18].mxu0  ;;  %v10053_v53 = vpop.f32.mrb[150].mxu1 }
 0x809   : > { %v10016_v12 = vpop.f32.mrb[19].mxu0  ;;  %v10054_v60 = vpop.f32.mrb[151].mxu1 }
 0x80a   : > { %v10017_v22 = vadd.f32 %v10016_v12, %v10015_v15  ;;  %v10055_v42 = vadd.f32 %v10054_v60, %v10053_v53 }
 0x80c   : > { %v8504_v57 = vadd.f32 %v10017_v22, %v8399_v51  ;;  %v8579_v39 = vadd.f32 %v10055_v42, %v8474_v31  ;;  %v10056_v4 = vpop.f32.mrb[152].mxu1 }
 0x80d   : > { %v10106_v61 = vpop.f32.mrb[20].mxu0  ;;  %v10057_v32 = vpop.f32.mrb[153].mxu1 }
 0x80e   : > { %v10058_v45 = vadd.f32 %v10057_v32, %v10056_v4  ;;  %v10107_v41 = vpop.f32.mrb[21].mxu0 }
 0x80f   : > { %v10108_v21 = vadd.f32 %v10107_v41, %v10106_v61 }
 0x810   : > { %v8584_v30 = vadd.f32 %v10058_v45, %v8479_v18  ;;  %v10059_v10 = vpop.f32.mrb[154].mxu1 }
 0x811   : > { %v8679_v14 = vadd.f32 %v10108_v21, %v8574_v5  ;;  %v10109_v24 = vpop.f32.mrb[22].mxu0  ;;  %v10060_v37 = vpop.f32.mrb[155].mxu1 }
 0x812   : > { %v10061_v7 = vadd.f32 %v10060_v37, %v10059_v10  ;;  %v10110_v63 = vpop.f32.mrb[23].mxu0  ;;  %v17228_v10 = vld [vmem:[%s17327_s9] ss:$0 sm:$0xff] }
 0x813   : > { %v10111_v1 = vadd.f32 %v10110_v63, %v10109_v24  ;;  %v17234_v63 = vld [vmem:[%s17328_s10] ss:$0 sm:$0xff] }
 0x814   : > { %v8589_v29 = vadd.f32 %v10061_v7, %v8484_v56  ;;  %v10062_v58 = vpop.f32.mrb[156].mxu1 }
 0x815   : > { %v8684_v33 = vadd.f32 %v10111_v1, %v8579_v39  ;;  %v10112_v48 = vpop.f32.mrb[24].mxu0  ;;  %v10063_v28 = vpop.f32.mrb[157].mxu1 }
 0x816   : > { %v10064_v8 = vadd.f32 %v10063_v28, %v10062_v58  ;;  %v10113_v38 = vpop.f32.mrb[25].mxu0 }
 0x817   : > { %v10114_v25 = vadd.f32 %v10113_v38, %v10112_v48 }
 0x818   : > { %v8594_v13 = vadd.f32 %v10064_v8, %v8489_v40  ;;  %v10065_v9 = vpop.f32.mrb[158].mxu1 }
 0x819   : > { %v8689_v17 = vadd.f32 %v10114_v25, %v8584_v30  ;;  %v10115_v43 = vpop.f32.mrb[26].mxu0  ;;  %v10066_v47 = vpop.f32.mrb[159].mxu1 }
 0x81a   : > { %v10067_v31 = vadd.f32 %v10066_v47, %v10065_v9  ;;  %v10116_v27 = vpop.f32.mrb[27].mxu0 }
 0x81b   : > { %v10117_v44 = vadd.f32 %v10116_v27, %v10115_v43 }
 0x81c   : > { %v8599_v34 = vadd.f32 %v10067_v31, %v8494_v19  ;;  %v10068_v18 = vpop.f32.mrb[160].mxu1 }
 0x81d   : > { %v8694_v49 = vadd.f32 %v10117_v44, %v8589_v29  ;;  %v10118_v52 = vpop.f32.mrb[28].mxu0  ;;  %v10069_v20 = vpop.f32.mrb[161].mxu1 }
 0x81e   : > { %v10070_v56 = vadd.f32 %v10069_v20, %v10068_v18  ;;  %v10119_v3 = vpop.f32.mrb[29].mxu0 }
 0x81f   : > { %v10120_v11 = vadd.f32 %v10119_v3, %v10118_v52 }
 0x820   : > { %v8604_v36 = vadd.f32 %v10070_v56, %v8499_v6  ;;  %v10071_v23 = vpop.f32.mrb[162].mxu1 }
 0x821   : > { %v8699_v55 = vadd.f32 %v10120_v11, %v8594_v13  ;;  %v10121_v50 = vpop.f32.mrb[30].mxu0  ;;  %v10072_v40 = vpop.f32.mrb[163].mxu1 }
 0x822   : > { %v10073_v54 = vadd.f32 %v10072_v40, %v10071_v23  ;;  %v10122_v2 = vpop.f32.mrb[31].mxu0 }
 0x823   : > { %v10123_v35 = vadd.f32 %v10122_v2, %v10121_v50 }
 0x824   : > { %v8609_v51 = vadd.f32 %v10073_v54, %v8504_v57  ;;  %v12073_v54 = vld [vmem:[#allocation2 + $0x21] sm:$0xff] }
 0x825   : > { %v8704_v26 = vadd.f32 %v10123_v35, %v8599_v34  ;;  %v10124_v62 = vpop.f32.mrb[32].mxu0  ;;  %v10162_v59 = vpop.f32.mrb[164].mxu1  ;;  %v12072_v34 = vld [vmem:[#allocation2 + $0x11] sm:$0xff] }
 0x826   : > { %v10125_v19 = vpop.f32.mrb[33].mxu0  ;;  %v10163_v46 = vpop.f32.mrb[165].mxu1 }
 0x827   : > { %v10126_v0 = vadd.f32 %v10125_v19, %v10124_v62  ;;  %v10164_v16 = vadd.f32 %v10163_v46, %v10162_v59 }
 0x829   : > { %v17221_v5 = vadd.f32 %v10126_v0, %v8604_v36  ;;  %v8784_v15 = vadd.f32 %v10164_v16, %v8679_v14  ;;  %v10127_v53 = vpop.f32.mrb[34].mxu0  ;;  %v10165_v6 = vpop.f32.mrb[166].mxu1 }
 0x82a   : > { %v10128_v12 = vpop.f32.mrb[35].mxu0  ;;  %v10166_v60 = vpop.f32.mrb[167].mxu1 }
 0x82b   : > { %v10129_v22 = vadd.f32 %v10128_v12, %v10127_v53  ;;  %v10167_v42 = vadd.f32 %v10166_v60, %v10165_v6 }
 0x82d   : > { %v17223_v39 = vadd.f32 %v10129_v22, %v8609_v51  ;;  %v8789_v57 = vadd.f32 %v10167_v42, %v8684_v33  ;;  %v10168_v4 = vpop.f32.mrb[168].mxu1 }
 0x82e   : > { %v10218_v61 = vpop.f32.mrb[36].mxu0  ;;  %v10169_v32 = vpop.f32.mrb[169].mxu1 }
 0x82f   : > { %v10170_v45 = vadd.f32 %v10169_v32, %v10168_v4  ;;  %v10219_v41 = vpop.f32.mrb[37].mxu0 }
 0x830   : > { %v10220_v21 = vadd.f32 %v10219_v41, %v10218_v61 }
 0x831   : > { %v8794_v30 = vadd.f32 %v10170_v45, %v8689_v17  ;;  %v10171_v14 = vpop.f32.mrb[170].mxu1 }
 0x832   : > { %v8889_v24 = vadd.f32 %v10220_v21, %v8784_v15  ;;  %v10221_v37 = vpop.f32.mrb[38].mxu0  ;;  %v10172_v7 = vpop.f32.mrb[171].mxu1 }
 0x833   : > { %v10173_v1 = vadd.f32 %v10172_v7, %v10171_v14  ;;  %v10222_v29 = vpop.f32.mrb[39].mxu0 }
 0x834   : > { %v8934_v58 = vmul.f32 %v17228_v10, %v8889_v24  ;;  %v10223_v33 = vadd.f32 %v10222_v29, %v10221_v37 }
 0x835   : > { %v8799_v48 = vadd.f32 %v10173_v1, %v8694_v49  ;;  %v10174_v28 = vpop.f32.mrb[172].mxu1 }
 0x836   : > { %v8949_v8 = vadd.f32 %v17234_v63, %v8934_v58  ;;  %v8894_v38 = vadd.f32 %v10223_v33, %v8789_v57  ;;  %v10224_v25 = vpop.f32.mrb[40].mxu0  ;;  %v10175_v13 = vpop.f32.mrb[173].mxu1  ;;  %v12076_v33 = vld [vmem:[#allocation2 + $0x51] sm:$0xff] }
 0x837   : > { %v10176_v9 = vadd.f32 %v10175_v13, %v10174_v28  ;;  %v10225_v17 = vpop.f32.mrb[41].mxu0 }
 0x838   : > { %v8957_v43 = vmax.f32 %v8949_v8, 0.0  ;;  %v8935_v47 = vmul.f32 %v17228_v10, %v8894_v38  ;;  %v10226_v31 = vadd.f32 %v10225_v17, %v10224_v25  ;;  %v12077_v17 = vld [vmem:[#allocation2 + $0x61] sm:$0xff] }
 0x839   : > { %v8804_v27 = vadd.f32 %v10176_v9, %v8699_v55  ;;  %v10177_v44 = vpop.f32.mrb[174].mxu1 }
 0x83a   : > { %v8965_v18 = vadd.f32 %v12072_v34, %v8957_v43  ;;  %v8950_v49 = vadd.f32 %v17234_v63, %v8935_v47  ;;  %v8899_v52 = vadd.f32 %v10226_v31, %v8794_v30  ;;  %v10227_v20 = vpop.f32.mrb[42].mxu0  ;;  %v10178_v56 = vpop.f32.mrb[175].mxu1  ;;  %v12075_v30 = vld [vmem:[#allocation2 + $0x41] sm:$0xff]  ;;  %v12078_v34 = vld [vmem:[#allocation2 + $0x71] sm:$0xff] }
 0x83b   : > { %v10179_v3 = vadd.f32 %v10178_v56, %v10177_v44  ;;  %v10228_v11 = vpop.f32.mrb[43].mxu0 }
 0x83c   : > { %8973 = vst [vmem:[%s17242_s29] sm:$0xff] %v8965_v18  ;;  %v8958_v36 = vmax.f32 %v8950_v49, 0.0  ;;  %v8936_v23 = vmul.f32 %v17228_v10, %v8899_v52  ;;  %v10229_v50 = vadd.f32 %v10228_v11, %v10227_v20 }
 0x83d   : > { %v8809_v55 = vadd.f32 %v10179_v3, %v8704_v26  ;;  %v10180_v40 = vpop.f32.mrb[176].mxu1  ;;  %v12074_v26 = vld [vmem:[#allocation2 + $0x31] sm:$0xff] }
 0x83e   : > { %v8966_v2 = vadd.f32 %v12073_v54, %v8958_v36  ;;  %v8951_v35 = vadd.f32 %v17234_v63, %v8936_v23  ;;  %v8904_v51 = vadd.f32 %v10229_v50, %v8799_v48  ;;  %v10230_v62 = vpop.f32.mrb[44].mxu0  ;;  %v10181_v59 = vpop.f32.mrb[177].mxu1 }
 0x83f   : > { %v10182_v19 = vadd.f32 %v10181_v59, %v10180_v40  ;;  %v10231_v46 = vpop.f32.mrb[45].mxu0 }
 0x840   : > { %8974 = vst [vmem:[%s17242_s29 + $0x8] sm:$0xff] %v8966_v2  ;;  %v8959_v0 = vmax.f32 %v8951_v35, 0.0  ;;  %v8937_v16 = vmul.f32 %v17228_v10, %v8904_v51  ;;  %v10232_v15 = vadd.f32 %v10231_v46, %v10230_v62 }
 0x841   : > { %v8814_v53 = vadd.f32 %v10182_v19, %v17221_v5  ;;  %v10183_v6 = vpop.f32.mrb[178].mxu1 }
 0x842   : > { %v8967_v12 = vadd.f32 %v12074_v26, %v8959_v0  ;;  %v8952_v60 = vadd.f32 %v17234_v63, %v8937_v16  ;;  %v8909_v22 = vadd.f32 %v10232_v15, %v8804_v27  ;;  %v10233_v42 = vpop.f32.mrb[46].mxu0  ;;  %v10184_v57 = vpop.f32.mrb[179].mxu1 }
 0x843   : > { %v10185_v4 = vadd.f32 %v10184_v57, %v10183_v6  ;;  %v10234_v61 = vpop.f32.mrb[47].mxu0 }
 0x844   : > { %8975 = vst [vmem:[%s17242_s29 + $0x10] sm:$0xff] %v8967_v12  ;;  %v8960_v32 = vmax.f32 %v8952_v60, 0.0  ;;  %v8938_v45 = vmul.f32 %v17228_v10, %v8909_v22  ;;  %v10235_v41 = vadd.f32 %v10234_v61, %v10233_v42 }
 0x845   : > { %v8819_v21 = vadd.f32 %v10185_v4, %v17223_v39 }
 0x846   : > { %v8968_v5 = vadd.f32 %v12075_v30, %v8960_v32  ;;  %v8953_v14 = vadd.f32 %v17234_v63, %v8938_v45  ;;  %v8914_v24 = vadd.f32 %v10235_v41, %v8809_v55  ;;  %v10236_v37 = vpop.f32.mrb[48].mxu0 }
 0x847   : > { %v10237_v7 = vpop.f32.mrb[49].mxu0 }
 0x848   : > { %8976 = vst [vmem:[%s17242_s29 + $0x18] sm:$0xff] %v8968_v5  ;;  %v8961_v1 = vmax.f32 %v8953_v14, 0.0  ;;  %v8939_v29 = vmul.f32 %v17228_v10, %v8914_v24  ;;  %v10238_v58 = vadd.f32 %v10237_v7, %v10236_v37 }
 0x84a   : > { %v8969_v48 = vadd.f32 %v12076_v33, %v8961_v1  ;;  %v8954_v28 = vadd.f32 %v17234_v63, %v8939_v29  ;;  %v8919_v8 = vadd.f32 %v10238_v58, %v8814_v53  ;;  %v10239_v39 = vpop.f32.mrb[50].mxu0 }
 0x84b   : > { %v10240_v38 = vpop.f32.mrb[51].mxu0 }
 0x84c   : > { %8977 = vst [vmem:[%s17242_s29 + $0x20] sm:$0xff] %v8969_v48  ;;  %v8962_v25 = vmax.f32 %v8954_v28, 0.0  ;;  %v8940_v13 = vmul.f32 %v17228_v10, %v8919_v8  ;;  %v10241_v9 = vadd.f32 %v10240_v38, %v10239_v39 }
 0x84e   : > { %v8970_v43 = vadd.f32 %v12077_v17, %v8962_v25  ;;  %v8955_v47 = vadd.f32 %v17234_v63, %v8940_v13  ;;  %v8924_v31 = vadd.f32 %v10241_v9, %v8819_v21 }
 0x850   : > { %8978 = vst [vmem:[%s17242_s29 + $0x28] sm:$0xff] %v8970_v43  ;;  %v8963_v27 = vmax.f32 %v8955_v47, 0.0  ;;  %v8941_v44 = vmul.f32 %v17228_v10, %v8924_v31  ;;  %v12079_v10 = vld [vmem:[#allocation2 + $0x81] sm:$0xff] }
 0x852   : > { %v8971_v18 = vadd.f32 %v12078_v34, %v8963_v27  ;;  %v8956_v49 = vadd.f32 %v17234_v63, %v8941_v44 }
 0x854   : > { %8979 = vst [vmem:[%s17242_s29 + $0x30] sm:$0xff] %v8971_v18  ;;  %v8964_v52 = vmax.f32 %v8956_v49, 0.0 }
 0x856   : > { %v8972_v20 = vadd.f32 %v12079_v10, %v8964_v52 }
 0x858   : > { %8980 = vst [vmem:[%s17242_s29 + $0x38] sm:$0xff] %v8972_v20 }
 0x859   : > { %12093 = shalt.err (!%p12090_p3)
}
 0x85a   : > { %s12094_s16 = scalar_lea.hbm %s17270_s23, 1024  ;;  %s12098_s29 = scalar_lea.hbm %s17329_s11, 2048 }
 0x85b   : > { %p12095_p4 = scmp.ne.s32.totalorder %s17270_s23, %s12094_s16  ;;  %p12099_p9 = scmp.lt.u32.totalorder %s17270_s23, %s17329_s11 }
 0x85c   : > { %p12100_p10 = scmp.lt.u32.totalorder %s12098_s29, %s12094_s16  ;;  %p12102_p12 = scmp.lt.u32.totalorder %s12094_s16, %s17270_s23 }
 0x85d   : > { %p12096_p7 = pnand %p12095_p4, %p12246_p5 }
 0x85e   : > { %p12101_p11 = por %p12100_p10, %p12099_p9 }
 0x85f   : > { %p12097_p8 = pneg %p12096_p7 }
 0x860   : > { %p12103_p13 = por %p12102_p12, %p12101_p11 }
 0x862   : > { %p12104_p0 = pnand %p12103_p13, %p12097_p8 }
 0x864   : > { %12107 = shalt.err (!%p12104_p0)
}
 0x865   : > { %s12146_s13 = smov 128   ;;  %s12147_s21 = smov 8  }
 0x866   : > { %11504 = dma.vmem_to_hbm [thread:$0]  (%p12246_p5), %s17272_s12, 1024, %s17270_s23, %s17277_s15, %s12146_s13, %s12146_s13, %s12147_s21  }
 0x867 PF: > { %p11510_p1 = scmp.ge.s32.totalorder %s12142_s20, 2  ;;  %s9010_s14 = sand.u32 1, %s12130_s17  }
 0x868   : > { %s9011_s24 = scalar_lea.sflag [#allocation6], %s9010_s14 }
 0x869   : > { %p11507_p2 = pnand %p11510_p1, %p12250_p6 }
 0x86b   : > { %12125 = dma.done.wait (!%p11507_p2), %s9011_s24, 1024  }
 0x86c   : > { %12127 = vsyncadd (!%p11507_p2), %s9011_s24, 4294966272  ;;  %s17910_s20 = sld [smem:[#allocation9_spill]]  ;;  %s17911_s26 = sld [smem:[#allocation8_spill]] }
 0x86d   : > { %s17912_s19 = sld [smem:[#allocation10_spill]]  ;;  %s17913_s17 = smov %s12134_s18 }
 0x872   : > { %p21_p3 = scmp.ge.s32.totalorder %s17910_s20, 4   ;;  %s17914_s18 = smov %s17911_s26 }
 0x874   :  { %23 = sbr.rel (!%p21_p3) target bundleno = 3 (0x3), region = 108 }
 0x87b   :  { %9016 = vsyncpa [#allocation6], 1 }
 0x87c   :  { %9018 = vsyncpa [#allocation6 + $0x1], 1 }

</bundles_post_ra>
